<compile_context>
chip_gen: v7x
topology: tpu7x:2x2x1
jax: 0.10.0
libtpu: 0.0.40
codegen_flags: <defaults>
</compile_context>

<pallas_src>
import functools
import math

import jax
import jax.numpy as jnp
from jax.experimental import pallas as pl
from jax.experimental.pallas import tpu as pltpu


# ----------------------------------------------------------------------------
# In-kernel helpers (traced inside the Pallas kernel, not separate launches)
# ----------------------------------------------------------------------------
def _mm(a, b):
    """Matmul with bf16 operands and f32 accumulation. `b` (weights) is already
    bf16 (pre-cast on host); only the activation is cast here."""
    return jnp.dot(a.astype(jnp.bfloat16), b, preferred_element_type=jnp.float32)


def _layernorm(x, g, b):
    mu = jnp.mean(x, axis=-1, keepdims=True)
    var = jnp.mean((x - mu) ** 2, axis=-1, keepdims=True)
    return (x - mu) * jax.lax.rsqrt(var + 1e-5) * g + b


def _mha_heads(q, k, v, nhead):
    """Per-head softmax attention on projected q/k/v for ONE batch element.
    Returns the heads lane-concatenated into a single [Lq, D] f32 buffer so the
    caller can do ONE K=D output projection (instead of nhead K=dh ones)."""
    Lq, D = q.shape
    dh = D // nhead
    scale = 1.0 / math.sqrt(dh)
    # Hoist casts out of the per-head loop (JAX does not CSE them).
    qb = q.astype(jnp.bfloat16)
    kb = k.astype(jnp.bfloat16)
    vb = v.astype(jnp.bfloat16)
    outs = []
    for h in range(nhead):                       # static unroll, nhead is small
        sl = slice(h * dh, (h + 1) * dh)
        s = jax.lax.dot_general(
            qb[:, sl], kb[:, sl], (((1,), (1,)), ((), ())),
            preferred_element_type=jnp.float32) * scale
        m = jnp.max(s, axis=-1, keepdims=True)
        p = jnp.exp(s - m)
        p = p * pl.reciprocal(jnp.sum(p, axis=-1, keepdims=True), approx=True)
        outs.append(jnp.dot(p.astype(jnp.bfloat16), vb[:, sl],
                            preferred_element_type=jnp.float32))
    return jnp.concatenate(outs, axis=-1)        # [Lq, D]


# ----------------------------------------------------------------------------
# The single fused Pallas kernel: stem + encoder + decoder + heads
# ----------------------------------------------------------------------------
def _detr_kernel(patches_ref, pos_ref, qpos_ref,
                 stem_w_ref, stem_b_ref, proj_w_ref, proj_b_ref,
                 e_wattn_ref, e_battn_ref, e_w1_ref, e_b1_ref,
                 e_w2_ref, e_b2_ref, e_ln_ref,
                 d_wsa_ref, d_bsa_ref, d_wca_ref, d_bca_ref,
                 d_w1_ref, d_b1_ref, d_w2_ref, d_b2_ref, d_ln_ref,
                 cls_w_ref, cls_b_ref, bw1_ref, bb1_ref, bw2_ref, bb2_ref,
                 bw3_ref, bb3_ref,
                 o_ref, *, B, L, Q, D, nhead, nc):
    # ------------------ conv stem + 1x1 input_proj (batch folded into M) -----
    feat = jnp.maximum(_mm(patches_ref[...], stem_w_ref[...]) + stem_b_ref[...],
                       0.0)
    src = _mm(feat, proj_w_ref[...]) + proj_b_ref[...]           # [B*L, D] f32

    pos = pos_ref[...]                                           # [L, D]
    qpos = qpos_ref[...]                                         # [Q, D]

    # ------------------ encoder layer (post-norm) -----------------------------
    e_wattn = e_wattn_ref[...]                                   # [D,4D] bf16
    e_battn = e_battn_ref[...]                                   # [1,4D] f32
    e_ln = e_ln_ref[...]                                         # [4, D] f32

    # One fused QKV projection over all B*L rows; the (batch-invariant)
    # positional contribution to q/k is computed once and added afterwards:
    # (src+pos)@wq + bq == src@wq + pos@wq + bq.
    qkv = _mm(src, e_wattn[:, :3 * D]) + e_battn[:, :3 * D]      # [B*L, 3D]
    pos_qk = _mm(pos, e_wattn[:, :2 * D])                        # [L, 2D]

    o_parts = []
    for b in range(B):                                           # static unroll
        rows = slice(b * L, (b + 1) * L)
        qb = qkv[rows, :D] + pos_qk[:, :D]
        kb = qkv[rows, D:2 * D] + pos_qk[:, D:]
        vb = qkv[rows, 2 * D:3 * D]
        o_parts.append(_mha_heads(qb, kb, vb, nhead))
    o_flat = jnp.concatenate(o_parts, axis=0)                    # [B*L, D]
    attn = _mm(o_flat, e_wattn[:, 3 * D:]) + e_battn[:, 3 * D:]  # single K=D proj

    x = _layernorm(src + attn, e_ln[0:1], e_ln[1:2])
    h = jnp.maximum(_mm(x, e_w1_ref[...]) + e_b1_ref[...], 0.0)
    ff = _mm(h, e_w2_ref[...]) + e_b2_ref[...]
    mem = _layernorm(x + ff, e_ln[2:3], e_ln[3:4])               # [B*L, D]

    # ------------------ decoder layer + final decoder norm --------------------
    d_wsa = d_wsa_ref[...]
    d_bsa = d_bsa_ref[...]
    d_wca = d_wca_ref[...]
    d_bca = d_bca_ref[...]
    d_ln = d_ln_ref[...]                                         # [8, D]

    tgt = jnp.zeros((B * Q, D), jnp.float32)                     # DETR: tgt = 0
    qpos_rep = jnp.concatenate([qpos] * B, axis=0)               # [B*Q, D]
    pos_rep = jnp.concatenate([pos] * B, axis=0)                 # [B*L, D]

    # self attention: q = k = tgt + query_pos, v = tgt  (batch folded into M)
    qk_sa = _mm(tgt + qpos_rep, d_wsa[:, :2 * D]) + d_bsa[:, :2 * D]
    v_sa = _mm(tgt, d_wsa[:, 2 * D:3 * D]) + d_bsa[:, 2 * D:3 * D]
    o_parts = []
    for b in range(B):
        rows = slice(b * Q, (b + 1) * Q)
        o_parts.append(_mha_heads(qk_sa[rows, :D], qk_sa[rows, D:],
                                  v_sa[rows], nhead))
    o_flat = jnp.concatenate(o_parts, axis=0)
    sa = _mm(o_flat, d_wsa[:, 3 * D:]) + d_bsa[:, 3 * D:]
    x = _layernorm(tgt + sa, d_ln[0:1], d_ln[1:2])               # [B*Q, D]

    # cross attention: q = x + query_pos, k = memory + pos, v = memory
    qc = _mm(x + qpos_rep, d_wca[:, :D]) + d_bca[:, :D]          # [B*Q, D]
    kc = _mm(mem + pos_rep, d_wca[:, D:2 * D]) + d_bca[:, D:2 * D]
    vc = _mm(mem, d_wca[:, 2 * D:3 * D]) + d_bca[:, 2 * D:3 * D]
    o_parts = []
    for b in range(B):
        qrows = slice(b * Q, (b + 1) * Q)
        krows = slice(b * L, (b + 1) * L)
        o_parts.append(_mha_heads(qc[qrows], kc[krows], vc[krows], nhead))
    o_flat = jnp.concatenate(o_parts, axis=0)
    ca = _mm(o_flat, d_wca[:, 3 * D:]) + d_bca[:, 3 * D:]
    x = _layernorm(x + ca, d_ln[2:3], d_ln[3:4])

    # FFN + final decoder norm
    h = jnp.maximum(_mm(x, d_w1_ref[...]) + d_b1_ref[...], 0.0)
    ff = _mm(h, d_w2_ref[...]) + d_b2_ref[...]
    x = _layernorm(x + ff, d_ln[4:5], d_ln[5:6])
    hs = _layernorm(x, d_ln[6:7], d_ln[7:8])                     # [B*Q, D]

    # ------------------ heads: lane-dense 128-wide slab ------------------------
    # logits columns >= nc are exactly zero (zero-padded bf16 weight columns),
    # so a single select on the boxes + one add assembles the slab.
    logits = _mm(hs, cls_w_ref[...]) + cls_b_ref[...]            # [B*Q, W]
    hb = jnp.maximum(_mm(hs, bw1_ref[...]) + bb1_ref[...], 0.0)
    hb = jnp.maximum(_mm(hb, bw2_ref[...]) + bb2_ref[...], 0.0)
    boxes = jax.nn.sigmoid(_mm(hb, bw3_ref[...]) + bb3_ref[...])  # [B*Q, W]
    M, W = logits.shape
    col = jax.lax.broadcasted_iota(jnp.int32, (M, W), 1)
    box_mask = jnp.logical_and(col >= nc, col < nc + 4)
    o_ref[...] = logits + jnp.where(box_mask, boxes, 0.0)


# ----------------------------------------------------------------------------
# pallas_call wrapper (single invocation, whole arrays resident in VMEM)
# ----------------------------------------------------------------------------
def fused_detr(patches, pos, params, cfg, *, B, L):
    D, Q, nhead = cfg["d_model"], cfg["num_queries"], cfg["nhead"]
    nc = cfg["num_classes"] + 1
    W = params["heads"]["cls_w"].shape[1]
    kernel = functools.partial(_detr_kernel, B=B, L=L, Q=Q, D=D,
                               nhead=nhead, nc=nc)
    # No grid: one kernel invocation, all (tiny) operands live as full blocks
    # in VMEM; no per-step overhead, no intermediate HBM round-trips.
    return pl.pallas_call(
        kernel,
        out_shape=jax.ShapeDtypeStruct((B * Q, W), jnp.float32),
    )(patches, pos, params["query_embed"],
      params["stem_w"], params["stem_b"], params["proj_w"], params["proj_b"],
      params["enc"]["w_attn"], params["enc"]["b_attn"],
      params["enc"]["w1"], params["enc"]["b1"],
      params["enc"]["w2"], params["enc"]["b2"], params["enc"]["ln"],
      params["dec"]["w_sa"], params["dec"]["b_sa"],
      params["dec"]["w_ca"], params["dec"]["b_ca"],
      params["dec"]["w1"], params["dec"]["b1"],
      params["dec"]["w2"], params["dec"]["b2"], params["dec"]["ln"],
      params["heads"]["cls_w"], params["heads"]["cls_b"],
      params["heads"]["bw1"], params["heads"]["bb1"],
      params["heads"]["bw2"], params["heads"]["bb2"],
      params["heads"]["bw3"], params["heads"]["bb3"])


# ----------------------------------------------------------------------------
# Model glue (host side, tiny)
# ----------------------------------------------------------------------------
def sine_pos_embed(H, W, d_model):
    num_pos_feats = d_model // 2
    temperature = 10000.0
    eps = 1e-6
    scale = 2.0 * math.pi
    y_embed = jnp.broadcast_to(
        jnp.arange(1, H + 1, dtype=jnp.float32)[:, None], (H, W))
    x_embed = jnp.broadcast_to(
        jnp.arange(1, W + 1, dtype=jnp.float32)[None, :], (H, W))
    y_embed = y_embed / (H + eps) * scale
    x_embed = x_embed / (W + eps) * scale
    dim_t = jnp.arange(num_pos_feats, dtype=jnp.float32)
    dim_t = temperature ** (2.0 * jnp.floor(dim_t / 2.0) / num_pos_feats)
    pos_x = x_embed[:, :, None] / dim_t
    pos_y = y_embed[:, :, None] / dim_t
    pos_x = jnp.stack([jnp.sin(pos_x[:, :, 0::2]), jnp.cos(pos_x[:, :, 1::2])],
                      axis=3).reshape(H, W, -1)
    pos_y = jnp.stack([jnp.sin(pos_y[:, :, 0::2]), jnp.cos(pos_y[:, :, 1::2])],
                      axis=3).reshape(H, W, -1)
    pos = jnp.concatenate([pos_y, pos_x], axis=-1)               # [H, W, d_model]
    return pos.reshape(H * W, d_model)


def detr_forward(inp_nchw, params, cfg):
    B = inp_nchw.shape[0]
    D, Q = cfg["d_model"], cfg["num_queries"]
    nc = cfg["num_classes"] + 1
    k = cfg["stem_k"]

    x = jnp.transpose(inp_nchw, (0, 2, 3, 1)).astype(jnp.float32)  # NCHW->NHWC
    _, H, W_, C = x.shape
    Ho, Wo = H // k, W_ // k
    L = Ho * Wo

    # im2col for the non-overlapping kxk stride-k conv stem
    patches = (x.reshape(B, Ho, k, Wo, k, C)
               .transpose(0, 1, 3, 2, 4, 5)
               .reshape(B * L, k * k * C))

    pos = sine_pos_embed(Ho, Wo, D)                              # [L, D]

    out = fused_detr(patches, pos, params, cfg, B=B, L=L)        # [B*Q, 128]
    pred_logits = out[:, :nc].reshape(B, Q, nc)
    pred_boxes = out[:, nc:nc + 4].reshape(B, Q, 4)
    return pred_logits, pred_boxes


# ----------------------------------------------------------------------------
# Deterministic parameter initialization (packed layouts, bf16 matmul weights)
# ----------------------------------------------------------------------------
def init_params(key, cfg):
    keys = iter(jax.random.split(key, 64))
    D, Cb, ffd, Q = (cfg["d_model"], cfg["backbone_c"], cfg["dim_ff"],
                     cfg["num_queries"])
    nc = cfg["num_classes"] + 1
    kk = cfg["stem_k"] * cfg["stem_k"] * cfg["in_c"]
    OUT_W = cfg["head_out_w"]

    def w32(shape, s=0.02):
        return (s * jax.random.normal(next(keys), shape)).astype(jnp.float32)

    def wb(shape, s=0.02):           # matmul weights shipped as bf16
        return w32(shape, s).astype(jnp.bfloat16)

    def zeros(shape):
        return jnp.zeros(shape, jnp.float32)

    def ones(shape):
        return jnp.ones(shape, jnp.float32)

    def attn_pack():
        # columns: [wq | wk | wv | wo], biases likewise (biases stay f32)
        return wb((D, 4 * D)), zeros((1, 4 * D))

    enc_w, enc_b = attn_pack()
    sa_w, sa_b = attn_pack()
    ca_w, ca_b = attn_pack()

    # lane-padded heads: logits at cols [0, nc), boxes at cols [nc, nc+4)
    cls_w_pad = zeros((D, OUT_W)).at[:, :nc].set(w32((D, nc))).astype(jnp.bfloat16)
    cls_b_pad = zeros((1, OUT_W))
    box_w_pad = zeros((D, OUT_W)).at[:, nc:nc + 4].set(w32((D, 4))).astype(jnp.bfloat16)
    box_b_pad = zeros((1, OUT_W))

    return dict(
        stem_w=wb((kk, Cb)), stem_b=zeros((1, Cb)),
        proj_w=wb((Cb, D)), proj_b=zeros((1, D)),
        enc=dict(w_attn=enc_w, b_attn=enc_b,
                 w1=wb((D, ffd)), b1=zeros((1, ffd)),
                 w2=wb((ffd, D)), b2=zeros((1, D)),
                 ln=jnp.concatenate([ones((1, D)), zeros((1, D))] * 2, axis=0)),
        dec=dict(w_sa=sa_w, b_sa=sa_b, w_ca=ca_w, b_ca=ca_b,
                 w1=wb((D, ffd)), b1=zeros((1, ffd)),
                 w2=wb((ffd, D)), b2=zeros((1, D)),
                 # [ln1_g; ln1_b; ln2_g; ln2_b; ln3_g; ln3_b; dec_norm_g; dec_norm_b]
                 ln=jnp.concatenate([ones((1, D)), zeros((1, D))] * 4, axis=0)),
        query_embed=w32((Q, D), s=1.0),
        heads=dict(cls_w=cls_w_pad, cls_b=cls_b_pad,
                   bw1=wb((D, D)), bb1=zeros((1, D)),
                   bw2=wb((D, D)), bb2=zeros((1, D)),
                   bw3=box_w_pad, bb3=box_b_pad),
    )


# ----------------------------------------------------------------------------
if __name__ == "__main__":
    cfg = dict(in_c=3, stem_k=4, backbone_c=64, d_model=32, nhead=4,
               dim_ff=64, num_queries=8, num_classes=91, head_out_w=128)

    # Small analogue of torch.rand(8, 3, 750, 800): NCHW input.
    key_inp, key_par = jax.random.split(jax.random.PRNGKey(0))
    inp = jax.random.uniform(key_inp, (2, 3, 32, 32), jnp.float32)
    params = init_params(key_par, cfg)

    fwd = jax.jit(functools.partial(detr_forward, cfg=cfg))
    pred_logits, pred_boxes = fwd(inp, params)
    jax.block_until_ready((pred_logits, pred_boxes))

    assert pred_logits.shape == (2, cfg["num_queries"], cfg["num_classes"] + 1)
    assert pred_boxes.shape == (2, cfg["num_queries"], 4)
    assert bool(jnp.all(jnp.isfinite(pred_logits)))
    assert bool(jnp.all((pred_boxes >= 0.0) & (pred_boxes <= 1.0)))
    print("KERNEL_OK")
</pallas_src>

<mosaic_0001>
module attributes {stable_mosaic.version = 11 : i64} {
  func.func @_detr_kernel(%arg0: memref<128x48xf32, #tpu.memory_space<vmem>>, %arg1: memref<64x32xf32, #tpu.memory_space<vmem>>, %arg2: memref<8x32xf32, #tpu.memory_space<vmem>>, %arg3: memref<48x64xbf16, #tpu.memory_space<vmem>>, %arg4: memref<1x64xf32, #tpu.memory_space<vmem>>, %arg5: memref<64x32xbf16, #tpu.memory_space<vmem>>, %arg6: memref<1x32xf32, #tpu.memory_space<vmem>>, %arg7: memref<32x128xbf16, #tpu.memory_space<vmem>>, %arg8: memref<1x128xf32, #tpu.memory_space<vmem>>, %arg9: memref<32x64xbf16, #tpu.memory_space<vmem>>, %arg10: memref<1x64xf32, #tpu.memory_space<vmem>>, %arg11: memref<64x32xbf16, #tpu.memory_space<vmem>>, %arg12: memref<1x32xf32, #tpu.memory_space<vmem>>, %arg13: memref<4x32xf32, #tpu.memory_space<vmem>>, %arg14: memref<32x128xbf16, #tpu.memory_space<vmem>>, %arg15: memref<1x128xf32, #tpu.memory_space<vmem>>, %arg16: memref<32x128xbf16, #tpu.memory_space<vmem>>, %arg17: memref<1x128xf32, #tpu.memory_space<vmem>>, %arg18: memref<32x64xbf16, #tpu.memory_space<vmem>>, %arg19: memref<1x64xf32, #tpu.memory_space<vmem>>, %arg20: memref<64x32xbf16, #tpu.memory_space<vmem>>, %arg21: memref<1x32xf32, #tpu.memory_space<vmem>>, %arg22: memref<8x32xf32, #tpu.memory_space<vmem>>, %arg23: memref<32x128xbf16, #tpu.memory_space<vmem>>, %arg24: memref<1x128xf32, #tpu.memory_space<vmem>>, %arg25: memref<32x32xbf16, #tpu.memory_space<vmem>>, %arg26: memref<1x32xf32, #tpu.memory_space<vmem>>, %arg27: memref<32x32xbf16, #tpu.memory_space<vmem>>, %arg28: memref<1x32xf32, #tpu.memory_space<vmem>>, %arg29: memref<32x128xbf16, #tpu.memory_space<vmem>>, %arg30: memref<1x128xf32, #tpu.memory_space<vmem>>, %arg31: memref<16x128xf32, #tpu.memory_space<vmem>>) attributes {dimension_semantics = [], scalar_prefetch = 0 : i64, scratch_operands = 0 : i64, tpu.core_type = #tpu.core_type<tc>} {
    %c0 = arith.constant 0 : index
    %c0_0 = arith.constant 0 : index
    %0 = vector.load %arg0[%c0, %c0_0] : memref<128x48xf32, #tpu.memory_space<vmem>>, vector<128x48xf32>
    %c0_1 = arith.constant 0 : index
    %c0_2 = arith.constant 0 : index
    %1 = vector.load %arg3[%c0_1, %c0_2] : memref<48x64xbf16, #tpu.memory_space<vmem>>, vector<48x64xbf16>
    %2 = arith.truncf %0 : vector<128x48xf32> to vector<128x48xbf16>
    %cst = arith.constant dense<0.000000e+00> : vector<128x64xf32>
    %3 = tpu.matmul %2, %1, %cst {dimension_numbers = #tpu.dot_dimension_numbers<[1], [0], [0], [1], [0, 0, 1, 1], [], []>} : vector<128x48xbf16>, vector<48x64xbf16>, vector<128x64xf32> -> vector<128x64xf32>
    %c0_3 = arith.constant 0 : index
    %c0_4 = arith.constant 0 : index
    %4 = vector.load %arg4[%c0_3, %c0_4] : memref<1x64xf32, #tpu.memory_space<vmem>>, vector<1x64xf32>
    %5 = vector.broadcast %4 : vector<1x64xf32> to vector<128x64xf32>
    %6 = arith.addf %3, %5 : vector<128x64xf32>
    %cst_5 = arith.constant 0.000000e+00 : f32
    %7 = vector.broadcast %cst_5 : f32 to vector<128x64xf32>
    %8 = arith.maximumf %6, %7 : vector<128x64xf32>
    %c0_6 = arith.constant 0 : index
    %c0_7 = arith.constant 0 : index
    %9 = vector.load %arg5[%c0_6, %c0_7] : memref<64x32xbf16, #tpu.memory_space<vmem>>, vector<64x32xbf16>
    %10 = arith.truncf %8 : vector<128x64xf32> to vector<128x64xbf16>
    %cst_8 = arith.constant dense<0.000000e+00> : vector<128x32xf32>
    %11 = tpu.matmul %10, %9, %cst_8 {dimension_numbers = #tpu.dot_dimension_numbers<[1], [0], [0], [1], [0, 0, 1, 1], [], []>} : vector<128x64xbf16>, vector<64x32xbf16>, vector<128x32xf32> -> vector<128x32xf32>
    %c0_9 = arith.constant 0 : index
    %c0_10 = arith.constant 0 : index
    %12 = vector.load %arg6[%c0_9, %c0_10] : memref<1x32xf32, #tpu.memory_space<vmem>>, vector<1x32xf32>
    %13 = vector.broadcast %12 : vector<1x32xf32> to vector<128x32xf32>
    %14 = arith.addf %11, %13 : vector<128x32xf32>
    %c0_11 = arith.constant 0 : index
    %c0_12 = arith.constant 0 : index
    %15 = vector.load %arg1[%c0_11, %c0_12] : memref<64x32xf32, #tpu.memory_space<vmem>>, vector<64x32xf32>
    %c0_13 = arith.constant 0 : index
    %c0_14 = arith.constant 0 : index
    %16 = vector.load %arg2[%c0_13, %c0_14] : memref<8x32xf32, #tpu.memory_space<vmem>>, vector<8x32xf32>
    %c0_15 = arith.constant 0 : index
    %c0_16 = arith.constant 0 : index
    %17 = vector.load %arg7[%c0_15, %c0_16] : memref<32x128xbf16, #tpu.memory_space<vmem>>, vector<32x128xbf16>
    %c0_17 = arith.constant 0 : index
    %c0_18 = arith.constant 0 : index
    %18 = vector.load %arg8[%c0_17, %c0_18] : memref<1x128xf32, #tpu.memory_space<vmem>>, vector<1x128xf32>
    %c0_19 = arith.constant 0 : index
    %c0_20 = arith.constant 0 : index
    %19 = vector.load %arg13[%c0_19, %c0_20] : memref<4x32xf32, #tpu.memory_space<vmem>>, vector<4x32xf32>
    %20 = vector.extract_strided_slice %17 {offsets = [0, 0], sizes = [32, 96], strides = [1, 1]} : vector<32x128xbf16> to vector<32x96xbf16>
    %21 = arith.truncf %14 : vector<128x32xf32> to vector<128x32xbf16>
    %cst_21 = arith.constant dense<0.000000e+00> : vector<128x96xf32>
    %22 = tpu.matmul %21, %20, %cst_21 {dimension_numbers = #tpu.dot_dimension_numbers<[1], [0], [0], [1], [0, 0, 1, 1], [], []>} : vector<128x32xbf16>, vector<32x96xbf16>, vector<128x96xf32> -> vector<128x96xf32>
    %23 = vector.extract_strided_slice %18 {offsets = [0, 0], sizes = [1, 96], strides = [1, 1]} : vector<1x128xf32> to vector<1x96xf32>
    %24 = vector.broadcast %23 : vector<1x96xf32> to vector<128x96xf32>
    %25 = arith.addf %22, %24 : vector<128x96xf32>
    %26 = vector.extract_strided_slice %17 {offsets = [0, 0], sizes = [32, 64], strides = [1, 1]} : vector<32x128xbf16> to vector<32x64xbf16>
    %27 = arith.truncf %15 : vector<64x32xf32> to vector<64x32xbf16>
    %cst_22 = arith.constant dense<0.000000e+00> : vector<64x64xf32>
    %28 = tpu.matmul %27, %26, %cst_22 {dimension_numbers = #tpu.dot_dimension_numbers<[1], [0], [0], [1], [0, 0, 1, 1], [], []>} : vector<64x32xbf16>, vector<32x64xbf16>, vector<64x64xf32> -> vector<64x64xf32>
    %29 = vector.extract_strided_slice %25 {offsets = [0, 0], sizes = [64, 32], strides = [1, 1]} : vector<128x96xf32> to vector<64x32xf32>
    %30 = vector.extract_strided_slice %28 {offsets = [0, 0], sizes = [64, 32], strides = [1, 1]} : vector<64x64xf32> to vector<64x32xf32>
    %31 = arith.addf %29, %30 : vector<64x32xf32>
    %32 = vector.extract_strided_slice %25 {offsets = [0, 32], sizes = [64, 32], strides = [1, 1]} : vector<128x96xf32> to vector<64x32xf32>
    %33 = vector.extract_strided_slice %28 {offsets = [0, 32], sizes = [64, 32], strides = [1, 1]} : vector<64x64xf32> to vector<64x32xf32>
    %34 = arith.addf %32, %33 : vector<64x32xf32>
    %35 = vector.extract_strided_slice %25 {offsets = [0, 64], sizes = [64, 32], strides = [1, 1]} : vector<128x96xf32> to vector<64x32xf32>
    %36 = arith.truncf %31 : vector<64x32xf32> to vector<64x32xbf16>
    %37 = arith.truncf %34 : vector<64x32xf32> to vector<64x32xbf16>
    %38 = arith.truncf %35 : vector<64x32xf32> to vector<64x32xbf16>
    %39 = vector.extract_strided_slice %36 {offsets = [0, 0], sizes = [64, 8], strides = [1, 1]} : vector<64x32xbf16> to vector<64x8xbf16>
    %40 = vector.extract_strided_slice %37 {offsets = [0, 0], sizes = [64, 8], strides = [1, 1]} : vector<64x32xbf16> to vector<64x8xbf16>
    %cst_23 = arith.constant dense<0.000000e+00> : vector<64x64xf32>
    %41 = tpu.matmul %39, %40, %cst_23 {dimension_numbers = #tpu.dot_dimension_numbers<[1], [1], [0], [0], [0, 0, 1, 0], [], []>} : vector<64x8xbf16>, vector<64x8xbf16>, vector<64x64xf32> -> vector<64x64xf32>
    %cst_24 = arith.constant 0.353553385 : f32
    %42 = vector.broadcast %cst_24 : f32 to vector<64x64xf32>
    %43 = arith.mulf %41, %42 : vector<64x64xf32>
    %cst_25 = arith.constant dense<0xFF800000> : vector<64xf32>
    %44 = vector.multi_reduction <maximumf>, %43, %cst_25 [1] : vector<64x64xf32> to vector<64xf32>
    %45 = vector.shape_cast %44 : vector<64xf32> to vector<64x1xf32>
    %46 = vector.broadcast %45 : vector<64x1xf32> to vector<64x64xf32>
    %47 = arith.subf %43, %46 : vector<64x64xf32>
    %48 = math.exp %47 : vector<64x64xf32>
    %cst_26 = arith.constant dense<0.000000e+00> : vector<64xf32>
    %49 = vector.multi_reduction <add>, %48, %cst_26 [1] : vector<64x64xf32> to vector<64xf32>
    %50 = vector.shape_cast %49 : vector<64xf32> to vector<64x1xf32>
    %51 = tpu.reciprocal %50 {approx = true} : vector<64x1xf32> -> vector<64x1xf32>
    %52 = vector.broadcast %51 : vector<64x1xf32> to vector<64x64xf32>
    %53 = arith.mulf %48, %52 : vector<64x64xf32>
    %54 = arith.truncf %53 : vector<64x64xf32> to vector<64x64xbf16>
    %55 = vector.extract_strided_slice %38 {offsets = [0, 0], sizes = [64, 8], strides = [1, 1]} : vector<64x32xbf16> to vector<64x8xbf16>
    %cst_27 = arith.constant dense<0.000000e+00> : vector<64x8xf32>
    %56 = tpu.matmul %54, %55, %cst_27 {dimension_numbers = #tpu.dot_dimension_numbers<[1], [0], [0], [1], [0, 0, 1, 1], [], []>} : vector<64x64xbf16>, vector<64x8xbf16>, vector<64x8xf32> -> vector<64x8xf32>
    %57 = vector.extract_strided_slice %36 {offsets = [0, 8], sizes = [64, 8], strides = [1, 1]} : vector<64x32xbf16> to vector<64x8xbf16>
    %58 = vector.extract_strided_slice %37 {offsets = [0, 8], sizes = [64, 8], strides = [1, 1]} : vector<64x32xbf16> to vector<64x8xbf16>
    %cst_28 = arith.constant dense<0.000000e+00> : vector<64x64xf32>
    %59 = tpu.matmul %57, %58, %cst_28 {dimension_numbers = #tpu.dot_dimension_numbers<[1], [1], [0], [0], [0, 0, 1, 0], [], []>} : vector<64x8xbf16>, vector<64x8xbf16>, vector<64x64xf32> -> vector<64x64xf32>
    %cst_29 = arith.constant 0.353553385 : f32
    %60 = vector.broadcast %cst_29 : f32 to vector<64x64xf32>
    %61 = arith.mulf %59, %60 : vector<64x64xf32>
    %cst_30 = arith.constant dense<0xFF800000> : vector<64xf32>
    %62 = vector.multi_reduction <maximumf>, %61, %cst_30 [1] : vector<64x64xf32> to vector<64xf32>
    %63 = vector.shape_cast %62 : vector<64xf32> to vector<64x1xf32>
    %64 = vector.broadcast %63 : vector<64x1xf32> to vector<64x64xf32>
    %65 = arith.subf %61, %64 : vector<64x64xf32>
    %66 = math.exp %65 : vector<64x64xf32>
    %cst_31 = arith.constant dense<0.000000e+00> : vector<64xf32>
    %67 = vector.multi_reduction <add>, %66, %cst_31 [1] : vector<64x64xf32> to vector<64xf32>
    %68 = vector.shape_cast %67 : vector<64xf32> to vector<64x1xf32>
    %69 = tpu.reciprocal %68 {approx = true} : vector<64x1xf32> -> vector<64x1xf32>
    %70 = vector.broadcast %69 : vector<64x1xf32> to vector<64x64xf32>
    %71 = arith.mulf %66, %70 : vector<64x64xf32>
    %72 = arith.truncf %71 : vector<64x64xf32> to vector<64x64xbf16>
    %73 = vector.extract_strided_slice %38 {offsets = [0, 8], sizes = [64, 8], strides = [1, 1]} : vector<64x32xbf16> to vector<64x8xbf16>
    %cst_32 = arith.constant dense<0.000000e+00> : vector<64x8xf32>
    %74 = tpu.matmul %72, %73, %cst_32 {dimension_numbers = #tpu.dot_dimension_numbers<[1], [0], [0], [1], [0, 0, 1, 1], [], []>} : vector<64x64xbf16>, vector<64x8xbf16>, vector<64x8xf32> -> vector<64x8xf32>
    %75 = vector.extract_strided_slice %36 {offsets = [0, 16], sizes = [64, 8], strides = [1, 1]} : vector<64x32xbf16> to vector<64x8xbf16>
    %76 = vector.extract_strided_slice %37 {offsets = [0, 16], sizes = [64, 8], strides = [1, 1]} : vector<64x32xbf16> to vector<64x8xbf16>
    %cst_33 = arith.constant dense<0.000000e+00> : vector<64x64xf32>
    %77 = tpu.matmul %75, %76, %cst_33 {dimension_numbers = #tpu.dot_dimension_numbers<[1], [1], [0], [0], [0, 0, 1, 0], [], []>} : vector<64x8xbf16>, vector<64x8xbf16>, vector<64x64xf32> -> vector<64x64xf32>
    %cst_34 = arith.constant 0.353553385 : f32
    %78 = vector.broadcast %cst_34 : f32 to vector<64x64xf32>
    %79 = arith.mulf %77, %78 : vector<64x64xf32>
    %cst_35 = arith.constant dense<0xFF800000> : vector<64xf32>
    %80 = vector.multi_reduction <maximumf>, %79, %cst_35 [1] : vector<64x64xf32> to vector<64xf32>
    %81 = vector.shape_cast %80 : vector<64xf32> to vector<64x1xf32>
    %82 = vector.broadcast %81 : vector<64x1xf32> to vector<64x64xf32>
    %83 = arith.subf %79, %82 : vector<64x64xf32>
    %84 = math.exp %83 : vector<64x64xf32>
    %cst_36 = arith.constant dense<0.000000e+00> : vector<64xf32>
    %85 = vector.multi_reduction <add>, %84, %cst_36 [1] : vector<64x64xf32> to vector<64xf32>
    %86 = vector.shape_cast %85 : vector<64xf32> to vector<64x1xf32>
    %87 = tpu.reciprocal %86 {approx = true} : vector<64x1xf32> -> vector<64x1xf32>
    %88 = vector.broadcast %87 : vector<64x1xf32> to vector<64x64xf32>
    %89 = arith.mulf %84, %88 : vector<64x64xf32>
    %90 = arith.truncf %89 : vector<64x64xf32> to vector<64x64xbf16>
    %91 = vector.extract_strided_slice %38 {offsets = [0, 16], sizes = [64, 8], strides = [1, 1]} : vector<64x32xbf16> to vector<64x8xbf16>
    %cst_37 = arith.constant dense<0.000000e+00> : vector<64x8xf32>
    %92 = tpu.matmul %90, %91, %cst_37 {dimension_numbers = #tpu.dot_dimension_numbers<[1], [0], [0], [1], [0, 0, 1, 1], [], []>} : vector<64x64xbf16>, vector<64x8xbf16>, vector<64x8xf32> -> vector<64x8xf32>
    %93 = vector.extract_strided_slice %36 {offsets = [0, 24], sizes = [64, 8], strides = [1, 1]} : vector<64x32xbf16> to vector<64x8xbf16>
    %94 = vector.extract_strided_slice %37 {offsets = [0, 24], sizes = [64, 8], strides = [1, 1]} : vector<64x32xbf16> to vector<64x8xbf16>
    %cst_38 = arith.constant dense<0.000000e+00> : vector<64x64xf32>
    %95 = tpu.matmul %93, %94, %cst_38 {dimension_numbers = #tpu.dot_dimension_numbers<[1], [1], [0], [0], [0, 0, 1, 0], [], []>} : vector<64x8xbf16>, vector<64x8xbf16>, vector<64x64xf32> -> vector<64x64xf32>
    %cst_39 = arith.constant 0.353553385 : f32
    %96 = vector.broadcast %cst_39 : f32 to vector<64x64xf32>
    %97 = arith.mulf %95, %96 : vector<64x64xf32>
    %cst_40 = arith.constant dense<0xFF800000> : vector<64xf32>
    %98 = vector.multi_reduction <maximumf>, %97, %cst_40 [1] : vector<64x64xf32> to vector<64xf32>
    %99 = vector.shape_cast %98 : vector<64xf32> to vector<64x1xf32>
    %100 = vector.broadcast %99 : vector<64x1xf32> to vector<64x64xf32>
    %101 = arith.subf %97, %100 : vector<64x64xf32>
    %102 = math.exp %101 : vector<64x64xf32>
    %cst_41 = arith.constant dense<0.000000e+00> : vector<64xf32>
    %103 = vector.multi_reduction <add>, %102, %cst_41 [1] : vector<64x64xf32> to vector<64xf32>
    %104 = vector.shape_cast %103 : vector<64xf32> to vector<64x1xf32>
    %105 = tpu.reciprocal %104 {approx = true} : vector<64x1xf32> -> vector<64x1xf32>
    %106 = vector.broadcast %105 : vector<64x1xf32> to vector<64x64xf32>
    %107 = arith.mulf %102, %106 : vector<64x64xf32>
    %108 = arith.truncf %107 : vector<64x64xf32> to vector<64x64xbf16>
    %109 = vector.extract_strided_slice %38 {offsets = [0, 24], sizes = [64, 8], strides = [1, 1]} : vector<64x32xbf16> to vector<64x8xbf16>
    %cst_42 = arith.constant dense<0.000000e+00> : vector<64x8xf32>
    %110 = tpu.matmul %108, %109, %cst_42 {dimension_numbers = #tpu.dot_dimension_numbers<[1], [0], [0], [1], [0, 0, 1, 1], [], []>} : vector<64x64xbf16>, vector<64x8xbf16>, vector<64x8xf32> -> vector<64x8xf32>
    %111 = tpu.concatenate %56, %74, %92, %110 in 1 : vector<64x8xf32>, vector<64x8xf32>, vector<64x8xf32>, vector<64x8xf32> -> vector<64x32xf32>
    %112 = vector.extract_strided_slice %25 {offsets = [64, 0], sizes = [64, 32], strides = [1, 1]} : vector<128x96xf32> to vector<64x32xf32>
    %113 = vector.extract_strided_slice %28 {offsets = [0, 0], sizes = [64, 32], strides = [1, 1]} : vector<64x64xf32> to vector<64x32xf32>
    %114 = arith.addf %112, %113 : vector<64x32xf32>
    %115 = vector.extract_strided_slice %25 {offsets = [64, 32], sizes = [64, 32], strides = [1, 1]} : vector<128x96xf32> to vector<64x32xf32>
    %116 = vector.extract_strided_slice %28 {offsets = [0, 32], sizes = [64, 32], strides = [1, 1]} : vector<64x64xf32> to vector<64x32xf32>
    %117 = arith.addf %115, %116 : vector<64x32xf32>
    %118 = vector.extract_strided_slice %25 {offsets = [64, 64], sizes = [64, 32], strides = [1, 1]} : vector<128x96xf32> to vector<64x32xf32>
    %119 = arith.truncf %114 : vector<64x32xf32> to vector<64x32xbf16>
    %120 = arith.truncf %117 : vector<64x32xf32> to vector<64x32xbf16>
    %121 = arith.truncf %118 : vector<64x32xf32> to vector<64x32xbf16>
    %122 = vector.extract_strided_slice %119 {offsets = [0, 0], sizes = [64, 8], strides = [1, 1]} : vector<64x32xbf16> to vector<64x8xbf16>
    %123 = vector.extract_strided_slice %120 {offsets = [0, 0], sizes = [64, 8], strides = [1, 1]} : vector<64x32xbf16> to vector<64x8xbf16>
    %cst_43 = arith.constant dense<0.000000e+00> : vector<64x64xf32>
    %124 = tpu.matmul %122, %123, %cst_43 {dimension_numbers = #tpu.dot_dimension_numbers<[1], [1], [0], [0], [0, 0, 1, 0], [], []>} : vector<64x8xbf16>, vector<64x8xbf16>, vector<64x64xf32> -> vector<64x64xf32>
    %cst_44 = arith.constant 0.353553385 : f32
    %125 = vector.broadcast %cst_44 : f32 to vector<64x64xf32>
    %126 = arith.mulf %124, %125 : vector<64x64xf32>
    %cst_45 = arith.constant dense<0xFF800000> : vector<64xf32>
    %127 = vector.multi_reduction <maximumf>, %126, %cst_45 [1] : vector<64x64xf32> to vector<64xf32>
    %128 = vector.shape_cast %127 : vector<64xf32> to vector<64x1xf32>
    %129 = vector.broadcast %128 : vector<64x1xf32> to vector<64x64xf32>
    %130 = arith.subf %126, %129 : vector<64x64xf32>
    %131 = math.exp %130 : vector<64x64xf32>
    %cst_46 = arith.constant dense<0.000000e+00> : vector<64xf32>
    %132 = vector.multi_reduction <add>, %131, %cst_46 [1] : vector<64x64xf32> to vector<64xf32>
    %133 = vector.shape_cast %132 : vector<64xf32> to vector<64x1xf32>
    %134 = tpu.reciprocal %133 {approx = true} : vector<64x1xf32> -> vector<64x1xf32>
    %135 = vector.broadcast %134 : vector<64x1xf32> to vector<64x64xf32>
    %136 = arith.mulf %131, %135 : vector<64x64xf32>
    %137 = arith.truncf %136 : vector<64x64xf32> to vector<64x64xbf16>
    %138 = vector.extract_strided_slice %121 {offsets = [0, 0], sizes = [64, 8], strides = [1, 1]} : vector<64x32xbf16> to vector<64x8xbf16>
    %cst_47 = arith.constant dense<0.000000e+00> : vector<64x8xf32>
    %139 = tpu.matmul %137, %138, %cst_47 {dimension_numbers = #tpu.dot_dimension_numbers<[1], [0], [0], [1], [0, 0, 1, 1], [], []>} : vector<64x64xbf16>, vector<64x8xbf16>, vector<64x8xf32> -> vector<64x8xf32>
    %140 = vector.extract_strided_slice %119 {offsets = [0, 8], sizes = [64, 8], strides = [1, 1]} : vector<64x32xbf16> to vector<64x8xbf16>
    %141 = vector.extract_strided_slice %120 {offsets = [0, 8], sizes = [64, 8], strides = [1, 1]} : vector<64x32xbf16> to vector<64x8xbf16>
    %cst_48 = arith.constant dense<0.000000e+00> : vector<64x64xf32>
    %142 = tpu.matmul %140, %141, %cst_48 {dimension_numbers = #tpu.dot_dimension_numbers<[1], [1], [0], [0], [0, 0, 1, 0], [], []>} : vector<64x8xbf16>, vector<64x8xbf16>, vector<64x64xf32> -> vector<64x64xf32>
    %cst_49 = arith.constant 0.353553385 : f32
    %143 = vector.broadcast %cst_49 : f32 to vector<64x64xf32>
    %144 = arith.mulf %142, %143 : vector<64x64xf32>
    %cst_50 = arith.constant dense<0xFF800000> : vector<64xf32>
    %145 = vector.multi_reduction <maximumf>, %144, %cst_50 [1] : vector<64x64xf32> to vector<64xf32>
    %146 = vector.shape_cast %145 : vector<64xf32> to vector<64x1xf32>
    %147 = vector.broadcast %146 : vector<64x1xf32> to vector<64x64xf32>
    %148 = arith.subf %144, %147 : vector<64x64xf32>
    %149 = math.exp %148 : vector<64x64xf32>
    %cst_51 = arith.constant dense<0.000000e+00> : vector<64xf32>
    %150 = vector.multi_reduction <add>, %149, %cst_51 [1] : vector<64x64xf32> to vector<64xf32>
    %151 = vector.shape_cast %150 : vector<64xf32> to vector<64x1xf32>
    %152 = tpu.reciprocal %151 {approx = true} : vector<64x1xf32> -> vector<64x1xf32>
    %153 = vector.broadcast %152 : vector<64x1xf32> to vector<64x64xf32>
    %154 = arith.mulf %149, %153 : vector<64x64xf32>
    %155 = arith.truncf %154 : vector<64x64xf32> to vector<64x64xbf16>
    %156 = vector.extract_strided_slice %121 {offsets = [0, 8], sizes = [64, 8], strides = [1, 1]} : vector<64x32xbf16> to vector<64x8xbf16>
    %cst_52 = arith.constant dense<0.000000e+00> : vector<64x8xf32>
    %157 = tpu.matmul %155, %156, %cst_52 {dimension_numbers = #tpu.dot_dimension_numbers<[1], [0], [0], [1], [0, 0, 1, 1], [], []>} : vector<64x64xbf16>, vector<64x8xbf16>, vector<64x8xf32> -> vector<64x8xf32>
    %158 = vector.extract_strided_slice %119 {offsets = [0, 16], sizes = [64, 8], strides = [1, 1]} : vector<64x32xbf16> to vector<64x8xbf16>
    %159 = vector.extract_strided_slice %120 {offsets = [0, 16], sizes = [64, 8], strides = [1, 1]} : vector<64x32xbf16> to vector<64x8xbf16>
    %cst_53 = arith.constant dense<0.000000e+00> : vector<64x64xf32>
    %160 = tpu.matmul %158, %159, %cst_53 {dimension_numbers = #tpu.dot_dimension_numbers<[1], [1], [0], [0], [0, 0, 1, 0], [], []>} : vector<64x8xbf16>, vector<64x8xbf16>, vector<64x64xf32> -> vector<64x64xf32>
    %cst_54 = arith.constant 0.353553385 : f32
    %161 = vector.broadcast %cst_54 : f32 to vector<64x64xf32>
    %162 = arith.mulf %160, %161 : vector<64x64xf32>
    %cst_55 = arith.constant dense<0xFF800000> : vector<64xf32>
    %163 = vector.multi_reduction <maximumf>, %162, %cst_55 [1] : vector<64x64xf32> to vector<64xf32>
    %164 = vector.shape_cast %163 : vector<64xf32> to vector<64x1xf32>
    %165 = vector.broadcast %164 : vector<64x1xf32> to vector<64x64xf32>
    %166 = arith.subf %162, %165 : vector<64x64xf32>
    %167 = math.exp %166 : vector<64x64xf32>
    %cst_56 = arith.constant dense<0.000000e+00> : vector<64xf32>
    %168 = vector.multi_reduction <add>, %167, %cst_56 [1] : vector<64x64xf32> to vector<64xf32>
    %169 = vector.shape_cast %168 : vector<64xf32> to vector<64x1xf32>
    %170 = tpu.reciprocal %169 {approx = true} : vector<64x1xf32> -> vector<64x1xf32>
    %171 = vector.broadcast %170 : vector<64x1xf32> to vector<64x64xf32>
    %172 = arith.mulf %167, %171 : vector<64x64xf32>
    %173 = arith.truncf %172 : vector<64x64xf32> to vector<64x64xbf16>
    %174 = vector.extract_strided_slice %121 {offsets = [0, 16], sizes = [64, 8], strides = [1, 1]} : vector<64x32xbf16> to vector<64x8xbf16>
    %cst_57 = arith.constant dense<0.000000e+00> : vector<64x8xf32>
    %175 = tpu.matmul %173, %174, %cst_57 {dimension_numbers = #tpu.dot_dimension_numbers<[1], [0], [0], [1], [0, 0, 1, 1], [], []>} : vector<64x64xbf16>, vector<64x8xbf16>, vector<64x8xf32> -> vector<64x8xf32>
    %176 = vector.extract_strided_slice %119 {offsets = [0, 24], sizes = [64, 8], strides = [1, 1]} : vector<64x32xbf16> to vector<64x8xbf16>
    %177 = vector.extract_strided_slice %120 {offsets = [0, 24], sizes = [64, 8], strides = [1, 1]} : vector<64x32xbf16> to vector<64x8xbf16>
    %cst_58 = arith.constant dense<0.000000e+00> : vector<64x64xf32>
    %178 = tpu.matmul %176, %177, %cst_58 {dimension_numbers = #tpu.dot_dimension_numbers<[1], [1], [0], [0], [0, 0, 1, 0], [], []>} : vector<64x8xbf16>, vector<64x8xbf16>, vector<64x64xf32> -> vector<64x64xf32>
    %cst_59 = arith.constant 0.353553385 : f32
    %179 = vector.broadcast %cst_59 : f32 to vector<64x64xf32>
    %180 = arith.mulf %178, %179 : vector<64x64xf32>
    %cst_60 = arith.constant dense<0xFF800000> : vector<64xf32>
    %181 = vector.multi_reduction <maximumf>, %180, %cst_60 [1] : vector<64x64xf32> to vector<64xf32>
    %182 = vector.shape_cast %181 : vector<64xf32> to vector<64x1xf32>
    %183 = vector.broadcast %182 : vector<64x1xf32> to vector<64x64xf32>
    %184 = arith.subf %180, %183 : vector<64x64xf32>
    %185 = math.exp %184 : vector<64x64xf32>
    %cst_61 = arith.constant dense<0.000000e+00> : vector<64xf32>
    %186 = vector.multi_reduction <add>, %185, %cst_61 [1] : vector<64x64xf32> to vector<64xf32>
    %187 = vector.shape_cast %186 : vector<64xf32> to vector<64x1xf32>
    %188 = tpu.reciprocal %187 {approx = true} : vector<64x1xf32> -> vector<64x1xf32>
    %189 = vector.broadcast %188 : vector<64x1xf32> to vector<64x64xf32>
    %190 = arith.mulf %185, %189 : vector<64x64xf32>
    %191 = arith.truncf %190 : vector<64x64xf32> to vector<64x64xbf16>
    %192 = vector.extract_strided_slice %121 {offsets = [0, 24], sizes = [64, 8], strides = [1, 1]} : vector<64x32xbf16> to vector<64x8xbf16>
    %cst_62 = arith.constant dense<0.000000e+00> : vector<64x8xf32>
    %193 = tpu.matmul %191, %192, %cst_62 {dimension_numbers = #tpu.dot_dimension_numbers<[1], [0], [0], [1], [0, 0, 1, 1], [], []>} : vector<64x64xbf16>, vector<64x8xbf16>, vector<64x8xf32> -> vector<64x8xf32>
    %194 = tpu.concatenate %139, %157, %175, %193 in 1 : vector<64x8xf32>, vector<64x8xf32>, vector<64x8xf32>, vector<64x8xf32> -> vector<64x32xf32>
    %195 = tpu.concatenate %111, %194 in 0 : vector<64x32xf32>, vector<64x32xf32> -> vector<128x32xf32>
    %196 = vector.extract_strided_slice %17 {offsets = [0, 96], sizes = [32, 32], strides = [1, 1]} : vector<32x128xbf16> to vector<32x32xbf16>
    %197 = arith.truncf %195 : vector<128x32xf32> to vector<128x32xbf16>
    %cst_63 = arith.constant dense<0.000000e+00> : vector<128x32xf32>
    %198 = tpu.matmul %197, %196, %cst_63 {dimension_numbers = #tpu.dot_dimension_numbers<[1], [0], [0], [1], [0, 0, 1, 1], [], []>} : vector<128x32xbf16>, vector<32x32xbf16>, vector<128x32xf32> -> vector<128x32xf32>
    %199 = vector.extract_strided_slice %18 {offsets = [0, 96], sizes = [1, 32], strides = [1, 1]} : vector<1x128xf32> to vector<1x32xf32>
    %200 = vector.broadcast %199 : vector<1x32xf32> to vector<128x32xf32>
    %201 = arith.addf %198, %200 : vector<128x32xf32>
    %202 = arith.addf %14, %201 : vector<128x32xf32>
    %203 = vector.extract_strided_slice %19 {offsets = [0, 0], sizes = [1, 32], strides = [1, 1]} : vector<4x32xf32> to vector<1x32xf32>
    %204 = vector.extract_strided_slice %19 {offsets = [1, 0], sizes = [1, 32], strides = [1, 1]} : vector<4x32xf32> to vector<1x32xf32>
    %cst_64 = arith.constant dense<0.000000e+00> : vector<128xf32>
    %205 = vector.multi_reduction <add>, %202, %cst_64 [1] : vector<128x32xf32> to vector<128xf32>
    %206 = vector.shape_cast %205 : vector<128xf32> to vector<128x1xf32>
    %cst_65 = arith.constant 3.200000e+01 : f32
    %207 = vector.broadcast %cst_65 : f32 to vector<128x1xf32>
    %208 = arith.divf %206, %207 : vector<128x1xf32>
    %209 = vector.broadcast %208 : vector<128x1xf32> to vector<128x32xf32>
    %210 = arith.subf %202, %209 : vector<128x32xf32>
    %211 = arith.mulf %210, %210 : vector<128x32xf32>
    %cst_66 = arith.constant dense<0.000000e+00> : vector<128xf32>
    %212 = vector.multi_reduction <add>, %211, %cst_66 [1] : vector<128x32xf32> to vector<128xf32>
    %213 = vector.shape_cast %212 : vector<128xf32> to vector<128x1xf32>
    %cst_67 = arith.constant 3.200000e+01 : f32
    %214 = vector.broadcast %cst_67 : f32 to vector<128x1xf32>
    %215 = arith.divf %213, %214 : vector<128x1xf32>
    %216 = vector.broadcast %208 : vector<128x1xf32> to vector<128x32xf32>
    %217 = arith.subf %202, %216 : vector<128x32xf32>
    %cst_68 = arith.constant 9.99999974E-6 : f32
    %218 = vector.broadcast %cst_68 : f32 to vector<128x1xf32>
    %219 = arith.addf %215, %218 : vector<128x1xf32>
    %220 = math.rsqrt %219 : vector<128x1xf32>
    %221 = vector.broadcast %220 : vector<128x1xf32> to vector<128x32xf32>
    %222 = arith.mulf %217, %221 : vector<128x32xf32>
    %223 = vector.broadcast %203 : vector<1x32xf32> to vector<128x32xf32>
    %224 = arith.mulf %222, %223 : vector<128x32xf32>
    %225 = vector.broadcast %204 : vector<1x32xf32> to vector<128x32xf32>
    %226 = arith.addf %224, %225 : vector<128x32xf32>
    %c0_69 = arith.constant 0 : index
    %c0_70 = arith.constant 0 : index
    %227 = vector.load %arg9[%c0_69, %c0_70] : memref<32x64xbf16, #tpu.memory_space<vmem>>, vector<32x64xbf16>
    %228 = arith.truncf %226 : vector<128x32xf32> to vector<128x32xbf16>
    %cst_71 = arith.constant dense<0.000000e+00> : vector<128x64xf32>
    %229 = tpu.matmul %228, %227, %cst_71 {dimension_numbers = #tpu.dot_dimension_numbers<[1], [0], [0], [1], [0, 0, 1, 1], [], []>} : vector<128x32xbf16>, vector<32x64xbf16>, vector<128x64xf32> -> vector<128x64xf32>
    %c0_72 = arith.constant 0 : index
    %c0_73 = arith.constant 0 : index
    %230 = vector.load %arg10[%c0_72, %c0_73] : memref<1x64xf32, #tpu.memory_space<vmem>>, vector<1x64xf32>
    %231 = vector.broadcast %230 : vector<1x64xf32> to vector<128x64xf32>
    %232 = arith.addf %229, %231 : vector<128x64xf32>
    %cst_74 = arith.constant 0.000000e+00 : f32
    %233 = vector.broadcast %cst_74 : f32 to vector<128x64xf32>
    %234 = arith.maximumf %232, %233 : vector<128x64xf32>
    %c0_75 = arith.constant 0 : index
    %c0_76 = arith.constant 0 : index
    %235 = vector.load %arg11[%c0_75, %c0_76] : memref<64x32xbf16, #tpu.memory_space<vmem>>, vector<64x32xbf16>
    %236 = arith.truncf %234 : vector<128x64xf32> to vector<128x64xbf16>
    %cst_77 = arith.constant dense<0.000000e+00> : vector<128x32xf32>
    %237 = tpu.matmul %236, %235, %cst_77 {dimension_numbers = #tpu.dot_dimension_numbers<[1], [0], [0], [1], [0, 0, 1, 1], [], []>} : vector<128x64xbf16>, vector<64x32xbf16>, vector<128x32xf32> -> vector<128x32xf32>
    %c0_78 = arith.constant 0 : index
    %c0_79 = arith.constant 0 : index
    %238 = vector.load %arg12[%c0_78, %c0_79] : memref<1x32xf32, #tpu.memory_space<vmem>>, vector<1x32xf32>
    %239 = vector.broadcast %238 : vector<1x32xf32> to vector<128x32xf32>
    %240 = arith.addf %237, %239 : vector<128x32xf32>
    %241 = arith.addf %226, %240 : vector<128x32xf32>
    %242 = vector.extract_strided_slice %19 {offsets = [2, 0], sizes = [1, 32], strides = [1, 1]} : vector<4x32xf32> to vector<1x32xf32>
    %243 = vector.extract_strided_slice %19 {offsets = [3, 0], sizes = [1, 32], strides = [1, 1]} : vector<4x32xf32> to vector<1x32xf32>
    %cst_80 = arith.constant dense<0.000000e+00> : vector<128xf32>
    %244 = vector.multi_reduction <add>, %241, %cst_80 [1] : vector<128x32xf32> to vector<128xf32>
    %245 = vector.shape_cast %244 : vector<128xf32> to vector<128x1xf32>
    %cst_81 = arith.constant 3.200000e+01 : f32
    %246 = vector.broadcast %cst_81 : f32 to vector<128x1xf32>
    %247 = arith.divf %245, %246 : vector<128x1xf32>
    %248 = vector.broadcast %247 : vector<128x1xf32> to vector<128x32xf32>
    %249 = arith.subf %241, %248 : vector<128x32xf32>
    %250 = arith.mulf %249, %249 : vector<128x32xf32>
    %cst_82 = arith.constant dense<0.000000e+00> : vector<128xf32>
    %251 = vector.multi_reduction <add>, %250, %cst_82 [1] : vector<128x32xf32> to vector<128xf32>
    %252 = vector.shape_cast %251 : vector<128xf32> to vector<128x1xf32>
    %cst_83 = arith.constant 3.200000e+01 : f32
    %253 = vector.broadcast %cst_83 : f32 to vector<128x1xf32>
    %254 = arith.divf %252, %253 : vector<128x1xf32>
    %255 = vector.broadcast %247 : vector<128x1xf32> to vector<128x32xf32>
    %256 = arith.subf %241, %255 : vector<128x32xf32>
    %cst_84 = arith.constant 9.99999974E-6 : f32
    %257 = vector.broadcast %cst_84 : f32 to vector<128x1xf32>
    %258 = arith.addf %254, %257 : vector<128x1xf32>
    %259 = math.rsqrt %258 : vector<128x1xf32>
    %260 = vector.broadcast %259 : vector<128x1xf32> to vector<128x32xf32>
    %261 = arith.mulf %256, %260 : vector<128x32xf32>
    %262 = vector.broadcast %242 : vector<1x32xf32> to vector<128x32xf32>
    %263 = arith.mulf %261, %262 : vector<128x32xf32>
    %264 = vector.broadcast %243 : vector<1x32xf32> to vector<128x32xf32>
    %265 = arith.addf %263, %264 : vector<128x32xf32>
    %c0_85 = arith.constant 0 : index
    %c0_86 = arith.constant 0 : index
    %266 = vector.load %arg14[%c0_85, %c0_86] : memref<32x128xbf16, #tpu.memory_space<vmem>>, vector<32x128xbf16>
    %c0_87 = arith.constant 0 : index
    %c0_88 = arith.constant 0 : index
    %267 = vector.load %arg15[%c0_87, %c0_88] : memref<1x128xf32, #tpu.memory_space<vmem>>, vector<1x128xf32>
    %c0_89 = arith.constant 0 : index
    %c0_90 = arith.constant 0 : index
    %268 = vector.load %arg16[%c0_89, %c0_90] : memref<32x128xbf16, #tpu.memory_space<vmem>>, vector<32x128xbf16>
    %c0_91 = arith.constant 0 : index
    %c0_92 = arith.constant 0 : index
    %269 = vector.load %arg17[%c0_91, %c0_92] : memref<1x128xf32, #tpu.memory_space<vmem>>, vector<1x128xf32>
    %c0_93 = arith.constant 0 : index
    %c0_94 = arith.constant 0 : index
    %270 = vector.load %arg22[%c0_93, %c0_94] : memref<8x32xf32, #tpu.memory_space<vmem>>, vector<8x32xf32>
    %cst_95 = arith.constant 0.000000e+00 : f32
    %271 = vector.broadcast %cst_95 : f32 to vector<16x32xf32>
    %272 = tpu.concatenate %16, %16 in 0 : vector<8x32xf32>, vector<8x32xf32> -> vector<16x32xf32>
    %273 = tpu.concatenate %15, %15 in 0 : vector<64x32xf32>, vector<64x32xf32> -> vector<128x32xf32>
    %274 = arith.addf %271, %272 : vector<16x32xf32>
    %275 = vector.extract_strided_slice %266 {offsets = [0, 0], sizes = [32, 64], strides = [1, 1]} : vector<32x128xbf16> to vector<32x64xbf16>
    %276 = arith.truncf %274 : vector<16x32xf32> to vector<16x32xbf16>
    %cst_96 = arith.constant dense<0.000000e+00> : vector<16x64xf32>
    %277 = tpu.matmul %276, %275, %cst_96 {dimension_numbers = #tpu.dot_dimension_numbers<[1], [0], [0], [1], [0, 0, 1, 1], [], []>} : vector<16x32xbf16>, vector<32x64xbf16>, vector<16x64xf32> -> vector<16x64xf32>
    %278 = vector.extract_strided_slice %267 {offsets = [0, 0], sizes = [1, 64], strides = [1, 1]} : vector<1x128xf32> to vector<1x64xf32>
    %279 = vector.broadcast %278 : vector<1x64xf32> to vector<16x64xf32>
    %280 = arith.addf %277, %279 : vector<16x64xf32>
    %281 = vector.extract_strided_slice %266 {offsets = [0, 64], sizes = [32, 32], strides = [1, 1]} : vector<32x128xbf16> to vector<32x32xbf16>
    %282 = arith.truncf %271 : vector<16x32xf32> to vector<16x32xbf16>
    %cst_97 = arith.constant dense<0.000000e+00> : vector<16x32xf32>
    %283 = tpu.matmul %282, %281, %cst_97 {dimension_numbers = #tpu.dot_dimension_numbers<[1], [0], [0], [1], [0, 0, 1, 1], [], []>} : vector<16x32xbf16>, vector<32x32xbf16>, vector<16x32xf32> -> vector<16x32xf32>
    %284 = vector.extract_strided_slice %267 {offsets = [0, 64], sizes = [1, 32], strides = [1, 1]} : vector<1x128xf32> to vector<1x32xf32>
    %285 = vector.broadcast %284 : vector<1x32xf32> to vector<16x32xf32>
    %286 = arith.addf %283, %285 : vector<16x32xf32>
    %287 = vector.extract_strided_slice %280 {offsets = [0, 0], sizes = [8, 32], strides = [1, 1]} : vector<16x64xf32> to vector<8x32xf32>
    %288 = vector.extract_strided_slice %280 {offsets = [0, 32], sizes = [8, 32], strides = [1, 1]} : vector<16x64xf32> to vector<8x32xf32>
    %289 = vector.extract_strided_slice %286 {offsets = [0, 0], sizes = [8, 32], strides = [1, 1]} : vector<16x32xf32> to vector<8x32xf32>
    %290 = arith.truncf %287 : vector<8x32xf32> to vector<8x32xbf16>
    %291 = arith.truncf %288 : vector<8x32xf32> to vector<8x32xbf16>
    %292 = arith.truncf %289 : vector<8x32xf32> to vector<8x32xbf16>
    %293 = vector.extract_strided_slice %290 {offsets = [0, 0], sizes = [8, 8], strides = [1, 1]} : vector<8x32xbf16> to vector<8x8xbf16>
    %294 = vector.extract_strided_slice %291 {offsets = [0, 0], sizes = [8, 8], strides = [1, 1]} : vector<8x32xbf16> to vector<8x8xbf16>
    %cst_98 = arith.constant dense<0.000000e+00> : vector<8x8xf32>
    %295 = tpu.matmul %293, %294, %cst_98 {dimension_numbers = #tpu.dot_dimension_numbers<[1], [1], [0], [0], [0, 0, 1, 0], [], []>} : vector<8x8xbf16>, vector<8x8xbf16>, vector<8x8xf32> -> vector<8x8xf32>
    %cst_99 = arith.constant 0.353553385 : f32
    %296 = vector.broadcast %cst_99 : f32 to vector<8x8xf32>
    %297 = arith.mulf %295, %296 : vector<8x8xf32>
    %cst_100 = arith.constant dense<0xFF800000> : vector<8xf32>
    %298 = vector.multi_reduction <maximumf>, %297, %cst_100 [1] : vector<8x8xf32> to vector<8xf32>
    %299 = vector.shape_cast %298 : vector<8xf32> to vector<8x1xf32>
    %300 = vector.broadcast %299 : vector<8x1xf32> to vector<8x8xf32>
    %301 = arith.subf %297, %300 : vector<8x8xf32>
    %302 = math.exp %301 : vector<8x8xf32>
    %cst_101 = arith.constant dense<0.000000e+00> : vector<8xf32>
    %303 = vector.multi_reduction <add>, %302, %cst_101 [1] : vector<8x8xf32> to vector<8xf32>
    %304 = vector.shape_cast %303 : vector<8xf32> to vector<8x1xf32>
    %305 = tpu.reciprocal %304 {approx = true} : vector<8x1xf32> -> vector<8x1xf32>
    %306 = vector.broadcast %305 : vector<8x1xf32> to vector<8x8xf32>
    %307 = arith.mulf %302, %306 : vector<8x8xf32>
    %308 = arith.truncf %307 : vector<8x8xf32> to vector<8x8xbf16>
    %309 = vector.extract_strided_slice %292 {offsets = [0, 0], sizes = [8, 8], strides = [1, 1]} : vector<8x32xbf16> to vector<8x8xbf16>
    %cst_102 = arith.constant dense<0.000000e+00> : vector<8x8xf32>
    %310 = tpu.matmul %308, %309, %cst_102 {dimension_numbers = #tpu.dot_dimension_numbers<[1], [0], [0], [1], [0, 0, 1, 1], [], []>} : vector<8x8xbf16>, vector<8x8xbf16>, vector<8x8xf32> -> vector<8x8xf32>
    %311 = vector.extract_strided_slice %290 {offsets = [0, 8], sizes = [8, 8], strides = [1, 1]} : vector<8x32xbf16> to vector<8x8xbf16>
    %312 = vector.extract_strided_slice %291 {offsets = [0, 8], sizes = [8, 8], strides = [1, 1]} : vector<8x32xbf16> to vector<8x8xbf16>
    %cst_103 = arith.constant dense<0.000000e+00> : vector<8x8xf32>
    %313 = tpu.matmul %311, %312, %cst_103 {dimension_numbers = #tpu.dot_dimension_numbers<[1], [1], [0], [0], [0, 0, 1, 0], [], []>} : vector<8x8xbf16>, vector<8x8xbf16>, vector<8x8xf32> -> vector<8x8xf32>
    %cst_104 = arith.constant 0.353553385 : f32
    %314 = vector.broadcast %cst_104 : f32 to vector<8x8xf32>
    %315 = arith.mulf %313, %314 : vector<8x8xf32>
    %cst_105 = arith.constant dense<0xFF800000> : vector<8xf32>
    %316 = vector.multi_reduction <maximumf>, %315, %cst_105 [1] : vector<8x8xf32> to vector<8xf32>
    %317 = vector.shape_cast %316 : vector<8xf32> to vector<8x1xf32>
    %318 = vector.broadcast %317 : vector<8x1xf32> to vector<8x8xf32>
    %319 = arith.subf %315, %318 : vector<8x8xf32>
    %320 = math.exp %319 : vector<8x8xf32>
    %cst_106 = arith.constant dense<0.000000e+00> : vector<8xf32>
    %321 = vector.multi_reduction <add>, %320, %cst_106 [1] : vector<8x8xf32> to vector<8xf32>
    %322 = vector.shape_cast %321 : vector<8xf32> to vector<8x1xf32>
    %323 = tpu.reciprocal %322 {approx = true} : vector<8x1xf32> -> vector<8x1xf32>
    %324 = vector.broadcast %323 : vector<8x1xf32> to vector<8x8xf32>
    %325 = arith.mulf %320, %324 : vector<8x8xf32>
    %326 = arith.truncf %325 : vector<8x8xf32> to vector<8x8xbf16>
    %327 = vector.extract_strided_slice %292 {offsets = [0, 8], sizes = [8, 8], strides = [1, 1]} : vector<8x32xbf16> to vector<8x8xbf16>
    %cst_107 = arith.constant dense<0.000000e+00> : vector<8x8xf32>
    %328 = tpu.matmul %326, %327, %cst_107 {dimension_numbers = #tpu.dot_dimension_numbers<[1], [0], [0], [1], [0, 0, 1, 1], [], []>} : vector<8x8xbf16>, vector<8x8xbf16>, vector<8x8xf32> -> vector<8x8xf32>
    %329 = vector.extract_strided_slice %290 {offsets = [0, 16], sizes = [8, 8], strides = [1, 1]} : vector<8x32xbf16> to vector<8x8xbf16>
    %330 = vector.extract_strided_slice %291 {offsets = [0, 16], sizes = [8, 8], strides = [1, 1]} : vector<8x32xbf16> to vector<8x8xbf16>
    %cst_108 = arith.constant dense<0.000000e+00> : vector<8x8xf32>
    %331 = tpu.matmul %329, %330, %cst_108 {dimension_numbers = #tpu.dot_dimension_numbers<[1], [1], [0], [0], [0, 0, 1, 0], [], []>} : vector<8x8xbf16>, vector<8x8xbf16>, vector<8x8xf32> -> vector<8x8xf32>
    %cst_109 = arith.constant 0.353553385 : f32
    %332 = vector.broadcast %cst_109 : f32 to vector<8x8xf32>
    %333 = arith.mulf %331, %332 : vector<8x8xf32>
    %cst_110 = arith.constant dense<0xFF800000> : vector<8xf32>
    %334 = vector.multi_reduction <maximumf>, %333, %cst_110 [1] : vector<8x8xf32> to vector<8xf32>
    %335 = vector.shape_cast %334 : vector<8xf32> to vector<8x1xf32>
    %336 = vector.broadcast %335 : vector<8x1xf32> to vector<8x8xf32>
    %337 = arith.subf %333, %336 : vector<8x8xf32>
    %338 = math.exp %337 : vector<8x8xf32>
    %cst_111 = arith.constant dense<0.000000e+00> : vector<8xf32>
    %339 = vector.multi_reduction <add>, %338, %cst_111 [1] : vector<8x8xf32> to vector<8xf32>
    %340 = vector.shape_cast %339 : vector<8xf32> to vector<8x1xf32>
    %341 = tpu.reciprocal %340 {approx = true} : vector<8x1xf32> -> vector<8x1xf32>
    %342 = vector.broadcast %341 : vector<8x1xf32> to vector<8x8xf32>
    %343 = arith.mulf %338, %342 : vector<8x8xf32>
    %344 = arith.truncf %343 : vector<8x8xf32> to vector<8x8xbf16>
    %345 = vector.extract_strided_slice %292 {offsets = [0, 16], sizes = [8, 8], strides = [1, 1]} : vector<8x32xbf16> to vector<8x8xbf16>
    %cst_112 = arith.constant dense<0.000000e+00> : vector<8x8xf32>
    %346 = tpu.matmul %344, %345, %cst_112 {dimension_numbers = #tpu.dot_dimension_numbers<[1], [0], [0], [1], [0, 0, 1, 1], [], []>} : vector<8x8xbf16>, vector<8x8xbf16>, vector<8x8xf32> -> vector<8x8xf32>
    %347 = vector.extract_strided_slice %290 {offsets = [0, 24], sizes = [8, 8], strides = [1, 1]} : vector<8x32xbf16> to vector<8x8xbf16>
    %348 = vector.extract_strided_slice %291 {offsets = [0, 24], sizes = [8, 8], strides = [1, 1]} : vector<8x32xbf16> to vector<8x8xbf16>
    %cst_113 = arith.constant dense<0.000000e+00> : vector<8x8xf32>
    %349 = tpu.matmul %347, %348, %cst_113 {dimension_numbers = #tpu.dot_dimension_numbers<[1], [1], [0], [0], [0, 0, 1, 0], [], []>} : vector<8x8xbf16>, vector<8x8xbf16>, vector<8x8xf32> -> vector<8x8xf32>
    %cst_114 = arith.constant 0.353553385 : f32
    %350 = vector.broadcast %cst_114 : f32 to vector<8x8xf32>
    %351 = arith.mulf %349, %350 : vector<8x8xf32>
    %cst_115 = arith.constant dense<0xFF800000> : vector<8xf32>
    %352 = vector.multi_reduction <maximumf>, %351, %cst_115 [1] : vector<8x8xf32> to vector<8xf32>
    %353 = vector.shape_cast %352 : vector<8xf32> to vector<8x1xf32>
    %354 = vector.broadcast %353 : vector<8x1xf32> to vector<8x8xf32>
    %355 = arith.subf %351, %354 : vector<8x8xf32>
    %356 = math.exp %355 : vector<8x8xf32>
    %cst_116 = arith.constant dense<0.000000e+00> : vector<8xf32>
    %357 = vector.multi_reduction <add>, %356, %cst_116 [1] : vector<8x8xf32> to vector<8xf32>
    %358 = vector.shape_cast %357 : vector<8xf32> to vector<8x1xf32>
    %359 = tpu.reciprocal %358 {approx = true} : vector<8x1xf32> -> vector<8x1xf32>
    %360 = vector.broadcast %359 : vector<8x1xf32> to vector<8x8xf32>
    %361 = arith.mulf %356, %360 : vector<8x8xf32>
    %362 = arith.truncf %361 : vector<8x8xf32> to vector<8x8xbf16>
    %363 = vector.extract_strided_slice %292 {offsets = [0, 24], sizes = [8, 8], strides = [1, 1]} : vector<8x32xbf16> to vector<8x8xbf16>
    %cst_117 = arith.constant dense<0.000000e+00> : vector<8x8xf32>
    %364 = tpu.matmul %362, %363, %cst_117 {dimension_numbers = #tpu.dot_dimension_numbers<[1], [0], [0], [1], [0, 0, 1, 1], [], []>} : vector<8x8xbf16>, vector<8x8xbf16>, vector<8x8xf32> -> vector<8x8xf32>
    %365 = tpu.concatenate %310, %328, %346, %364 in 1 : vector<8x8xf32>, vector<8x8xf32>, vector<8x8xf32>, vector<8x8xf32> -> vector<8x32xf32>
    %366 = vector.extract_strided_slice %280 {offsets = [8, 0], sizes = [8, 32], strides = [1, 1]} : vector<16x64xf32> to vector<8x32xf32>
    %367 = vector.extract_strided_slice %280 {offsets = [8, 32], sizes = [8, 32], strides = [1, 1]} : vector<16x64xf32> to vector<8x32xf32>
    %368 = vector.extract_strided_slice %286 {offsets = [8, 0], sizes = [8, 32], strides = [1, 1]} : vector<16x32xf32> to vector<8x32xf32>
    %369 = arith.truncf %366 : vector<8x32xf32> to vector<8x32xbf16>
    %370 = arith.truncf %367 : vector<8x32xf32> to vector<8x32xbf16>
    %371 = arith.truncf %368 : vector<8x32xf32> to vector<8x32xbf16>
    %372 = vector.extract_strided_slice %369 {offsets = [0, 0], sizes = [8, 8], strides = [1, 1]} : vector<8x32xbf16> to vector<8x8xbf16>
    %373 = vector.extract_strided_slice %370 {offsets = [0, 0], sizes = [8, 8], strides = [1, 1]} : vector<8x32xbf16> to vector<8x8xbf16>
    %cst_118 = arith.constant dense<0.000000e+00> : vector<8x8xf32>
    %374 = tpu.matmul %372, %373, %cst_118 {dimension_numbers = #tpu.dot_dimension_numbers<[1], [1], [0], [0], [0, 0, 1, 0], [], []>} : vector<8x8xbf16>, vector<8x8xbf16>, vector<8x8xf32> -> vector<8x8xf32>
    %cst_119 = arith.constant 0.353553385 : f32
    %375 = vector.broadcast %cst_119 : f32 to vector<8x8xf32>
    %376 = arith.mulf %374, %375 : vector<8x8xf32>
    %cst_120 = arith.constant dense<0xFF800000> : vector<8xf32>
    %377 = vector.multi_reduction <maximumf>, %376, %cst_120 [1] : vector<8x8xf32> to vector<8xf32>
    %378 = vector.shape_cast %377 : vector<8xf32> to vector<8x1xf32>
    %379 = vector.broadcast %378 : vector<8x1xf32> to vector<8x8xf32>
    %380 = arith.subf %376, %379 : vector<8x8xf32>
    %381 = math.exp %380 : vector<8x8xf32>
    %cst_121 = arith.constant dense<0.000000e+00> : vector<8xf32>
    %382 = vector.multi_reduction <add>, %381, %cst_121 [1] : vector<8x8xf32> to vector<8xf32>
    %383 = vector.shape_cast %382 : vector<8xf32> to vector<8x1xf32>
    %384 = tpu.reciprocal %383 {approx = true} : vector<8x1xf32> -> vector<8x1xf32>
    %385 = vector.broadcast %384 : vector<8x1xf32> to vector<8x8xf32>
    %386 = arith.mulf %381, %385 : vector<8x8xf32>
    %387 = arith.truncf %386 : vector<8x8xf32> to vector<8x8xbf16>
    %388 = vector.extract_strided_slice %371 {offsets = [0, 0], sizes = [8, 8], strides = [1, 1]} : vector<8x32xbf16> to vector<8x8xbf16>
    %cst_122 = arith.constant dense<0.000000e+00> : vector<8x8xf32>
    %389 = tpu.matmul %387, %388, %cst_122 {dimension_numbers = #tpu.dot_dimension_numbers<[1], [0], [0], [1], [0, 0, 1, 1], [], []>} : vector<8x8xbf16>, vector<8x8xbf16>, vector<8x8xf32> -> vector<8x8xf32>
    %390 = vector.extract_strided_slice %369 {offsets = [0, 8], sizes = [8, 8], strides = [1, 1]} : vector<8x32xbf16> to vector<8x8xbf16>
    %391 = vector.extract_strided_slice %370 {offsets = [0, 8], sizes = [8, 8], strides = [1, 1]} : vector<8x32xbf16> to vector<8x8xbf16>
    %cst_123 = arith.constant dense<0.000000e+00> : vector<8x8xf32>
    %392 = tpu.matmul %390, %391, %cst_123 {dimension_numbers = #tpu.dot_dimension_numbers<[1], [1], [0], [0], [0, 0, 1, 0], [], []>} : vector<8x8xbf16>, vector<8x8xbf16>, vector<8x8xf32> -> vector<8x8xf32>
    %cst_124 = arith.constant 0.353553385 : f32
    %393 = vector.broadcast %cst_124 : f32 to vector<8x8xf32>
    %394 = arith.mulf %392, %393 : vector<8x8xf32>
    %cst_125 = arith.constant dense<0xFF800000> : vector<8xf32>
    %395 = vector.multi_reduction <maximumf>, %394, %cst_125 [1] : vector<8x8xf32> to vector<8xf32>
    %396 = vector.shape_cast %395 : vector<8xf32> to vector<8x1xf32>
    %397 = vector.broadcast %396 : vector<8x1xf32> to vector<8x8xf32>
    %398 = arith.subf %394, %397 : vector<8x8xf32>
    %399 = math.exp %398 : vector<8x8xf32>
    %cst_126 = arith.constant dense<0.000000e+00> : vector<8xf32>
    %400 = vector.multi_reduction <add>, %399, %cst_126 [1] : vector<8x8xf32> to vector<8xf32>
    %401 = vector.shape_cast %400 : vector<8xf32> to vector<8x1xf32>
    %402 = tpu.reciprocal %401 {approx = true} : vector<8x1xf32> -> vector<8x1xf32>
    %403 = vector.broadcast %402 : vector<8x1xf32> to vector<8x8xf32>
    %404 = arith.mulf %399, %403 : vector<8x8xf32>
    %405 = arith.truncf %404 : vector<8x8xf32> to vector<8x8xbf16>
    %406 = vector.extract_strided_slice %371 {offsets = [0, 8], sizes = [8, 8], strides = [1, 1]} : vector<8x32xbf16> to vector<8x8xbf16>
    %cst_127 = arith.constant dense<0.000000e+00> : vector<8x8xf32>
    %407 = tpu.matmul %405, %406, %cst_127 {dimension_numbers = #tpu.dot_dimension_numbers<[1], [0], [0], [1], [0, 0, 1, 1], [], []>} : vector<8x8xbf16>, vector<8x8xbf16>, vector<8x8xf32> -> vector<8x8xf32>
    %408 = vector.extract_strided_slice %369 {offsets = [0, 16], sizes = [8, 8], strides = [1, 1]} : vector<8x32xbf16> to vector<8x8xbf16>
    %409 = vector.extract_strided_slice %370 {offsets = [0, 16], sizes = [8, 8], strides = [1, 1]} : vector<8x32xbf16> to vector<8x8xbf16>
    %cst_128 = arith.constant dense<0.000000e+00> : vector<8x8xf32>
    %410 = tpu.matmul %408, %409, %cst_128 {dimension_numbers = #tpu.dot_dimension_numbers<[1], [1], [0], [0], [0, 0, 1, 0], [], []>} : vector<8x8xbf16>, vector<8x8xbf16>, vector<8x8xf32> -> vector<8x8xf32>
    %cst_129 = arith.constant 0.353553385 : f32
    %411 = vector.broadcast %cst_129 : f32 to vector<8x8xf32>
    %412 = arith.mulf %410, %411 : vector<8x8xf32>
    %cst_130 = arith.constant dense<0xFF800000> : vector<8xf32>
    %413 = vector.multi_reduction <maximumf>, %412, %cst_130 [1] : vector<8x8xf32> to vector<8xf32>
    %414 = vector.shape_cast %413 : vector<8xf32> to vector<8x1xf32>
    %415 = vector.broadcast %414 : vector<8x1xf32> to vector<8x8xf32>
    %416 = arith.subf %412, %415 : vector<8x8xf32>
    %417 = math.exp %416 : vector<8x8xf32>
    %cst_131 = arith.constant dense<0.000000e+00> : vector<8xf32>
    %418 = vector.multi_reduction <add>, %417, %cst_131 [1] : vector<8x8xf32> to vector<8xf32>
    %419 = vector.shape_cast %418 : vector<8xf32> to vector<8x1xf32>
    %420 = tpu.reciprocal %419 {approx = true} : vector<8x1xf32> -> vector<8x1xf32>
    %421 = vector.broadcast %420 : vector<8x1xf32> to vector<8x8xf32>
    %422 = arith.mulf %417, %421 : vector<8x8xf32>
    %423 = arith.truncf %422 : vector<8x8xf32> to vector<8x8xbf16>
    %424 = vector.extract_strided_slice %371 {offsets = [0, 16], sizes = [8, 8], strides = [1, 1]} : vector<8x32xbf16> to vector<8x8xbf16>
    %cst_132 = arith.constant dense<0.000000e+00> : vector<8x8xf32>
    %425 = tpu.matmul %423, %424, %cst_132 {dimension_numbers = #tpu.dot_dimension_numbers<[1], [0], [0], [1], [0, 0, 1, 1], [], []>} : vector<8x8xbf16>, vector<8x8xbf16>, vector<8x8xf32> -> vector<8x8xf32>
    %426 = vector.extract_strided_slice %369 {offsets = [0, 24], sizes = [8, 8], strides = [1, 1]} : vector<8x32xbf16> to vector<8x8xbf16>
    %427 = vector.extract_strided_slice %370 {offsets = [0, 24], sizes = [8, 8], strides = [1, 1]} : vector<8x32xbf16> to vector<8x8xbf16>
    %cst_133 = arith.constant dense<0.000000e+00> : vector<8x8xf32>
    %428 = tpu.matmul %426, %427, %cst_133 {dimension_numbers = #tpu.dot_dimension_numbers<[1], [1], [0], [0], [0, 0, 1, 0], [], []>} : vector<8x8xbf16>, vector<8x8xbf16>, vector<8x8xf32> -> vector<8x8xf32>
    %cst_134 = arith.constant 0.353553385 : f32
    %429 = vector.broadcast %cst_134 : f32 to vector<8x8xf32>
    %430 = arith.mulf %428, %429 : vector<8x8xf32>
    %cst_135 = arith.constant dense<0xFF800000> : vector<8xf32>
    %431 = vector.multi_reduction <maximumf>, %430, %cst_135 [1] : vector<8x8xf32> to vector<8xf32>
    %432 = vector.shape_cast %431 : vector<8xf32> to vector<8x1xf32>
    %433 = vector.broadcast %432 : vector<8x1xf32> to vector<8x8xf32>
    %434 = arith.subf %430, %433 : vector<8x8xf32>
    %435 = math.exp %434 : vector<8x8xf32>
    %cst_136 = arith.constant dense<0.000000e+00> : vector<8xf32>
    %436 = vector.multi_reduction <add>, %435, %cst_136 [1] : vector<8x8xf32> to vector<8xf32>
    %437 = vector.shape_cast %436 : vector<8xf32> to vector<8x1xf32>
    %438 = tpu.reciprocal %437 {approx = true} : vector<8x1xf32> -> vector<8x1xf32>
    %439 = vector.broadcast %438 : vector<8x1xf32> to vector<8x8xf32>
    %440 = arith.mulf %435, %439 : vector<8x8xf32>
    %441 = arith.truncf %440 : vector<8x8xf32> to vector<8x8xbf16>
    %442 = vector.extract_strided_slice %371 {offsets = [0, 24], sizes = [8, 8], strides = [1, 1]} : vector<8x32xbf16> to vector<8x8xbf16>
    %cst_137 = arith.constant dense<0.000000e+00> : vector<8x8xf32>
    %443 = tpu.matmul %441, %442, %cst_137 {dimension_numbers = #tpu.dot_dimension_numbers<[1], [0], [0], [1], [0, 0, 1, 1], [], []>} : vector<8x8xbf16>, vector<8x8xbf16>, vector<8x8xf32> -> vector<8x8xf32>
    %444 = tpu.concatenate %389, %407, %425, %443 in 1 : vector<8x8xf32>, vector<8x8xf32>, vector<8x8xf32>, vector<8x8xf32> -> vector<8x32xf32>
    %445 = tpu.concatenate %365, %444 in 0 : vector<8x32xf32>, vector<8x32xf32> -> vector<16x32xf32>
    %446 = vector.extract_strided_slice %266 {offsets = [0, 96], sizes = [32, 32], strides = [1, 1]} : vector<32x128xbf16> to vector<32x32xbf16>
    %447 = arith.truncf %445 : vector<16x32xf32> to vector<16x32xbf16>
    %cst_138 = arith.constant dense<0.000000e+00> : vector<16x32xf32>
    %448 = tpu.matmul %447, %446, %cst_138 {dimension_numbers = #tpu.dot_dimension_numbers<[1], [0], [0], [1], [0, 0, 1, 1], [], []>} : vector<16x32xbf16>, vector<32x32xbf16>, vector<16x32xf32> -> vector<16x32xf32>
    %449 = vector.extract_strided_slice %267 {offsets = [0, 96], sizes = [1, 32], strides = [1, 1]} : vector<1x128xf32> to vector<1x32xf32>
    %450 = vector.broadcast %449 : vector<1x32xf32> to vector<16x32xf32>
    %451 = arith.addf %448, %450 : vector<16x32xf32>
    %452 = arith.addf %271, %451 : vector<16x32xf32>
    %453 = vector.extract_strided_slice %270 {offsets = [0, 0], sizes = [1, 32], strides = [1, 1]} : vector<8x32xf32> to vector<1x32xf32>
    %454 = vector.extract_strided_slice %270 {offsets = [1, 0], sizes = [1, 32], strides = [1, 1]} : vector<8x32xf32> to vector<1x32xf32>
    %cst_139 = arith.constant dense<0.000000e+00> : vector<16xf32>
    %455 = vector.multi_reduction <add>, %452, %cst_139 [1] : vector<16x32xf32> to vector<16xf32>
    %456 = vector.shape_cast %455 : vector<16xf32> to vector<16x1xf32>
    %cst_140 = arith.constant 3.200000e+01 : f32
    %457 = vector.broadcast %cst_140 : f32 to vector<16x1xf32>
    %458 = arith.divf %456, %457 : vector<16x1xf32>
    %459 = vector.broadcast %458 : vector<16x1xf32> to vector<16x32xf32>
    %460 = arith.subf %452, %459 : vector<16x32xf32>
    %461 = arith.mulf %460, %460 : vector<16x32xf32>
    %cst_141 = arith.constant dense<0.000000e+00> : vector<16xf32>
    %462 = vector.multi_reduction <add>, %461, %cst_141 [1] : vector<16x32xf32> to vector<16xf32>
    %463 = vector.shape_cast %462 : vector<16xf32> to vector<16x1xf32>
    %cst_142 = arith.constant 3.200000e+01 : f32
    %464 = vector.broadcast %cst_142 : f32 to vector<16x1xf32>
    %465 = arith.divf %463, %464 : vector<16x1xf32>
    %466 = vector.broadcast %458 : vector<16x1xf32> to vector<16x32xf32>
    %467 = arith.subf %452, %466 : vector<16x32xf32>
    %cst_143 = arith.constant 9.99999974E-6 : f32
    %468 = vector.broadcast %cst_143 : f32 to vector<16x1xf32>
    %469 = arith.addf %465, %468 : vector<16x1xf32>
    %470 = math.rsqrt %469 : vector<16x1xf32>
    %471 = vector.broadcast %470 : vector<16x1xf32> to vector<16x32xf32>
    %472 = arith.mulf %467, %471 : vector<16x32xf32>
    %473 = vector.broadcast %453 : vector<1x32xf32> to vector<16x32xf32>
    %474 = arith.mulf %472, %473 : vector<16x32xf32>
    %475 = vector.broadcast %454 : vector<1x32xf32> to vector<16x32xf32>
    %476 = arith.addf %474, %475 : vector<16x32xf32>
    %477 = arith.addf %476, %272 : vector<16x32xf32>
    %478 = vector.extract_strided_slice %268 {offsets = [0, 0], sizes = [32, 32], strides = [1, 1]} : vector<32x128xbf16> to vector<32x32xbf16>
    %479 = arith.truncf %477 : vector<16x32xf32> to vector<16x32xbf16>
    %cst_144 = arith.constant dense<0.000000e+00> : vector<16x32xf32>
    %480 = tpu.matmul %479, %478, %cst_144 {dimension_numbers = #tpu.dot_dimension_numbers<[1], [0], [0], [1], [0, 0, 1, 1], [], []>} : vector<16x32xbf16>, vector<32x32xbf16>, vector<16x32xf32> -> vector<16x32xf32>
    %481 = vector.extract_strided_slice %269 {offsets = [0, 0], sizes = [1, 32], strides = [1, 1]} : vector<1x128xf32> to vector<1x32xf32>
    %482 = vector.broadcast %481 : vector<1x32xf32> to vector<16x32xf32>
    %483 = arith.addf %480, %482 : vector<16x32xf32>
    %484 = arith.addf %265, %273 : vector<128x32xf32>
    %485 = vector.extract_strided_slice %268 {offsets = [0, 32], sizes = [32, 32], strides = [1, 1]} : vector<32x128xbf16> to vector<32x32xbf16>
    %486 = arith.truncf %484 : vector<128x32xf32> to vector<128x32xbf16>
    %cst_145 = arith.constant dense<0.000000e+00> : vector<128x32xf32>
    %487 = tpu.matmul %486, %485, %cst_145 {dimension_numbers = #tpu.dot_dimension_numbers<[1], [0], [0], [1], [0, 0, 1, 1], [], []>} : vector<128x32xbf16>, vector<32x32xbf16>, vector<128x32xf32> -> vector<128x32xf32>
    %488 = vector.extract_strided_slice %269 {offsets = [0, 32], sizes = [1, 32], strides = [1, 1]} : vector<1x128xf32> to vector<1x32xf32>
    %489 = vector.broadcast %488 : vector<1x32xf32> to vector<128x32xf32>
    %490 = arith.addf %487, %489 : vector<128x32xf32>
    %491 = vector.extract_strided_slice %268 {offsets = [0, 64], sizes = [32, 32], strides = [1, 1]} : vector<32x128xbf16> to vector<32x32xbf16>
    %492 = arith.truncf %265 : vector<128x32xf32> to vector<128x32xbf16>
    %cst_146 = arith.constant dense<0.000000e+00> : vector<128x32xf32>
    %493 = tpu.matmul %492, %491, %cst_146 {dimension_numbers = #tpu.dot_dimension_numbers<[1], [0], [0], [1], [0, 0, 1, 1], [], []>} : vector<128x32xbf16>, vector<32x32xbf16>, vector<128x32xf32> -> vector<128x32xf32>
    %494 = vector.extract_strided_slice %269 {offsets = [0, 64], sizes = [1, 32], strides = [1, 1]} : vector<1x128xf32> to vector<1x32xf32>
    %495 = vector.broadcast %494 : vector<1x32xf32> to vector<128x32xf32>
    %496 = arith.addf %493, %495 : vector<128x32xf32>
    %497 = vector.extract_strided_slice %483 {offsets = [0, 0], sizes = [8, 32], strides = [1, 1]} : vector<16x32xf32> to vector<8x32xf32>
    %498 = vector.extract_strided_slice %490 {offsets = [0, 0], sizes = [64, 32], strides = [1, 1]} : vector<128x32xf32> to vector<64x32xf32>
    %499 = vector.extract_strided_slice %496 {offsets = [0, 0], sizes = [64, 32], strides = [1, 1]} : vector<128x32xf32> to vector<64x32xf32>
    %500 = arith.truncf %497 : vector<8x32xf32> to vector<8x32xbf16>
    %501 = arith.truncf %498 : vector<64x32xf32> to vector<64x32xbf16>
    %502 = arith.truncf %499 : vector<64x32xf32> to vector<64x32xbf16>
    %503 = vector.extract_strided_slice %500 {offsets = [0, 0], sizes = [8, 8], strides = [1, 1]} : vector<8x32xbf16> to vector<8x8xbf16>
    %504 = vector.extract_strided_slice %501 {offsets = [0, 0], sizes = [64, 8], strides = [1, 1]} : vector<64x32xbf16> to vector<64x8xbf16>
    %cst_147 = arith.constant dense<0.000000e+00> : vector<8x64xf32>
    %505 = tpu.matmul %503, %504, %cst_147 {dimension_numbers = #tpu.dot_dimension_numbers<[1], [1], [0], [0], [0, 0, 1, 0], [], []>} : vector<8x8xbf16>, vector<64x8xbf16>, vector<8x64xf32> -> vector<8x64xf32>
    %cst_148 = arith.constant 0.353553385 : f32
    %506 = vector.broadcast %cst_148 : f32 to vector<8x64xf32>
    %507 = arith.mulf %505, %506 : vector<8x64xf32>
    %cst_149 = arith.constant dense<0xFF800000> : vector<8xf32>
    %508 = vector.multi_reduction <maximumf>, %507, %cst_149 [1] : vector<8x64xf32> to vector<8xf32>
    %509 = vector.shape_cast %508 : vector<8xf32> to vector<8x1xf32>
    %510 = vector.broadcast %509 : vector<8x1xf32> to vector<8x64xf32>
    %511 = arith.subf %507, %510 : vector<8x64xf32>
    %512 = math.exp %511 : vector<8x64xf32>
    %cst_150 = arith.constant dense<0.000000e+00> : vector<8xf32>
    %513 = vector.multi_reduction <add>, %512, %cst_150 [1] : vector<8x64xf32> to vector<8xf32>
    %514 = vector.shape_cast %513 : vector<8xf32> to vector<8x1xf32>
    %515 = tpu.reciprocal %514 {approx = true} : vector<8x1xf32> -> vector<8x1xf32>
    %516 = vector.broadcast %515 : vector<8x1xf32> to vector<8x64xf32>
    %517 = arith.mulf %512, %516 : vector<8x64xf32>
    %518 = arith.truncf %517 : vector<8x64xf32> to vector<8x64xbf16>
    %519 = vector.extract_strided_slice %502 {offsets = [0, 0], sizes = [64, 8], strides = [1, 1]} : vector<64x32xbf16> to vector<64x8xbf16>
    %cst_151 = arith.constant dense<0.000000e+00> : vector<8x8xf32>
    %520 = tpu.matmul %518, %519, %cst_151 {dimension_numbers = #tpu.dot_dimension_numbers<[1], [0], [0], [1], [0, 0, 1, 1], [], []>} : vector<8x64xbf16>, vector<64x8xbf16>, vector<8x8xf32> -> vector<8x8xf32>
    %521 = vector.extract_strided_slice %500 {offsets = [0, 8], sizes = [8, 8], strides = [1, 1]} : vector<8x32xbf16> to vector<8x8xbf16>
    %522 = vector.extract_strided_slice %501 {offsets = [0, 8], sizes = [64, 8], strides = [1, 1]} : vector<64x32xbf16> to vector<64x8xbf16>
    %cst_152 = arith.constant dense<0.000000e+00> : vector<8x64xf32>
    %523 = tpu.matmul %521, %522, %cst_152 {dimension_numbers = #tpu.dot_dimension_numbers<[1], [1], [0], [0], [0, 0, 1, 0], [], []>} : vector<8x8xbf16>, vector<64x8xbf16>, vector<8x64xf32> -> vector<8x64xf32>
    %cst_153 = arith.constant 0.353553385 : f32
    %524 = vector.broadcast %cst_153 : f32 to vector<8x64xf32>
    %525 = arith.mulf %523, %524 : vector<8x64xf32>
    %cst_154 = arith.constant dense<0xFF800000> : vector<8xf32>
    %526 = vector.multi_reduction <maximumf>, %525, %cst_154 [1] : vector<8x64xf32> to vector<8xf32>
    %527 = vector.shape_cast %526 : vector<8xf32> to vector<8x1xf32>
    %528 = vector.broadcast %527 : vector<8x1xf32> to vector<8x64xf32>
    %529 = arith.subf %525, %528 : vector<8x64xf32>
    %530 = math.exp %529 : vector<8x64xf32>
    %cst_155 = arith.constant dense<0.000000e+00> : vector<8xf32>
    %531 = vector.multi_reduction <add>, %530, %cst_155 [1] : vector<8x64xf32> to vector<8xf32>
    %532 = vector.shape_cast %531 : vector<8xf32> to vector<8x1xf32>
    %533 = tpu.reciprocal %532 {approx = true} : vector<8x1xf32> -> vector<8x1xf32>
    %534 = vector.broadcast %533 : vector<8x1xf32> to vector<8x64xf32>
    %535 = arith.mulf %530, %534 : vector<8x64xf32>
    %536 = arith.truncf %535 : vector<8x64xf32> to vector<8x64xbf16>
    %537 = vector.extract_strided_slice %502 {offsets = [0, 8], sizes = [64, 8], strides = [1, 1]} : vector<64x32xbf16> to vector<64x8xbf16>
    %cst_156 = arith.constant dense<0.000000e+00> : vector<8x8xf32>
    %538 = tpu.matmul %536, %537, %cst_156 {dimension_numbers = #tpu.dot_dimension_numbers<[1], [0], [0], [1], [0, 0, 1, 1], [], []>} : vector<8x64xbf16>, vector<64x8xbf16>, vector<8x8xf32> -> vector<8x8xf32>
    %539 = vector.extract_strided_slice %500 {offsets = [0, 16], sizes = [8, 8], strides = [1, 1]} : vector<8x32xbf16> to vector<8x8xbf16>
    %540 = vector.extract_strided_slice %501 {offsets = [0, 16], sizes = [64, 8], strides = [1, 1]} : vector<64x32xbf16> to vector<64x8xbf16>
    %cst_157 = arith.constant dense<0.000000e+00> : vector<8x64xf32>
    %541 = tpu.matmul %539, %540, %cst_157 {dimension_numbers = #tpu.dot_dimension_numbers<[1], [1], [0], [0], [0, 0, 1, 0], [], []>} : vector<8x8xbf16>, vector<64x8xbf16>, vector<8x64xf32> -> vector<8x64xf32>
    %cst_158 = arith.constant 0.353553385 : f32
    %542 = vector.broadcast %cst_158 : f32 to vector<8x64xf32>
    %543 = arith.mulf %541, %542 : vector<8x64xf32>
    %cst_159 = arith.constant dense<0xFF800000> : vector<8xf32>
    %544 = vector.multi_reduction <maximumf>, %543, %cst_159 [1] : vector<8x64xf32> to vector<8xf32>
    %545 = vector.shape_cast %544 : vector<8xf32> to vector<8x1xf32>
    %546 = vector.broadcast %545 : vector<8x1xf32> to vector<8x64xf32>
    %547 = arith.subf %543, %546 : vector<8x64xf32>
    %548 = math.exp %547 : vector<8x64xf32>
    %cst_160 = arith.constant dense<0.000000e+00> : vector<8xf32>
    %549 = vector.multi_reduction <add>, %548, %cst_160 [1] : vector<8x64xf32> to vector<8xf32>
    %550 = vector.shape_cast %549 : vector<8xf32> to vector<8x1xf32>
    %551 = tpu.reciprocal %550 {approx = true} : vector<8x1xf32> -> vector<8x1xf32>
    %552 = vector.broadcast %551 : vector<8x1xf32> to vector<8x64xf32>
    %553 = arith.mulf %548, %552 : vector<8x64xf32>
    %554 = arith.truncf %553 : vector<8x64xf32> to vector<8x64xbf16>
    %555 = vector.extract_strided_slice %502 {offsets = [0, 16], sizes = [64, 8], strides = [1, 1]} : vector<64x32xbf16> to vector<64x8xbf16>
    %cst_161 = arith.constant dense<0.000000e+00> : vector<8x8xf32>
    %556 = tpu.matmul %554, %555, %cst_161 {dimension_numbers = #tpu.dot_dimension_numbers<[1], [0], [0], [1], [0, 0, 1, 1], [], []>} : vector<8x64xbf16>, vector<64x8xbf16>, vector<8x8xf32> -> vector<8x8xf32>
    %557 = vector.extract_strided_slice %500 {offsets = [0, 24], sizes = [8, 8], strides = [1, 1]} : vector<8x32xbf16> to vector<8x8xbf16>
    %558 = vector.extract_strided_slice %501 {offsets = [0, 24], sizes = [64, 8], strides = [1, 1]} : vector<64x32xbf16> to vector<64x8xbf16>
    %cst_162 = arith.constant dense<0.000000e+00> : vector<8x64xf32>
    %559 = tpu.matmul %557, %558, %cst_162 {dimension_numbers = #tpu.dot_dimension_numbers<[1], [1], [0], [0], [0, 0, 1, 0], [], []>} : vector<8x8xbf16>, vector<64x8xbf16>, vector<8x64xf32> -> vector<8x64xf32>
    %cst_163 = arith.constant 0.353553385 : f32
    %560 = vector.broadcast %cst_163 : f32 to vector<8x64xf32>
    %561 = arith.mulf %559, %560 : vector<8x64xf32>
    %cst_164 = arith.constant dense<0xFF800000> : vector<8xf32>
    %562 = vector.multi_reduction <maximumf>, %561, %cst_164 [1] : vector<8x64xf32> to vector<8xf32>
    %563 = vector.shape_cast %562 : vector<8xf32> to vector<8x1xf32>
    %564 = vector.broadcast %563 : vector<8x1xf32> to vector<8x64xf32>
    %565 = arith.subf %561, %564 : vector<8x64xf32>
    %566 = math.exp %565 : vector<8x64xf32>
    %cst_165 = arith.constant dense<0.000000e+00> : vector<8xf32>
    %567 = vector.multi_reduction <add>, %566, %cst_165 [1] : vector<8x64xf32> to vector<8xf32>
    %568 = vector.shape_cast %567 : vector<8xf32> to vector<8x1xf32>
    %569 = tpu.reciprocal %568 {approx = true} : vector<8x1xf32> -> vector<8x1xf32>
    %570 = vector.broadcast %569 : vector<8x1xf32> to vector<8x64xf32>
    %571 = arith.mulf %566, %570 : vector<8x64xf32>
    %572 = arith.truncf %571 : vector<8x64xf32> to vector<8x64xbf16>
    %573 = vector.extract_strided_slice %502 {offsets = [0, 24], sizes = [64, 8], strides = [1, 1]} : vector<64x32xbf16> to vector<64x8xbf16>
    %cst_166 = arith.constant dense<0.000000e+00> : vector<8x8xf32>
    %574 = tpu.matmul %572, %573, %cst_166 {dimension_numbers = #tpu.dot_dimension_numbers<[1], [0], [0], [1], [0, 0, 1, 1], [], []>} : vector<8x64xbf16>, vector<64x8xbf16>, vector<8x8xf32> -> vector<8x8xf32>
    %575 = tpu.concatenate %520, %538, %556, %574 in 1 : vector<8x8xf32>, vector<8x8xf32>, vector<8x8xf32>, vector<8x8xf32> -> vector<8x32xf32>
    %576 = vector.extract_strided_slice %483 {offsets = [8, 0], sizes = [8, 32], strides = [1, 1]} : vector<16x32xf32> to vector<8x32xf32>
    %577 = vector.extract_strided_slice %490 {offsets = [64, 0], sizes = [64, 32], strides = [1, 1]} : vector<128x32xf32> to vector<64x32xf32>
    %578 = vector.extract_strided_slice %496 {offsets = [64, 0], sizes = [64, 32], strides = [1, 1]} : vector<128x32xf32> to vector<64x32xf32>
    %579 = arith.truncf %576 : vector<8x32xf32> to vector<8x32xbf16>
    %580 = arith.truncf %577 : vector<64x32xf32> to vector<64x32xbf16>
    %581 = arith.truncf %578 : vector<64x32xf32> to vector<64x32xbf16>
    %582 = vector.extract_strided_slice %579 {offsets = [0, 0], sizes = [8, 8], strides = [1, 1]} : vector<8x32xbf16> to vector<8x8xbf16>
    %583 = vector.extract_strided_slice %580 {offsets = [0, 0], sizes = [64, 8], strides = [1, 1]} : vector<64x32xbf16> to vector<64x8xbf16>
    %cst_167 = arith.constant dense<0.000000e+00> : vector<8x64xf32>
    %584 = tpu.matmul %582, %583, %cst_167 {dimension_numbers = #tpu.dot_dimension_numbers<[1], [1], [0], [0], [0, 0, 1, 0], [], []>} : vector<8x8xbf16>, vector<64x8xbf16>, vector<8x64xf32> -> vector<8x64xf32>
    %cst_168 = arith.constant 0.353553385 : f32
    %585 = vector.broadcast %cst_168 : f32 to vector<8x64xf32>
    %586 = arith.mulf %584, %585 : vector<8x64xf32>
    %cst_169 = arith.constant dense<0xFF800000> : vector<8xf32>
    %587 = vector.multi_reduction <maximumf>, %586, %cst_169 [1] : vector<8x64xf32> to vector<8xf32>
    %588 = vector.shape_cast %587 : vector<8xf32> to vector<8x1xf32>
    %589 = vector.broadcast %588 : vector<8x1xf32> to vector<8x64xf32>
    %590 = arith.subf %586, %589 : vector<8x64xf32>
    %591 = math.exp %590 : vector<8x64xf32>
    %cst_170 = arith.constant dense<0.000000e+00> : vector<8xf32>
    %592 = vector.multi_reduction <add>, %591, %cst_170 [1] : vector<8x64xf32> to vector<8xf32>
    %593 = vector.shape_cast %592 : vector<8xf32> to vector<8x1xf32>
    %594 = tpu.reciprocal %593 {approx = true} : vector<8x1xf32> -> vector<8x1xf32>
    %595 = vector.broadcast %594 : vector<8x1xf32> to vector<8x64xf32>
    %596 = arith.mulf %591, %595 : vector<8x64xf32>
    %597 = arith.truncf %596 : vector<8x64xf32> to vector<8x64xbf16>
    %598 = vector.extract_strided_slice %581 {offsets = [0, 0], sizes = [64, 8], strides = [1, 1]} : vector<64x32xbf16> to vector<64x8xbf16>
    %cst_171 = arith.constant dense<0.000000e+00> : vector<8x8xf32>
    %599 = tpu.matmul %597, %598, %cst_171 {dimension_numbers = #tpu.dot_dimension_numbers<[1], [0], [0], [1], [0, 0, 1, 1], [], []>} : vector<8x64xbf16>, vector<64x8xbf16>, vector<8x8xf32> -> vector<8x8xf32>
    %600 = vector.extract_strided_slice %579 {offsets = [0, 8], sizes = [8, 8], strides = [1, 1]} : vector<8x32xbf16> to vector<8x8xbf16>
    %601 = vector.extract_strided_slice %580 {offsets = [0, 8], sizes = [64, 8], strides = [1, 1]} : vector<64x32xbf16> to vector<64x8xbf16>
    %cst_172 = arith.constant dense<0.000000e+00> : vector<8x64xf32>
    %602 = tpu.matmul %600, %601, %cst_172 {dimension_numbers = #tpu.dot_dimension_numbers<[1], [1], [0], [0], [0, 0, 1, 0], [], []>} : vector<8x8xbf16>, vector<64x8xbf16>, vector<8x64xf32> -> vector<8x64xf32>
    %cst_173 = arith.constant 0.353553385 : f32
    %603 = vector.broadcast %cst_173 : f32 to vector<8x64xf32>
    %604 = arith.mulf %602, %603 : vector<8x64xf32>
    %cst_174 = arith.constant dense<0xFF800000> : vector<8xf32>
    %605 = vector.multi_reduction <maximumf>, %604, %cst_174 [1] : vector<8x64xf32> to vector<8xf32>
    %606 = vector.shape_cast %605 : vector<8xf32> to vector<8x1xf32>
    %607 = vector.broadcast %606 : vector<8x1xf32> to vector<8x64xf32>
    %608 = arith.subf %604, %607 : vector<8x64xf32>
    %609 = math.exp %608 : vector<8x64xf32>
    %cst_175 = arith.constant dense<0.000000e+00> : vector<8xf32>
    %610 = vector.multi_reduction <add>, %609, %cst_175 [1] : vector<8x64xf32> to vector<8xf32>
    %611 = vector.shape_cast %610 : vector<8xf32> to vector<8x1xf32>
    %612 = tpu.reciprocal %611 {approx = true} : vector<8x1xf32> -> vector<8x1xf32>
    %613 = vector.broadcast %612 : vector<8x1xf32> to vector<8x64xf32>
    %614 = arith.mulf %609, %613 : vector<8x64xf32>
    %615 = arith.truncf %614 : vector<8x64xf32> to vector<8x64xbf16>
    %616 = vector.extract_strided_slice %581 {offsets = [0, 8], sizes = [64, 8], strides = [1, 1]} : vector<64x32xbf16> to vector<64x8xbf16>
    %cst_176 = arith.constant dense<0.000000e+00> : vector<8x8xf32>
    %617 = tpu.matmul %615, %616, %cst_176 {dimension_numbers = #tpu.dot_dimension_numbers<[1], [0], [0], [1], [0, 0, 1, 1], [], []>} : vector<8x64xbf16>, vector<64x8xbf16>, vector<8x8xf32> -> vector<8x8xf32>
    %618 = vector.extract_strided_slice %579 {offsets = [0, 16], sizes = [8, 8], strides = [1, 1]} : vector<8x32xbf16> to vector<8x8xbf16>
    %619 = vector.extract_strided_slice %580 {offsets = [0, 16], sizes = [64, 8], strides = [1, 1]} : vector<64x32xbf16> to vector<64x8xbf16>
    %cst_177 = arith.constant dense<0.000000e+00> : vector<8x64xf32>
    %620 = tpu.matmul %618, %619, %cst_177 {dimension_numbers = #tpu.dot_dimension_numbers<[1], [1], [0], [0], [0, 0, 1, 0], [], []>} : vector<8x8xbf16>, vector<64x8xbf16>, vector<8x64xf32> -> vector<8x64xf32>
    %cst_178 = arith.constant 0.353553385 : f32
    %621 = vector.broadcast %cst_178 : f32 to vector<8x64xf32>
    %622 = arith.mulf %620, %621 : vector<8x64xf32>
    %cst_179 = arith.constant dense<0xFF800000> : vector<8xf32>
    %623 = vector.multi_reduction <maximumf>, %622, %cst_179 [1] : vector<8x64xf32> to vector<8xf32>
    %624 = vector.shape_cast %623 : vector<8xf32> to vector<8x1xf32>
    %625 = vector.broadcast %624 : vector<8x1xf32> to vector<8x64xf32>
    %626 = arith.subf %622, %625 : vector<8x64xf32>
    %627 = math.exp %626 : vector<8x64xf32>
    %cst_180 = arith.constant dense<0.000000e+00> : vector<8xf32>
    %628 = vector.multi_reduction <add>, %627, %cst_180 [1] : vector<8x64xf32> to vector<8xf32>
    %629 = vector.shape_cast %628 : vector<8xf32> to vector<8x1xf32>
    %630 = tpu.reciprocal %629 {approx = true} : vector<8x1xf32> -> vector<8x1xf32>
    %631 = vector.broadcast %630 : vector<8x1xf32> to vector<8x64xf32>
    %632 = arith.mulf %627, %631 : vector<8x64xf32>
    %633 = arith.truncf %632 : vector<8x64xf32> to vector<8x64xbf16>
    %634 = vector.extract_strided_slice %581 {offsets = [0, 16], sizes = [64, 8], strides = [1, 1]} : vector<64x32xbf16> to vector<64x8xbf16>
    %cst_181 = arith.constant dense<0.000000e+00> : vector<8x8xf32>
    %635 = tpu.matmul %633, %634, %cst_181 {dimension_numbers = #tpu.dot_dimension_numbers<[1], [0], [0], [1], [0, 0, 1, 1], [], []>} : vector<8x64xbf16>, vector<64x8xbf16>, vector<8x8xf32> -> vector<8x8xf32>
    %636 = vector.extract_strided_slice %579 {offsets = [0, 24], sizes = [8, 8], strides = [1, 1]} : vector<8x32xbf16> to vector<8x8xbf16>
    %637 = vector.extract_strided_slice %580 {offsets = [0, 24], sizes = [64, 8], strides = [1, 1]} : vector<64x32xbf16> to vector<64x8xbf16>
    %cst_182 = arith.constant dense<0.000000e+00> : vector<8x64xf32>
    %638 = tpu.matmul %636, %637, %cst_182 {dimension_numbers = #tpu.dot_dimension_numbers<[1], [1], [0], [0], [0, 0, 1, 0], [], []>} : vector<8x8xbf16>, vector<64x8xbf16>, vector<8x64xf32> -> vector<8x64xf32>
    %cst_183 = arith.constant 0.353553385 : f32
    %639 = vector.broadcast %cst_183 : f32 to vector<8x64xf32>
    %640 = arith.mulf %638, %639 : vector<8x64xf32>
    %cst_184 = arith.constant dense<0xFF800000> : vector<8xf32>
    %641 = vector.multi_reduction <maximumf>, %640, %cst_184 [1] : vector<8x64xf32> to vector<8xf32>
    %642 = vector.shape_cast %641 : vector<8xf32> to vector<8x1xf32>
    %643 = vector.broadcast %642 : vector<8x1xf32> to vector<8x64xf32>
    %644 = arith.subf %640, %643 : vector<8x64xf32>
    %645 = math.exp %644 : vector<8x64xf32>
    %cst_185 = arith.constant dense<0.000000e+00> : vector<8xf32>
    %646 = vector.multi_reduction <add>, %645, %cst_185 [1] : vector<8x64xf32> to vector<8xf32>
    %647 = vector.shape_cast %646 : vector<8xf32> to vector<8x1xf32>
    %648 = tpu.reciprocal %647 {approx = true} : vector<8x1xf32> -> vector<8x1xf32>
    %649 = vector.broadcast %648 : vector<8x1xf32> to vector<8x64xf32>
    %650 = arith.mulf %645, %649 : vector<8x64xf32>
    %651 = arith.truncf %650 : vector<8x64xf32> to vector<8x64xbf16>
    %652 = vector.extract_strided_slice %581 {offsets = [0, 24], sizes = [64, 8], strides = [1, 1]} : vector<64x32xbf16> to vector<64x8xbf16>
    %cst_186 = arith.constant dense<0.000000e+00> : vector<8x8xf32>
    %653 = tpu.matmul %651, %652, %cst_186 {dimension_numbers = #tpu.dot_dimension_numbers<[1], [0], [0], [1], [0, 0, 1, 1], [], []>} : vector<8x64xbf16>, vector<64x8xbf16>, vector<8x8xf32> -> vector<8x8xf32>
    %654 = tpu.concatenate %599, %617, %635, %653 in 1 : vector<8x8xf32>, vector<8x8xf32>, vector<8x8xf32>, vector<8x8xf32> -> vector<8x32xf32>
    %655 = tpu.concatenate %575, %654 in 0 : vector<8x32xf32>, vector<8x32xf32> -> vector<16x32xf32>
    %656 = vector.extract_strided_slice %268 {offsets = [0, 96], sizes = [32, 32], strides = [1, 1]} : vector<32x128xbf16> to vector<32x32xbf16>
    %657 = arith.truncf %655 : vector<16x32xf32> to vector<16x32xbf16>
    %cst_187 = arith.constant dense<0.000000e+00> : vector<16x32xf32>
    %658 = tpu.matmul %657, %656, %cst_187 {dimension_numbers = #tpu.dot_dimension_numbers<[1], [0], [0], [1], [0, 0, 1, 1], [], []>} : vector<16x32xbf16>, vector<32x32xbf16>, vector<16x32xf32> -> vector<16x32xf32>
    %659 = vector.extract_strided_slice %269 {offsets = [0, 96], sizes = [1, 32], strides = [1, 1]} : vector<1x128xf32> to vector<1x32xf32>
    %660 = vector.broadcast %659 : vector<1x32xf32> to vector<16x32xf32>
    %661 = arith.addf %658, %660 : vector<16x32xf32>
    %662 = arith.addf %476, %661 : vector<16x32xf32>
    %663 = vector.extract_strided_slice %270 {offsets = [2, 0], sizes = [1, 32], strides = [1, 1]} : vector<8x32xf32> to vector<1x32xf32>
    %664 = vector.extract_strided_slice %270 {offsets = [3, 0], sizes = [1, 32], strides = [1, 1]} : vector<8x32xf32> to vector<1x32xf32>
    %cst_188 = arith.constant dense<0.000000e+00> : vector<16xf32>
    %665 = vector.multi_reduction <add>, %662, %cst_188 [1] : vector<16x32xf32> to vector<16xf32>
    %666 = vector.shape_cast %665 : vector<16xf32> to vector<16x1xf32>
    %cst_189 = arith.constant 3.200000e+01 : f32
    %667 = vector.broadcast %cst_189 : f32 to vector<16x1xf32>
    %668 = arith.divf %666, %667 : vector<16x1xf32>
    %669 = vector.broadcast %668 : vector<16x1xf32> to vector<16x32xf32>
    %670 = arith.subf %662, %669 : vector<16x32xf32>
    %671 = arith.mulf %670, %670 : vector<16x32xf32>
    %cst_190 = arith.constant dense<0.000000e+00> : vector<16xf32>
    %672 = vector.multi_reduction <add>, %671, %cst_190 [1] : vector<16x32xf32> to vector<16xf32>
    %673 = vector.shape_cast %672 : vector<16xf32> to vector<16x1xf32>
    %cst_191 = arith.constant 3.200000e+01 : f32
    %674 = vector.broadcast %cst_191 : f32 to vector<16x1xf32>
    %675 = arith.divf %673, %674 : vector<16x1xf32>
    %676 = vector.broadcast %668 : vector<16x1xf32> to vector<16x32xf32>
    %677 = arith.subf %662, %676 : vector<16x32xf32>
    %cst_192 = arith.constant 9.99999974E-6 : f32
    %678 = vector.broadcast %cst_192 : f32 to vector<16x1xf32>
    %679 = arith.addf %675, %678 : vector<16x1xf32>
    %680 = math.rsqrt %679 : vector<16x1xf32>
    %681 = vector.broadcast %680 : vector<16x1xf32> to vector<16x32xf32>
    %682 = arith.mulf %677, %681 : vector<16x32xf32>
    %683 = vector.broadcast %663 : vector<1x32xf32> to vector<16x32xf32>
    %684 = arith.mulf %682, %683 : vector<16x32xf32>
    %685 = vector.broadcast %664 : vector<1x32xf32> to vector<16x32xf32>
    %686 = arith.addf %684, %685 : vector<16x32xf32>
    %c0_193 = arith.constant 0 : index
    %c0_194 = arith.constant 0 : index
    %687 = vector.load %arg18[%c0_193, %c0_194] : memref<32x64xbf16, #tpu.memory_space<vmem>>, vector<32x64xbf16>
    %688 = arith.truncf %686 : vector<16x32xf32> to vector<16x32xbf16>
    %cst_195 = arith.constant dense<0.000000e+00> : vector<16x64xf32>
    %689 = tpu.matmul %688, %687, %cst_195 {dimension_numbers = #tpu.dot_dimension_numbers<[1], [0], [0], [1], [0, 0, 1, 1], [], []>} : vector<16x32xbf16>, vector<32x64xbf16>, vector<16x64xf32> -> vector<16x64xf32>
    %c0_196 = arith.constant 0 : index
    %c0_197 = arith.constant 0 : index
    %690 = vector.load %arg19[%c0_196, %c0_197] : memref<1x64xf32, #tpu.memory_space<vmem>>, vector<1x64xf32>
    %691 = vector.broadcast %690 : vector<1x64xf32> to vector<16x64xf32>
    %692 = arith.addf %689, %691 : vector<16x64xf32>
    %cst_198 = arith.constant 0.000000e+00 : f32
    %693 = vector.broadcast %cst_198 : f32 to vector<16x64xf32>
    %694 = arith.maximumf %692, %693 : vector<16x64xf32>
    %c0_199 = arith.constant 0 : index
    %c0_200 = arith.constant 0 : index
    %695 = vector.load %arg20[%c0_199, %c0_200] : memref<64x32xbf16, #tpu.memory_space<vmem>>, vector<64x32xbf16>
    %696 = arith.truncf %694 : vector<16x64xf32> to vector<16x64xbf16>
    %cst_201 = arith.constant dense<0.000000e+00> : vector<16x32xf32>
    %697 = tpu.matmul %696, %695, %cst_201 {dimension_numbers = #tpu.dot_dimension_numbers<[1], [0], [0], [1], [0, 0, 1, 1], [], []>} : vector<16x64xbf16>, vector<64x32xbf16>, vector<16x32xf32> -> vector<16x32xf32>
    %c0_202 = arith.constant 0 : index
    %c0_203 = arith.constant 0 : index
    %698 = vector.load %arg21[%c0_202, %c0_203] : memref<1x32xf32, #tpu.memory_space<vmem>>, vector<1x32xf32>
    %699 = vector.broadcast %698 : vector<1x32xf32> to vector<16x32xf32>
    %700 = arith.addf %697, %699 : vector<16x32xf32>
    %701 = arith.addf %686, %700 : vector<16x32xf32>
    %702 = vector.extract_strided_slice %270 {offsets = [4, 0], sizes = [1, 32], strides = [1, 1]} : vector<8x32xf32> to vector<1x32xf32>
    %703 = vector.extract_strided_slice %270 {offsets = [5, 0], sizes = [1, 32], strides = [1, 1]} : vector<8x32xf32> to vector<1x32xf32>
    %cst_204 = arith.constant dense<0.000000e+00> : vector<16xf32>
    %704 = vector.multi_reduction <add>, %701, %cst_204 [1] : vector<16x32xf32> to vector<16xf32>
    %705 = vector.shape_cast %704 : vector<16xf32> to vector<16x1xf32>
    %cst_205 = arith.constant 3.200000e+01 : f32
    %706 = vector.broadcast %cst_205 : f32 to vector<16x1xf32>
    %707 = arith.divf %705, %706 : vector<16x1xf32>
    %708 = vector.broadcast %707 : vector<16x1xf32> to vector<16x32xf32>
    %709 = arith.subf %701, %708 : vector<16x32xf32>
    %710 = arith.mulf %709, %709 : vector<16x32xf32>
    %cst_206 = arith.constant dense<0.000000e+00> : vector<16xf32>
    %711 = vector.multi_reduction <add>, %710, %cst_206 [1] : vector<16x32xf32> to vector<16xf32>
    %712 = vector.shape_cast %711 : vector<16xf32> to vector<16x1xf32>
    %cst_207 = arith.constant 3.200000e+01 : f32
    %713 = vector.broadcast %cst_207 : f32 to vector<16x1xf32>
    %714 = arith.divf %712, %713 : vector<16x1xf32>
    %715 = vector.broadcast %707 : vector<16x1xf32> to vector<16x32xf32>
    %716 = arith.subf %701, %715 : vector<16x32xf32>
    %cst_208 = arith.constant 9.99999974E-6 : f32
    %717 = vector.broadcast %cst_208 : f32 to vector<16x1xf32>
    %718 = arith.addf %714, %717 : vector<16x1xf32>
    %719 = math.rsqrt %718 : vector<16x1xf32>
    %720 = vector.broadcast %719 : vector<16x1xf32> to vector<16x32xf32>
    %721 = arith.mulf %716, %720 : vector<16x32xf32>
    %722 = vector.broadcast %702 : vector<1x32xf32> to vector<16x32xf32>
    %723 = arith.mulf %721, %722 : vector<16x32xf32>
    %724 = vector.broadcast %703 : vector<1x32xf32> to vector<16x32xf32>
    %725 = arith.addf %723, %724 : vector<16x32xf32>
    %726 = vector.extract_strided_slice %270 {offsets = [6, 0], sizes = [1, 32], strides = [1, 1]} : vector<8x32xf32> to vector<1x32xf32>
    %727 = vector.extract_strided_slice %270 {offsets = [7, 0], sizes = [1, 32], strides = [1, 1]} : vector<8x32xf32> to vector<1x32xf32>
    %cst_209 = arith.constant dense<0.000000e+00> : vector<16xf32>
    %728 = vector.multi_reduction <add>, %725, %cst_209 [1] : vector<16x32xf32> to vector<16xf32>
    %729 = vector.shape_cast %728 : vector<16xf32> to vector<16x1xf32>
    %cst_210 = arith.constant 3.200000e+01 : f32
    %730 = vector.broadcast %cst_210 : f32 to vector<16x1xf32>
    %731 = arith.divf %729, %730 : vector<16x1xf32>
    %732 = vector.broadcast %731 : vector<16x1xf32> to vector<16x32xf32>
    %733 = arith.subf %725, %732 : vector<16x32xf32>
    %734 = arith.mulf %733, %733 : vector<16x32xf32>
    %cst_211 = arith.constant dense<0.000000e+00> : vector<16xf32>
    %735 = vector.multi_reduction <add>, %734, %cst_211 [1] : vector<16x32xf32> to vector<16xf32>
    %736 = vector.shape_cast %735 : vector<16xf32> to vector<16x1xf32>
    %cst_212 = arith.constant 3.200000e+01 : f32
    %737 = vector.broadcast %cst_212 : f32 to vector<16x1xf32>
    %738 = arith.divf %736, %737 : vector<16x1xf32>
    %739 = vector.broadcast %731 : vector<16x1xf32> to vector<16x32xf32>
    %740 = arith.subf %725, %739 : vector<16x32xf32>
    %cst_213 = arith.constant 9.99999974E-6 : f32
    %741 = vector.broadcast %cst_213 : f32 to vector<16x1xf32>
    %742 = arith.addf %738, %741 : vector<16x1xf32>
    %743 = math.rsqrt %742 : vector<16x1xf32>
    %744 = vector.broadcast %743 : vector<16x1xf32> to vector<16x32xf32>
    %745 = arith.mulf %740, %744 : vector<16x32xf32>
    %746 = vector.broadcast %726 : vector<1x32xf32> to vector<16x32xf32>
    %747 = arith.mulf %745, %746 : vector<16x32xf32>
    %748 = vector.broadcast %727 : vector<1x32xf32> to vector<16x32xf32>
    %749 = arith.addf %747, %748 : vector<16x32xf32>
    %c0_214 = arith.constant 0 : index
    %c0_215 = arith.constant 0 : index
    %750 = vector.load %arg23[%c0_214, %c0_215] : memref<32x128xbf16, #tpu.memory_space<vmem>>, vector<32x128xbf16>
    %751 = arith.truncf %749 : vector<16x32xf32> to vector<16x32xbf16>
    %cst_216 = arith.constant dense<0.000000e+00> : vector<16x128xf32>
    %752 = tpu.matmul %751, %750, %cst_216 {dimension_numbers = #tpu.dot_dimension_numbers<[1], [0], [0], [1], [0, 0, 1, 1], [], []>} : vector<16x32xbf16>, vector<32x128xbf16>, vector<16x128xf32> -> vector<16x128xf32>
    %c0_217 = arith.constant 0 : index
    %c0_218 = arith.constant 0 : index
    %753 = vector.load %arg24[%c0_217, %c0_218] : memref<1x128xf32, #tpu.memory_space<vmem>>, vector<1x128xf32>
    %754 = vector.broadcast %753 : vector<1x128xf32> to vector<16x128xf32>
    %755 = arith.addf %752, %754 : vector<16x128xf32>
    %c0_219 = arith.constant 0 : index
    %c0_220 = arith.constant 0 : index
    %756 = vector.load %arg25[%c0_219, %c0_220] : memref<32x32xbf16, #tpu.memory_space<vmem>>, vector<32x32xbf16>
    %757 = arith.truncf %749 : vector<16x32xf32> to vector<16x32xbf16>
    %cst_221 = arith.constant dense<0.000000e+00> : vector<16x32xf32>
    %758 = tpu.matmul %757, %756, %cst_221 {dimension_numbers = #tpu.dot_dimension_numbers<[1], [0], [0], [1], [0, 0, 1, 1], [], []>} : vector<16x32xbf16>, vector<32x32xbf16>, vector<16x32xf32> -> vector<16x32xf32>
    %c0_222 = arith.constant 0 : index
    %c0_223 = arith.constant 0 : index
    %759 = vector.load %arg26[%c0_222, %c0_223] : memref<1x32xf32, #tpu.memory_space<vmem>>, vector<1x32xf32>
    %760 = vector.broadcast %759 : vector<1x32xf32> to vector<16x32xf32>
    %761 = arith.addf %758, %760 : vector<16x32xf32>
    %cst_224 = arith.constant 0.000000e+00 : f32
    %762 = vector.broadcast %cst_224 : f32 to vector<16x32xf32>
    %763 = arith.maximumf %761, %762 : vector<16x32xf32>
    %c0_225 = arith.constant 0 : index
    %c0_226 = arith.constant 0 : index
    %764 = vector.load %arg27[%c0_225, %c0_226] : memref<32x32xbf16, #tpu.memory_space<vmem>>, vector<32x32xbf16>
    %765 = arith.truncf %763 : vector<16x32xf32> to vector<16x32xbf16>
    %cst_227 = arith.constant dense<0.000000e+00> : vector<16x32xf32>
    %766 = tpu.matmul %765, %764, %cst_227 {dimension_numbers = #tpu.dot_dimension_numbers<[1], [0], [0], [1], [0, 0, 1, 1], [], []>} : vector<16x32xbf16>, vector<32x32xbf16>, vector<16x32xf32> -> vector<16x32xf32>
    %c0_228 = arith.constant 0 : index
    %c0_229 = arith.constant 0 : index
    %767 = vector.load %arg28[%c0_228, %c0_229] : memref<1x32xf32, #tpu.memory_space<vmem>>, vector<1x32xf32>
    %768 = vector.broadcast %767 : vector<1x32xf32> to vector<16x32xf32>
    %769 = arith.addf %766, %768 : vector<16x32xf32>
    %cst_230 = arith.constant 0.000000e+00 : f32
    %770 = vector.broadcast %cst_230 : f32 to vector<16x32xf32>
    %771 = arith.maximumf %769, %770 : vector<16x32xf32>
    %c0_231 = arith.constant 0 : index
    %c0_232 = arith.constant 0 : index
    %772 = vector.load %arg29[%c0_231, %c0_232] : memref<32x128xbf16, #tpu.memory_space<vmem>>, vector<32x128xbf16>
    %773 = arith.truncf %771 : vector<16x32xf32> to vector<16x32xbf16>
    %cst_233 = arith.constant dense<0.000000e+00> : vector<16x128xf32>
    %774 = tpu.matmul %773, %772, %cst_233 {dimension_numbers = #tpu.dot_dimension_numbers<[1], [0], [0], [1], [0, 0, 1, 1], [], []>} : vector<16x32xbf16>, vector<32x128xbf16>, vector<16x128xf32> -> vector<16x128xf32>
    %c0_234 = arith.constant 0 : index
    %c0_235 = arith.constant 0 : index
    %775 = vector.load %arg30[%c0_234, %c0_235] : memref<1x128xf32, #tpu.memory_space<vmem>>, vector<1x128xf32>
    %776 = vector.broadcast %775 : vector<1x128xf32> to vector<16x128xf32>
    %777 = arith.addf %774, %776 : vector<16x128xf32>
    %778 = arith.negf %777 : vector<16x128xf32>
    %779 = math.exp %778 : vector<16x128xf32>
    %cst_236 = arith.constant 1.000000e+00 : f32
    %780 = vector.broadcast %cst_236 : f32 to vector<16x128xf32>
    %781 = arith.addf %780, %779 : vector<16x128xf32>
    %782 = arith.divf %780, %781 : vector<16x128xf32>
    %783 = tpu.iota {dimensions = array<i32: 1>} : vector<16x128xi32>
    %c92_i32 = arith.constant 92 : i32
    %784 = vector.broadcast %c92_i32 : i32 to vector<16x128xi32>
    %785 = arith.cmpi sge, %783, %784 : vector<16x128xi32>
    %c96_i32 = arith.constant 96 : i32
    %786 = vector.broadcast %c96_i32 : i32 to vector<16x128xi32>
    %787 = arith.cmpi slt, %783, %786 : vector<16x128xi32>
    %788 = arith.andi %785, %787 : vector<16x128xi1>
    %cst_237 = arith.constant 0.000000e+00 : f32
    %789 = vector.broadcast %cst_237 : f32 to vector<16x128xf32>
    %790 = arith.select %788, %782, %789 : vector<16x128xi1>, vector<16x128xf32>
    %791 = arith.addf %755, %790 : vector<16x128xf32>
    %c0_238 = arith.constant 0 : index
    %c0_239 = arith.constant 0 : index
    %792 = vector.load %arg31[%c0_238, %c0_239] : memref<16x128xf32, #tpu.memory_space<vmem>>, vector<16x128xf32>
    tpu.vector_store %arg31[%c0_238, %c0_239], %791 {strides = array<i32>} : memref<16x128xf32, #tpu.memory_space<vmem>>, vector<16x128xf32>,
    return
  }
}

</mosaic_0001>

<bundles_post_ra>
// kernel: detr_forward.1
= control target key start
LH: loop header
LB: loop body
LE: loop exit
PB: predicated region body
PF: predicated region fallthrough
CT: control target
= control target key end

     0   :  { %s9700_s3 = smov 3   ;;  %s9701_s10 = smov 5   ;;  %vm186_vm0 = vcmask 392192   ;;  %vm371_vm1 = vcmask 523264   ;;  %vm534_vm2 = vcmask 261120   ;;  %vm765_vm3 = vcmask 64512   ;;  %s12502_s0 = inlined_call_operand.smem [shape: u32[32], index: -1, kind: input, shape index: {}] }
   0x1   :  { %s7578_s6 = sld [smem:[%s12502_s0 + %s9700_s3]]   ;;  %s9702_s14 = smov 4   ;;  %vm2034_vm4 = vcmask 130048   ;;  %vm2043_vm5 = vcmask 195584   ;;  %vm9727_vm6 = vmmov 0   ;;  %vm4562_vm7 = vcmask 1043456  }
   0x2   :  { %s9757_s9 = sld [smem:[%s12502_s0]]   ;;  %s9703_s18 = smov 7  }
   0x3   :  { %s9762_s13 = sld [smem:[%s12502_s0 + %s9701_s10]]   ;;  %s9704_s22 = smov 1  }
   0x4   :  { %s7579_s17 = sld [smem:[%s12502_s0 + %s9702_s14]]   ;;  %s9705_s26 = smov 6  }
   0x5   :  { %s9806_s21 = sld [smem:[%s12502_s0 + %s9703_s18]]   ;;  %s9706_s30 = smov 8  }
   0x6   :  { %s9812_s25 = sld [smem:[%s12502_s0 + %s9704_s22]]   ;;  %s9707_s4 = smov 96  }
   0x7   :  { %v9241_v0 = vld [vmem:[%s7578_s6] sm:$0xff]   ;;  %v9242_v1 = vld [vmem:[%s7578_s6 + $0x8] sm:$0xff]   ;;  %v9243_v4 = vld [vmem:[%s7578_s6 + $0x10] sm:$0xff]   ;;  %s7581_s29 = sld [smem:[%s12502_s0 + %s9705_s26]]   ;;  %s9708_s5 = smov 64  }
   0x8   :  { %8195 = vmatprep.subr.bf16.mxu0 %v9241_v0  ;;  %v131_v2 = vld [vmem:[%s9757_s9] sm:$0xff]  ;;  %v132_v3 = vld [vmem:[%s9757_s9 + $0x8] sm:$0xff]  ;;  %v133_v6 = vld [vmem:[%s9757_s9 + $0x10] sm:$0xff]  ;;  %s9898_s3 = sld [smem:[%s12502_s0 + %s9706_s30]]   ;;  %s9709_s6 = smov 88  }
   0x9   :  { %8196 = vmatpush3.bf16.msra.mxu0 %v9241_v0  ;;  %v153_v5 = vpack.c.bf16 %v132_v3, %v131_v2  ;;  %v134_v7 = vld [vmem:[%s9757_s9 + $0x18] sm:$0xff]  ;;  %v135_v8 = vld [vmem:[%s9757_s9 + $0x20] sm:$0xff]  ;;  %v136_v9 = vld [vmem:[%s9757_s9 + $0x28] sm:$0xff]  ;;  %s9710_s7 = smov 120   ;;  %s9711_s8 = smov 56  }
   0xa   :  { %8197 = vmatprep.subr.bf16.mxu0 %v9242_v1  ;;  %v9244_v10 = vld [vmem:[%s9762_s13] sm:$0xff]   ;;  %v154_v11 = vpack.c.bf16 %v134_v7, %v133_v6  ;;  %v9245_v12 = vld [vmem:[%s9762_s13 + $0x8] sm:$0xff]   ;;  %v155_v13 = vpack.c.bf16 %v136_v9, %v135_v8  ;;  %v137_v14 = vld [vmem:[%s9757_s9 + $0x30] sm:$0xff]  ;;  %s9713_s10 = smov 112   ;;  %s9714_s11 = smov 48  }
   0xb   :  { %8201 = vmatprep.mubr.msk.bf16.mxu0 %vm186_vm0, %v153_v5  ;;  %8217 = vmatprep.subr.bf16.mxu1 %v9244_v10  ;;  %v138_v15 = vld [vmem:[%s9757_s9 + $0x38] sm:$0xff]  ;;  %v139_v16 = vld [vmem:[%s9757_s9 + $0x40] sm:$0xff]  ;;  %v140_v17 = vld [vmem:[%s9757_s9 + $0x48] sm:$0xff]  ;;  %s9715_s12 = smov 72   ;;  %s9717_s14 = smov 40  }
   0xc   :  { %8218 = vmatpush3.bf16.msra.mxu1 %v9244_v10  ;;  %v156_v18 = vpack.c.bf16 %v138_v15, %v137_v14  ;;  %v157_v19 = vpack.c.bf16 %v140_v17, %v139_v16  ;;  %v141_v20 = vld [vmem:[%s9757_s9 + $0x50] sm:$0xff]  ;;  %v142_v21 = vld [vmem:[%s9757_s9 + $0x58] sm:$0xff]  ;;  %v143_v22 = vld [vmem:[%s9757_s9 + $0x60] sm:$0xff]  ;;  %s9718_s15 = smov 16   ;;  %s9719_s16 = smov 32  }
   0xd   :  { %8198 = vmatpush3.bf16.msra.mxu0 %v9242_v1  ;;  %8219 = vmatprep.subr.bf16.mxu1 %v9245_v12  ;;  %v144_v23 = vld [vmem:[%s9757_s9 + $0x68] sm:$0xff]  ;;  %v158_v24 = vpack.c.bf16 %v142_v21, %v141_v20  ;;  %v145_v26 = vld [vmem:[%s9757_s9 + $0x70] sm:$0xff]  ;;  %v146_v27 = vld [vmem:[%s9757_s9 + $0x78] sm:$0xff]  ;;  %s9712_s9 = smov 80   ;;  %s9721_s18 = smov 9  }
   0xe   :  { %8199 = vmatprep.subr.bf16.mxu0 %v9243_v4  ;;  %v159_v25 = vpack.c.bf16 %v144_v23, %v143_v22  ;;  %v160_v28 = vpack.c.bf16 %v146_v27, %v145_v26  ;;  %v9246_v29 = vld [vmem:[%s9762_s13 + $0x10] sm:$0xff]   ;;  %v9247_v30 = vld [vmem:[%s9762_s13 + $0x18] sm:$0xff]   ;;  %v7607_v31 = vld [vmem:[%s7579_s17] ss:$0 sm:$0xff]  ;;  %s9716_s13 = smov 104   ;;  %s9720_s17 = smov 24  }
   0xf   :  { %v493_v26 = vld [vmem:[%s9812_s25] sm:$0xff]  ;;  %v494_v27 = vld [vmem:[%s9812_s25 + $0x8] sm:$0xff]  ;;  %s9722_s22 = smov 13   ;;  %s9723_s27 = smov 14  }
  0x10   :  { %8220 = vmatpush3.bf16.msra.mxu1 %v9245_v12  ;;  %s11122_s26 = sld [smem:[%s12502_s0 + %s9722_s22]]   ;;  %s9725_s2 = smov 11  }
  0x11   :  { %8200 = vmatpush3.bf16.msra.mxu0 %v9243_v4  ;;  %8221 = vmatprep.subr.bf16.mxu1 %v9246_v29  ;;  %s11195_s1 = sld [smem:[%s12502_s0 + %s9723_s27]]   ;;  %s9729_s27 = smov 15  }
  0x14   :  { %8202 = vmatmul.mubr.msk.bf16.vlgmr.msra.gmra.mrb[0].mxu0 %vm186_vm0, %v154_v11  ;;  %8222 = vmatpush3.bf16.msra.mxu1 %v9246_v29  ;;  %v495_v29 = vld [vmem:[%s9812_s25 + $0x10] sm:$0xff] }
  0x15   :  { %8205 = vmatprep.mubr.msk.bf16.mxu0 %vm186_vm0, %v155_v13  ;;  %8223 = vmatprep.subr.bf16.mxu1 %v9247_v30 }
  0x18   :  { %8224 = vmatpush3.bf16.msra.mxu1 %v9247_v30  ;;  %v496_v30 = vld [vmem:[%s9812_s25 + $0x18] sm:$0xff] }
  0x1c   :  { %8206 = vmatmul.mubr.msk.bf16.gmra.mrb[4].mxu0 %vm186_vm0, %v156_v18 }
  0x1d   :  { %8209 = vmatprep.mubr.msk.bf16.mxu0 %vm186_vm0, %v157_v19 }
  0x24   :  { %8210 = vmatmul.mubr.msk.bf16.gmra.mrb[8].mxu0 %vm186_vm0, %v158_v24  ;;  %v9248_v24 = vld [vmem:[%s9806_s21] sm:$0xff]  }
  0x25   :  { %8213 = vmatprep.mubr.msk.bf16.mxu0 %vm186_vm0, %v159_v25  ;;  %8261 = vmatprep.subr.bf16.mxu1 %v9248_v24  ;;  %v9249_v25 = vld [vmem:[%s9806_s21 + $0x8] sm:$0xff]  }
  0x26   :  { %8241 = vmatprep.subr.bf16.mxu0 %v9248_v24 }
  0x27   :  { %8242 = vmatpush3.bf16.msra.mxu0 %v9248_v24 }
  0x28   :  { %8243 = vmatprep.subr.bf16.mxu0 %v9249_v25 }
  0x2b   :  { %8244 = vmatpush3.bf16.msra.mxu0 %v9249_v25 }
  0x2c   :  { %8214 = vmatmul.mubr.msk.bf16.gmra.mrb[12].mxu0 %vm186_vm0, %v160_v28  ;;  %v656_v28 = vpack.c.bf16 %v494_v27, %v493_v26 }
  0xe7   :  { %v8203_v32 = vpop.f32.mrb[0].mxu0 }
  0xe8   :  { %v254_v33 = vadd.f32 %v8203_v32, %v7607_v31  ;;  %v245_v34 = vpop.f32.mrb[1].mxu0  ;;  %v497_v32 = vld [vmem:[%s9812_s25 + $0x20] sm:$0xff] }
  0xe9   :  { %v246_v35 = vadd.f32 %v7607_v31, %v245_v34  ;;  %v8204_v36 = vpop.f32.mrb[2].mxu0 }
  0xea   :  { %v257_v37 = vadd.f32 %v8204_v36, %v7607_v31  ;;  %v248_v38 = vpop.f32.mrb[3].mxu0  ;;  %v310_v40 = vmax.f32 %v254_v33, 0.0  ;;  %v498_v33 = vld [vmem:[%s9812_s25 + $0x28] sm:$0xff]  ;;  %v500_v36 = vld [vmem:[%s9812_s25 + $0x38] sm:$0xff] }
  0xeb   :  { %v249_v39 = vadd.f32 %v7607_v31, %v248_v38  ;;  %v308_v42 = vmax.f32 %v246_v35, 0.0  ;;  %v658_v34 = vpack.c.bf16 %v498_v33, %v497_v32  ;;  %v499_v35 = vld [vmem:[%s9812_s25 + $0x30] sm:$0xff] }
  0xec   :  { %v311_v41 = vmax.f32 %v257_v37, 0.0  ;;  %v659_v37 = vpack.c.bf16 %v500_v36, %v499_v35 }
  0xed   :  { %v309_v43 = vmax.f32 %v249_v39, 0.0  ;;  %v7619_v39 = vld [vmem:[%s7581_s29] ss:$0 sm:$0xff]  ;;  %s9737_s29 = smov 21  }
  0xee   :  { %v333_v44 = vpack.c.bf16 %v311_v41, %v310_v40 }
  0xef   :  { %v8207_v45 = vpop.f32.mrb[4].mxu0  ;;  %v332_v46 = vpack.c.bf16 %v309_v43, %v308_v42 }
  0xf0   :  { %v270_v47 = vadd.f32 %v8207_v45, %v7607_v31  ;;  %v261_v48 = vpop.f32.mrb[5].mxu0 }
  0xf1   :  { %v262_v49 = vadd.f32 %v7607_v31, %v261_v48  ;;  %v8208_v50 = vpop.f32.mrb[6].mxu0  ;;  %8225 = vmatprep.mubr.msk.bf16.mxu1 %vm371_vm1, %v332_v46 }
  0xf2   :  { %v314_v51 = vmax.f32 %v270_v47, 0.0  ;;  %v273_v52 = vadd.f32 %v8208_v50, %v7607_v31  ;;  %v264_v53 = vpop.f32.mrb[7].mxu0  ;;  %8226 = vmatmul.mubr.msk.bf16.vlgmr.msra.gmra.mrb[0].mxu1 %vm371_vm1, %v333_v44 }
  0xf3   :  { %v312_v54 = vmax.f32 %v262_v49, 0.0  ;;  %v265_v55 = vadd.f32 %v7607_v31, %v264_v53  ;;  %8262 = vmatpush3.bf16.msra.mxu1 %v9248_v24 }
  0xf4   :  { %v315_v56 = vmax.f32 %v273_v52, 0.0  ;;  %8263 = vmatprep.subr.bf16.mxu1 %v9249_v25 }
  0xf5   :  { %v313_v57 = vmax.f32 %v265_v55, 0.0 }
  0xf6   :  { %v335_v58 = vpack.c.bf16 %v315_v56, %v314_v51 }
  0xf7   :  { %v334_v59 = vpack.c.bf16 %v313_v57, %v312_v54  ;;  %v8211_v60 = vpop.f32.mrb[8].mxu0  ;;  %8264 = vmatpush3.bf16.msra.mxu1 %v9249_v25 }
  0xf8   :  { %v286_v61 = vadd.f32 %v8211_v60, %v7607_v31  ;;  %v277_v62 = vpop.f32.mrb[9].mxu0 }
  0xf9   :  { %v278_v63 = vadd.f32 %v7607_v31, %v277_v62  ;;  %v8212_v0 = vpop.f32.mrb[10].mxu0  ;;  %8229 = vmatprep.mubr.msk.bf16.mxu1 %vm371_vm1, %v334_v59 }
  0xfa   :  { %v318_v1 = vmax.f32 %v286_v61, 0.0  ;;  %v289_v2 = vadd.f32 %v8212_v0, %v7607_v31  ;;  %v280_v3 = vpop.f32.mrb[11].mxu0  ;;  %8230 = vmatmul.mubr.msk.bf16.gmra.mrb[4].mxu1 %vm371_vm1, %v335_v58 }
  0xfb   :  { %v316_v4 = vmax.f32 %v278_v63, 0.0  ;;  %v281_v5 = vadd.f32 %v7607_v31, %v280_v3 }
  0xfc   :  { %v319_v6 = vmax.f32 %v289_v2, 0.0 }
  0xfd   :  { %v317_v7 = vmax.f32 %v281_v5, 0.0 }
  0xfe   :  { %v337_v8 = vpack.c.bf16 %v319_v6, %v318_v1 }
  0xff   :  { %v336_v9 = vpack.c.bf16 %v317_v7, %v316_v4  ;;  %v8215_v10 = vpop.f32.mrb[12].mxu0 }
 0x100   :  { %v302_v11 = vadd.f32 %v8215_v10, %v7607_v31  ;;  %v293_v12 = vpop.f32.mrb[13].mxu0 }
 0x101   :  { %v294_v13 = vadd.f32 %v7607_v31, %v293_v12  ;;  %v8216_v14 = vpop.f32.mrb[14].mxu0  ;;  %8233 = vmatprep.mubr.msk.bf16.mxu1 %vm371_vm1, %v336_v9 }
 0x102   :  { %v322_v15 = vmax.f32 %v302_v11, 0.0  ;;  %v305_v16 = vadd.f32 %v8216_v14, %v7607_v31  ;;  %v296_v17 = vpop.f32.mrb[15].mxu0  ;;  %8234 = vmatmul.mubr.msk.bf16.gmra.mrb[8].mxu1 %vm371_vm1, %v337_v8 }
 0x103   :  { %v320_v18 = vmax.f32 %v294_v13, 0.0  ;;  %v297_v19 = vadd.f32 %v7607_v31, %v296_v17  ;;  %v657_v31 = vpack.c.bf16 %v496_v30, %v495_v29 }
 0x104   :  { %v323_v20 = vmax.f32 %v305_v16, 0.0 }
 0x105   :  { %v321_v21 = vmax.f32 %v297_v19, 0.0 }
 0x106   :  { %v339_v22 = vpack.c.bf16 %v323_v20, %v322_v15 }
 0x107   :  { %v338_v23 = vpack.c.bf16 %v321_v21, %v320_v18 }
 0x109   :  { %8237 = vmatprep.mubr.msk.bf16.mxu1 %vm371_vm1, %v338_v23  ;;  %v9901_v23 = vld [vmem:[%s9898_s3] ss:$0 sm:$0xff] }
 0x10a   :  { %8238 = vmatmul.mubr.msk.bf16.gmra.mrb[12].mxu1 %vm371_vm1, %v339_v22 }
 0x10b   :  { %8265 = vmatprep.mubr.msk.bf16.mxu1 %vm534_vm2, %v656_v28 }
 0x112   :  { %8266 = vmatmul.mubr.msk.bf16.vlgmr.msra.gmra.mrb[16].mxu1 %vm534_vm2, %v657_v31 }
 0x113   :  { %8269 = vmatprep.mubr.msk.bf16.mxu1 %vm534_vm2, %v658_v34 }
 0x11a   :  { %8270 = vmatmul.mubr.msk.bf16.gmra.mrb[20].mxu1 %vm534_vm2, %v659_v37 }
 0x1c5   :  { %v8227_v38 = vpop.f32.mrb[0].mxu1 }
 0x1c6   :  { %v430_v40 = vpop.f32.mrb[1].mxu1  ;;  %v9836_v46 = vadd.f32 %v8227_v38, %v7619_v39 }
 0x1c7   :  { %v8228_v41 = vpop.f32.mrb[2].mxu1  ;;  %v9832_v44 = vadd.f32 %v7619_v39, %v430_v40 }
 0x1c8   :  { %v9830_v42 = vadd.f32 %v8228_v41, %v7619_v39  ;;  %v433_v43 = vpop.f32.mrb[3].mxu1  ;;  %12529 = vst [vmem:[#allocation5_spill] sm:$0xff] %v9836_v46 }
 0x1c9   :  { %12527 = vst [vmem:[#allocation3_spill] sm:$0xff] %v9832_v44  ;;  %v9834_v45 = vadd.f32 %v7619_v39, %v433_v43 }
 0x1ca   :  { %12526 = vst [vmem:[#allocation2_spill] sm:$0xff] %v9830_v42  ;;  %v509_v48 = vpack.c.bf16 %v9830_v42, %v9836_v46 }
 0x1cb   :  { %12528 = vst [vmem:[#allocation4_spill] sm:$0xff] %v9834_v45  ;;  %v508_v47 = vpack.c.bf16 %v9834_v45, %v9832_v44 }
 0x1cd   :  { %v8231_v49 = vpop.f32.mrb[4].mxu1  ;;  %8245 = vmatprep.mubr.msk.bf16.mxu0 %vm534_vm2, %v508_v47 }
 0x1ce   :  { %v9843_v50 = vadd.f32 %v8231_v49, %v7619_v39  ;;  %v446_v51 = vpop.f32.mrb[5].mxu1  ;;  %8246 = vmatmul.mubr.msk.bf16.vlgmr.msra.gmra.mrb[16].mxu0 %vm534_vm2, %v509_v48 }
 0x1cf   :  { %v9846_v52 = vadd.f32 %v7619_v39, %v446_v51  ;;  %v8232_v53 = vpop.f32.mrb[6].mxu1 }
 0x1d0   :  { %12530 = vst [vmem:[#allocation6_spill] sm:$0xff] %v9843_v50  ;;  %v9848_v54 = vadd.f32 %v8232_v53, %v7619_v39  ;;  %v449_v55 = vpop.f32.mrb[7].mxu1 }
 0x1d1   :  { %12531 = vst [vmem:[#allocation7_spill] sm:$0xff] %v9846_v52  ;;  %v9850_v56 = vadd.f32 %v7619_v39, %v449_v55 }
 0x1d2   :  { %12532 = vst [vmem:[#allocation8_spill] sm:$0xff] %v9848_v54  ;;  %v511_v57 = vpack.c.bf16 %v9848_v54, %v9843_v50 }
 0x1d3   :  { %12533 = vst [vmem:[#allocation9_spill] sm:$0xff] %v9850_v56  ;;  %v510_v58 = vpack.c.bf16 %v9850_v56, %v9846_v52 }
 0x1d5   :  { %v8235_v59 = vpop.f32.mrb[8].mxu1  ;;  %8249 = vmatprep.mubr.msk.bf16.mxu0 %vm534_vm2, %v510_v58 }
 0x1d6   :  { %v9857_v60 = vadd.f32 %v8235_v59, %v7619_v39  ;;  %v462_v61 = vpop.f32.mrb[9].mxu1  ;;  %8250 = vmatmul.mubr.msk.bf16.gmra.mrb[20].mxu0 %vm534_vm2, %v511_v57 }
 0x1d7   :  { %v9860_v62 = vadd.f32 %v7619_v39, %v462_v61  ;;  %v8236_v63 = vpop.f32.mrb[10].mxu1 }
 0x1d8   :  { %12534 = vst [vmem:[#allocation10_spill] sm:$0xff] %v9857_v60  ;;  %v9862_v0 = vadd.f32 %v8236_v63, %v7619_v39  ;;  %v465_v1 = vpop.f32.mrb[11].mxu1 }
 0x1d9   :  { %12535 = vst [vmem:[#allocation11_spill] sm:$0xff] %v9860_v62  ;;  %v9864_v2 = vadd.f32 %v7619_v39, %v465_v1 }
 0x1da   :  { %12536 = vst [vmem:[#allocation12_spill] sm:$0xff] %v9862_v0  ;;  %v513_v3 = vpack.c.bf16 %v9862_v0, %v9857_v60 }
 0x1db   :  { %12537 = vst [vmem:[#allocation13_spill] sm:$0xff] %v9864_v2  ;;  %v512_v4 = vpack.c.bf16 %v9864_v2, %v9860_v62 }
 0x1dd   :  { %v8239_v5 = vpop.f32.mrb[12].mxu1  ;;  %8253 = vmatprep.mubr.msk.bf16.mxu0 %vm534_vm2, %v512_v4 }
 0x1de   :  { %v9871_v6 = vadd.f32 %v8239_v5, %v7619_v39  ;;  %v478_v7 = vpop.f32.mrb[13].mxu1  ;;  %8254 = vmatmul.mubr.msk.bf16.gmra.mrb[24].mxu0 %vm534_vm2, %v513_v3 }
 0x1df   :  { %v9874_v8 = vadd.f32 %v7619_v39, %v478_v7  ;;  %v8240_v9 = vpop.f32.mrb[14].mxu1 }
 0x1e0   :  { %12538 = vst [vmem:[#allocation14_spill] sm:$0xff] %v9871_v6  ;;  %v9876_v10 = vadd.f32 %v8240_v9, %v7619_v39  ;;  %v481_v11 = vpop.f32.mrb[15].mxu1 }
 0x1e1   :  { %12539 = vst [vmem:[#allocation15_spill] sm:$0xff] %v9874_v8  ;;  %v9878_v12 = vadd.f32 %v7619_v39, %v481_v11 }
 0x1e2   :  { %12540 = vst [vmem:[#allocation16_spill] sm:$0xff] %v9876_v10  ;;  %v515_v13 = vpack.c.bf16 %v9876_v10, %v9871_v6 }
 0x1e3   :  { %12541 = vst [vmem:[#allocation17_spill] sm:$0xff] %v9878_v12  ;;  %v514_v14 = vpack.c.bf16 %v9878_v12, %v9874_v8 }
 0x1e5   :  { %8257 = vmatprep.mubr.msk.bf16.mxu0 %vm534_vm2, %v514_v14  ;;  %v8267_v15 = vpop.f32.mrb[16].mxu1 }
 0x1e6   :  { %8258 = vmatmul.mubr.msk.bf16.gmra.mrb[28].mxu0 %vm534_vm2, %v515_v13  ;;  %v706_v16 = vpop.f32.mrb[17].mxu1 }
 0x1e7   :  { %v8268_v17 = vpop.f32.mrb[18].mxu1 }
 0x1e8   :  { %v709_v18 = vpop.f32.mrb[19].mxu1 }
 0x1ed   :  { %v9886_v19 = vpop.f32.mrb[20].mxu1 }
 0x1ee   :  { %v9888_v20 = vpop.f32.mrb[21].mxu1 }
 0x1ef   :  { %v9890_v21 = vpop.f32.mrb[22].mxu1 }
 0x1f0   :  { %v9892_v22 = vpop.f32.mrb[23].mxu1 }
 0x2a1   :  { %v8247_v24 = vpop.f32.mrb[16].mxu0 }
 0x2a2   :  { %v602_v25 = vadd.f32 %v8247_v24, %v9901_v23  ;;  %v593_v26 = vpop.f32.mrb[17].mxu0 }
 0x2a3   :  { %v594_v27 = vadd.f32 %v9901_v23, %v593_v26  ;;  %v8248_v28 = vpop.f32.mrb[18].mxu0 }
 0x2a4   :  { %v739_v29 = vadd.f32 %v8267_v15, %v602_v25  ;;  %v605_v30 = vadd.f32 %v8248_v28, %v9901_v23  ;;  %v596_v31 = vpop.f32.mrb[19].mxu0 }
 0x2a5   :  { %v737_v32 = vadd.f32 %v706_v16, %v594_v27  ;;  %v597_v33 = vadd.f32 %v9901_v23, %v596_v31 }
 0x2a6   :  { %v740_v34 = vadd.f32 %v8268_v17, %v605_v30  ;;  %v9907_v35 = vpack.c.bf16 %v605_v30, %v602_v25 }
 0x2a7   :  { %v738_v36 = vadd.f32 %v709_v18, %v597_v33  ;;  %v9909_v37 = vpack.c.bf16 %v597_v33, %v594_v27 }
 0x2a8   :  { %v9911_v38 = vpack.c.bf16 %v740_v34, %v739_v29 }
 0x2a9   :  { %v9913_v39 = vpack.c.bf16 %v738_v36, %v737_v32  ;;  %v8251_v40 = vpop.f32.mrb[20].mxu0 }
 0x2aa   :  { %v618_v41 = vadd.f32 %v8251_v40, %v9901_v23  ;;  %v609_v43 = vpop.f32.mrb[21].mxu0 }
 0x2ab   :  { %v610_v47 = vadd.f32 %v9901_v23, %v609_v43  ;;  %v8252_v48 = vpop.f32.mrb[22].mxu0  ;;  %757 = vrot.lane.b32.xlu0 %v9913_v39, %s9707_s4  ;;  %8281 = vmatprep.mubr.msk.bf16.mxu0 %vm765_vm3, %v9913_v39 }
 0x2ac   :  { %v621_v49 = vadd.f32 %v8252_v48, %v9901_v23  ;;  %v743_v51 = vadd.f32 %v9886_v19, %v618_v41  ;;  %v612_v53 = vpop.f32.mrb[23].mxu0 }
 0x2ad   :  { %v613_v55 = vadd.f32 %v9901_v23, %v612_v53  ;;  %v741_v57 = vadd.f32 %v9888_v20, %v610_v47 }
 0x2ae   :  { %v9925_v58 = vpack.c.bf16 %v621_v49, %v618_v41  ;;  %v744_v59 = vadd.f32 %v9890_v21, %v621_v49 }
 0x2af   :  { %v9928_v61 = vpack.c.bf16 %v613_v55, %v610_v47  ;;  %v742_v63 = vadd.f32 %v9892_v22, %v613_v55  ;;  %759 = vrot.lane.b32.xlu0 %v9911_v38, %s9707_s4 }
 0x2b0   :  { %v9933_v1 = vpack.c.bf16 %v744_v59, %v743_v51 }
 0x2b1   :  { %v9935_v3 = vpack.c.bf16 %v742_v63, %v741_v57  ;;  %v8255_v4 = vpop.f32.mrb[24].mxu0 }
 0x2b2   :  { %v634_v5 = vadd.f32 %v8255_v4, %v9901_v23  ;;  %v625_v7 = vpop.f32.mrb[25].mxu0 }
 0x2b3   :  { %v626_v9 = vadd.f32 %v9901_v23, %v625_v7  ;;  %v8256_v11 = vpop.f32.mrb[26].mxu0  ;;  %761 = vrot.lane.b32.xlu1 %v9935_v3, %s9707_s4 }
 0x2b4   :  { %v2054_v13 = vadd.f32 %v8267_v15, %v634_v5  ;;  %v637_v14 = vadd.f32 %v8256_v11, %v9901_v23  ;;  %v628_v24 = vpop.f32.mrb[27].mxu0 }
 0x2b5   :  { %v2052_v25 = vadd.f32 %v706_v16, %v626_v9  ;;  %v629_v26 = vadd.f32 %v9901_v23, %v628_v24 }
 0x2b6   :  { %v2055_v27 = vadd.f32 %v8268_v17, %v637_v14  ;;  %v9943_v28 = vpack.c.bf16 %v637_v14, %v634_v5 }
 0x2b7   :  { %v2053_v29 = vadd.f32 %v709_v18, %v629_v26  ;;  %v9945_v30 = vpack.c.bf16 %v629_v26, %v626_v9  ;;  %763 = vrot.lane.b32.xlu1 %v9933_v1, %s9707_s4 }
 0x2b8   :  { %v9949_v31 = vpack.c.bf16 %v2055_v27, %v2054_v13 }
 0x2b9   :  { %v9951_v32 = vpack.c.bf16 %v2053_v29, %v2052_v25  ;;  %v8259_v15 = vpop.f32.mrb[28].mxu0 }
 0x2ba   :  { %v650_v33 = vadd.f32 %v8259_v15, %v9901_v23  ;;  %v641_v34 = vpop.f32.mrb[29].mxu0 }
 0x2bb   :  { %v642_v16 = vadd.f32 %v9901_v23, %v641_v34  ;;  %v8260_v36 = vpop.f32.mrb[30].mxu0 }
 0x2bc   :  { %v2058_v17 = vadd.f32 %v9886_v19, %v650_v33  ;;  %v653_v18 = vadd.f32 %v8260_v36, %v9901_v23  ;;  %v644_v40 = vpop.f32.mrb[31].mxu0 }
 0x2bd   :  { %v2056_v41 = vadd.f32 %v9888_v20, %v642_v16  ;;  %v645_v43 = vadd.f32 %v9901_v23, %v644_v40 }
 0x2be   :  { %v2059_v47 = vadd.f32 %v9890_v21, %v653_v18  ;;  %v9960_v48 = vpack.c.bf16 %v653_v18, %v650_v33 }
 0x2bf   :  { %v2057_v49 = vadd.f32 %v9892_v22, %v645_v43  ;;  %v9963_v51 = vpack.c.bf16 %v645_v43, %v642_v16 }
 0x2c0   :  { %v9965_v53 = vpack.c.bf16 %v2059_v47, %v2058_v17 }
 0x2c1   :  { %v9967_v55 = vpack.c.bf16 %v2057_v49, %v2056_v41 }
 0x31d   :  { %v758_v19 = vpop.permute.xlu0 %757 }
 0x31e   :  { %9013 = vmatprep.subr.msk.bf16.mxu0 %vm765_vm3, %v758_v19  ;;  %v779_v57 = vsel %vm765_vm3, %v758_v19, 0 }
 0x31f   :  { %8274 = vmatpush3.bf16.xpose.msra.mxu0 %v779_v57 }
 0x321   :  { %v760_v20 = vpop.permute.xlu0 %759 }
 0x322   :  { %9014 = vmatprep.subr.msk.bf16.mxu0 %vm765_vm3, %v760_v20  ;;  %v782_v21 = vsel %vm765_vm3, %v760_v20, 0 }
 0x325   :  { %v762_v23 = vpop.permute.xlu1 %761 }
 0x326   :  { %v785_v22 = vsel %vm765_vm3, %v762_v23, 0 }
 0x327   :  { %8276 = vmatpush3.bf16.xpose.msra.mxu0 %v782_v21 }
 0x328   :  { %9015 = vmatprep.subr.msk.bf16.mxu0 %vm765_vm3, %v762_v23 }
 0x329   :  { %v764_v59 = vpop.permute.xlu1 %763 }
 0x32a   :  { %v788_v63 = vsel %vm765_vm3, %v764_v59, 0 }
 0x32f   :  { %8278 = vmatpush3.bf16.xpose.msra.mxu0 %v785_v22 }
 0x330   :  { %9016 = vmatprep.subr.msk.bf16.mxu0 %vm765_vm3, %v764_v59 }
 0x337   :  { %8280 = vmatpush3.bf16.xpose.msra.mxu0 %v788_v63 }
 0x33e   :  { %8282 = vmatmul.mubr.msk.bf16.vlgmr.msra.gmra.mrb[32].mxu0 %vm765_vm3, %v9911_v38 }
 0x33f   :  { %8285 = vmatprep.mubr.msk.bf16.mxu0 %vm765_vm3, %v9935_v3 }
 0x346   :  { %8286 = vmatmul.mubr.msk.bf16.gmra.mrb[36].mxu0 %vm765_vm3, %v9933_v1 }
 0x411   :  { %v8283_v4 = vpop.f32.mrb[32].mxu0 }
 0x412   :  { %v857_v5 = vmul.f32 0.35355338, %v8283_v4  ;;  %v824_v7 = vpop.f32.mrb[33].mxu0 }
 0x413   :  { %v8284_v9 = vpop.f32.mrb[34].mxu0  ;;  %v855_v11 = vmul.f32 0.35355338, %v824_v7 }
 0x414   :  { %v827_v13 = vpop.f32.mrb[35].mxu0  ;;  %v869_v14 = vsel %vm371_vm1, %v857_v5, -inf  ;;  %v858_v26 = vmul.f32 0.35355338, %v8284_v9 }
 0x415   :  { %v856_v24 = vmul.f32 0.35355338, %v827_v13  ;;  %870 = vmax.xlane.f32.xlu0 %v869_v14  ;;  %v863_v27 = vsel %vm371_vm1, %v855_v11, -inf }
 0x416   :  { %v872_v17 = vsel %vm371_vm1, %v858_v26, -inf }
 0x417   :  { %v866_v25 = vsel %vm371_vm1, %v856_v24, -inf }
 0x418   :  { %867 = vmax.xlane.f32.xlu1 %v866_v25 }
 0x419   :  { %864 = vmax.xlane.f32.xlu0 %v863_v27  ;;  %v8287_v29 = vpop.f32.mrb[36].mxu0 }
 0x41a   :  { %v861_v15 = vmul.f32 0.35355338, %v8287_v29  ;;  %v840_v33 = vpop.f32.mrb[37].mxu0 }
 0x41b   :  { %v8288_v34 = vpop.f32.mrb[38].mxu0  ;;  %v859_v16 = vmul.f32 0.35355338, %v840_v33 }
 0x41c   :  { %v843_v36 = vpop.f32.mrb[39].mxu0  ;;  %v881_v18 = vsel %vm371_vm1, %v861_v15, -inf  ;;  %v862_v43 = vmul.f32 0.35355338, %v8288_v34 }
 0x41d   :  { %v9988_v40 = vmul.f32 0.35355338, %v843_v36  ;;  %873 = vmax.xlane.f32.xlu0 %v872_v17  ;;  %882 = vmax.xlane.f32.xlu1 %v881_v18  ;;  %v875_v47 = vsel %vm371_vm1, %v859_v16, -inf }
 0x41e   :  { %v884_v49 = vsel %vm371_vm1, %v862_v43, -inf }
 0x41f   :  { %v878_v41 = vsel %vm371_vm1, %v9988_v40, -inf }
 0x421   :  { %876 = vmax.xlane.f32.xlu1 %v875_v47  ;;  %879 = vmax.xlane.f32.xlu0 %v878_v41 }
 0x425   :  { %885 = vmax.xlane.f32.xlu0 %v884_v49 }
 0x432   :  { %959 = vrot.lane.b32.xlu1 %v9909_v37, %s9708_s5 }
 0x436   :  { %963 = vrot.lane.b32.xlu1 %v9928_v61, %s9708_s5 }
 0x43a   :  { %965 = vrot.lane.b32.xlu1 %v9925_v58, %s9708_s5 }
 0x43b   :  { %961 = vrot.lane.b32.xlu0 %v9907_v35, %s9708_s5 }
 0x43e   :  { %1056 = vrot.lane.b32.xlu1 %v9913_v39, %s9709_s6 }
 0x4a2   :  { %v871_v19 = vpop.xlane.xlu0 %870 }
 0x4a3   :  { %v889_v57 = vsub.f32 %v857_v5, %v871_v19 }
 0x4a5   :  { %v899_v20 = vmul.f32 1.442695, %v889_v57  ;;  %v868_v21 = vpop.xlane.xlu1 %867 }
 0x4a6   :  { %v865_v23 = vpop.xlane.xlu0 %864  ;;  %v888_v59 = vsub.f32 %v856_v24, %v868_v21 }
 0x4a7   :  { %9274 = vpow2.f32 %v899_v20  ;;  %v887_v22 = vsub.f32 %v855_v11, %v865_v23 }
 0x4a8   :  { %v897_v13 = vmul.f32 1.442695, %v888_v59 }
 0x4a9   :  { %v895_v63 = vmul.f32 1.442695, %v887_v22 }
 0x4aa   :  { %v874_v4 = vpop.xlane.xlu0 %873  ;;  %v883_v7 = vpop.xlane.xlu1 %882 }
 0x4ab   :  { %9276 = vpow2.f32 %v895_v63  ;;  %v890_v9 = vsub.f32 %v858_v26, %v874_v4  ;;  %v893_v25 = vsub.f32 %v861_v15, %v883_v7 }
 0x4ad   :  { %v901_v14 = vmul.f32 1.442695, %v890_v9  ;;  %v907_v5 = vmul.f32 1.442695, %v893_v25 }
 0x4ae   :  { %v877_v27 = vpop.xlane.xlu1 %876  ;;  %v880_v29 = vpop.xlane.xlu0 %879 }
 0x4af   :  { %9278 = vpow2.f32 %v901_v14  ;;  %v891_v34 = vsub.f32 %v859_v16, %v877_v27  ;;  %v892_v9 = vsub.f32 %v9988_v40, %v880_v29 }
 0x4b0   :  { %9280 = vpow2.f32 %v897_v13 }
 0x4b1   :  { %v10004_v33 = vpop.eup %9274  ;;  %9282 = vpow2.f32 %v907_v5  ;;  %v903_v26 = vmul.f32 1.442695, %v891_v34  ;;  %v905_v13 = vmul.f32 1.442695, %v892_v9 }
 0x4b2   :  { %v960_v36 = vpop.permute.xlu1 %959  ;;  %v886_v17 = vpop.xlane.xlu0 %885  ;;  %v917_v11 = vsel %vm371_vm1, %v10004_v33, 0.0 }
 0x4b3   :  { %918 = vadd.xlane.f32.xlu1 %v917_v11  ;;  %8289 = vmatprep.subr.bf16.mxu1 %v960_v36  ;;  %v894_v15 = vsub.f32 %v862_v43, %v886_v17  ;;  %9284 = vpow2.f32 %v903_v26 }
 0x4b4   :  { %8290 = vmatpush3.bf16.msra.mxu1 %v960_v36 }
 0x4b5   :  { %v10008_v24 = vpop.eup %9276  ;;  %v909_v49 = vmul.f32 1.442695, %v894_v15 }
 0x4b6   :  { %v964_v18 = vpop.permute.xlu1 %963  ;;  %v962_v41 = vpop.permute.xlu0 %961  ;;  %v911_v47 = vsel %vm371_vm1, %v10008_v24, 0.0 }
 0x4b7   :  { %912 = vadd.xlane.f32.xlu1 %v911_v47  ;;  %8291 = vmatprep.subr.bf16.mxu1 %v962_v41  ;;  %9286 = vpow2.f32 %v909_v49 }
 0x4b8   :  { %8292 = vmatpush3.bf16.msra.mxu1 %v962_v41  ;;  %9288 = vpow2.f32 %v905_v13 }
 0x4b9   :  { %v9279_v16 = vpop.eup %9278  ;;  %8293 = vmatprep.subr.bf16.mxu1 %v964_v18 }
 0x4ba   :  { %v966_v19 = vpop.permute.xlu1 %965  ;;  %v920_v57 = vsel %vm371_vm1, %v9279_v16, 0.0  ;;  %v9281_v20 = vpop.eup %9280 }
 0x4bb   :  { %921 = vadd.xlane.f32.xlu0 %v920_v57  ;;  %v914_v43 = vsel %vm371_vm1, %v9281_v20, 0.0  ;;  %v10014_v21 = vpop.eup %9282 }
 0x4bc   :  { %8294 = vmatpush3.bf16.msra.mxu1 %v964_v18  ;;  %v929_v22 = vsel %vm371_vm1, %v10014_v21, 0.0 }
 0x4bd   :  { %8295 = vmatprep.subr.bf16.mxu1 %v966_v19  ;;  %v10019_v59 = vpop.eup %9284 }
 0x4be   :  { %v1057_v23 = vpop.permute.xlu1 %1056  ;;  %v923_v63 = vsel %vm371_vm1, %v10019_v59, 0.0 }
 0x4bf   :  { %915 = vadd.xlane.f32.xlu0 %v914_v43 }
 0x4c0   :  { %8296 = vmatpush3.bf16.msra.mxu1 %v966_v19 }
 0x4c1   :  { %9017 = vmatprep.subr.msk.bf16.mxu1 %vm765_vm3, %v1057_v23  ;;  %v10023_v4 = vpop.eup %9286 }
 0x4c2   :  { %v932_v7 = vsel %vm371_vm1, %v10023_v4, 0.0  ;;  %v9289_v14 = vpop.eup %9288 }
 0x4c3   :  { %930 = vadd.xlane.f32.xlu0 %v929_v22  ;;  %v926_v25 = vsel %vm371_vm1, %v9289_v14, 0.0 }
 0x4c7   :  { %924 = vadd.xlane.f32.xlu0 %v923_v63  ;;  %v1077_v63 = vsel %vm765_vm3, %v1057_v23, 0 }
 0x4c8   :  { %1060 = vrot.lane.b32.xlu1 %v9935_v3, %s9709_s6 }
 0x4cb   :  { %933 = vadd.xlane.f32.xlu0 %v932_v7 }
 0x4e1   :  { %1058 = vrot.lane.b32.xlu0 %v9911_v38, %s9709_s6 }
 0x4e5   :  { %1048 = vrot.lane.b32.xlu0 %v9913_v39, %s9710_s7 }
 0x4e9   :  { %1052 = vrot.lane.b32.xlu0 %v9935_v3, %s9710_s7 }
 0x4ec   :  { %927 = vadd.xlane.f32.xlu1 %v926_v25 }
 0x4fd   :  { %1062 = vrot.lane.b32.xlu1 %v9933_v1, %s9709_s6 }
 0x501   :  { %1050 = vrot.lane.b32.xlu1 %v9911_v38, %s9710_s7 }
 0x505   :  { %1054 = vrot.lane.b32.xlu1 %v9933_v1, %s9710_s7 }
 0x540   :  { %v919_v40 = vpop.xlane.xlu1 %918 }
 0x544   :  { %v913_v27 = vpop.xlane.xlu1 %912 }
 0x548   :  { %v922_v29 = vpop.xlane.xlu0 %921  ;;  %v1061_v7 = vpop.permute.xlu1 %1060 }
 0x549   :  { %9290 = vrcp.f32 %v922_v29 }
 0x54a   :  { %9292 = vrcp.f32 %v913_v27 }
 0x54b   :  { %9294 = vrcp.f32 %v919_v40 }
 0x54c   :  { %v916_v5 = vpop.xlane.xlu0 %915 }
 0x54d   :  { %9296 = vrcp.f32 %v916_v5 }
 0x550   :  { %v931_v34 = vpop.xlane.xlu0 %930 }
 0x553   :  { %v9291_v36 = vpop.eup %9290 }
 0x554   :  { %v925_v17 = vpop.xlane.xlu0 %924  ;;  %v9293_v11 = vpop.eup %9292  ;;  %v946_v18 = vmul.f32 %v9291_v36, %v9279_v16 }
 0x555   :  { %v9295_v26 = vpop.eup %9294  ;;  %v943_v47 = vmul.f32 %v9293_v11, %v10008_v24 }
 0x556   :  { %v945_v19 = vmul.f32 %v9295_v26, %v10004_v33  ;;  %v1083_v33 = vsel %vm765_vm3, %v1061_v7, 0 }
 0x557   :  { %v9297_v15 = vpop.eup %9296 }
 0x558   :  { %v934_v41 = vpop.xlane.xlu0 %933  ;;  %v944_v49 = vmul.f32 %v9297_v15, %v9281_v20  ;;  %v952_v43 = vpack.c.bf16 %v946_v18, %v945_v19 }
 0x559   :  { %9298 = vrcp.f32 %v934_v41 }
 0x55a   :  { %v951_v57 = vpack.c.bf16 %v944_v49, %v943_v47  ;;  %9300 = vrcp.f32 %v925_v17 }
 0x55b   :  { %9302 = vrcp.f32 %v931_v34 }
 0x55c   :  { %8297 = vmatprep.mubr.msk.bf16.mxu1 %vm371_vm1, %v951_v57  ;;  %v1059_v22 = vpop.permute.xlu0 %1058 }
 0x55d   :  { %8298 = vmatmul.mubr.msk.bf16.vlgmr.msra.gmra.mrb[24].mxu1 %vm371_vm1, %v952_v43  ;;  %v1080_v16 = vsel %vm765_vm3, %v1059_v22, 0 }
 0x55e   :  { %8306 = vmatpush3.bf16.xpose.msra.mxu1 %v1077_v63 }
 0x55f   :  { %9018 = vmatprep.subr.msk.bf16.mxu1 %vm765_vm3, %v1059_v22 }
 0x560   :  { %v1049_v11 = vpop.permute.xlu0 %1048 }
 0x563   :  { %v9299_v9 = vpop.eup %9298 }
 0x564   :  { %v9301_v13 = vpop.eup %9300  ;;  %v950_v27 = vmul.f32 %v9299_v9, %v10023_v4  ;;  %v1053_v15 = vpop.permute.xlu0 %1052 }
 0x565   :  { %v9303_v25 = vpop.eup %9302  ;;  %v947_v29 = vmul.f32 %v9301_v13, %v10019_v59 }
 0x566   :  { %8308 = vmatpush3.bf16.xpose.msra.mxu1 %v1080_v16  ;;  %v949_v36 = vmul.f32 %v9303_v25, %v10014_v21 }
 0x567   :  { %9019 = vmatprep.subr.msk.bf16.mxu1 %vm765_vm3, %v1061_v7 }
 0x568   :  { %v954_v17 = vpack.c.bf16 %v950_v27, %v949_v36 }
 0x56e   :  { %8310 = vmatpush3.bf16.xpose.msra.mxu1 %v1083_v33 }
 0x579   :  { %v928_v24 = vpop.xlane.xlu1 %927 }
 0x57a   :  { %9304 = vrcp.f32 %v928_v24 }
 0x57d   :  { %v1063_v20 = vpop.permute.xlu1 %1062 }
 0x57e   :  { %9020 = vmatprep.subr.msk.bf16.mxu1 %vm765_vm3, %v1063_v20  ;;  %v1086_v23 = vsel %vm765_vm3, %v1063_v20, 0 }
 0x57f   :  { %8312 = vmatpush3.bf16.xpose.msra.mxu1 %v1086_v23 }
 0x581   :  { %v1051_v26 = vpop.permute.xlu1 %1050 }
 0x584   :  { %v9305_v40 = vpop.eup %9304 }
 0x585   :  { %v948_v5 = vmul.f32 %v9305_v40, %v9289_v14  ;;  %v1055_v4 = vpop.permute.xlu1 %1054 }
 0x587   :  { %v953_v34 = vpack.c.bf16 %v948_v5, %v947_v29 }
 0x589   :  { %8301 = vmatprep.mubr.msk.bf16.mxu1 %vm371_vm1, %v953_v34 }
 0x58a   :  { %8302 = vmatmul.mubr.msk.bf16.gmra.mrb[28].mxu1 %vm371_vm1, %v954_v17 }
 0x58b   :  { %8313 = vmatprep.mubr.msk.bf16.mxu1 %vm765_vm3, %v1049_v11 }
 0x592   :  { %8314 = vmatmul.mubr.msk.bf16.vlgmr.msra.gmra.mrb[32].mxu1 %vm765_vm3, %v1051_v26 }
 0x593   :  { %8317 = vmatprep.mubr.msk.bf16.mxu1 %vm765_vm3, %v1053_v15 }
 0x59a   :  { %8318 = vmatmul.mubr.msk.bf16.gmra.mrb[36].mxu1 %vm765_vm3, %v1055_v4 }
 0x630   :  { %v10063_v59 = vpop.f32.mrb[24].mxu1 }
 0x631   :  { %12542 = vst [vmem:[#allocation18_spill] sm:$0xff] %v10063_v59  ;;  %v10065_v21 = vpop.f32.mrb[25].mxu1 }
 0x632   :  { %12543 = vst [vmem:[#allocation19_spill] sm:$0xff] %v10065_v21  ;;  %v10067_v14 = vpop.f32.mrb[26].mxu1 }
 0x633   :  { %12544 = vst [vmem:[#allocation20_spill] sm:$0xff] %v10067_v14  ;;  %v10069_v18 = vpop.f32.mrb[27].mxu1 }
 0x634   :  { %12545 = vst [vmem:[#allocation21_spill] sm:$0xff] %v10069_v18 }
 0x65d   :  { %v10071_v41 = vpop.f32.mrb[28].mxu1 }
 0x65e   :  { %12546 = vst [vmem:[#allocation22_spill] sm:$0xff] %v10071_v41  ;;  %v10073_v47 = vpop.f32.mrb[29].mxu1 }
 0x65f   :  { %12547 = vst [vmem:[#allocation23_spill] sm:$0xff] %v10073_v47  ;;  %v10075_v49 = vpop.f32.mrb[30].mxu1 }
 0x660   :  { %12548 = vst [vmem:[#allocation24_spill] sm:$0xff] %v10075_v49  ;;  %v10077_v19 = vpop.f32.mrb[31].mxu1 }
 0x661   :  { %12549 = vst [vmem:[#allocation25_spill] sm:$0xff] %v10077_v19 }
 0x665   :  { %v8315_v57 = vpop.f32.mrb[32].mxu1 }
 0x666   :  { %v1155_v43 = vmul.f32 0.35355338, %v8315_v57  ;;  %v1122_v22 = vpop.f32.mrb[33].mxu1 }
 0x667   :  { %v8316_v63 = vpop.f32.mrb[34].mxu1  ;;  %v1153_v16 = vmul.f32 0.35355338, %v1122_v22 }
 0x668   :  { %v1125_v7 = vpop.f32.mrb[35].mxu1  ;;  %v1167_v33 = vsel %vm371_vm1, %v1155_v43, -inf  ;;  %v1156_v23 = vmul.f32 0.35355338, %v8316_v63 }
 0x669   :  { %v1154_v24 = vmul.f32 0.35355338, %v1125_v7  ;;  %1168 = vmax.xlane.f32.xlu0 %v1167_v33  ;;  %v1161_v9 = vsel %vm371_vm1, %v1153_v16, -inf }
 0x66a   :  { %v1170_v36 = vsel %vm371_vm1, %v1156_v23, -inf }
 0x66b   :  { %v1164_v20 = vsel %vm371_vm1, %v1154_v24, -inf }
 0x66c   :  { %1165 = vmax.xlane.f32.xlu1 %v1164_v20 }
 0x66d   :  { %1162 = vmax.xlane.f32.xlu0 %v1161_v9  ;;  %v8319_v13 = vpop.f32.mrb[36].mxu1 }
 0x66e   :  { %v1159_v25 = vmul.f32 0.35355338, %v8319_v13  ;;  %v1138_v40 = vpop.f32.mrb[37].mxu1 }
 0x66f   :  { %v8320_v27 = vpop.f32.mrb[38].mxu1  ;;  %v1157_v29 = vmul.f32 0.35355338, %v1138_v40 }
 0x670   :  { %v1141_v5 = vpop.f32.mrb[39].mxu1  ;;  %v1179_v34 = vsel %vm371_vm1, %v1159_v25, -inf  ;;  %v1160_v26 = vmul.f32 0.35355338, %v8320_v27 }
 0x671   :  { %v10084_v17 = vmul.f32 0.35355338, %v1141_v5  ;;  %1171 = vmax.xlane.f32.xlu0 %v1170_v36  ;;  %1180 = vmax.xlane.f32.xlu1 %v1179_v34  ;;  %v1173_v15 = vsel %vm371_vm1, %v1157_v29, -inf }
 0x672   :  { %v1182_v4 = vsel %vm371_vm1, %v1160_v26, -inf }
 0x673   :  { %v1176_v11 = vsel %vm371_vm1, %v10084_v17, -inf }
 0x675   :  { %1174 = vmax.xlane.f32.xlu1 %v1173_v15  ;;  %1177 = vmax.xlane.f32.xlu0 %v1176_v11 }
 0x679   :  { %1183 = vmax.xlane.f32.xlu0 %v1182_v4 }
 0x686   :  { %1253 = vrot.lane.b32.xlu1 %v9909_v37, %s9711_s8 }
 0x68a   :  { %1257 = vrot.lane.b32.xlu1 %v9928_v61, %s9711_s8 }
 0x68e   :  { %1259 = vrot.lane.b32.xlu1 %v9925_v58, %s9711_s8 }
 0x68f   :  { %1255 = vrot.lane.b32.xlu0 %v9907_v35, %s9711_s8 }
 0x692   :  { %1350 = vrot.lane.b32.xlu1 %v9913_v39, %s9712_s9 }
 0x6f6   :  { %v1169_v57 = vpop.xlane.xlu0 %1168 }
 0x6f7   :  { %v1187_v22 = vsub.f32 %v1155_v43, %v1169_v57 }
 0x6f9   :  { %v1197_v63 = vmul.f32 1.442695, %v1187_v22  ;;  %v1166_v7 = vpop.xlane.xlu1 %1165 }
 0x6fa   :  { %v1163_v33 = vpop.xlane.xlu0 %1162  ;;  %v1186_v13 = vsub.f32 %v1154_v24, %v1166_v7 }
 0x6fb   :  { %9306 = vpow2.f32 %v1197_v63  ;;  %v1185_v20 = vsub.f32 %v1153_v16, %v1163_v33 }
 0x6fc   :  { %v1195_v34 = vmul.f32 1.442695, %v1186_v13 }
 0x6fd   :  { %v1193_v9 = vmul.f32 1.442695, %v1185_v20 }
 0x6fe   :  { %v1181_v40 = vpop.xlane.xlu1 %1180  ;;  %v1172_v27 = vpop.xlane.xlu0 %1171 }
 0x6ff   :  { %9308 = vpow2.f32 %v1193_v9  ;;  %v1188_v5 = vsub.f32 %v1156_v23, %v1172_v27  ;;  %v1191_v11 = vsub.f32 %v1159_v25, %v1181_v40 }
 0x701   :  { %v1199_v36 = vmul.f32 1.442695, %v1188_v5  ;;  %v1205_v43 = vmul.f32 1.442695, %v1191_v11 }
 0x702   :  { %v1175_v15 = vpop.xlane.xlu1 %1174  ;;  %v1178_v4 = vpop.xlane.xlu0 %1177 }
 0x703   :  { %9310 = vpow2.f32 %v1199_v36  ;;  %v1189_v57 = vsub.f32 %v1157_v29, %v1175_v15 }
 0x704   :  { %9312 = vpow2.f32 %v1195_v34 }
 0x705   :  { %v10100_v10 = vpop.eup %9306  ;;  %9314 = vpow2.f32 %v1205_v43  ;;  %v1201_v23 = vmul.f32 1.442695, %v1189_v57 }
 0x706   :  { %v1254_v22 = vpop.permute.xlu1 %1253  ;;  %v1184_v63 = vpop.xlane.xlu0 %1183  ;;  %v1215_v16 = vsel %vm371_vm1, %v10100_v10, 0.0 }
 0x707   :  { %8321 = vmatprep.subr.bf16.mxu0 %v1254_v22  ;;  %1216 = vadd.xlane.f32.xlu1 %v1215_v16  ;;  %v1192_v25 = vsub.f32 %v1160_v26, %v1184_v63  ;;  %9316 = vpow2.f32 %v1201_v23 }
 0x708   :  { %8322 = vmatpush3.bf16.msra.mxu0 %v1254_v22  ;;  %v1190_v22 = vsub.f32 %v10084_v17, %v1178_v4 }
 0x709   :  { %v10104_v24 = vpop.eup %9308  ;;  %v1207_v9 = vmul.f32 1.442695, %v1192_v25 }
 0x70a   :  { %v1258_v7 = vpop.permute.xlu1 %1257  ;;  %v1256_v33 = vpop.permute.xlu0 %1255  ;;  %v1209_v20 = vsel %vm371_vm1, %v10104_v24, 0.0  ;;  %v1203_v63 = vmul.f32 1.442695, %v1190_v22 }
 0x70b   :  { %1210 = vadd.xlane.f32.xlu1 %v1209_v20  ;;  %8323 = vmatprep.subr.bf16.mxu0 %v1256_v33  ;;  %9318 = vpow2.f32 %v1207_v9 }
 0x70c   :  { %8324 = vmatpush3.bf16.msra.mxu0 %v1256_v33  ;;  %9320 = vpow2.f32 %v1203_v63 }
 0x70d   :  { %8325 = vmatprep.subr.bf16.mxu0 %v1258_v7  ;;  %v9311_v29 = vpop.eup %9310 }
 0x70e   :  { %v1260_v13 = vpop.permute.xlu1 %1259  ;;  %v1218_v40 = vsel %vm371_vm1, %v9311_v29, 0.0  ;;  %v9313_v27 = vpop.eup %9312 }
 0x70f   :  { %1219 = vadd.xlane.f32.xlu0 %v1218_v40  ;;  %v1212_v26 = vsel %vm371_vm1, %v9313_v27, 0.0  ;;  %v10110_v5 = vpop.eup %9314 }
 0x710   :  { %8326 = vmatpush3.bf16.msra.mxu0 %v1258_v7  ;;  %v1227_v34 = vsel %vm371_vm1, %v10110_v5, 0.0 }
 0x711   :  { %8327 = vmatprep.subr.bf16.mxu0 %v1260_v13  ;;  %v10115_v11 = vpop.eup %9316 }
 0x712   :  { %v1351_v36 = vpop.permute.xlu1 %1350  ;;  %v1221_v15 = vsel %vm371_vm1, %v10115_v11, 0.0 }
 0x713   :  { %1213 = vadd.xlane.f32.xlu0 %v1212_v26 }
 0x714   :  { %8328 = vmatpush3.bf16.msra.mxu0 %v1260_v13 }
 0x715   :  { %9021 = vmatprep.subr.msk.bf16.mxu0 %vm765_vm3, %v1351_v36  ;;  %v10119_v43 = vpop.eup %9318 }
 0x716   :  { %v1230_v57 = vsel %vm371_vm1, %v10119_v43, 0.0  ;;  %v9321_v16 = vpop.eup %9320 }
 0x717   :  { %1228 = vadd.xlane.f32.xlu0 %v1227_v34  ;;  %v1224_v23 = vsel %vm371_vm1, %v9321_v16, 0.0 }
 0x71b   :  { %1222 = vadd.xlane.f32.xlu0 %v1221_v15 }
 0x71c   :  { %1354 = vrot.lane.b32.xlu1 %v9935_v3, %s9712_s9 }
 0x71f   :  { %1231 = vadd.xlane.f32.xlu0 %v1230_v57 }
 0x735   :  { %1352 = vrot.lane.b32.xlu0 %v9911_v38, %s9712_s9 }
 0x739   :  { %1342 = vrot.lane.b32.xlu0 %v9913_v39, %s9713_s10 }
 0x73d   :  { %1346 = vrot.lane.b32.xlu0 %v9935_v3, %s9713_s10 }
 0x740   :  { %1225 = vadd.xlane.f32.xlu1 %v1224_v23 }
 0x751   :  { %1356 = vrot.lane.b32.xlu1 %v9933_v1, %s9712_s9 }
 0x755   :  { %1344 = vrot.lane.b32.xlu1 %v9911_v38, %s9713_s10 }
 0x759   :  { %1348 = vrot.lane.b32.xlu1 %v9933_v1, %s9713_s10 }
 0x794   :  { %v1217_v17 = vpop.xlane.xlu1 %1216 }
 0x798   :  { %v1211_v4 = vpop.xlane.xlu1 %1210 }
 0x79c   :  { %v1220_v25 = vpop.xlane.xlu0 %1219 }
 0x79d   :  { %9322 = vrcp.f32 %v1220_v25  ;;  %v1355_v25 = vpop.permute.xlu1 %1354 }
 0x79e   :  { %9324 = vrcp.f32 %v1211_v4  ;;  %v1371_v4 = vsel %vm765_vm3, %v1351_v36, 0 }
 0x79f   :  { %9326 = vrcp.f32 %v1217_v17 }
 0x7a0   :  { %v1214_v7 = vpop.xlane.xlu0 %1213 }
 0x7a1   :  { %9328 = vrcp.f32 %v1214_v7 }
 0x7a4   :  { %v1229_v33 = vpop.xlane.xlu0 %1228 }
 0x7a7   :  { %v9323_v20 = vpop.eup %9322 }
 0x7a8   :  { %v1223_v9 = vpop.xlane.xlu0 %1222  ;;  %v9325_v13 = vpop.eup %9324  ;;  %v1244_v34 = vmul.f32 %v9323_v20, %v9311_v29 }
 0x7a9   :  { %v9327_v40 = vpop.eup %9326  ;;  %v1241_v57 = vmul.f32 %v9325_v13, %v10104_v24 }
 0x7aa   :  { %v1243_v63 = vmul.f32 %v9327_v40, %v10100_v10  ;;  %v1377_v10 = vsel %vm765_vm3, %v1355_v25, 0 }
 0x7ab   :  { %v9329_v26 = vpop.eup %9328 }
 0x7ac   :  { %v1232_v15 = vpop.xlane.xlu0 %1231  ;;  %v1242_v22 = vmul.f32 %v9329_v26, %v9313_v27  ;;  %v1250_v12 = vpack.c.bf16 %v1244_v34, %v1243_v63 }
 0x7ad   :  { %9330 = vrcp.f32 %v1232_v15 }
 0x7ae   :  { %v1249_v23 = vpack.c.bf16 %v1242_v22, %v1241_v57  ;;  %9332 = vrcp.f32 %v1223_v9 }
 0x7af   :  { %9334 = vrcp.f32 %v1229_v33 }
 0x7b0   :  { %8329 = vmatprep.mubr.msk.bf16.mxu0 %vm371_vm1, %v1249_v23  ;;  %v1353_v17 = vpop.permute.xlu0 %1352 }
 0x7b1   :  { %8330 = vmatmul.mubr.msk.bf16.vlgmr.msra.gmra.mrb[40].mxu0 %vm371_vm1, %v1250_v12  ;;  %v1374_v29 = vsel %vm765_vm3, %v1353_v17, 0 }
 0x7b2   :  { %8338 = vmatpush3.bf16.xpose.msra.mxu0 %v1371_v4 }
 0x7b3   :  { %9022 = vmatprep.subr.msk.bf16.mxu0 %vm765_vm3, %v1353_v17 }
 0x7b4   :  { %v1343_v57 = vpop.permute.xlu0 %1342 }
 0x7b7   :  { %v9331_v36 = vpop.eup %9330 }
 0x7b8   :  { %v9333_v7 = vpop.eup %9332  ;;  %v1248_v40 = vmul.f32 %v9331_v36, %v10119_v43  ;;  %v1347_v63 = vpop.permute.xlu0 %1346 }
 0x7b9   :  { %v9335_v20 = vpop.eup %9334  ;;  %v1245_v26 = vmul.f32 %v9333_v7, %v10115_v11 }
 0x7ba   :  { %8340 = vmatpush3.bf16.xpose.msra.mxu0 %v1374_v29  ;;  %v1247_v9 = vmul.f32 %v9335_v20, %v10110_v5 }
 0x7bb   :  { %9023 = vmatprep.subr.msk.bf16.mxu0 %vm765_vm3, %v1355_v25 }
 0x7bc   :  { %v1252_v15 = vpack.c.bf16 %v1248_v40, %v1247_v9 }
 0x7c2   :  { %8342 = vmatpush3.bf16.xpose.msra.mxu0 %v1377_v10 }
 0x7cd   :  { %v1226_v24 = vpop.xlane.xlu1 %1225 }
 0x7ce   :  { %9336 = vrcp.f32 %v1226_v24 }
 0x7d1   :  { %v1357_v12 = vpop.permute.xlu1 %1356 }
 0x7d2   :  { %9024 = vmatprep.subr.msk.bf16.mxu0 %vm765_vm3, %v1357_v12  ;;  %v1380_v27 = vsel %vm765_vm3, %v1357_v12, 0 }
 0x7d3   :  { %8344 = vmatpush3.bf16.xpose.msra.mxu0 %v1380_v27 }
 0x7d5   :  { %v1345_v22 = vpop.permute.xlu1 %1344 }
 0x7d8   :  { %v9337_v13 = vpop.eup %9336 }
 0x7d9   :  { %v1246_v34 = vmul.f32 %v9337_v13, %v9321_v16  ;;  %v1349_v43 = vpop.permute.xlu1 %1348 }
 0x7db   :  { %v1251_v33 = vpack.c.bf16 %v1246_v34, %v1245_v26 }
 0x7dd   :  { %8333 = vmatprep.mubr.msk.bf16.mxu0 %vm371_vm1, %v1251_v33 }
 0x7de   :  { %8334 = vmatmul.mubr.msk.bf16.gmra.mrb[44].mxu0 %vm371_vm1, %v1252_v15 }
 0x7df   :  { %8345 = vmatprep.mubr.msk.bf16.mxu0 %vm765_vm3, %v1343_v57 }
 0x7e6   :  { %8346 = vmatmul.mubr.msk.bf16.vlgmr.msra.gmra.mrb[48].mxu0 %vm765_vm3, %v1345_v22 }
 0x7e7   :  { %8349 = vmatprep.mubr.msk.bf16.mxu0 %vm765_vm3, %v1347_v63 }
 0x7ee   :  { %8350 = vmatmul.mubr.msk.bf16.gmra.mrb[52].mxu0 %vm765_vm3, %v1349_v43 }
 0x884   :  { %v10159_v11 = vpop.f32.mrb[40].mxu0 }
 0x885   :  { %v10161_v5 = vpop.f32.mrb[41].mxu0 }
 0x886   :  { %v10163_v16 = vpop.f32.mrb[42].mxu0 }
 0x887   :  { %v10167_v17 = vpop.f32.mrb[43].mxu0 }
 0x8b1   :  { %v10171_v29 = vpop.f32.mrb[44].mxu0 }
 0x8b2   :  { %v10173_v25 = vpop.f32.mrb[45].mxu0 }
 0x8b3   :  { %v10175_v10 = vpop.f32.mrb[46].mxu0 }
 0x8b4   :  { %v10179_v12 = vpop.f32.mrb[47].mxu0 }
 0x8b9   :  { %v8347_v36 = vpop.f32.mrb[48].mxu0 }
 0x8ba   :  { %v1449_v7 = vmul.f32 0.35355338, %v8347_v36  ;;  %v1416_v20 = vpop.f32.mrb[49].mxu0 }
 0x8bb   :  { %v8348_v13 = vpop.f32.mrb[50].mxu0  ;;  %v1447_v40 = vmul.f32 0.35355338, %v1416_v20 }
 0x8bc   :  { %v1419_v26 = vpop.f32.mrb[51].mxu0  ;;  %v1461_v34 = vsel %vm371_vm1, %v1449_v7, -inf  ;;  %v1450_v15 = vmul.f32 0.35355338, %v8348_v13 }
 0x8bd   :  { %v1448_v9 = vmul.f32 0.35355338, %v1419_v26  ;;  %1462 = vmax.xlane.f32.xlu0 %v1461_v34  ;;  %v1455_v57 = vsel %vm371_vm1, %v1447_v40, -inf }
 0x8be   :  { %v1464_v20 = vsel %vm371_vm1, %v1450_v15, -inf }
 0x8bf   :  { %v1458_v33 = vsel %vm371_vm1, %v1448_v9, -inf }
 0x8c0   :  { %1459 = vmax.xlane.f32.xlu1 %v1458_v33 }
 0x8c1   :  { %1456 = vmax.xlane.f32.xlu0 %v1455_v57  ;;  %v8351_v22 = vpop.f32.mrb[52].mxu0 }
 0x8c2   :  { %v1453_v63 = vmul.f32 0.35355338, %v8351_v22  ;;  %v1432_v43 = vpop.f32.mrb[53].mxu0 }
 0x8c3   :  { %v8352_v27 = vpop.f32.mrb[54].mxu0  ;;  %v1451_v36 = vmul.f32 0.35355338, %v1432_v43 }
 0x8c4   :  { %v1435_v24 = vpop.f32.mrb[55].mxu0  ;;  %v1473_v23 = vsel %vm371_vm1, %v1453_v63, -inf  ;;  %v1454_v26 = vmul.f32 0.35355338, %v8352_v27 }
 0x8c5   :  { %v10188_v4 = vmul.f32 0.35355338, %v1435_v24  ;;  %1465 = vmax.xlane.f32.xlu0 %v1464_v20  ;;  %1474 = vmax.xlane.f32.xlu1 %v1473_v23  ;;  %v1467_v34 = vsel %vm371_vm1, %v1451_v36, -inf }
 0x8c6   :  { %v1476_v33 = vsel %vm371_vm1, %v1454_v26, -inf }
 0x8c7   :  { %v1470_v13 = vsel %vm371_vm1, %v10188_v4, -inf }
 0x8c9   :  { %1468 = vmax.xlane.f32.xlu1 %v1467_v34  ;;  %1471 = vmax.xlane.f32.xlu0 %v1470_v13 }
 0x8cd   :  { %1477 = vmax.xlane.f32.xlu0 %v1476_v33 }
 0x8da   :  { %1547 = vrot.lane.b32.xlu1 %v9909_v37, %s9714_s11 }
 0x8de   :  { %1551 = vrot.lane.b32.xlu1 %v9928_v61, %s9714_s11 }
 0x8e2   :  { %1553 = vrot.lane.b32.xlu1 %v9925_v58, %s9714_s11 }
 0x8e3   :  { %1549 = vrot.lane.b32.xlu0 %v9907_v35, %s9714_s11 }
 0x8e6   :  { %1644 = vrot.lane.b32.xlu1 %v9913_v39, %s9715_s12 }
 0x94a   :  { %v1463_v23 = vpop.xlane.xlu0 %1462 }
 0x94b   :  { %v1481_v24 = vsub.f32 %v1449_v7, %v1463_v23 }
 0x94d   :  { %v1491_v27 = vmul.f32 1.442695, %v1481_v24  ;;  %v1460_v57 = vpop.xlane.xlu1 %1459 }
 0x94e   :  { %v1457_v22 = vpop.xlane.xlu0 %1456  ;;  %v1480_v13 = vsub.f32 %v1448_v9, %v1460_v57 }
 0x94f   :  { %9338 = vpow2.f32 %v1491_v27  ;;  %v1479_v43 = vsub.f32 %v1447_v40, %v1457_v22 }
 0x950   :  { %v1489_v0 = vmul.f32 1.442695, %v1480_v13 }
 0x951   :  { %v1487_v20 = vmul.f32 1.442695, %v1479_v43 }
 0x952   :  { %v1475_v34 = vpop.xlane.xlu1 %1474  ;;  %v1466_v33 = vpop.xlane.xlu0 %1465 }
 0x953   :  { %9340 = vpow2.f32 %v1487_v20  ;;  %v1482_v6 = vsub.f32 %v1450_v15, %v1466_v33  ;;  %v1485_v2 = vsub.f32 %v1453_v63, %v1475_v34 }
 0x955   :  { %v1493_v8 = vmul.f32 1.442695, %v1482_v6  ;;  %v1499_v7 = vmul.f32 1.442695, %v1485_v2 }
 0x956   :  { %v1469_v60 = vpop.xlane.xlu1 %1468  ;;  %v1472_v62 = vpop.xlane.xlu0 %1471 }
 0x957   :  { %9342 = vpow2.f32 %v1493_v8  ;;  %v1483_v23 = vsub.f32 %v1451_v36, %v1469_v60 }
 0x958   :  { %9344 = vpow2.f32 %v1489_v0 }
 0x959   :  { %v10204_v54 = vpop.eup %9338  ;;  %9346 = vpow2.f32 %v1499_v7  ;;  %v1495_v6 = vmul.f32 1.442695, %v1483_v23 }
 0x95a   :  { %v1548_v24 = vpop.permute.xlu1 %1547  ;;  %v1478_v27 = vpop.xlane.xlu0 %1477  ;;  %v1509_v40 = vsel %vm371_vm1, %v10204_v54, 0.0 }
 0x95b   :  { %8353 = vmatprep.subr.bf16.mxu1 %v1548_v24  ;;  %1510 = vadd.xlane.f32.xlu1 %v1509_v40  ;;  %v1486_v15 = vsub.f32 %v1454_v26, %v1478_v27  ;;  %9348 = vpow2.f32 %v1495_v6 }
 0x95c   :  { %8354 = vmatpush3.bf16.msra.mxu1 %v1548_v24  ;;  %v1484_v24 = vsub.f32 %v10188_v4, %v1472_v62 }
 0x95d   :  { %v10208_v9 = vpop.eup %9340  ;;  %v1501_v2 = vmul.f32 1.442695, %v1486_v15 }
 0x95e   :  { %v1552_v63 = vpop.permute.xlu1 %1551  ;;  %v1550_v8 = vpop.permute.xlu0 %1549  ;;  %v1503_v0 = vsel %vm371_vm1, %v10208_v9, 0.0  ;;  %v1497_v27 = vmul.f32 1.442695, %v1484_v24 }
 0x95f   :  { %1504 = vadd.xlane.f32.xlu1 %v1503_v0  ;;  %8355 = vmatprep.subr.bf16.mxu1 %v1550_v8  ;;  %9350 = vpow2.f32 %v1501_v2 }
 0x960   :  { %8356 = vmatpush3.bf16.msra.mxu1 %v1550_v8  ;;  %9352 = vpow2.f32 %v1497_v27 }
 0x961   :  { %8357 = vmatprep.subr.bf16.mxu1 %v1552_v63  ;;  %v9343_v60 = vpop.eup %9342 }
 0x962   :  { %v1554_v36 = vpop.permute.xlu1 %1553  ;;  %v1512_v57 = vsel %vm371_vm1, %v9343_v60, 0.0  ;;  %v9345_v22 = vpop.eup %9344 }
 0x963   :  { %1513 = vadd.xlane.f32.xlu0 %v1512_v57  ;;  %v1506_v26 = vsel %vm371_vm1, %v9345_v22, 0.0  ;;  %v10214_v43 = vpop.eup %9346 }
 0x964   :  { %8358 = vmatpush3.bf16.msra.mxu1 %v1552_v63  ;;  %v1521_v13 = vsel %vm371_vm1, %v10214_v43, 0.0 }
 0x965   :  { %8359 = vmatprep.subr.bf16.mxu1 %v1554_v36  ;;  %v10219_v34 = vpop.eup %9348 }
 0x966   :  { %v1645_v20 = vpop.permute.xlu1 %1644  ;;  %v1515_v33 = vsel %vm371_vm1, %v10219_v34, 0.0 }
 0x967   :  { %1507 = vadd.xlane.f32.xlu0 %v1506_v26  ;;  %v1665_v27 = vsel %vm765_vm3, %v1645_v20, 0 }
 0x968   :  { %8360 = vmatpush3.bf16.msra.mxu1 %v1554_v36 }
 0x969   :  { %9025 = vmatprep.subr.msk.bf16.mxu1 %vm765_vm3, %v1645_v20  ;;  %v10223_v7 = vpop.eup %9350 }
 0x96a   :  { %v1524_v23 = vsel %vm371_vm1, %v10223_v7, 0.0  ;;  %v9353_v40 = vpop.eup %9352 }
 0x96b   :  { %1522 = vadd.xlane.f32.xlu0 %v1521_v13  ;;  %v1518_v6 = vsel %vm371_vm1, %v9353_v40, 0.0 }
 0x96f   :  { %1516 = vadd.xlane.f32.xlu0 %v1515_v33 }
 0x970   :  { %1648 = vrot.lane.b32.xlu1 %v9935_v3, %s9715_s12 }
 0x973   :  { %1525 = vadd.xlane.f32.xlu0 %v1524_v23 }
 0x989   :  { %1646 = vrot.lane.b32.xlu0 %v9911_v38, %s9715_s12 }
 0x98d   :  { %1636 = vrot.lane.b32.xlu0 %v9913_v39, %s9716_s13 }
 0x991   :  { %1640 = vrot.lane.b32.xlu0 %v9935_v3, %s9716_s13 }
 0x994   :  { %1519 = vadd.xlane.f32.xlu1 %v1518_v6 }
 0x9a5   :  { %1650 = vrot.lane.b32.xlu1 %v9933_v1, %s9715_s12 }
 0x9a9   :  { %1638 = vrot.lane.b32.xlu1 %v9911_v38, %s9716_s13 }
 0x9ad   :  { %1642 = vrot.lane.b32.xlu1 %v9933_v1, %s9716_s13 }
 0x9e8   :  { %v1511_v62 = vpop.xlane.xlu1 %1510 }
 0x9ec   :  { %v1505_v4 = vpop.xlane.xlu1 %1504 }
 0x9f0   :  { %v1514_v15 = vpop.xlane.xlu0 %1513  ;;  %v1649_v6 = vpop.permute.xlu1 %1648 }
 0x9f1   :  { %9354 = vrcp.f32 %v1514_v15 }
 0x9f2   :  { %9356 = vrcp.f32 %v1505_v4 }
 0x9f3   :  { %9358 = vrcp.f32 %v1511_v62 }
 0x9f4   :  { %v1508_v39 = vpop.xlane.xlu0 %1507 }
 0x9f5   :  { %9360 = vrcp.f32 %v1508_v39 }
 0x9f8   :  { %v1523_v3 = vpop.xlane.xlu0 %1522 }
 0x9fb   :  { %v9355_v63 = vpop.eup %9354 }
 0x9fc   :  { %v1517_v8 = vpop.xlane.xlu0 %1516  ;;  %v9357_v0 = vpop.eup %9356  ;;  %v1538_v57 = vmul.f32 %v9355_v63, %v9343_v60 }
 0x9fd   :  { %v9359_v2 = vpop.eup %9358  ;;  %v1535_v38 = vmul.f32 %v9357_v0, %v10208_v9 }
 0x9fe   :  { %v1537_v1 = vmul.f32 %v9359_v2, %v10204_v54  ;;  %v1671_v54 = vsel %vm765_vm3, %v1649_v6, 0 }
 0x9ff   :  { %v9361_v36 = vpop.eup %9360 }
 0xa00   :  { %v1526_v26 = vpop.xlane.xlu0 %1525  ;;  %v1536_v13 = vmul.f32 %v9361_v36, %v9345_v22  ;;  %v1544_v23 = vpack.c.bf16 %v1538_v57, %v1537_v1 }
 0xa01   :  { %9362 = vrcp.f32 %v1526_v26 }
 0xa02   :  { %v1543_v33 = vpack.c.bf16 %v1536_v13, %v1535_v38  ;;  %9364 = vrcp.f32 %v1517_v8 }
 0xa03   :  { %9366 = vrcp.f32 %v1523_v3 }
 0xa04   :  { %8361 = vmatprep.mubr.msk.bf16.mxu1 %vm371_vm1, %v1543_v33  ;;  %v1647_v24 = vpop.permute.xlu0 %1646 }
 0xa05   :  { %8362 = vmatmul.mubr.msk.bf16.vlgmr.msra.gmra.mrb[40].mxu1 %vm371_vm1, %v1544_v23  ;;  %v1668_v60 = vsel %vm765_vm3, %v1647_v24, 0 }
 0xa06   :  { %8370 = vmatpush3.bf16.xpose.msra.mxu1 %v1665_v27 }
 0xa07   :  { %9026 = vmatprep.subr.msk.bf16.mxu1 %vm765_vm3, %v1647_v24 }
 0xa08   :  { %v1637_v57 = vpop.permute.xlu0 %1636 }
 0xa0b   :  { %v9363_v62 = vpop.eup %9362 }
 0xa0c   :  { %v9365_v4 = vpop.eup %9364  ;;  %v1542_v63 = vmul.f32 %v9363_v62, %v10223_v7  ;;  %v1641_v38 = vpop.permute.xlu0 %1640 }
 0xa0d   :  { %v9367_v15 = vpop.eup %9366  ;;  %v1539_v0 = vmul.f32 %v9365_v4, %v10219_v34 }
 0xa0e   :  { %8372 = vmatpush3.bf16.xpose.msra.mxu1 %v1668_v60  ;;  %v1541_v8 = vmul.f32 %v9367_v15, %v10214_v43 }
 0xa0f   :  { %9027 = vmatprep.subr.msk.bf16.mxu1 %vm765_vm3, %v1649_v6 }
 0xa10   :  { %v1546_v36 = vpack.c.bf16 %v1542_v63, %v1541_v8 }
 0xa16   :  { %8374 = vmatpush3.bf16.xpose.msra.mxu1 %v1671_v54 }
 0xa21   :  { %v1520_v9 = vpop.xlane.xlu1 %1519 }
 0xa22   :  { %9368 = vrcp.f32 %v1520_v9 }
 0xa25   :  { %v1651_v22 = vpop.permute.xlu1 %1650 }
 0xa26   :  { %9028 = vmatprep.subr.msk.bf16.mxu1 %vm765_vm3, %v1651_v22  ;;  %v1674_v20 = vsel %vm765_vm3, %v1651_v22, 0 }
 0xa27   :  { %8376 = vmatpush3.bf16.xpose.msra.mxu1 %v1674_v20 }
 0xa29   :  { %v1639_v26 = vpop.permute.xlu1 %1638 }
 0xa2c   :  { %v9369_v39 = vpop.eup %9368 }
 0xa2d   :  { %v1540_v2 = vmul.f32 %v9369_v39, %v9353_v40  ;;  %v1643_v7 = vpop.permute.xlu1 %1642 }
 0xa2f   :  { %v1545_v3 = vpack.c.bf16 %v1540_v2, %v1539_v0 }
 0xa31   :  { %8365 = vmatprep.mubr.msk.bf16.mxu1 %vm371_vm1, %v1545_v3 }
 0xa32   :  { %8366 = vmatmul.mubr.msk.bf16.gmra.mrb[44].mxu1 %vm371_vm1, %v1546_v36 }
 0xa33   :  { %8377 = vmatprep.mubr.msk.bf16.mxu1 %vm765_vm3, %v1637_v57 }
 0xa3a   :  { %8378 = vmatmul.mubr.msk.bf16.vlgmr.msra.gmra.mrb[48].mxu1 %vm765_vm3, %v1639_v26 }
 0xa3b   :  { %8381 = vmatprep.mubr.msk.bf16.mxu1 %vm765_vm3, %v1641_v38 }
 0xa42   :  { %8382 = vmatmul.mubr.msk.bf16.gmra.mrb[52].mxu1 %vm765_vm3, %v1643_v7 }
 0xad8   :  { %v10263_v34 = vpop.f32.mrb[40].mxu1 }
 0xad9   :  { %v10265_v43 = vpop.f32.mrb[41].mxu1 }
 0xada   :  { %v10267_v40 = vpop.f32.mrb[42].mxu1 }
 0xadb   :  { %v10271_v1 = vpop.f32.mrb[43].mxu1 }
 0xb05   :  { %v10275_v23 = vpop.f32.mrb[44].mxu1 }
 0xb06   :  { %v10277_v24 = vpop.f32.mrb[45].mxu1 }
 0xb07   :  { %v10279_v27 = vpop.f32.mrb[46].mxu1 }
 0xb08   :  { %v10283_v6 = vpop.f32.mrb[47].mxu1 }
 0xb0d   :  { %v8379_v9 = vpop.f32.mrb[48].mxu1 }
 0xb0e   :  { %v1743_v22 = vmul.f32 0.35355338, %v8379_v9  ;;  %v1710_v20 = vpop.f32.mrb[49].mxu1 }
 0xb0f   :  { %v8380_v62 = vpop.f32.mrb[50].mxu1  ;;  %v1741_v4 = vmul.f32 0.35355338, %v1710_v20 }
 0xb10   :  { %v1713_v15 = vpop.f32.mrb[51].mxu1  ;;  %v1755_v39 = vsel %vm371_vm1, %v1743_v22, -inf  ;;  %v1744_v2 = vmul.f32 0.35355338, %v8380_v62 }
 0xb11   :  { %v1742_v63 = vmul.f32 0.35355338, %v1713_v15  ;;  %1756 = vmax.xlane.f32.xlu0 %v1755_v39  ;;  %v1749_v8 = vsel %vm371_vm1, %v1741_v4, -inf }
 0xb12   :  { %v1758_v9 = vsel %vm371_vm1, %v1744_v2, -inf }
 0xb13   :  { %v1752_v0 = vsel %vm371_vm1, %v1742_v63, -inf }
 0xb14   :  { %1753 = vmax.xlane.f32.xlu1 %v1752_v0 }
 0xb15   :  { %1750 = vmax.xlane.f32.xlu0 %v1749_v8  ;;  %v8383_v3 = vpop.f32.mrb[52].mxu1 }
 0xb16   :  { %v1747_v36 = vmul.f32 0.35355338, %v8383_v3  ;;  %v1726_v57 = vpop.f32.mrb[53].mxu1 }
 0xb17   :  { %v8384_v26 = vpop.f32.mrb[54].mxu1  ;;  %v1745_v38 = vmul.f32 0.35355338, %v1726_v57 }
 0xb18   :  { %v1729_v7 = vpop.f32.mrb[55].mxu1  ;;  %v1767_v20 = vsel %vm371_vm1, %v1747_v36, -inf  ;;  %v1748_v15 = vmul.f32 0.35355338, %v8384_v26 }
 0xb19   :  { %v10292_v54 = vmul.f32 0.35355338, %v1729_v7  ;;  %1759 = vmax.xlane.f32.xlu0 %v1758_v9  ;;  %1768 = vmax.xlane.f32.xlu1 %v1767_v20  ;;  %v1761_v39 = vsel %vm371_vm1, %v1745_v38, -inf }
 0xb1a   :  { %v1770_v0 = vsel %vm371_vm1, %v1748_v15, -inf }
 0xb1b   :  { %v1764_v62 = vsel %vm371_vm1, %v10292_v54, -inf }
 0xb1d   :  { %1762 = vmax.xlane.f32.xlu1 %v1761_v39  ;;  %1765 = vmax.xlane.f32.xlu0 %v1764_v62 }
 0xb21   :  { %1771 = vmax.xlane.f32.xlu0 %v1770_v0 }
 0xb2e   :  { %1841 = vrot.lane.b32.xlu1 %v9909_v37, %s9717_s14 }
 0xb32   :  { %1845 = vrot.lane.b32.xlu1 %v9928_v61, %s9717_s14 }
 0xb36   :  { %1847 = vrot.lane.b32.xlu1 %v9925_v58, %s9717_s14 }
 0xb37   :  { %1843 = vrot.lane.b32.xlu0 %v9907_v35, %s9717_s14 }
 0xb3a   :  { %2072 = vrot.lane.b32.xlu1 %v9951_v32, %s9707_s4 }
 0xb9e   :  { %v1757_v8 = vpop.xlane.xlu0 %1756 }
 0xb9f   :  { %v1775_v3 = vsub.f32 %v1743_v22, %v1757_v8 }
 0xba1   :  { %v1785_v57 = vmul.f32 1.442695, %v1775_v3  ;;  %v1754_v26 = vpop.xlane.xlu1 %1753 }
 0xba2   :  { %v1751_v7 = vpop.xlane.xlu0 %1750  ;;  %v1774_v20 = vsub.f32 %v1742_v63, %v1754_v26 }
 0xba3   :  { %9370 = vpow2.f32 %v1785_v57  ;;  %v1773_v9 = vsub.f32 %v1741_v4, %v1751_v7 }
 0xba4   :  { %v1783_v0 = vmul.f32 1.442695, %v1774_v20 }
 0xba5   :  { %v1781_v37 = vmul.f32 1.442695, %v1773_v9 }
 0xba6   :  { %v1769_v62 = vpop.xlane.xlu1 %1768  ;;  %v1760_v61 = vpop.xlane.xlu0 %1759 }
 0xba7   :  { %9372 = vpow2.f32 %v1781_v37  ;;  %v1776_v39 = vsub.f32 %v1744_v2, %v1760_v61  ;;  %v1779_v60 = vsub.f32 %v1747_v36, %v1769_v62 }
 0xba9   :  { %v1787_v58 = vmul.f32 1.442695, %v1776_v39  ;;  %v1793_v22 = vmul.f32 1.442695, %v1779_v60 }
 0xbaa   :  { %v1763_v35 = vpop.xlane.xlu1 %1762  ;;  %v1766_v13 = vpop.xlane.xlu0 %1765 }
 0xbab   :  { %9374 = vpow2.f32 %v1787_v58  ;;  %v1777_v8 = vsub.f32 %v1745_v38, %v1763_v35 }
 0xbac   :  { %9376 = vpow2.f32 %v1783_v0 }
 0xbad   :  { %v10308_v33 = vpop.eup %9370  ;;  %9378 = vpow2.f32 %v1793_v22  ;;  %v1789_v2 = vmul.f32 1.442695, %v1777_v8 }
 0xbae   :  { %v1842_v3 = vpop.permute.xlu1 %1841  ;;  %v1772_v57 = vpop.xlane.xlu0 %1771  ;;  %v1803_v4 = vsel %vm371_vm1, %v10308_v33, 0.0 }
 0xbaf   :  { %8385 = vmatprep.subr.bf16.mxu0 %v1842_v3  ;;  %1804 = vadd.xlane.f32.xlu1 %v1803_v4  ;;  %v1780_v36 = vsub.f32 %v1748_v15, %v1772_v57  ;;  %9380 = vpow2.f32 %v1789_v2 }
 0xbb0   :  { %8386 = vmatpush3.bf16.msra.mxu0 %v1842_v3  ;;  %v1778_v3 = vsub.f32 %v10292_v54, %v1766_v13 }
 0xbb1   :  { %v9373_v63 = vpop.eup %9372  ;;  %v1795_v38 = vmul.f32 1.442695, %v1780_v36 }
 0xbb2   :  { %v1846_v26 = vpop.permute.xlu1 %1845  ;;  %v1844_v7 = vpop.permute.xlu0 %1843  ;;  %v1797_v9 = vsel %vm371_vm1, %v9373_v63, 0.0  ;;  %v1791_v57 = vmul.f32 1.442695, %v1778_v3 }
 0xbb3   :  { %1798 = vadd.xlane.f32.xlu1 %v1797_v9  ;;  %8387 = vmatprep.subr.bf16.mxu0 %v1844_v7  ;;  %9382 = vpow2.f32 %v1795_v38 }
 0xbb4   :  { %8388 = vmatpush3.bf16.msra.mxu0 %v1844_v7  ;;  %9384 = vpow2.f32 %v1791_v57 }
 0xbb5   :  { %8389 = vmatprep.subr.bf16.mxu0 %v1846_v26  ;;  %v9375_v60 = vpop.eup %9374 }
 0xbb6   :  { %v1848_v37 = vpop.permute.xlu1 %1847  ;;  %v1806_v20 = vsel %vm371_vm1, %v9375_v60, 0.0  ;;  %v9377_v62 = vpop.eup %9376 }
 0xbb7   :  { %1807 = vadd.xlane.f32.xlu0 %v1806_v20  ;;  %v1800_v15 = vsel %vm371_vm1, %v9377_v62, 0.0  ;;  %v10315_v61 = vpop.eup %9378 }
 0xbb8   :  { %8390 = vmatpush3.bf16.msra.mxu0 %v1846_v26  ;;  %v1815_v58 = vsel %vm371_vm1, %v10315_v61, 0.0 }
 0xbb9   :  { %8391 = vmatprep.subr.bf16.mxu0 %v1848_v37  ;;  %v10320_v0 = vpop.eup %9380 }
 0xbba   :  { %v2073_v39 = vpop.permute.xlu1 %2072  ;;  %v1809_v35 = vsel %vm371_vm1, %v10320_v0, 0.0 }
 0xbbb   :  { %1801 = vadd.xlane.f32.xlu0 %v1800_v15 }
 0xbbc   :  { %8392 = vmatpush3.bf16.msra.mxu0 %v1848_v37 }
 0xbbd   :  { %9029 = vmatprep.subr.msk.bf16.mxu0 %vm765_vm3, %v2073_v39  ;;  %v9383_v22 = vpop.eup %9382 }
 0xbbe   :  { %v1818_v8 = vsel %vm371_vm1, %v9383_v22, 0.0  ;;  %v9385_v4 = vpop.eup %9384 }
 0xbbf   :  { %1816 = vadd.xlane.f32.xlu0 %v1815_v58  ;;  %v1812_v2 = vsel %vm371_vm1, %v9385_v4, 0.0 }
 0xbc3   :  { %1810 = vadd.xlane.f32.xlu0 %v1809_v35 }
 0xbc4   :  { %2076 = vrot.lane.b32.xlu1 %v9967_v55, %s9707_s4 }
 0xbc7   :  { %1819 = vadd.xlane.f32.xlu0 %v1818_v8 }
 0xbdd   :  { %2074 = vrot.lane.b32.xlu0 %v9949_v31, %s9707_s4 }
 0xbe8   :  { %1813 = vadd.xlane.f32.xlu1 %v1812_v2 }
 0xbf9   :  { %2078 = vrot.lane.b32.xlu1 %v9965_v53, %s9707_s4 }
 0xc3c   :  { %v1805_v36 = vpop.xlane.xlu1 %1804 }
 0xc40   :  { %v1799_v26 = vpop.xlane.xlu1 %1798 }
 0xc44   :  { %v1808_v7 = vpop.xlane.xlu0 %1807 }
 0xc45   :  { %9386 = vrcp.f32 %v1808_v7 }
 0xc46   :  { %9388 = vrcp.f32 %v1799_v26 }
 0xc47   :  { %9390 = vrcp.f32 %v1805_v36  ;;  %v2093_v36 = vsel %vm765_vm3, %v2073_v39, 0 }
 0xc48   :  { %v1802_v9 = vpop.xlane.xlu0 %1801 }
 0xc49   :  { %9392 = vrcp.f32 %v1802_v9 }
 0xc4c   :  { %v1817_v13 = vpop.xlane.xlu0 %1816 }
 0xc4f   :  { %v9387_v54 = vpop.eup %9386 }
 0xc50   :  { %v1811_v38 = vpop.xlane.xlu0 %1810  ;;  %v9389_v37 = vpop.eup %9388  ;;  %v1832_v58 = vmul.f32 %v9387_v54, %v9375_v60 }
 0xc51   :  { %v9391_v20 = vpop.eup %9390  ;;  %v1829_v8 = vmul.f32 %v9389_v37, %v9373_v63  ;;  %v2077_v60 = vpop.permute.xlu1 %2076 }
 0xc52   :  { %v1831_v57 = vmul.f32 %v9391_v20, %v10308_v33  ;;  %v2099_v33 = vsel %vm765_vm3, %v2077_v60, 0 }
 0xc53   :  { %v9393_v15 = vpop.eup %9392 }
 0xc54   :  { %v1820_v35 = vpop.xlane.xlu0 %1819  ;;  %v1830_v3 = vmul.f32 %v9393_v15, %v9377_v62  ;;  %v1838_v50 = vpack.c.bf16 %v1832_v58, %v1831_v57 }
 0xc55   :  { %9394 = vrcp.f32 %v1820_v35 }
 0xc56   :  { %v1837_v2 = vpack.c.bf16 %v1830_v3, %v1829_v8  ;;  %9396 = vrcp.f32 %v1811_v38 }
 0xc57   :  { %9398 = vrcp.f32 %v1817_v13 }
 0xc58   :  { %8393 = vmatprep.mubr.msk.bf16.mxu0 %vm371_vm1, %v1837_v2  ;;  %v2075_v26 = vpop.permute.xlu0 %2074 }
 0xc59   :  { %8394 = vmatmul.mubr.msk.bf16.vlgmr.msra.gmra.mrb[56].mxu0 %vm371_vm1, %v1838_v50  ;;  %v2096_v7 = vsel %vm765_vm3, %v2075_v26, 0 }
 0xc5a   :  { %8402 = vmatpush3.bf16.xpose.msra.mxu0 %v2093_v36 }
 0xc5b   :  { %9030 = vmatprep.subr.msk.bf16.mxu0 %vm765_vm3, %v2075_v26 }
 0xc5f   :  { %v9395_v39 = vpop.eup %9394 }
 0xc60   :  { %v9397_v9 = vpop.eup %9396  ;;  %v1836_v20 = vmul.f32 %v9395_v39, %v9383_v22 }
 0xc61   :  { %v9399_v54 = vpop.eup %9398  ;;  %v1833_v15 = vmul.f32 %v9397_v9, %v10320_v0 }
 0xc62   :  { %8404 = vmatpush3.bf16.xpose.msra.mxu0 %v2096_v7  ;;  %v1835_v35 = vmul.f32 %v9399_v54, %v10315_v61 }
 0xc63   :  { %9031 = vmatprep.subr.msk.bf16.mxu0 %vm765_vm3, %v2077_v60 }
 0xc64   :  { %v1840_v13 = vpack.c.bf16 %v1836_v20, %v1835_v35 }
 0xc6a   :  { %8406 = vmatpush3.bf16.xpose.msra.mxu0 %v2099_v33 }
 0xc75   :  { %v1814_v63 = vpop.xlane.xlu1 %1813 }
 0xc76   :  { %9400 = vrcp.f32 %v1814_v63 }
 0xc79   :  { %v2079_v50 = vpop.permute.xlu1 %2078 }
 0xc7a   :  { %9032 = vmatprep.subr.msk.bf16.mxu0 %vm765_vm3, %v2079_v50  ;;  %v2102_v62 = vsel %vm765_vm3, %v2079_v50, 0 }
 0xc7b   :  { %8408 = vmatpush3.bf16.xpose.msra.mxu0 %v2102_v62 }
 0xc80   :  { %v9401_v37 = vpop.eup %9400 }
 0xc81   :  { %v1834_v58 = vmul.f32 %v9401_v37, %v9385_v4 }
 0xc83   :  { %v1839_v38 = vpack.c.bf16 %v1834_v58, %v1833_v15 }
 0xc85   :  { %8397 = vmatprep.mubr.msk.bf16.mxu0 %vm371_vm1, %v1839_v38 }
 0xc86   :  { %8398 = vmatmul.mubr.msk.bf16.gmra.mrb[60].mxu0 %vm371_vm1, %v1840_v13 }
 0xc87   :  { %8409 = vmatprep.mubr.msk.bf16.mxu0 %vm765_vm3, %v9951_v32 }
 0xc8e   :  { %8410 = vmatmul.mubr.msk.bf16.vlgmr.msra.gmra.mrb[64].mxu0 %vm765_vm3, %v9949_v31 }
 0xc8f   :  { %8413 = vmatprep.mubr.msk.bf16.mxu0 %vm765_vm3, %v9967_v55 }
 0xc96   :  { %8414 = vmatmul.mubr.msk.bf16.gmra.mrb[68].mxu0 %vm765_vm3, %v9965_v53 }
 0xd2c   :  { %v10355_v0 = vpop.f32.mrb[56].mxu0 }
 0xd2d   :  { %v10357_v61 = vpop.f32.mrb[57].mxu0 }
 0xd2e   :  { %v10359_v22 = vpop.f32.mrb[58].mxu0 }
 0xd2f   :  { %v10363_v8 = vpop.f32.mrb[59].mxu0 }
 0xd59   :  { %v10367_v57 = vpop.f32.mrb[60].mxu0 }
 0xd5a   :  { %v10369_v2 = vpop.f32.mrb[61].mxu0 }
 0xd5b   :  { %v10371_v26 = vpop.f32.mrb[62].mxu0 }
 0xd5c   :  { %v10375_v7 = vpop.f32.mrb[63].mxu0 }
 0xd61   :  { %v8411_v33 = vpop.f32.mrb[64].mxu0 }
 0xd62   :  { %v2171_v63 = vmul.f32 0.35355338, %v8411_v33  ;;  %v2138_v50 = vpop.f32.mrb[65].mxu0 }
 0xd63   :  { %v8412_v62 = vpop.f32.mrb[66].mxu0  ;;  %v2169_v39 = vmul.f32 0.35355338, %v2138_v50 }
 0xd64   :  { %v2141_v9 = vpop.f32.mrb[67].mxu0  ;;  %v2183_v54 = vsel %vm371_vm1, %v2171_v63, -inf  ;;  %v2172_v15 = vmul.f32 0.35355338, %v8412_v62 }
 0xd65   :  { %v2170_v37 = vmul.f32 0.35355338, %v2141_v9  ;;  %2184 = vmax.xlane.f32.xlu0 %v2183_v54  ;;  %v2177_v58 = vsel %vm371_vm1, %v2169_v39, -inf }
 0xd66   :  { %v2186_v50 = vsel %vm371_vm1, %v2172_v15, -inf }
 0xd67   :  { %v2180_v20 = vsel %vm371_vm1, %v2170_v37, -inf }
 0xd68   :  { %2181 = vmax.xlane.f32.xlu1 %v2180_v20 }
 0xd69   :  { %2178 = vmax.xlane.f32.xlu0 %v2177_v58  ;;  %v8415_v35 = vpop.f32.mrb[68].mxu0 }
 0xd6a   :  { %v2175_v38 = vmul.f32 0.35355338, %v8415_v35  ;;  %v2154_v13 = vpop.f32.mrb[69].mxu0 }
 0xd6b   :  { %v8416_v60 = vpop.f32.mrb[70].mxu0  ;;  %v2173_v33 = vmul.f32 0.35355338, %v2154_v13 }
 0xd6c   :  { %v2157_v36 = vpop.f32.mrb[71].mxu0  ;;  %v2195_v4 = vsel %vm371_vm1, %v2175_v38, -inf  ;;  %v2176_v9 = vmul.f32 0.35355338, %v8416_v60 }
 0xd6d   :  { %v10384_v3 = vmul.f32 0.35355338, %v2157_v36  ;;  %2187 = vmax.xlane.f32.xlu0 %v2186_v50  ;;  %2196 = vmax.xlane.f32.xlu1 %v2195_v4  ;;  %v2189_v54 = vsel %vm371_vm1, %v2173_v33, -inf }
 0xd6e   :  { %v2198_v20 = vsel %vm371_vm1, %v2176_v9, -inf }
 0xd6f   :  { %v2192_v62 = vsel %vm371_vm1, %v10384_v3, -inf }
 0xd71   :  { %2190 = vmax.xlane.f32.xlu1 %v2189_v54  ;;  %2193 = vmax.xlane.f32.xlu0 %v2192_v62 }
 0xd75   :  { %2199 = vmax.xlane.f32.xlu0 %v2198_v20 }
 0xd82   :  { %2273 = vrot.lane.b32.xlu1 %v9945_v30, %s9708_s5 }
 0xd86   :  { %2277 = vrot.lane.b32.xlu1 %v9963_v51, %s9708_s5 }
 0xd8a   :  { %2279 = vrot.lane.b32.xlu1 %v9960_v48, %s9708_s5 }
 0xd8b   :  { %2275 = vrot.lane.b32.xlu0 %v9943_v28, %s9708_s5 }
 0xd8e   :  { %2370 = vrot.lane.b32.xlu1 %v9951_v32, %s9709_s6 }
 0xdf2   :  { %v2185_v4 = vpop.xlane.xlu0 %2184 }
 0xdf3   :  { %v2203_v36 = vsub.f32 %v2171_v63, %v2185_v4 }
 0xdf5   :  { %v2213_v60 = vmul.f32 1.442695, %v2203_v36  ;;  %v2182_v58 = vpop.xlane.xlu1 %2181 }
 0xdf6   :  { %v2179_v35 = vpop.xlane.xlu0 %2178  ;;  %v2202_v50 = vsub.f32 %v2170_v37, %v2182_v58 }
 0xdf7   :  { %9402 = vpow2.f32 %v2213_v60  ;;  %v2201_v13 = vsub.f32 %v2169_v39, %v2179_v35 }
 0xdf8   :  { %v2211_v52 = vmul.f32 1.442695, %v2202_v50 }
 0xdf9   :  { %v2209_v62 = vmul.f32 1.442695, %v2201_v13 }
 0xdfa   :  { %v2188_v54 = vpop.xlane.xlu0 %2187  ;;  %v2197_v20 = vpop.xlane.xlu1 %2196 }
 0xdfb   :  { %9404 = vpow2.f32 %v2209_v62  ;;  %v2204_v56 = vsub.f32 %v2172_v15, %v2188_v54  ;;  %v2207_v46 = vsub.f32 %v2175_v38, %v2197_v20 }
 0xdfd   :  { %v2215_v42 = vmul.f32 1.442695, %v2204_v56  ;;  %v2221_v63 = vmul.f32 1.442695, %v2207_v46 }
 0xdfe   :  { %v2191_v44 = vpop.xlane.xlu1 %2190  ;;  %v2194_v45 = vpop.xlane.xlu0 %2193 }
 0xdff   :  { %9406 = vpow2.f32 %v2215_v42  ;;  %v2205_v4 = vsub.f32 %v2173_v33, %v2191_v44 }
 0xe00   :  { %9408 = vpow2.f32 %v2211_v52 }
 0xe01   :  { %v10400_v47 = vpop.eup %9402  ;;  %9410 = vpow2.f32 %v2221_v63  ;;  %v2217_v56 = vmul.f32 1.442695, %v2205_v4 }
 0xe02   :  { %v2274_v36 = vpop.permute.xlu1 %2273  ;;  %v2200_v60 = vpop.xlane.xlu0 %2199  ;;  %v2231_v39 = vsel %vm371_vm1, %v10400_v47, 0.0 }
 0xe03   :  { %2232 = vadd.xlane.f32.xlu1 %v2231_v39  ;;  %8417 = vmatprep.subr.bf16.mxu1 %v2274_v36  ;;  %v2208_v15 = vsub.f32 %v2176_v9, %v2200_v60  ;;  %9412 = vpow2.f32 %v2217_v56 }
 0xe04   :  { %8418 = vmatpush3.bf16.msra.mxu1 %v2274_v36  ;;  %v2206_v36 = vsub.f32 %v10384_v3, %v2194_v45 }
 0xe05   :  { %v10404_v37 = vpop.eup %9404  ;;  %v2223_v46 = vmul.f32 1.442695, %v2208_v15 }
 0xe06   :  { %v2278_v38 = vpop.permute.xlu1 %2277  ;;  %v2276_v42 = vpop.permute.xlu0 %2275  ;;  %v2225_v52 = vsel %vm371_vm1, %v10404_v37, 0.0  ;;  %v2219_v60 = vmul.f32 1.442695, %v2206_v36 }
 0xe07   :  { %2226 = vadd.xlane.f32.xlu1 %v2225_v52  ;;  %8419 = vmatprep.subr.bf16.mxu1 %v2276_v42  ;;  %9414 = vpow2.f32 %v2223_v46 }
 0xe08   :  { %8420 = vmatpush3.bf16.msra.mxu1 %v2276_v42  ;;  %9416 = vpow2.f32 %v2219_v60 }
 0xe09   :  { %v9407_v44 = vpop.eup %9406  ;;  %8421 = vmatprep.subr.bf16.mxu1 %v2278_v38 }
 0xe0a   :  { %v2280_v33 = vpop.permute.xlu1 %2279  ;;  %v2234_v58 = vsel %vm371_vm1, %v9407_v44, 0.0  ;;  %v9409_v35 = vpop.eup %9408 }
 0xe0b   :  { %2235 = vadd.xlane.f32.xlu0 %v2234_v58  ;;  %v2228_v9 = vsel %vm371_vm1, %v9409_v35, 0.0  ;;  %v10410_v13 = vpop.eup %9410 }
 0xe0c   :  { %8422 = vmatpush3.bf16.msra.mxu1 %v2278_v38  ;;  %v2243_v62 = vsel %vm371_vm1, %v10410_v13, 0.0 }
 0xe0d   :  { %8423 = vmatprep.subr.bf16.mxu1 %v2280_v33  ;;  %v10415_v54 = vpop.eup %9412 }
 0xe0e   :  { %v2371_v50 = vpop.permute.xlu1 %2370  ;;  %v2237_v20 = vsel %vm371_vm1, %v10415_v54, 0.0 }
 0xe0f   :  { %2229 = vadd.xlane.f32.xlu0 %v2228_v9 }
 0xe10   :  { %8424 = vmatpush3.bf16.msra.mxu1 %v2280_v33 }
 0xe11   :  { %9033 = vmatprep.subr.msk.bf16.mxu1 %vm765_vm3, %v2371_v50  ;;  %v10419_v63 = vpop.eup %9414 }
 0xe12   :  { %v2246_v4 = vsel %vm371_vm1, %v10419_v63, 0.0  ;;  %v9417_v39 = vpop.eup %9416 }
 0xe13   :  { %2244 = vadd.xlane.f32.xlu0 %v2243_v62  ;;  %v2240_v56 = vsel %vm371_vm1, %v9417_v39, 0.0 }
 0xe17   :  { %2238 = vadd.xlane.f32.xlu0 %v2237_v20 }
 0xe18   :  { %2374 = vrot.lane.b32.xlu1 %v9967_v55, %s9709_s6 }
 0xe1b   :  { %2247 = vadd.xlane.f32.xlu0 %v2246_v4 }
 0xe31   :  { %2372 = vrot.lane.b32.xlu0 %v9949_v31, %s9709_s6 }
 0xe35   :  { %2362 = vrot.lane.b32.xlu0 %v9951_v32, %s9710_s7 }
 0xe39   :  { %2366 = vrot.lane.b32.xlu0 %v9967_v55, %s9710_s7 }
 0xe3c   :  { %2241 = vadd.xlane.f32.xlu1 %v2240_v56 }
 0xe4d   :  { %2376 = vrot.lane.b32.xlu1 %v9965_v53, %s9709_s6 }
 0xe51   :  { %2364 = vrot.lane.b32.xlu1 %v9949_v31, %s9710_s7 }
 0xe55   :  { %2368 = vrot.lane.b32.xlu1 %v9965_v53, %s9710_s7 }
 0xe90   :  { %v2233_v45 = vpop.xlane.xlu1 %2232 }
 0xe94   :  { %v2227_v3 = vpop.xlane.xlu1 %2226 }
 0xe98   :  { %v2236_v15 = vpop.xlane.xlu0 %2235 }
 0xe99   :  { %9418 = vrcp.f32 %v2236_v15  ;;  %v2375_v15 = vpop.permute.xlu1 %2374 }
 0xe9a   :  { %9420 = vrcp.f32 %v2227_v3  ;;  %v2391_v3 = vsel %vm765_vm3, %v2371_v50, 0 }
 0xe9b   :  { %9422 = vrcp.f32 %v2233_v45 }
 0xe9c   :  { %v2230_v38 = vpop.xlane.xlu0 %2229 }
 0xe9d   :  { %9424 = vrcp.f32 %v2230_v38 }
 0xea0   :  { %v2245_v42 = vpop.xlane.xlu0 %2244 }
 0xea3   :  { %v9419_v52 = vpop.eup %9418 }
 0xea4   :  { %v2239_v46 = vpop.xlane.xlu0 %2238  ;;  %v9421_v33 = vpop.eup %9420  ;;  %v2260_v62 = vmul.f32 %v9419_v52, %v9407_v44 }
 0xea5   :  { %v9423_v58 = vpop.eup %9422  ;;  %v2257_v4 = vmul.f32 %v9421_v33, %v10404_v37 }
 0xea6   :  { %v2259_v60 = vmul.f32 %v9423_v58, %v10400_v47  ;;  %v2397_v47 = vsel %vm765_vm3, %v2375_v15, 0 }
 0xea7   :  { %v9425_v9 = vpop.eup %9424 }
 0xea8   :  { %v2248_v20 = vpop.xlane.xlu0 %2247  ;;  %v2258_v36 = vmul.f32 %v9425_v9, %v9409_v35  ;;  %v2266_v19 = vpack.c.bf16 %v2260_v62, %v2259_v60 }
 0xea9   :  { %9426 = vrcp.f32 %v2248_v20 }
 0xeaa   :  { %v2265_v56 = vpack.c.bf16 %v2258_v36, %v2257_v4  ;;  %9428 = vrcp.f32 %v2239_v46 }
 0xeab   :  { %9430 = vrcp.f32 %v2245_v42 }
 0xeac   :  { %8425 = vmatprep.mubr.msk.bf16.mxu1 %vm371_vm1, %v2265_v56  ;;  %v2373_v45 = vpop.permute.xlu0 %2372 }
 0xead   :  { %8426 = vmatmul.mubr.msk.bf16.vlgmr.msra.gmra.mrb[56].mxu1 %vm371_vm1, %v2266_v19  ;;  %v2394_v44 = vsel %vm765_vm3, %v2373_v45, 0 }
 0xeae   :  { %8434 = vmatpush3.bf16.xpose.msra.mxu1 %v2391_v3 }
 0xeaf   :  { %9034 = vmatprep.subr.msk.bf16.mxu1 %vm765_vm3, %v2373_v45 }
 0xeb0   :  { %v2363_v4 = vpop.permute.xlu0 %2362 }
 0xeb3   :  { %v9427_v50 = vpop.eup %9426 }
 0xeb4   :  { %v9429_v38 = vpop.eup %9428  ;;  %v2264_v58 = vmul.f32 %v9427_v50, %v10419_v63  ;;  %v2367_v60 = vpop.permute.xlu0 %2366 }
 0xeb5   :  { %v9431_v52 = vpop.eup %9430  ;;  %v2261_v9 = vmul.f32 %v9429_v38, %v10415_v54 }
 0xeb6   :  { %8436 = vmatpush3.bf16.xpose.msra.mxu1 %v2394_v44  ;;  %v2263_v46 = vmul.f32 %v9431_v52, %v10410_v13 }
 0xeb7   :  { %9035 = vmatprep.subr.msk.bf16.mxu1 %vm765_vm3, %v2375_v15 }
 0xeb8   :  { %v2268_v20 = vpack.c.bf16 %v2264_v58, %v2263_v46 }
 0xebe   :  { %8438 = vmatpush3.bf16.xpose.msra.mxu1 %v2397_v47 }
 0xec9   :  { %v2242_v37 = vpop.xlane.xlu1 %2241 }
 0xeca   :  { %9432 = vrcp.f32 %v2242_v37 }
 0xecd   :  { %v2377_v19 = vpop.permute.xlu1 %2376 }
 0xece   :  { %9036 = vmatprep.subr.msk.bf16.mxu1 %vm765_vm3, %v2377_v19  ;;  %v2400_v35 = vsel %vm765_vm3, %v2377_v19, 0 }
 0xecf   :  { %8440 = vmatpush3.bf16.xpose.msra.mxu1 %v2400_v35 }
 0xed1   :  { %v2365_v36 = vpop.permute.xlu1 %2364 }
 0xed4   :  { %v9433_v33 = vpop.eup %9432 }
 0xed5   :  { %v2262_v62 = vmul.f32 %v9433_v33, %v9417_v39  ;;  %v2369_v63 = vpop.permute.xlu1 %2368 }
 0xed7   :  { %v2267_v42 = vpack.c.bf16 %v2262_v62, %v2261_v9 }
 0xed9   :  { %8429 = vmatprep.mubr.msk.bf16.mxu1 %vm371_vm1, %v2267_v42 }
 0xeda   :  { %8430 = vmatmul.mubr.msk.bf16.gmra.mrb[60].mxu1 %vm371_vm1, %v2268_v20 }
 0xedb   :  { %8441 = vmatprep.mubr.msk.bf16.mxu1 %vm765_vm3, %v2363_v4 }
 0xee2   :  { %8442 = vmatmul.mubr.msk.bf16.vlgmr.msra.gmra.mrb[64].mxu1 %vm765_vm3, %v2365_v36 }
 0xee3   :  { %8445 = vmatprep.mubr.msk.bf16.mxu1 %vm765_vm3, %v2367_v60 }
 0xeea   :  { %8446 = vmatmul.mubr.msk.bf16.gmra.mrb[68].mxu1 %vm765_vm3, %v2369_v63 }
 0xf80   :  { %v10459_v54 = vpop.f32.mrb[56].mxu1 }
 0xf81   :  { %12550 = vst [vmem:[#allocation26_spill] sm:$0xff] %v10459_v54  ;;  %v10461_v13 = vpop.f32.mrb[57].mxu1 }
 0xf82   :  { %12551 = vst [vmem:[#allocation27_spill] sm:$0xff] %v10461_v13  ;;  %v10463_v39 = vpop.f32.mrb[58].mxu1 }
 0xf83   :  { %12552 = vst [vmem:[#allocation28_spill] sm:$0xff] %v10463_v39  ;;  %v10465_v56 = vpop.f32.mrb[59].mxu1 }
 0xf84   :  { %12553 = vst [vmem:[#allocation29_spill] sm:$0xff] %v10465_v56 }
 0xfad   :  { %v10467_v45 = vpop.f32.mrb[60].mxu1 }
 0xfae   :  { %12554 = vst [vmem:[#allocation30_spill] sm:$0xff] %v10467_v45  ;;  %v10469_v3 = vpop.f32.mrb[61].mxu1 }
 0xfaf   :  { %12555 = vst [vmem:[#allocation31_spill] sm:$0xff] %v10469_v3  ;;  %v10471_v44 = vpop.f32.mrb[62].mxu1 }
 0xfb0   :  { %12556 = vst [vmem:[#allocation32_spill] sm:$0xff] %v10471_v44  ;;  %v10473_v15 = vpop.f32.mrb[63].mxu1 }
 0xfb1   :  { %12557 = vst [vmem:[#allocation33_spill] sm:$0xff] %v10473_v15 }
 0xfb5   :  { %v8443_v47 = vpop.f32.mrb[64].mxu1 }
 0xfb6   :  { %v2469_v37 = vmul.f32 0.35355338, %v8443_v47  ;;  %v2436_v19 = vpop.f32.mrb[65].mxu1 }
 0xfb7   :  { %v8444_v35 = vpop.f32.mrb[66].mxu1  ;;  %v2467_v50 = vmul.f32 0.35355338, %v2436_v19 }
 0xfb8   :  { %v2439_v38 = vpop.f32.mrb[67].mxu1  ;;  %v2481_v52 = vsel %vm371_vm1, %v2469_v37, -inf  ;;  %v2470_v9 = vmul.f32 0.35355338, %v8444_v35 }
 0xfb9   :  { %v2468_v33 = vmul.f32 0.35355338, %v2439_v38  ;;  %2482 = vmax.xlane.f32.xlu0 %v2481_v52  ;;  %v2475_v62 = vsel %vm371_vm1, %v2467_v50, -inf }
 0xfba   :  { %v2484_v63 = vsel %vm371_vm1, %v2470_v9, -inf }
 0xfbb   :  { %v2478_v58 = vsel %vm371_vm1, %v2468_v33, -inf }
 0xfbc   :  { %2479 = vmax.xlane.f32.xlu1 %v2478_v58 }
 0xfbd   :  { %2476 = vmax.xlane.f32.xlu0 %v2475_v62  ;;  %v8447_v46 = vpop.f32.mrb[68].mxu1 }
 0xfbe   :  { %v2473_v42 = vmul.f32 0.35355338, %v8447_v46  ;;  %v2452_v20 = vpop.f32.mrb[69].mxu1 }
 0xfbf   :  { %v8448_v4 = vpop.f32.mrb[70].mxu1  ;;  %v2471_v36 = vmul.f32 0.35355338, %v2452_v20 }
 0xfc0   :  { %v2455_v60 = vpop.f32.mrb[71].mxu1  ;;  %v2493_v47 = vsel %vm371_vm1, %v2473_v42, -inf  ;;  %v2474_v38 = vmul.f32 0.35355338, %v8448_v4 }
 0xfc1   :  { %v10480_v19 = vmul.f32 0.35355338, %v2455_v60  ;;  %2485 = vmax.xlane.f32.xlu0 %v2484_v63  ;;  %2494 = vmax.xlane.f32.xlu1 %v2493_v47  ;;  %v2487_v52 = vsel %vm371_vm1, %v2471_v36, -inf }
 0xfc2   :  { %v2496_v58 = vsel %vm371_vm1, %v2474_v38, -inf }
 0xfc3   :  { %v2490_v35 = vsel %vm371_vm1, %v10480_v19, -inf }
 0xfc5   :  { %2488 = vmax.xlane.f32.xlu1 %v2487_v52  ;;  %2491 = vmax.xlane.f32.xlu0 %v2490_v35 }
 0xfc9   :  { %2497 = vmax.xlane.f32.xlu0 %v2496_v58 }
 0xfd6   :  { %2567 = vrot.lane.b32.xlu1 %v9945_v30, %s9711_s8 }
 0xfda   :  { %2571 = vrot.lane.b32.xlu1 %v9963_v51, %s9711_s8 }
 0xfde   :  { %2573 = vrot.lane.b32.xlu1 %v9960_v48, %s9711_s8 }
 0xfdf   :  { %2569 = vrot.lane.b32.xlu0 %v9943_v28, %s9711_s8 }
 0xfe2   :  { %2664 = vrot.lane.b32.xlu1 %v9951_v32, %s9712_s9 }
0x1046   :  { %v2483_v62 = vpop.xlane.xlu0 %2482 }
0x1047   :  { %v2501_v46 = vsub.f32 %v2469_v37, %v2483_v62 }
0x1049   :  { %v2511_v20 = vmul.f32 1.442695, %v2501_v46  ;;  %v2480_v4 = vpop.xlane.xlu1 %2479 }
0x104a   :  { %v2477_v60 = vpop.xlane.xlu0 %2476  ;;  %v2500_v35 = vsub.f32 %v2468_v33, %v2480_v4 }
0x104b   :  { %9434 = vpow2.f32 %v2511_v20  ;;  %v2499_v63 = vsub.f32 %v2467_v50, %v2477_v60 }
0x104c   :  { %v2509_v45 = vmul.f32 1.442695, %v2500_v35 }
0x104d   :  { %v2507_v47 = vmul.f32 1.442695, %v2499_v63 }
0x104e   :  { %v2495_v52 = vpop.xlane.xlu1 %2494  ;;  %v2486_v58 = vpop.xlane.xlu0 %2485 }
0x104f   :  { %9436 = vpow2.f32 %v2507_v47  ;;  %v2502_v3 = vsub.f32 %v2470_v9, %v2486_v58  ;;  %v2505_v44 = vsub.f32 %v2473_v42, %v2495_v52 }
0x1051   :  { %v2513_v15 = vmul.f32 1.442695, %v2502_v3  ;;  %v2519_v37 = vmul.f32 1.442695, %v2505_v44 }
0x1052   :  { %v2489_v13 = vpop.xlane.xlu1 %2488  ;;  %v2492_v56 = vpop.xlane.xlu0 %2491 }
0x1053   :  { %9438 = vpow2.f32 %v2513_v15  ;;  %v2503_v62 = vsub.f32 %v2471_v36, %v2489_v13 }
0x1054   :  { %9440 = vpow2.f32 %v2509_v45 }
0x1055   :  { %v10496_v54 = vpop.eup %9434  ;;  %9442 = vpow2.f32 %v2519_v37  ;;  %v2515_v3 = vmul.f32 1.442695, %v2503_v62 }
0x1056   :  { %v2568_v46 = vpop.permute.xlu1 %2567  ;;  %v2498_v20 = vpop.xlane.xlu0 %2497  ;;  %v2529_v50 = vsel %vm371_vm1, %v10496_v54, 0.0 }
0x1057   :  { %8449 = vmatprep.subr.bf16.mxu0 %v2568_v46  ;;  %2530 = vadd.xlane.f32.xlu1 %v2529_v50  ;;  %v2506_v9 = vsub.f32 %v2474_v38, %v2498_v20  ;;  %9444 = vpow2.f32 %v2515_v3 }
0x1058   :  { %8450 = vmatpush3.bf16.msra.mxu0 %v2568_v46  ;;  %v2504_v46 = vsub.f32 %v10480_v19, %v2492_v56 }
0x1059   :  { %v10500_v33 = vpop.eup %9436  ;;  %v2521_v44 = vmul.f32 1.442695, %v2506_v9 }
0x105a   :  { %v2572_v42 = vpop.permute.xlu1 %2571  ;;  %v2570_v15 = vpop.permute.xlu0 %2569  ;;  %v2523_v45 = vsel %vm371_vm1, %v10500_v33, 0.0  ;;  %v2517_v20 = vmul.f32 1.442695, %v2504_v46 }
0x105b   :  { %2524 = vadd.xlane.f32.xlu1 %v2523_v45  ;;  %8451 = vmatprep.subr.bf16.mxu0 %v2570_v15  ;;  %9446 = vpow2.f32 %v2521_v44 }
0x105c   :  { %8452 = vmatpush3.bf16.msra.mxu0 %v2570_v15  ;;  %9448 = vpow2.f32 %v2517_v20 }
0x105d   :  { %8453 = vmatprep.subr.bf16.mxu0 %v2572_v42  ;;  %v9439_v13 = vpop.eup %9438 }
0x105e   :  { %v2574_v36 = vpop.permute.xlu1 %2573  ;;  %v2532_v4 = vsel %vm371_vm1, %v9439_v13, 0.0  ;;  %v9441_v60 = vpop.eup %9440 }
0x105f   :  { %2533 = vadd.xlane.f32.xlu0 %v2532_v4  ;;  %v2526_v38 = vsel %vm371_vm1, %v9441_v60, 0.0  ;;  %v10506_v63 = vpop.eup %9442 }
0x1060   :  { %8454 = vmatpush3.bf16.msra.mxu0 %v2572_v42  ;;  %v2541_v35 = vsel %vm371_vm1, %v10506_v63, 0.0 }
0x1061   :  { %8455 = vmatprep.subr.bf16.mxu0 %v2574_v36  ;;  %v10511_v52 = vpop.eup %9444 }
0x1062   :  { %v2665_v47 = vpop.permute.xlu1 %2664  ;;  %v2535_v58 = vsel %vm371_vm1, %v10511_v52, 0.0 }
0x1063   :  { %2527 = vadd.xlane.f32.xlu0 %v2526_v38 }
0x1064   :  { %8456 = vmatpush3.bf16.msra.mxu0 %v2574_v36 }
0x1065   :  { %9037 = vmatprep.subr.msk.bf16.mxu0 %vm765_vm3, %v2665_v47  ;;  %v10515_v37 = vpop.eup %9446 }
0x1066   :  { %v2544_v62 = vsel %vm371_vm1, %v10515_v37, 0.0  ;;  %v9449_v50 = vpop.eup %9448 }
0x1067   :  { %2542 = vadd.xlane.f32.xlu0 %v2541_v35  ;;  %v2538_v3 = vsel %vm371_vm1, %v9449_v50, 0.0 }
0x106b   :  { %2536 = vadd.xlane.f32.xlu0 %v2535_v58 }
0x106c   :  { %2668 = vrot.lane.b32.xlu1 %v9967_v55, %s9712_s9 }
0x106f   :  { %2545 = vadd.xlane.f32.xlu0 %v2544_v62 }
0x1085   :  { %2666 = vrot.lane.b32.xlu0 %v9949_v31, %s9712_s9 }
0x1089   :  { %2656 = vrot.lane.b32.xlu0 %v9951_v32, %s9713_s10 }
0x108d   :  { %2660 = vrot.lane.b32.xlu0 %v9967_v55, %s9713_s10 }
0x1090   :  { %2539 = vadd.xlane.f32.xlu1 %v2538_v3 }
0x10a1   :  { %2670 = vrot.lane.b32.xlu1 %v9965_v53, %s9712_s9 }
0x10a5   :  { %2658 = vrot.lane.b32.xlu1 %v9949_v31, %s9713_s10 }
0x10a9   :  { %2662 = vrot.lane.b32.xlu1 %v9965_v53, %s9713_s10 }
0x10e4   :  { %v2531_v56 = vpop.xlane.xlu1 %2530 }
0x10e8   :  { %v2525_v19 = vpop.xlane.xlu1 %2524 }
0x10ec   :  { %v2534_v9 = vpop.xlane.xlu0 %2533 }
0x10ed   :  { %9450 = vrcp.f32 %v2534_v9  ;;  %v2669_v9 = vpop.permute.xlu1 %2668 }
0x10ee   :  { %9452 = vrcp.f32 %v2525_v19  ;;  %v2685_v19 = vsel %vm765_vm3, %v2665_v47, 0 }
0x10ef   :  { %9454 = vrcp.f32 %v2531_v56 }
0x10f0   :  { %v2528_v42 = vpop.xlane.xlu0 %2527 }
0x10f1   :  { %9456 = vrcp.f32 %v2528_v42 }
0x10f4   :  { %v2543_v15 = vpop.xlane.xlu0 %2542 }
0x10f7   :  { %v9451_v45 = vpop.eup %9450 }
0x10f8   :  { %v2537_v44 = vpop.xlane.xlu0 %2536  ;;  %v9453_v36 = vpop.eup %9452  ;;  %v2558_v35 = vmul.f32 %v9451_v45, %v9439_v13 }
0x10f9   :  { %v9455_v4 = vpop.eup %9454  ;;  %v2555_v62 = vmul.f32 %v9453_v36, %v10500_v33 }
0x10fa   :  { %v2557_v20 = vmul.f32 %v9455_v4, %v10496_v54  ;;  %v2691_v54 = vsel %vm765_vm3, %v2669_v9, 0 }
0x10fb   :  { %v9457_v38 = vpop.eup %9456 }
0x10fc   :  { %v2546_v58 = vpop.xlane.xlu0 %2545  ;;  %v2556_v46 = vmul.f32 %v9457_v38, %v9441_v60  ;;  %v2564_v39 = vpack.c.bf16 %v2558_v35, %v2557_v20 }
0x10fd   :  { %9458 = vrcp.f32 %v2546_v58 }
0x10fe   :  { %v2563_v3 = vpack.c.bf16 %v2556_v46, %v2555_v62  ;;  %9460 = vrcp.f32 %v2537_v44 }
0x10ff   :  { %9462 = vrcp.f32 %v2543_v15 }
0x1100   :  { %8457 = vmatprep.mubr.msk.bf16.mxu0 %vm371_vm1, %v2563_v3  ;;  %v2667_v56 = vpop.permute.xlu0 %2666 }
0x1101   :  { %8458 = vmatmul.mubr.msk.bf16.vlgmr.msra.gmra.mrb[72].mxu0 %vm371_vm1, %v2564_v39  ;;  %v2688_v13 = vsel %vm765_vm3, %v2667_v56, 0 }
0x1102   :  { %8466 = vmatpush3.bf16.xpose.msra.mxu0 %v2685_v19 }
0x1103   :  { %9038 = vmatprep.subr.msk.bf16.mxu0 %vm765_vm3, %v2667_v56 }
0x1104   :  { %v2657_v62 = vpop.permute.xlu0 %2656 }
0x1107   :  { %v9459_v47 = vpop.eup %9458 }
0x1108   :  { %v9461_v42 = vpop.eup %9460  ;;  %v2562_v4 = vmul.f32 %v9459_v47, %v10515_v37  ;;  %v2661_v20 = vpop.permute.xlu0 %2660 }
0x1109   :  { %v9463_v45 = vpop.eup %9462  ;;  %v2559_v38 = vmul.f32 %v9461_v42, %v10511_v52 }
0x110a   :  { %8468 = vmatpush3.bf16.xpose.msra.mxu0 %v2688_v13  ;;  %v2561_v44 = vmul.f32 %v9463_v45, %v10506_v63 }
0x110b   :  { %9039 = vmatprep.subr.msk.bf16.mxu0 %vm765_vm3, %v2669_v9 }
0x110c   :  { %v2566_v58 = vpack.c.bf16 %v2562_v4, %v2561_v44 }
0x1112   :  { %8470 = vmatpush3.bf16.xpose.msra.mxu0 %v2691_v54 }
0x111d   :  { %v2540_v33 = vpop.xlane.xlu1 %2539 }
0x111e   :  { %9464 = vrcp.f32 %v2540_v33 }
0x1121   :  { %v2671_v39 = vpop.permute.xlu1 %2670 }
0x1122   :  { %9040 = vmatprep.subr.msk.bf16.mxu0 %vm765_vm3, %v2671_v39  ;;  %v2694_v60 = vsel %vm765_vm3, %v2671_v39, 0 }
0x1123   :  { %8472 = vmatpush3.bf16.xpose.msra.mxu0 %v2694_v60 }
0x1125   :  { %v2659_v46 = vpop.permute.xlu1 %2658 }
0x1128   :  { %v9465_v36 = vpop.eup %9464 }
0x1129   :  { %v2560_v35 = vmul.f32 %v9465_v36, %v9449_v50  ;;  %v2663_v37 = vpop.permute.xlu1 %2662 }
0x112b   :  { %v2565_v15 = vpack.c.bf16 %v2560_v35, %v2559_v38 }
0x112d   :  { %8461 = vmatprep.mubr.msk.bf16.mxu0 %vm371_vm1, %v2565_v15 }
0x112e   :  { %8462 = vmatmul.mubr.msk.bf16.gmra.mrb[76].mxu0 %vm371_vm1, %v2566_v58 }
0x112f   :  { %8473 = vmatprep.mubr.msk.bf16.mxu0 %vm765_vm3, %v2657_v62 }
0x1136   :  { %8474 = vmatmul.mubr.msk.bf16.vlgmr.msra.gmra.mrb[80].mxu0 %vm765_vm3, %v2659_v46 }
0x1137   :  { %8477 = vmatprep.mubr.msk.bf16.mxu0 %vm765_vm3, %v2661_v20 }
0x113e   :  { %8478 = vmatmul.mubr.msk.bf16.gmra.mrb[84].mxu0 %vm765_vm3, %v2663_v37 }
0x11d4   :  { %v10555_v52 = vpop.f32.mrb[72].mxu0 }
0x11d5   :  { %v10557_v63 = vpop.f32.mrb[73].mxu0 }
0x11d6   :  { %v10559_v50 = vpop.f32.mrb[74].mxu0 }
0x11d7   :  { %v10563_v56 = vpop.f32.mrb[75].mxu0 }
0x1201   :  { %v10567_v13 = vpop.f32.mrb[76].mxu0 }
0x1202   :  { %v10569_v9 = vpop.f32.mrb[77].mxu0 }
0x1203   :  { %12558 = vst [vmem:[#allocation34_spill] sm:$0xff] %v10569_v9  ;;  %v10571_v54 = vpop.f32.mrb[78].mxu0 }
0x1204   :  { %v10575_v39 = vpop.f32.mrb[79].mxu0 }
0x1209   :  { %v8475_v47 = vpop.f32.mrb[80].mxu0 }
0x120a   :  { %v2763_v42 = vmul.f32 0.35355338, %v8475_v47  ;;  %v2730_v45 = vpop.f32.mrb[81].mxu0 }
0x120b   :  { %v8476_v36 = vpop.f32.mrb[82].mxu0  ;;  %v2761_v4 = vmul.f32 0.35355338, %v2730_v45 }
0x120c   :  { %v2733_v38 = vpop.f32.mrb[83].mxu0  ;;  %v2775_v35 = vsel %vm371_vm1, %v2763_v42, -inf  ;;  %v2764_v58 = vmul.f32 0.35355338, %v8476_v36 }
0x120d   :  { %v2762_v44 = vmul.f32 0.35355338, %v2733_v38  ;;  %2776 = vmax.xlane.f32.xlu0 %v2775_v35  ;;  %v2769_v62 = vsel %vm371_vm1, %v2761_v4, -inf }
0x120e   :  { %v2778_v45 = vsel %vm371_vm1, %v2764_v58, -inf }
0x120f   :  { %v2772_v15 = vsel %vm371_vm1, %v2762_v44, -inf }
0x1210   :  { %2773 = vmax.xlane.f32.xlu1 %v2772_v15 }
0x1211   :  { %2770 = vmax.xlane.f32.xlu0 %v2769_v62  ;;  %v8479_v46 = vpop.f32.mrb[84].mxu0 }
0x1212   :  { %v2767_v20 = vmul.f32 0.35355338, %v8479_v46  ;;  %v2746_v37 = vpop.f32.mrb[85].mxu0 }
0x1213   :  { %v8480_v60 = vpop.f32.mrb[86].mxu0  ;;  %v2765_v47 = vmul.f32 0.35355338, %v2746_v37 }
0x1214   :  { %v2749_v33 = vpop.f32.mrb[87].mxu0  ;;  %v2787_v19 = vsel %vm371_vm1, %v2767_v20, -inf  ;;  %v2768_v38 = vmul.f32 0.35355338, %v8480_v60 }
0x1215   :  { %v10584_v3 = vmul.f32 0.35355338, %v2749_v33  ;;  %2779 = vmax.xlane.f32.xlu0 %v2778_v45  ;;  %2788 = vmax.xlane.f32.xlu1 %v2787_v19  ;;  %v2781_v35 = vsel %vm371_vm1, %v2765_v47, -inf }
0x1216   :  { %v2790_v15 = vsel %vm371_vm1, %v2768_v38, -inf }
0x1217   :  { %v2784_v36 = vsel %vm371_vm1, %v10584_v3, -inf }
0x1219   :  { %2782 = vmax.xlane.f32.xlu1 %v2781_v35  ;;  %2785 = vmax.xlane.f32.xlu0 %v2784_v36 }
0x121d   :  { %2791 = vmax.xlane.f32.xlu0 %v2790_v15 }
0x122a   :  { %2861 = vrot.lane.b32.xlu1 %v9945_v30, %s9714_s11 }
0x122e   :  { %2865 = vrot.lane.b32.xlu1 %v9963_v51, %s9714_s11 }
0x1232   :  { %2867 = vrot.lane.b32.xlu1 %v9960_v48, %s9714_s11 }
0x1233   :  { %2863 = vrot.lane.b32.xlu0 %v9943_v28, %s9714_s11  ;;  %s7586_s11 = sld [smem:[%s12502_s0 + %s9725_s2]]  }
0x1234   :  { %s7590_s2 = sld [smem:[%s12502_s0 + %s9729_s27]]  }
0x1236   :  { %2958 = vrot.lane.b32.xlu1 %v9951_v32, %s9715_s12 }
0x129a   :  { %v2777_v19 = vpop.xlane.xlu0 %2776 }
0x129b   :  { %v2795_v33 = vsub.f32 %v2763_v42, %v2777_v19 }
0x129d   :  { %v2805_v60 = vmul.f32 1.442695, %v2795_v33  ;;  %v2774_v62 = vpop.xlane.xlu1 %2773 }
0x129e   :  { %v2771_v46 = vpop.xlane.xlu0 %2770  ;;  %v2794_v36 = vsub.f32 %v2762_v44, %v2774_v62 }
0x129f   :  { %9466 = vpow2.f32 %v2805_v60  ;;  %v2793_v37 = vsub.f32 %v2761_v4, %v2771_v46 }
0x12a0   :  { %v2803_v59 = vmul.f32 1.442695, %v2794_v36 }
0x12a1   :  { %v2801_v45 = vmul.f32 1.442695, %v2793_v37 }
0x12a2   :  { %v2789_v35 = vpop.xlane.xlu1 %2788  ;;  %v2780_v15 = vpop.xlane.xlu0 %2779 }
0x12a3   :  { %9468 = vpow2.f32 %v2801_v45  ;;  %v2796_v41 = vsub.f32 %v2764_v58, %v2780_v15  ;;  %v2799_v14 = vsub.f32 %v2767_v20, %v2789_v35 }
0x12a5   :  { %v2807_v49 = vmul.f32 1.442695, %v2796_v41  ;;  %v2813_v42 = vmul.f32 1.442695, %v2799_v14 }
0x12a6   :  { %v2783_v21 = vpop.xlane.xlu1 %2782  ;;  %v2786_v18 = vpop.xlane.xlu0 %2785 }
0x12a7   :  { %9470 = vpow2.f32 %v2807_v49  ;;  %v2797_v19 = vsub.f32 %v2765_v47, %v2783_v21 }
0x12a8   :  { %9472 = vpow2.f32 %v2803_v59 }
0x12a9   :  { %v10600_v9 = vpop.eup %9466  ;;  %9474 = vpow2.f32 %v2813_v42  ;;  %v2809_v41 = vmul.f32 1.442695, %v2797_v19 }
0x12aa   :  { %v2862_v33 = vpop.permute.xlu1 %2861  ;;  %v2792_v60 = vpop.xlane.xlu0 %2791  ;;  %v2823_v4 = vsel %vm371_vm1, %v10600_v9, 0.0 }
0x12ab   :  { %8481 = vmatprep.subr.bf16.mxu1 %v2862_v33  ;;  %2824 = vadd.xlane.f32.xlu1 %v2823_v4  ;;  %v2800_v58 = vsub.f32 %v2768_v38, %v2792_v60  ;;  %9476 = vpow2.f32 %v2809_v41 }
0x12ac   :  { %8482 = vmatpush3.bf16.msra.mxu1 %v2862_v33  ;;  %v2798_v33 = vsub.f32 %v10584_v3, %v2786_v18 }
0x12ad   :  { %v10604_v44 = vpop.eup %9468  ;;  %v2815_v14 = vmul.f32 1.442695, %v2800_v58 }
0x12ae   :  { %v2866_v20 = vpop.permute.xlu1 %2865  ;;  %v2864_v49 = vpop.permute.xlu0 %2863  ;;  %v2817_v59 = vsel %vm371_vm1, %v10604_v44, 0.0  ;;  %v2811_v60 = vmul.f32 1.442695, %v2798_v33 }
0x12af   :  { %2818 = vadd.xlane.f32.xlu1 %v2817_v59  ;;  %8483 = vmatprep.subr.bf16.mxu1 %v2864_v49  ;;  %9478 = vpow2.f32 %v2815_v14 }
0x12b0   :  { %8484 = vmatpush3.bf16.msra.mxu1 %v2864_v49  ;;  %9480 = vpow2.f32 %v2811_v60 }
0x12b1   :  { %8485 = vmatprep.subr.bf16.mxu1 %v2866_v20  ;;  %v9471_v21 = vpop.eup %9470 }
0x12b2   :  { %v2868_v47 = vpop.permute.xlu1 %2867  ;;  %v2826_v62 = vsel %vm371_vm1, %v9471_v21, 0.0  ;;  %v9473_v46 = vpop.eup %9472 }
0x12b3   :  { %2827 = vadd.xlane.f32.xlu0 %v2826_v62  ;;  %v2820_v38 = vsel %vm371_vm1, %v9473_v46, 0.0  ;;  %v10610_v37 = vpop.eup %9474 }
0x12b4   :  { %8486 = vmatpush3.bf16.msra.mxu1 %v2866_v20  ;;  %v2835_v36 = vsel %vm371_vm1, %v10610_v37, 0.0 }
0x12b5   :  { %8487 = vmatprep.subr.bf16.mxu1 %v2868_v47  ;;  %v10615_v35 = vpop.eup %9476 }
0x12b6   :  { %v2959_v45 = vpop.permute.xlu1 %2958  ;;  %v2829_v15 = vsel %vm371_vm1, %v10615_v35, 0.0 }
0x12b7   :  { %2821 = vadd.xlane.f32.xlu0 %v2820_v38  ;;  %v2979_v60 = vsel %vm765_vm3, %v2959_v45, 0 }
0x12b8   :  { %8488 = vmatpush3.bf16.msra.mxu1 %v2868_v47 }
0x12b9   :  { %9041 = vmatprep.subr.msk.bf16.mxu1 %vm765_vm3, %v2959_v45  ;;  %v10619_v42 = vpop.eup %9478 }
0x12ba   :  { %v2838_v19 = vsel %vm371_vm1, %v10619_v42, 0.0  ;;  %v9481_v4 = vpop.eup %9480 }
0x12bb   :  { %2836 = vadd.xlane.f32.xlu0 %v2835_v36  ;;  %v2832_v41 = vsel %vm371_vm1, %v9481_v4, 0.0 }
0x12bf   :  { %2830 = vadd.xlane.f32.xlu0 %v2829_v15 }
0x12c0   :  { %2962 = vrot.lane.b32.xlu1 %v9967_v55, %s9715_s12 }
0x12c3   :  { %2839 = vadd.xlane.f32.xlu0 %v2838_v19 }
0x12d9   :  { %2960 = vrot.lane.b32.xlu0 %v9949_v31, %s9715_s12 }
0x12dd   :  { %2950 = vrot.lane.b32.xlu0 %v9951_v32, %s9716_s13 }
0x12e1   :  { %2954 = vrot.lane.b32.xlu0 %v9967_v55, %s9716_s13 }
0x12e4   :  { %2833 = vadd.xlane.f32.xlu1 %v2832_v41 }
0x12f5   :  { %2964 = vrot.lane.b32.xlu1 %v9965_v53, %s9715_s12 }
0x12f9   :  { %2952 = vrot.lane.b32.xlu1 %v9949_v31, %s9716_s13 }
0x12fd   :  { %2956 = vrot.lane.b32.xlu1 %v9965_v53, %s9716_s13 }
0x1338   :  { %v2825_v18 = vpop.xlane.xlu1 %2824 }
0x133c   :  { %v2819_v3 = vpop.xlane.xlu1 %2818 }
0x1340   :  { %v2828_v58 = vpop.xlane.xlu0 %2827  ;;  %v2963_v41 = vpop.permute.xlu1 %2962 }
0x1341   :  { %9482 = vrcp.f32 %v2828_v58 }
0x1342   :  { %9484 = vrcp.f32 %v2819_v3 }
0x1343   :  { %9486 = vrcp.f32 %v2825_v18 }
0x1344   :  { %v2822_v32 = vpop.xlane.xlu0 %2821 }
0x1345   :  { %9488 = vrcp.f32 %v2822_v32 }
0x1348   :  { %v2837_v55 = vpop.xlane.xlu0 %2836 }
0x134b   :  { %v9483_v20 = vpop.eup %9482 }
0x134c   :  { %v2831_v49 = vpop.xlane.xlu0 %2830  ;;  %v9485_v59 = vpop.eup %9484  ;;  %v2852_v62 = vmul.f32 %v9483_v20, %v9471_v21 }
0x134d   :  { %v9487_v14 = vpop.eup %9486  ;;  %v2849_v31 = vmul.f32 %v9485_v59, %v10604_v44 }
0x134e   :  { %v2851_v53 = vmul.f32 %v9487_v14, %v10600_v9  ;;  %v2985_v9 = vsel %vm765_vm3, %v2963_v41, 0 }
0x134f   :  { %v9489_v47 = vpop.eup %9488 }
0x1350   :  { %v2840_v38 = vpop.xlane.xlu0 %2839  ;;  %v2850_v36 = vmul.f32 %v9489_v47, %v9473_v46  ;;  %v2858_v19 = vpack.c.bf16 %v2852_v62, %v2851_v53 }
0x1351   :  { %9490 = vrcp.f32 %v2840_v38 }
0x1352   :  { %v2857_v15 = vpack.c.bf16 %v2850_v36, %v2849_v31  ;;  %9492 = vrcp.f32 %v2831_v49 }
0x1353   :  { %9494 = vrcp.f32 %v2837_v55 }
0x1354   :  { %8489 = vmatprep.mubr.msk.bf16.mxu1 %vm371_vm1, %v2857_v15  ;;  %v2961_v33 = vpop.permute.xlu0 %2960 }
0x1355   :  { %8490 = vmatmul.mubr.msk.bf16.vlgmr.msra.gmra.mrb[72].mxu1 %vm371_vm1, %v2858_v19  ;;  %v2982_v21 = vsel %vm765_vm3, %v2961_v33, 0 }
0x1356   :  { %8498 = vmatpush3.bf16.xpose.msra.mxu1 %v2979_v60 }
0x1357   :  { %9042 = vmatprep.subr.msk.bf16.mxu1 %vm765_vm3, %v2961_v33 }
0x1358   :  { %v2951_v62 = vpop.permute.xlu0 %2950 }
0x135b   :  { %v9491_v18 = vpop.eup %9490 }
0x135c   :  { %v9493_v3 = vpop.eup %9492  ;;  %v2856_v20 = vmul.f32 %v9491_v18, %v10619_v42  ;;  %v2955_v31 = vpop.permute.xlu0 %2954 }
0x135d   :  { %v9495_v58 = vpop.eup %9494  ;;  %v2853_v59 = vmul.f32 %v9493_v3, %v10615_v35 }
0x135e   :  { %8500 = vmatpush3.bf16.xpose.msra.mxu1 %v2982_v21  ;;  %v2855_v49 = vmul.f32 %v9495_v58, %v10610_v37 }
0x135f   :  { %9043 = vmatprep.subr.msk.bf16.mxu1 %vm765_vm3, %v2963_v41 }
0x1360   :  { %v2860_v47 = vpack.c.bf16 %v2856_v20, %v2855_v49 }
0x1366   :  { %8502 = vmatpush3.bf16.xpose.msra.mxu1 %v2985_v9 }
0x1371   :  { %v2834_v44 = vpop.xlane.xlu1 %2833 }
0x1372   :  { %9496 = vrcp.f32 %v2834_v44 }
0x1375   :  { %v2965_v46 = vpop.permute.xlu1 %2964 }
0x1376   :  { %9044 = vmatprep.subr.msk.bf16.mxu1 %vm765_vm3, %v2965_v46  ;;  %v2988_v45 = vsel %vm765_vm3, %v2965_v46, 0 }
0x1377   :  { %8504 = vmatpush3.bf16.xpose.msra.mxu1 %v2988_v45 }
0x1379   :  { %v2953_v38 = vpop.permute.xlu1 %2952 }
0x137c   :  { %v9497_v32 = vpop.eup %9496 }
0x137d   :  { %v2854_v14 = vmul.f32 %v9497_v32, %v9481_v4  ;;  %v2957_v42 = vpop.permute.xlu1 %2956 }
0x137f   :  { %v2859_v55 = vpack.c.bf16 %v2854_v14, %v2853_v59 }
0x1381   :  { %8493 = vmatprep.mubr.msk.bf16.mxu1 %vm371_vm1, %v2859_v55 }
0x1382   :  { %8494 = vmatmul.mubr.msk.bf16.gmra.mrb[76].mxu1 %vm371_vm1, %v2860_v47 }
0x1383   :  { %8505 = vmatprep.mubr.msk.bf16.mxu1 %vm765_vm3, %v2951_v62 }
0x138a   :  { %8506 = vmatmul.mubr.msk.bf16.vlgmr.msra.gmra.mrb[80].mxu1 %vm765_vm3, %v2953_v38 }
0x138b   :  { %8509 = vmatprep.mubr.msk.bf16.mxu1 %vm765_vm3, %v2955_v31 }
0x1392   :  { %8510 = vmatmul.mubr.msk.bf16.gmra.mrb[84].mxu1 %vm765_vm3, %v2957_v42 }
0x1428   :  { %v10659_v35 = vpop.f32.mrb[72].mxu1 }
0x1429   :  { %v10661_v37 = vpop.f32.mrb[73].mxu1 }
0x142a   :  { %v10663_v4 = vpop.f32.mrb[74].mxu1 }
0x142b   :  { %v10667_v53 = vpop.f32.mrb[75].mxu1 }
0x1455   :  { %v10671_v19 = vpop.f32.mrb[76].mxu1 }
0x1456   :  { %12559 = vst [vmem:[#allocation35_spill] sm:$0xff] %v10671_v19  ;;  %v10673_v33 = vpop.f32.mrb[77].mxu1 }
0x1457   :  { %12560 = vst [vmem:[#allocation36_spill] sm:$0xff] %v10673_v33  ;;  %v10675_v60 = vpop.f32.mrb[78].mxu1 }
0x1458   :  { %12561 = vst [vmem:[#allocation37_spill] sm:$0xff] %v10675_v60  ;;  %v10679_v41 = vpop.f32.mrb[79].mxu1 }
0x1459   :  { %12562 = vst [vmem:[#allocation38_spill] sm:$0xff] %v10679_v41 }
0x145d   :  { %v8507_v44 = vpop.f32.mrb[80].mxu1 }
0x145e   :  { %v3024_v46 = vpop.f32.mrb[81].mxu1  ;;  %v3057_v58 = vmul.f32 0.35355338, %v8507_v44 }
0x145f   :  { %v3055_v45 = vmul.f32 0.35355338, %v3024_v46  ;;  %v8508_v18 = vpop.f32.mrb[82].mxu1 }
0x1460   :  { %v3027_v3 = vpop.f32.mrb[83].mxu1  ;;  %v3058_v14 = vmul.f32 0.35355338, %v8508_v18  ;;  %v3069_v55 = vsel %vm371_vm1, %v3057_v58, -inf }
0x1461   :  { %v3056_v32 = vmul.f32 0.35355338, %v3027_v3  ;;  %v3063_v20 = vsel %vm371_vm1, %v3055_v45, -inf }
0x1462   :  { %3064 = vmax.xlane.f32.xlu0 %v3063_v20  ;;  %v3072_v44 = vsel %vm371_vm1, %v3058_v14, -inf }
0x1463   :  { %v3066_v59 = vsel %vm371_vm1, %v3056_v32, -inf }
0x1464   :  { %3067 = vmax.xlane.f32.xlu1 %v3066_v59 }
0x1465   :  { %v8511_v49 = vpop.f32.mrb[84].mxu1 }
0x1466   :  { %3070 = vmax.xlane.f32.xlu0 %v3069_v55  ;;  %v3040_v47 = vpop.f32.mrb[85].mxu1  ;;  %v3061_v42 = vmul.f32 0.35355338, %v8511_v49 }
0x1467   :  { %v3059_v62 = vmul.f32 0.35355338, %v3040_v47  ;;  %v8512_v38 = vpop.f32.mrb[86].mxu1 }
0x1468   :  { %v3043_v31 = vpop.f32.mrb[87].mxu1  ;;  %v3062_v20 = vmul.f32 0.35355338, %v8512_v38  ;;  %v3081_v59 = vsel %vm371_vm1, %v3061_v42, -inf }
0x1469   :  { %v3060_v46 = vmul.f32 0.35355338, %v3043_v31  ;;  %v3075_v3 = vsel %vm371_vm1, %v3059_v62, -inf }
0x146a   :  { %3073 = vmax.xlane.f32.xlu0 %v3072_v44  ;;  %3076 = vmax.xlane.f32.xlu1 %v3075_v3  ;;  %v3084_v55 = vsel %vm371_vm1, %v3062_v20, -inf }
0x146b   :  { %v3078_v18 = vsel %vm371_vm1, %v3060_v46, -inf }
0x146e   :  { %3082 = vmax.xlane.f32.xlu1 %v3081_v59  ;;  %3079 = vmax.xlane.f32.xlu0 %v3078_v18 }
0x1472   :  { %3085 = vmax.xlane.f32.xlu0 %v3084_v55 }
0x147f   :  { %3155 = vrot.lane.b32.xlu1 %v9945_v30, %s9717_s14 }
0x14ef   :  { %v3065_v49 = vpop.xlane.xlu0 %3064 }
0x14f0   :  { %v3087_v47 = vsub.f32 %v3055_v45, %v3065_v49 }
0x14f1   :  { %v3068_v31 = vpop.xlane.xlu1 %3067 }
0x14f2   :  { %v3095_v44 = vmul.f32 1.442695, %v3087_v47  ;;  %v3088_v38 = vsub.f32 %v3056_v32, %v3068_v31 }
0x14f3   :  { %v3071_v9 = vpop.xlane.xlu0 %3070 }
0x14f4   :  { %v3089_v21 = vsub.f32 %v3057_v58, %v3071_v9  ;;  %v3097_v41 = vmul.f32 1.442695, %v3088_v38 }
0x14f6   :  { %v3099_v3 = vmul.f32 1.442695, %v3089_v21 }
0x14f7   :  { %v3077_v15 = vpop.xlane.xlu1 %3076  ;;  %v3074_v36 = vpop.xlane.xlu0 %3073 }
0x14f8   :  { %9498 = vpow2.f32 %v3099_v3  ;;  %v3090_v33 = vsub.f32 %v3058_v14, %v3074_v36  ;;  %v3091_v59 = vsub.f32 %v3059_v62, %v3077_v15 }
0x14f9   :  { %9500 = vpow2.f32 %v3095_v44 }
0x14fa   :  { %v3101_v18 = vmul.f32 1.442695, %v3090_v33  ;;  %v3103_v30 = vmul.f32 1.442695, %v3091_v59 }
0x14fb   :  { %v3083_v55 = vpop.xlane.xlu1 %3082  ;;  %v3080_v19 = vpop.xlane.xlu0 %3079 }
0x14fc   :  { %v3093_v60 = vsub.f32 %v3061_v42, %v3083_v55  ;;  %9502 = vpow2.f32 %v3101_v18  ;;  %v3092_v49 = vsub.f32 %v3060_v46, %v3080_v19  ;;  %v12563_v18 = vpack.i.bf16 %v10167_v17, %v10161_v5 }
0x14fd   :  { %9504 = vpow2.f32 %v3097_v41  ;;  %v12564_v55 = vpack.i.bf16 %v10271_v1, %v10265_v43  ;;  %v12568_v5 = vpack.i.bf16 %v10267_v40, %v10263_v34  ;;  %v12569_v17 = vpack.i.bf16 %v10175_v10, %v10171_v29  ;;  %v9683_v43 = vld [vmem:[%s9806_s21 + $0x8] sm:$0xff]  }
0x14fe   :  { %v3107_v45 = vmul.f32 1.442695, %v3093_v60  ;;  %v3105_v15 = vmul.f32 1.442695, %v3092_v49  ;;  %v12572_v34 = vpack.i.bf16 %v10371_v26, %v10367_v57  ;;  %v12573_v29 = vpack.i.bf16 %v10283_v6, %v10277_v24  ;;  %v12580_v24 = vld [vmem:[#allocation34_spill] sm:$0xff] }
0x14ff   :  { %v3156_v9 = vpop.permute.xlu1 %3155  ;;  %v3086_v58 = vpop.xlane.xlu0 %3085  ;;  %v12574_v10 = vpack.i.bf16 %v10559_v50, %v10555_v52  ;;  %v12577_v40 = vpack.i.bf16 %v10563_v56, %v10557_v63  ;;  %v12578_v1 = vpack.i.bf16 %v10571_v54, %v10567_v13 }
0x1500   :  { %9506 = vpow2.f32 %v3107_v45  ;;  %v3094_v21 = vsub.f32 %v3062_v20, %v3086_v58  ;;  %8513 = vmatprep.subr.bf16.mxu0 %v3156_v9 }
0x1501   :  { %8514 = vmatpush3.bf16.msra.mxu0 %v3156_v9  ;;  %9508 = vpow2.f32 %v3103_v30  ;;  %v9682_v30 = vld [vmem:[%s9806_s21] sm:$0xff]   ;;  %s7584_s21 = sld [smem:[%s12502_s0 + %s9721_s18]]  }
0x1502   :  { %v10693_v32 = vpop.eup %9498  ;;  %v3109_v36 = vmul.f32 1.442695, %v3094_v21 }
0x1503   :  { %v3117_v33 = vsel %vm371_vm1, %v10693_v32, 0.0  ;;  %v10697_v14 = vpop.eup %9500 }
0x1504   :  { %9510 = vpow2.f32 %v3109_v36  ;;  %3118 = vadd.xlane.f32.xlu1 %v3117_v33  ;;  %v3111_v19 = vsel %vm371_vm1, %v10697_v14, 0.0 }
0x1505   :  { %9512 = vpow2.f32 %v3105_v15 }
0x1506   :  { %v10699_v60 = vpop.eup %9502 }
0x1507   :  { %v3120_v41 = vsel %vm371_vm1, %v10699_v60, 0.0  ;;  %v10705_v62 = vpop.eup %9504 }
0x1508   :  { %3112 = vadd.xlane.f32.xlu1 %v3111_v19  ;;  %3121 = vadd.xlane.f32.xlu0 %v3120_v41  ;;  %v3114_v47 = vsel %vm371_vm1, %v10705_v62, 0.0 }
0x150a   :  { %v10707_v42 = vpop.eup %9506 }
0x150b   :  { %v3129_v46 = vsel %vm371_vm1, %v10707_v42, 0.0  ;;  %v10711_v20 = vpop.eup %9508 }
0x150c   :  { %3130 = vadd.xlane.f32.xlu1 %v3129_v46  ;;  %3115 = vadd.xlane.f32.xlu0 %v3114_v47  ;;  %v3123_v44 = vsel %vm371_vm1, %v10711_v20, 0.0  ;;  %v12582_v47 = vld [vmem:[#allocation21_spill] sm:$0xff] }
0x150e   :  { %v10715_v31 = vpop.eup %9510 }
0x150f   :  { %v3132_v3 = vsel %vm371_vm1, %v10715_v31, 0.0  ;;  %v10721_v38 = vpop.eup %9512 }
0x1510   :  { %3124 = vadd.xlane.f32.xlu1 %v3123_v44  ;;  %3133 = vadd.xlane.f32.xlu0 %v3132_v3  ;;  %v3126_v59 = vsel %vm371_vm1, %v10721_v38, 0.0  ;;  %v12583_v44 = vld [vmem:[#allocation19_spill] sm:$0xff] }
0x1514   :  { %3127 = vadd.xlane.f32.xlu0 %v3126_v59 }
0x1521   :  { %3159 = vrot.lane.b32.xlu1 %v9963_v51, %s9717_s14  ;;  %v12567_v51 = vpack.i.bf16 %v10359_v22, %v10355_v0 }
0x1525   :  { %3161 = vrot.lane.b32.xlu1 %v9960_v48, %s9717_s14  ;;  %v12565_v48 = vpack.i.bf16 %v10363_v8, %v10357_v61 }
0x1529   :  { %9092 = vrot.lane.b32.xlu1 %v12563_v18, %s9706_s30 }
0x152a   :  { %3157 = vrot.lane.b32.xlu0 %v9943_v28, %s9717_s14  ;;  %v12566_v28 = vpack.i.bf16 %v10163_v16, %v10159_v11  ;;  %v12570_v11 = vpack.i.bf16 %v10279_v27, %v10275_v23  ;;  %v12571_v16 = vpack.i.bf16 %v10179_v12, %v10173_v25  ;;  %v12575_v25 = vpack.i.bf16 %v10375_v7, %v10369_v2  ;;  %s9726_s14 = smov 2  }
0x152b   :  { %v12576_v12 = vpack.i.bf16 %v10663_v4, %v10659_v35  ;;  %v12579_v23 = vpack.i.bf16 %v10667_v53, %v10661_v37  ;;  %v12581_v27 = vpack.i.bf16 %v10575_v39, %v12580_v24  ;;  %s11255_s20 = sld [smem:[%s12502_s0 + %s9726_s14]]   ;;  %s9732_s14 = smov 17  }
0x152d   :  { %9102 = vrot.lane.b32.xlu1 %v12564_v55, %s9718_s15 }
0x152e   :  { %3372 = vrot.lane.b32.xlu0 %v9682_v30, %s9719_s16 }
0x1531   :  { %9112 = vrot.lane.b32.xlu1 %v12565_v48, %s9720_s17 }
0x1532   :  { %9097 = vrot.lane.b32.xlu0 %v12566_v28, %s9706_s30 }
0x1535   :  { %9117 = vrot.lane.b32.xlu1 %v12567_v51, %s9720_s17 }
0x1536   :  { %9107 = vrot.lane.b32.xlu0 %v12568_v5, %s9718_s15 }
0x1539   :  { %9127 = vrot.lane.b32.xlu1 %v12569_v17, %s9706_s30 }
0x153a   :  { %3374 = vrot.lane.b32.xlu0 %v9683_v43, %s9719_s16 }
0x153d   :  { %9137 = vrot.lane.b32.xlu1 %v12570_v11, %s9718_s15 }
0x153e   :  { %9122 = vrot.lane.b32.xlu0 %v12571_v16, %s9706_s30 }
0x1541   :  { %9147 = vrot.lane.b32.xlu1 %v12572_v34, %s9720_s17 }
0x1542   :  { %9132 = vrot.lane.b32.xlu0 %v12573_v29, %s9718_s15 }
0x1545   :  { %9157 = vrot.lane.b32.xlu1 %v12574_v10, %s9706_s30 }
0x1546   :  { %9142 = vrot.lane.b32.xlu0 %v12575_v25, %s9720_s17  ;;  %v12584_v25 = vld [vmem:[#allocation20_spill] sm:$0xff] }
0x1549   :  { %9167 = vrot.lane.b32.xlu1 %v12576_v12, %s9718_s15 }
0x154a   :  { %9152 = vrot.lane.b32.xlu0 %v12577_v40, %s9706_s30  ;;  %v12585_v40 = vld [vmem:[#allocation18_spill] sm:$0xff] }
0x154d   :  { %9177 = vrot.lane.b32.xlu1 %v12578_v1, %s9706_s30 }
0x154e   :  { %9162 = vrot.lane.b32.xlu0 %v12579_v23, %s9718_s15 }
0x1552   :  { %9172 = vrot.lane.b32.xlu0 %v12581_v27, %s9706_s30 }
0x1591   :  { %v3119_v6 = vpop.xlane.xlu1 %3118 }
0x1595   :  { %v3113_v0 = vpop.xlane.xlu1 %3112  ;;  %v3122_v61 = vpop.xlane.xlu0 %3121 }
0x1596   :  { %9514 = vrcp.f32 %v3113_v0 }
0x1599   :  { %v3131_v22 = vpop.xlane.xlu1 %3130  ;;  %v3116_v8 = vpop.xlane.xlu0 %3115 }
0x159a   :  { %9516 = vrcp.f32 %v3116_v8 }
0x159b   :  { %9518 = vrcp.f32 %v3122_v61 }
0x159c   :  { %9520 = vrcp.f32 %v3119_v6 }
0x159d   :  { %v3125_v57 = vpop.xlane.xlu1 %3124  ;;  %v3134_v2 = vpop.xlane.xlu0 %3133 }
0x159e   :  { %9522 = vrcp.f32 %v3125_v57 }
0x15a0   :  { %v9515_v52 = vpop.eup %9514 }
0x15a1   :  { %v3160_v26 = vpop.permute.xlu1 %3159  ;;  %v3128_v7 = vpop.xlane.xlu0 %3127  ;;  %v3143_v13 = vmul.f32 %v9515_v52, %v10697_v14 }
0x15a2   :  { %9524 = vrcp.f32 %v3128_v7 }
0x15a3   :  { %9526 = vrcp.f32 %v3134_v2 }
0x15a4   :  { %v9517_v63 = vpop.eup %9516  ;;  %9528 = vrcp.f32 %v3131_v22 }
0x15a5   :  { %v3162_v50 = vpop.permute.xlu1 %3161  ;;  %v3158_v56 = vpop.permute.xlu0 %3157  ;;  %v3144_v54 = vmul.f32 %v9517_v63, %v10705_v62 }
0x15a6   :  { %8515 = vmatprep.subr.bf16.mxu0 %v3158_v56  ;;  %v9519_v37 = vpop.eup %9518 }
0x15a7   :  { %8516 = vmatpush3.bf16.msra.mxu0 %v3158_v56  ;;  %v3151_v39 = vpack.c.bf16 %v3144_v54, %v3143_v13  ;;  %v9521_v53 = vpop.eup %9520  ;;  %v3146_v9 = vmul.f32 %v9519_v37, %v10699_v60  ;;  %v12586_v37 = vld [vmem:[#allocation24_spill] sm:$0xff] }
0x15a8   :  { %8517 = vmatprep.subr.bf16.mxu0 %v3160_v26  ;;  %v9523_v45 = vpop.eup %9522  ;;  %v3145_v14 = vmul.f32 %v9521_v53, %v10693_v32  ;;  %v12587_v53 = vld [vmem:[#allocation22_spill] sm:$0xff] }
0x15a9   :  { %v9093_v35 = vpop.permute.xlu1 %9092  ;;  %8521 = vmatprep.mubr.msk.bf16.mxu0 %vm371_vm1, %v3151_v39  ;;  %v3373_v4 = vpop.permute.xlu0 %3372  ;;  %v3147_v62 = vmul.f32 %v9523_v45, %v10711_v20 }
0x15aa   :  { %v9095_v58 = vunpack.i.h.bf16 %v9093_v35  ;;  %v9094_v21 = vunpack.i.l.bf16 %v9093_v35  ;;  %v3152_v46 = vpack.c.bf16 %v3146_v9, %v3145_v14  ;;  %v12588_v9 = vld [vmem:[#allocation25_spill] sm:$0xff] }
0x15ab   :  { %8518 = vmatpush3.bf16.msra.mxu0 %v3160_v26 }
0x15ac   :  { %v9525_v49 = vpop.eup %9524  ;;  %8519 = vmatprep.subr.bf16.mxu0 %v3162_v50  ;;  %v2027_v60 = vsel %vm765_vm3, %v12582_v47, %v9095_v58  ;;  %v2026_v3 = vsel %vm765_vm3, %v12583_v44, %v9094_v21  ;;  %v12589_v21 = vld [vmem:[#allocation23_spill] sm:$0xff] }
0x15ad   :  { %v9103_v36 = vpop.permute.xlu1 %9102  ;;  %v9098_v15 = vpop.permute.xlu0 %9097  ;;  %v3148_v33 = vmul.f32 %v9525_v49, %v10721_v38 }
0x15ae   :  { %v9105_v19 = vunpack.i.h.bf16 %v9103_v36  ;;  %v9104_v41 = vunpack.i.l.bf16 %v9103_v36  ;;  %v9100_v59 = vunpack.i.h.bf16 %v9098_v15  ;;  %v9527_v38 = vpop.eup %9526  ;;  %v9099_v55 = vunpack.i.l.bf16 %v9098_v15 }
0x15af   :  { %8520 = vmatpush3.bf16.msra.mxu0 %v3162_v50  ;;  %v3153_v28 = vpack.c.bf16 %v3148_v33, %v3147_v62  ;;  %v9529_v43 = vpop.eup %9528  ;;  %v3150_v29 = vmul.f32 %v9527_v38, %v10715_v31 }
0x15b0   :  { %8529 = vmatprep.subr.bf16.mxu0 %v3373_v4  ;;  %v2035_v51 = vsel %vm2034_vm4, %v2026_v3, %v9104_v41  ;;  %v2036_v20 = vsel %vm2034_vm4, %v2027_v60, %v9105_v19  ;;  %v2029_v12 = vsel %vm765_vm3, %v12584_v25, %v9100_v59  ;;  %v2028_v1 = vsel %vm765_vm3, %v12585_v40, %v9099_v55 }
0x15b1   :  { %v9113_v18 = vpop.permute.xlu1 %9112  ;;  %v9108_v48 = vpop.permute.xlu0 %9107  ;;  %v3149_v61 = vmul.f32 %v9529_v43, %v10707_v42  ;;  %v12591_v43 = vld [vmem:[#allocation35_spill] sm:$0xff] }
0x15b2   :  { %v9115_v32 = vunpack.i.h.bf16 %v9113_v18  ;;  %v9114_v30 = vunpack.i.l.bf16 %v9113_v18  ;;  %v9110_v5 = vunpack.i.h.bf16 %v9108_v48  ;;  %v9109_v17 = vunpack.i.l.bf16 %v9108_v48  ;;  %8522 = vmatmul.mubr.msk.bf16.vlgmr.msra.gmra.mrb[88].mxu0 %vm371_vm1, %v3152_v46 }
0x15b3   :  { %8525 = vmatprep.mubr.msk.bf16.mxu0 %vm371_vm1, %v3153_v28  ;;  %8530 = vmatpush3.bf16.msra.mxu0 %v3373_v4  ;;  %v3154_v2 = vpack.c.bf16 %v3150_v29, %v3149_v61  ;;  %v12594_v29 = vld [vmem:[#allocation36_spill] sm:$0xff] }
0x15b4   :  { %v2044_v11 = vsel %vm2043_vm5, %v2035_v51, %v9114_v30  ;;  %v2045_v16 = vsel %vm2043_vm5, %v2036_v20, %v9115_v32  ;;  %v2037_v6 = vsel %vm2034_vm4, %v2028_v1, %v9109_v17  ;;  %v2038_v0 = vsel %vm2034_vm4, %v2029_v12, %v9110_v5  ;;  %v12590_v17 = vld [vmem:[#allocation37_spill] sm:$0xff] }
0x15b5   :  { %v9118_v34 = vpop.permute.xlu1 %9117  ;;  %v3364_v10 = vpack.c.bf16 %v2045_v16, %v2044_v11  ;;  %v3375_v27 = vpop.permute.xlu0 %3374  ;;  %v12592_v11 = vpack.i.bf16 %v12590_v17, %v12591_v43 }
0x15b6   :  { %v9120_v23 = vunpack.i.h.bf16 %v9118_v34  ;;  %v9119_v24 = vunpack.i.l.bf16 %v9118_v34  ;;  %8531 = vmatprep.subr.bf16.mxu0 %v3375_v27  ;;  %v12593_v34 = vld [vmem:[#allocation38_spill] sm:$0xff] }
0x15b7   :  { %8532 = vmatpush3.bf16.msra.mxu0 %v3375_v27  ;;  %v9684_v27 = vld [vmem:[%s9898_s3] ss:$0 sm:$0xff] }
0x15b8   :  { %v2046_v22 = vsel %vm2043_vm5, %v2037_v6, %v9119_v24  ;;  %v2047_v31 = vsel %vm2043_vm5, %v2038_v0, %v9120_v23 }
0x15b9   :  { %v3365_v8 = vpack.c.bf16 %v2047_v31, %v2046_v22  ;;  %v9128_v57 = vpop.permute.xlu1 %9127  ;;  %v9123_v26 = vpop.permute.xlu0 %9122 }
0x15ba   :  { %8526 = vmatmul.mubr.msk.bf16.gmra.mrb[92].mxu0 %vm371_vm1, %v3154_v2  ;;  %v9130_v7 = vunpack.i.h.bf16 %v9128_v57  ;;  %v9129_v52 = vunpack.i.l.bf16 %v9128_v57  ;;  %v9125_v50 = vunpack.i.h.bf16 %v9123_v26  ;;  %v9124_v56 = vunpack.i.l.bf16 %v9123_v26 }
0x15bb   :  { %8533 = vmatprep.mubr.msk.bf16.mxu0 %vm534_vm2, %v3364_v10  ;;  %v12595_v10 = vpack.i.bf16 %v12593_v34, %v12594_v29  ;;  %v12600_v34 = vld [vmem:[#allocation32_spill] sm:$0xff] }
0x15bc   :  { %v2033_v4 = vsel %vm765_vm3, %v12586_v37, %v9130_v7  ;;  %v2032_v45 = vsel %vm765_vm3, %v12587_v53, %v9129_v52  ;;  %v2031_v58 = vsel %vm765_vm3, %v12588_v9, %v9125_v50  ;;  %v2030_v36 = vsel %vm765_vm3, %v12589_v21, %v9124_v56  ;;  %v12598_v9 = vld [vmem:[#allocation29_spill] sm:$0xff] }
0x15bd   :  { %v9138_v63 = vpop.permute.xlu1 %9137  ;;  %v9133_v42 = vpop.permute.xlu0 %9132 }
0x15be   :  { %v9140_v13 = vunpack.i.h.bf16 %v9138_v63  ;;  %v9139_v54 = vunpack.i.l.bf16 %v9138_v63  ;;  %v9135_v39 = vunpack.i.h.bf16 %v9133_v42  ;;  %v9134_v35 = vunpack.i.l.bf16 %v9133_v42 }
0x15c0   :  { %v2041_v19 = vsel %vm2034_vm4, %v2032_v45, %v9139_v54  ;;  %v2042_v41 = vsel %vm2034_vm4, %v2033_v4, %v9140_v13  ;;  %v2039_v47 = vsel %vm2034_vm4, %v2030_v36, %v9134_v35  ;;  %v2040_v60 = vsel %vm2034_vm4, %v2031_v58, %v9135_v39  ;;  %v12596_v4 = vld [vmem:[#allocation28_spill] sm:$0xff]  ;;  %v12597_v45 = vld [vmem:[#allocation26_spill] sm:$0xff]  ;;  %v12599_v36 = vld [vmem:[#allocation27_spill] sm:$0xff] }
0x15c1   :  { %v9148_v49 = vpop.permute.xlu1 %9147  ;;  %v9143_v14 = vpop.permute.xlu0 %9142 }
0x15c2   :  { %v9150_v15 = vunpack.i.h.bf16 %v9148_v49  ;;  %v9149_v33 = vunpack.i.l.bf16 %v9148_v49  ;;  %v9145_v62 = vunpack.i.h.bf16 %v9143_v14  ;;  %v9144_v46 = vunpack.i.l.bf16 %v9143_v14  ;;  %8534 = vmatmul.mubr.msk.bf16.vlgmr.msra.gmra.mrb[96].mxu0 %vm534_vm2, %v3365_v8 }
0x15c4   :  { %v2050_v44 = vsel %vm2043_vm5, %v2041_v19, %v9149_v33  ;;  %v2051_v3 = vsel %vm2043_vm5, %v2042_v41, %v9150_v15  ;;  %v2048_v59 = vsel %vm2043_vm5, %v2039_v47, %v9144_v46  ;;  %v2049_v18 = vsel %vm2043_vm5, %v2040_v60, %v9145_v62 }
0x15c5   :  { %v3367_v38 = vpack.c.bf16 %v2051_v3, %v2050_v44  ;;  %v3366_v55 = vpack.c.bf16 %v2049_v18, %v2048_v59  ;;  %v9158_v57 = vpop.permute.xlu1 %9157  ;;  %v9153_v2 = vpop.permute.xlu0 %9152 }
0x15c6   :  { %v9160_v52 = vunpack.i.h.bf16 %v9158_v57  ;;  %v9159_v63 = vunpack.i.l.bf16 %v9158_v57  ;;  %v9155_v50 = vunpack.i.h.bf16 %v9153_v2  ;;  %v9154_v42 = vunpack.i.l.bf16 %v9153_v2 }
0x15c7   :  { %8537 = vmatprep.mubr.msk.bf16.mxu0 %vm534_vm2, %v3366_v55 }
0x15c8   :  { %v3343_v53 = vsel %vm765_vm3, %v12596_v4, %v9160_v52  ;;  %v3342_v49 = vsel %vm765_vm3, %v12597_v45, %v9159_v63  ;;  %v3341_v58 = vsel %vm765_vm3, %v12598_v9, %v9155_v50  ;;  %v3340_v15 = vsel %vm765_vm3, %v12599_v36, %v9154_v42  ;;  %v12604_v36 = vld [vmem:[#allocation4_spill] sm:$0xff] }
0x15c9   :  { %v9168_v26 = vpop.permute.xlu1 %9167  ;;  %v9163_v7 = vpop.permute.xlu0 %9162 }
0x15ca   :  { %8538 = vmatmul.mubr.msk.bf16.gmra.mrb[100].mxu0 %vm534_vm2, %v3367_v38  ;;  %v9169_v13 = vunpack.i.l.bf16 %v9168_v26  ;;  %v9170_v39 = vunpack.i.h.bf16 %v9168_v26  ;;  %v9164_v35 = vunpack.i.l.bf16 %v9163_v7  ;;  %v9165_v37 = vunpack.i.h.bf16 %v9163_v7 }
0x15cc   :  { %v3350_v33 = vsel %vm2034_vm4, %v3342_v49, %v9169_v13  ;;  %v3351_v62 = vsel %vm2034_vm4, %v3343_v53, %v9170_v39  ;;  %v3348_v46 = vsel %vm2034_vm4, %v3340_v15, %v9164_v35  ;;  %v3349_v44 = vsel %vm2034_vm4, %v3341_v58, %v9165_v37 }
0x15cd   :  { %v9178_v56 = vpop.permute.xlu1 %9177  ;;  %v9173_v54 = vpop.permute.xlu0 %9172 }
0x15ce   :  { %v9180_v3 = vunpack.i.h.bf16 %v9178_v56  ;;  %v9179_v38 = vunpack.i.l.bf16 %v9178_v56 }
0x15d0   :  { %v3347_v29 = vsel %vm765_vm3, %v12600_v34, %v9180_v3 }
0x1685   :  { %v8523_v32 = vpop.f32.mrb[88].mxu0 }
0x1686   :  { %v3213_v30 = vpop.f32.mrb[89].mxu0 }
0x1687   :  { %v8524_v48 = vpop.f32.mrb[90].mxu0 }
0x1688   :  { %v9181_v28 = vpack.i.bf16 %v8524_v48, %v8523_v32  ;;  %v3216_v51 = vpop.f32.mrb[91].mxu0 }
0x1689   :  { %v9186_v20 = vpack.i.bf16 %v3216_v51, %v3213_v30  ;;  %v9174_v51 = vunpack.i.l.bf16 %v9173_v54 }
0x168a   :  { %9182 = vrot.lane.b32.xlu1 %v9181_v28, %s9720_s17  ;;  %v9175_v28 = vunpack.i.h.bf16 %v9173_v54 }
0x168b   :  { %9187 = vrot.lane.b32.xlu0 %v9186_v20, %s9720_s17 }
0x168d   :  { %v8527_v5 = vpop.f32.mrb[92].mxu0 }
0x168e   :  { %9197 = vrot.lane.b32.xlu1 %v12592_v11, %s9718_s15  ;;  %v3229_v16 = vpop.f32.mrb[93].mxu0 }
0x168f   :  { %9192 = vrot.lane.b32.xlu0 %v12595_v10, %s9718_s15  ;;  %v8528_v25 = vpop.f32.mrb[94].mxu0  ;;  %v12601_v10 = vld [vmem:[#allocation30_spill] sm:$0xff] }
0x1690   :  { %v9206_v12 = vpack.i.bf16 %v8528_v25, %v8527_v5  ;;  %v3232_v40 = vpop.f32.mrb[95].mxu0  ;;  %v3346_v25 = vsel %vm765_vm3, %v12601_v10, %v9179_v38  ;;  %v12610_v38 = vld [vmem:[#allocation6_spill] sm:$0xff] }
0x1691   :  { %v9201_v1 = vpack.i.bf16 %v3232_v40, %v3229_v16  ;;  %v12602_v40 = vld [vmem:[#allocation33_spill] sm:$0xff] }
0x1692   :  { %9207 = vrot.lane.b32.xlu1 %v9206_v12, %s9720_s17 }
0x1693   :  { %9202 = vrot.lane.b32.xlu0 %v9201_v1, %s9720_s17  ;;  %v3345_v1 = vsel %vm765_vm3, %v12602_v40, %v9175_v28  ;;  %v12613_v40 = vld [vmem:[#allocation10_spill] sm:$0xff] }
0x1695   :  { %v10867_v23 = vpop.f32.mrb[96].mxu0 }
0x1696   :  { %v10869_v24 = vpop.f32.mrb[97].mxu0 }
0x1697   :  { %3378 = vrot.lane.b32.xlu0 %v9684_v27, %s9719_s16  ;;  %v10873_v6 = vpop.f32.mrb[98].mxu0  ;;  %v12603_v27 = vld [vmem:[#allocation31_spill] sm:$0xff] }
0x1698   :  { %v10875_v0 = vpop.f32.mrb[99].mxu0  ;;  %v3344_v57 = vsel %vm765_vm3, %v12603_v27, %v9174_v51  ;;  %v12614_v27 = vld [vmem:[#allocation13_spill] sm:$0xff] }
0x169d   :  { %v10877_v61 = vpop.f32.mrb[100].mxu0 }
0x169e   :  { %v10879_v22 = vpop.f32.mrb[101].mxu0 }
0x169f   :  { %v10881_v31 = vpop.f32.mrb[102].mxu0 }
0x16a0   :  { %v10883_v8 = vpop.f32.mrb[103].mxu0 }
0x16fc   :  { %v9183_v21 = vpop.permute.xlu1 %9182 }
0x16fd   :  { %v9185_v14 = vunpack.i.h.bf16 %v9183_v21  ;;  %v9184_v19 = vunpack.i.l.bf16 %v9183_v21  ;;  %v9188_v41 = vpop.permute.xlu0 %9187 }
0x16fe   :  { %v9190_v47 = vunpack.i.h.bf16 %v9188_v41  ;;  %v9189_v60 = vunpack.i.l.bf16 %v9188_v41 }
0x16ff   :  { %v3359_v59 = vsel %vm2043_vm5, %v3351_v62, %v9185_v14  ;;  %v3358_v18 = vsel %vm2043_vm5, %v3350_v33, %v9184_v19  ;;  %v12605_v33 = vld [vmem:[#allocation3_spill] sm:$0xff]  ;;  %v12606_v19 = vld [vmem:[#allocation5_spill] sm:$0xff]  ;;  %v12607_v62 = vld [vmem:[#allocation2_spill] sm:$0xff] }
0x1700   :  { %v3356_v55 = vsel %vm2043_vm5, %v3348_v46, %v9189_v60  ;;  %v3357_v32 = vsel %vm2043_vm5, %v3349_v44, %v9190_v47  ;;  %v9198_v30 = vpop.permute.xlu1 %9197  ;;  %v3369_v48 = vpack.c.bf16 %v3359_v59, %v3358_v18  ;;  %v12608_v44 = vld [vmem:[#allocation7_spill] sm:$0xff]  ;;  %v12609_v59 = vld [vmem:[#allocation9_spill] sm:$0xff] }
0x1701   :  { %v9193_v20 = vpop.permute.xlu0 %9192  ;;  %v3368_v5 = vpack.c.bf16 %v3357_v32, %v3356_v55  ;;  %v9200_v17 = vunpack.i.h.bf16 %v9198_v30  ;;  %v9199_v43 = vunpack.i.l.bf16 %v9198_v30  ;;  %v12611_v32 = vld [vmem:[#allocation8_spill] sm:$0xff] }
0x1702   :  { %v9195_v11 = vunpack.i.h.bf16 %v9193_v20  ;;  %v9194_v16 = vunpack.i.l.bf16 %v9193_v20 }
0x1703   :  { %8541 = vmatprep.mubr.msk.bf16.mxu0 %vm534_vm2, %v3368_v5  ;;  %v3355_v52 = vsel %vm2034_vm4, %v3347_v29, %v9200_v17  ;;  %v3354_v63 = vsel %vm2034_vm4, %v3346_v25, %v9199_v43  ;;  %v12612_v29 = vld [vmem:[#allocation11_spill] sm:$0xff] }
0x1704   :  { %v9208_v12 = vpop.permute.xlu1 %9207  ;;  %8542 = vmatmul.mubr.msk.bf16.gmra.mrb[104].mxu0 %vm534_vm2, %v3369_v48  ;;  %v3352_v42 = vsel %vm2034_vm4, %v3344_v57, %v9194_v16  ;;  %v3353_v13 = vsel %vm2034_vm4, %v3345_v1, %v9195_v11 }
0x1705   :  { %v9210_v2 = vunpack.i.h.bf16 %v9208_v12  ;;  %v9209_v26 = vunpack.i.l.bf16 %v9208_v12  ;;  %v9203_v7 = vpop.permute.xlu0 %9202 }
0x1706   :  { %v9205_v50 = vunpack.i.h.bf16 %v9203_v7  ;;  %v9204_v56 = vunpack.i.l.bf16 %v9203_v7  ;;  %v12615_v7 = vld [vmem:[#allocation12_spill] sm:$0xff] }
0x1707   :  { %v3363_v54 = vsel %vm2043_vm5, %v3355_v52, %v9210_v2  ;;  %v3362_v39 = vsel %vm2043_vm5, %v3354_v63, %v9209_v26 }
0x1708   :  { %v3360_v35 = vsel %vm2043_vm5, %v3352_v42, %v9204_v56  ;;  %v3361_v37 = vsel %vm2043_vm5, %v3353_v13, %v9205_v50  ;;  %v3371_v4 = vpack.c.bf16 %v3363_v54, %v3362_v39 }
0x1709   :  { %v10919_v53 = vpop.permute.xlu0 %3378  ;;  %v3370_v45 = vpack.c.bf16 %v3361_v37, %v3360_v35 }
0x170a   :  { %v3443_v49 = vadd.f32 %v10875_v0, %v10919_v53  ;;  %v3440_v9 = vadd.f32 %v10869_v24, %v10919_v53  ;;  %v3448_v58 = vadd.f32 %v10867_v23, %v10919_v53  ;;  %v3451_v21 = vadd.f32 %v10873_v6, %v10919_v53 }
0x170b   :  { %8545 = vmatprep.mubr.msk.bf16.mxu0 %vm534_vm2, %v3370_v45  ;;  %v3456_v0 = vadd.f32 %v10879_v22, %v10919_v53  ;;  %v3459_v24 = vadd.f32 %v10883_v8, %v10919_v53  ;;  %v3464_v47 = vadd.f32 %v10877_v61, %v10919_v53  ;;  %v3467_v22 = vadd.f32 %v10881_v31, %v10919_v53 }
0x170c   :  { %8546 = vmatmul.mubr.msk.bf16.gmra.mrb[108].mxu0 %vm534_vm2, %v3371_v4  ;;  %v10932_v15 = vadd.f32 %v3443_v49, %v12604_v36  ;;  %v3502_v14 = vadd.f32 %v3440_v9, %v12605_v33  ;;  %v10943_v41 = vadd.f32 %v3448_v58, %v12606_v19  ;;  %v10946_v46 = vadd.f32 %v3451_v21, %v12607_v62  ;;  %v12616_v49 = vld [vmem:[#allocation15_spill] sm:$0xff]  ;;  %v12618_v19 = vld [vmem:[#allocation17_spill] sm:$0xff] }
0x170d   :  { %v10957_v3 = vadd.f32 %v3456_v0, %v12608_v44  ;;  %v10960_v18 = vadd.f32 %v3459_v24, %v12609_v59  ;;  %v10967_v55 = vadd.f32 %v3464_v47, %v12610_v38  ;;  %v10970_v30 = vadd.f32 %v3467_v22, %v12611_v32 }
0x170e   :  { %v3521_v23 = vsel %vm534_vm2, %v10932_v15, 0.0  ;;  %v3518_v6 = vsel %vm534_vm2, %v3502_v14, 0.0  ;;  %v3524_v8 = vsel %vm534_vm2, %v10943_v41, 0.0  ;;  %v3527_v60 = vsel %vm534_vm2, %v10946_v46, 0.0 }
0x170f   :  { %3522 = vadd.xlane.f32.xlu0 %v3521_v23  ;;  %3519 = vadd.xlane.f32.xlu1 %v3518_v6  ;;  %v3530_v61 = vsel %vm534_vm2, %v10957_v3, 0.0  ;;  %v3533_v31 = vsel %vm534_vm2, %v10960_v18, 0.0  ;;  %v3536_v48 = vsel %vm534_vm2, %v10967_v55, 0.0  ;;  %v3539_v28 = vsel %vm534_vm2, %v10970_v30, 0.0  ;;  %v12617_v23 = vld [vmem:[#allocation14_spill] sm:$0xff] }
0x1713   :  { %3525 = vadd.xlane.f32.xlu0 %v3524_v8  ;;  %3528 = vadd.xlane.f32.xlu1 %v3527_v60 }
0x1717   :  { %3531 = vadd.xlane.f32.xlu0 %v3530_v61  ;;  %3534 = vadd.xlane.f32.xlu1 %v3533_v31 }
0x171b   :  { %3537 = vadd.xlane.f32.xlu0 %v3536_v48  ;;  %3540 = vadd.xlane.f32.xlu1 %v3539_v28 }
0x179c   :  { %v3523_v20 = vpop.xlane.xlu0 %3522  ;;  %v3520_v16 = vpop.xlane.xlu1 %3519 }
0x179d   :  { %v3567_v56 = vmul.f32 0.03125, %v3520_v16  ;;  %v3568_v4 = vmul.f32 0.03125, %v3523_v20 }
0x179f   :  { %v11007_v33 = vsub.f32 %v3502_v14, %v3567_v56  ;;  %v12619_v14 = vld [vmem:[#allocation16_spill] sm:$0xff] }
0x17a0   :  { %v3526_v26 = vpop.xlane.xlu0 %3525  ;;  %v3529_v42 = vpop.xlane.xlu1 %3528 }
0x17a1   :  { %v3569_v24 = vmul.f32 0.03125, %v3526_v26  ;;  %v3570_v8 = vmul.f32 0.03125, %v3529_v42  ;;  %v3599_v38 = vmul.f32 %v11007_v33, %v11007_v33 }
0x17a3   :  { %v11026_v59 = vsub.f32 %v10943_v41, %v3569_v24  ;;  %v11033_v32 = vsub.f32 %v10946_v46, %v3570_v8 }
0x17a4   :  { %v3532_v0 = vpop.xlane.xlu0 %3531  ;;  %v3535_v22 = vpop.xlane.xlu1 %3534 }
0x17a5   :  { %v3571_v61 = vmul.f32 0.03125, %v3532_v0  ;;  %v3572_v48 = vmul.f32 0.03125, %v3535_v22 }
0x17a7   :  { %v11040_v20 = vsub.f32 %v10957_v3, %v3571_v61  ;;  %v11046_v46 = vsub.f32 %v10960_v18, %v3572_v48 }
0x17d7   :  { %v8543_v51 = vpop.f32.mrb[104].mxu0 }
0x17d8   :  { %v3471_v5 = vpop.f32.mrb[105].mxu0  ;;  %v3480_v17 = vadd.f32 %v8543_v51, %v10919_v53  ;;  %v3541_v51 = vpop.xlane.xlu1 %3540 }
0x17d9   :  { %v3472_v43 = vadd.f32 %v3471_v5, %v10919_v53  ;;  %v8544_v11 = vpop.f32.mrb[106].mxu0 }
0x17da   :  { %v3474_v34 = vpop.f32.mrb[107].mxu0  ;;  %v3483_v25 = vadd.f32 %v8544_v11, %v10919_v53  ;;  %v10984_v1 = vadd.f32 %v3480_v17, %v12613_v40  ;;  %v3615_v17 = vsel %vm534_vm2, %v3599_v38, 0.0  ;;  %v3574_v11 = vmul.f32 0.03125, %v3541_v51 }
0x17db   :  { %v10979_v10 = vadd.f32 %v3472_v43, %v12612_v29  ;;  %v3475_v12 = vadd.f32 %v3474_v34, %v10919_v53  ;;  %v3601_v43 = vmul.f32 %v11026_v59, %v11026_v59  ;;  %v3602_v34 = vmul.f32 %v11033_v32, %v11033_v32 }
0x17dc   :  { %v10992_v52 = vadd.f32 %v3483_v25, %v12615_v7  ;;  %v3548_v37 = vsel %vm534_vm2, %v10984_v1, 0.0  ;;  %v3603_v25 = vmul.f32 %v11040_v20, %v11040_v20  ;;  %v3604_v40 = vmul.f32 %v11046_v46, %v11046_v46 }
0x17dd   :  { %v10987_v57 = vadd.f32 %v3475_v12, %v12614_v27  ;;  %v3542_v2 = vsel %vm534_vm2, %v10979_v10, 0.0  ;;  %v3621_v29 = vsel %vm534_vm2, %v3601_v43, 0.0  ;;  %v11058_v12 = vsub.f32 %v10970_v30, %v3574_v11 }
0x17de   :  { %3543 = vadd.xlane.f32.xlu0 %v3542_v2  ;;  %v3551_v36 = vsel %vm534_vm2, %v10992_v52, 0.0  ;;  %v3624_v18 = vsel %vm534_vm2, %v3602_v34, 0.0  ;;  %v3627_v27 = vsel %vm534_vm2, %v3603_v25, 0.0  ;;  %v3630_v2 = vsel %vm534_vm2, %v3604_v40, 0.0 }
0x17df   :  { %v8547_v63 = vpop.f32.mrb[108].mxu0  ;;  %v3545_v50 = vsel %vm534_vm2, %v10987_v57, 0.0  ;;  %v3606_v26 = vmul.f32 %v11058_v12, %v11058_v12  ;;  %v12524_v11 = vlaneseq }
0x17e0   :  { %v3487_v13 = vpop.f32.mrb[109].mxu0  ;;  %3546 = vadd.xlane.f32.xlu1 %v3545_v50  ;;  %v3496_v54 = vadd.f32 %v8547_v63, %v10919_v53  ;;  %v9250_v63 = vld [vmem:[%s7584_s21] sm:$0xff]   ;;  %v9251_v50 = vld [vmem:[%s7584_s21 + $0x8] sm:$0xff]   ;;  %s9728_s21 = smov 10  }
0x17e1   :  { %v3488_v39 = vadd.f32 %v3487_v13, %v10919_v53  ;;  %v8548_v35 = vpop.f32.mrb[110].mxu0  ;;  %v3636_v7 = vsel %vm534_vm2, %v3606_v26, 0.0  ;;  %8549 = vmatprep.subr.bf16.mxu1 %v9250_v63  ;;  %s7585_s24 = sld [smem:[%s12502_s0 + %s9728_s21]]  }
0x17e2   :  { %v3490_v45 = vpop.f32.mrb[111].mxu0  ;;  %3549 = vadd.xlane.f32.xlu0 %v3548_v37  ;;  %v3499_v58 = vadd.f32 %v8548_v35, %v10919_v53  ;;  %v11010_v6 = vadd.f32 %v3496_v54, %v12617_v23  ;;  %8550 = vmatpush3.bf16.msra.mxu1 %v9250_v63  ;;  %s11697_s21 = sld [smem:[%s12502_s0 + %s9732_s14]]  }
0x17e3   :  { %v11001_v9 = vadd.f32 %v3488_v39, %v12616_v49  ;;  %v3491_v21 = vadd.f32 %v3490_v45, %v10919_v53  ;;  %v11018_v53 = vsub.f32 %v10932_v15, %v3568_v4  ;;  %v3538_v15 = vpop.xlane.xlu0 %3537  ;;  %8551 = vmatprep.subr.bf16.mxu1 %v9251_v50 }
0x17e4   :  { %3552 = vadd.xlane.f32.xlu1 %v3551_v36  ;;  %v11021_v60 = vadd.f32 %v3499_v58, %v12619_v14  ;;  %v3560_v31 = vsel %vm534_vm2, %v11010_v6, 0.0  ;;  %v3573_v5 = vmul.f32 0.03125, %v3538_v15 }
0x17e5   :  { %v11013_v62 = vadd.f32 %v3491_v21, %v12618_v19  ;;  %v3554_v47 = vsel %vm534_vm2, %v11001_v9, 0.0  ;;  %v3600_v41 = vmul.f32 %v11018_v53, %v11018_v53 }
0x17e6   :  { %3555 = vadd.xlane.f32.xlu0 %v3554_v47  ;;  %v3563_v28 = vsel %vm534_vm2, %v11021_v60, 0.0  ;;  %v11052_v3 = vsub.f32 %v10967_v55, %v3573_v5  ;;  %8552 = vmatpush3.bf16.msra.mxu1 %v9251_v50 }
0x17e7   :  { %v3557_v44 = vsel %vm534_vm2, %v11013_v62, 0.0  ;;  %v3618_v16 = vsel %vm534_vm2, %v3600_v41, 0.0 }
0x17e8   :  { %3558 = vadd.xlane.f32.xlu1 %v3557_v44  ;;  %v3605_v55 = vmul.f32 %v11052_v3, %v11052_v3 }
0x17ea   :  { %3561 = vadd.xlane.f32.xlu0 %v3560_v31  ;;  %v3633_v30 = vsel %vm534_vm2, %v3605_v55, 0.0  ;;  %v11128_v55 = vshrl.u32 %v12524_v11, 7 }
0x17ec   :  { %3564 = vadd.xlane.f32.xlu1 %v3563_v28 }
0x17ee   :  { %3616 = vadd.xlane.f32.xlu0 %v3615_v17 }
0x17f0   :  { %3619 = vadd.xlane.f32.xlu1 %v3618_v16 }
0x17f2   :  { %3622 = vadd.xlane.f32.xlu0 %v3621_v29 }
0x17f4   :  { %3625 = vadd.xlane.f32.xlu1 %v3624_v18 }
0x17f6   :  { %3628 = vadd.xlane.f32.xlu0 %v3627_v27 }
0x17f8   :  { %3631 = vadd.xlane.f32.xlu1 %v3630_v2 }
0x17fa   :  { %3634 = vadd.xlane.f32.xlu0 %v3633_v30 }
0x17fc   :  { %3637 = vadd.xlane.f32.xlu1 %v3636_v7 }
0x186b   :  { %v3544_v56 = vpop.xlane.xlu0 %3543 }
0x186c   :  { %v3575_v42 = vmul.f32 0.03125, %v3544_v56  ;;  %v3729_v56 = vsub.s32 0, %v11128_v55 }
0x186d   :  { %v3547_v13 = vpop.xlane.xlu1 %3546 }
0x186e   :  { %v11075_v54 = vsub.f32 %v10979_v10, %v3575_v42  ;;  %v3576_v39 = vmul.f32 0.03125, %v3547_v13  ;;  %v507_v13 = vld [vmem:[%s11122_s26] sm:$0xf] }
0x186f   :  { %v3550_v35 = vpop.xlane.xlu0 %3549 }
0x1870   :  { %v11078_v37 = vsub.f32 %v10987_v57, %v3576_v39  ;;  %v3577_v4 = vmul.f32 0.03125, %v3550_v35  ;;  %v3607_v45 = vmul.f32 %v11075_v54, %v11075_v54 }
0x1871   :  { %v3553_v49 = vpop.xlane.xlu1 %3552 }
0x1872   :  { %v11083_v58 = vsub.f32 %v10984_v1, %v3577_v4  ;;  %v3578_v21 = vmul.f32 0.03125, %v3553_v49  ;;  %v3639_v36 = vsel %vm534_vm2, %v3607_v45, 0.0  ;;  %v3608_v10 = vmul.f32 %v11078_v37, %v11078_v37 }
0x1873   :  { %v3556_v0 = vpop.xlane.xlu0 %3555  ;;  %3640 = vadd.xlane.f32.xlu0 %v3639_v36  ;;  %v12525_v36 = vsub.s32 1, %v11128_v55 }
0x1874   :  { %v11089_v24 = vsub.f32 %v10992_v52, %v3578_v21  ;;  %v3579_v57 = vmul.f32 0.03125, %v3556_v0  ;;  %v3642_v23 = vsel %vm534_vm2, %v3608_v10, 0.0  ;;  %v3609_v19 = vmul.f32 %v11083_v58, %v11083_v58 }
0x1875   :  { %3643 = vadd.xlane.f32.xlu1 %v3642_v23  ;;  %v3559_v1 = vpop.xlane.xlu1 %3558  ;;  %v11134_v21 = vrot.slane %v507_v13, %v3729_v56 }
0x1876   :  { %v11095_v47 = vsub.f32 %v11001_v9, %v3579_v57  ;;  %v3580_v22 = vmul.f32 0.03125, %v3559_v1  ;;  %v3645_v8 = vsel %vm534_vm2, %v3609_v19, 0.0  ;;  %v3610_v14 = vmul.f32 %v11089_v24, %v11089_v24 }
0x1877   :  { %v3562_v44 = vpop.xlane.xlu0 %3561  ;;  %3646 = vadd.xlane.f32.xlu0 %v3645_v8  ;;  %v11140_v8 = vrot.slane %v507_v13, %v12525_v36  ;;  %v9255_v13 = vld [vmem:[%s7586_s11 + $0x8] sm:$0xff]  }
0x1878   :  { %v11101_v52 = vsub.f32 %v11013_v62, %v3580_v22  ;;  %v3581_v61 = vmul.f32 0.03125, %v3562_v44  ;;  %v3648_v31 = vsel %vm534_vm2, %v3610_v14, 0.0  ;;  %v3611_v38 = vmul.f32 %v11095_v47, %v11095_v47 }
0x1879   :  { %3649 = vadd.xlane.f32.xlu1 %v3648_v31  ;;  %v3565_v9 = vpop.xlane.xlu1 %3564 }
0x187a   :  { %v11107_v15 = vsub.f32 %v11010_v6, %v3581_v61  ;;  %v3582_v48 = vmul.f32 0.03125, %v3565_v9  ;;  %v3651_v28 = vsel %vm534_vm2, %v3611_v38, 0.0  ;;  %v3612_v41 = vmul.f32 %v11101_v52, %v11101_v52 }
0x187b   :  { %3652 = vadd.xlane.f32.xlu0 %v3651_v28  ;;  %v3617_v62 = vpop.xlane.xlu0 %3616 }
0x187c   :  { %v11113_v51 = vsub.f32 %v11021_v60, %v3582_v48  ;;  %v3663_v5 = vmul.f32 0.03125, %v3617_v62  ;;  %v3654_v17 = vsel %vm534_vm2, %v3612_v41, 0.0  ;;  %v3613_v43 = vmul.f32 %v11107_v15, %v11107_v15 }
0x187d   :  { %3655 = vadd.xlane.f32.xlu1 %v3654_v17  ;;  %v3620_v6 = vpop.xlane.xlu1 %3619 }
0x187e   :  { %v3679_v16 = vadd.f32 1e-05, %v3663_v5  ;;  %v3664_v34 = vmul.f32 0.03125, %v3620_v6  ;;  %v3657_v29 = vsel %vm534_vm2, %v3613_v43, 0.0  ;;  %v3614_v60 = vmul.f32 %v11113_v51, %v11113_v51 }
0x187f   :  { %3658 = vadd.xlane.f32.xlu0 %v3657_v29  ;;  %v3623_v25 = vpop.xlane.xlu0 %3622 }
0x1880   :  { %9530 = vrsqrt.f32 %v3679_v16  ;;  %v3680_v18 = vadd.f32 1e-05, %v3664_v34  ;;  %v3665_v40 = vmul.f32 0.03125, %v3623_v25  ;;  %v3660_v27 = vsel %vm534_vm2, %v3614_v60, 0.0 }
0x1881   :  { %3661 = vadd.xlane.f32.xlu1 %v3660_v27  ;;  %v3626_v2 = vpop.xlane.xlu1 %3625 }
0x1882   :  { %9532 = vrsqrt.f32 %v3680_v18  ;;  %v3681_v26 = vadd.f32 1e-05, %v3665_v40  ;;  %v3666_v30 = vmul.f32 0.03125, %v3626_v2 }
0x1883   :  { %v3629_v7 = vpop.xlane.xlu0 %3628 }
0x1884   :  { %9534 = vrsqrt.f32 %v3681_v26  ;;  %v3682_v63 = vadd.f32 1e-05, %v3666_v30  ;;  %v3667_v50 = vmul.f32 0.03125, %v3629_v7 }
0x1885   :  { %v3632_v42 = vpop.xlane.xlu1 %3631 }
0x1886   :  { %9536 = vrsqrt.f32 %v3682_v63  ;;  %v3683_v39 = vadd.f32 1e-05, %v3667_v50  ;;  %v3668_v35 = vmul.f32 0.03125, %v3632_v42  ;;  %v9724_v63 = vmov 0.0   ;;  %v9253_v50 = vld [vmem:[%s11195_s1 + $0x8] sm:$0xff]   ;;  %v9254_v42 = vld [vmem:[%s7586_s11] sm:$0xff]  }
0x1887   :  { %v3635_v4 = vpop.xlane.xlu0 %3634  ;;  %8593 = vmatprep.subr.bf16.mxu1 %v9724_v63  ;;  %8569 = vmatprep.subr.bf16.mxu0 %v9254_v42 }
0x1888   :  { %9538 = vrsqrt.f32 %v3683_v39  ;;  %v3684_v45 = vadd.f32 1e-05, %v3668_v35  ;;  %v3669_v49 = vmul.f32 0.03125, %v3635_v4  ;;  %8570 = vmatpush3.bf16.msra.mxu0 %v9254_v42  ;;  %v9256_v39 = vld [vmem:[%s7586_s11 + $0x10] sm:$0xff]   ;;  %v9257_v35 = vld [vmem:[%s7586_s11 + $0x18] sm:$0xff]   ;;  %s11592_s11 = sld [smem:[%s12502_s0 + %s9718_s15]]  }
0x1889   :  { %v3638_v10 = vpop.xlane.xlu1 %3637  ;;  %8571 = vmatprep.subr.bf16.mxu0 %v9255_v13 }
0x188a   :  { %v9531_v0 = vpop.eup %9530  ;;  %9540 = vrsqrt.f32 %v3684_v45  ;;  %v3685_v57 = vadd.f32 1e-05, %v3669_v49  ;;  %v3670_v23 = vmul.f32 0.03125, %v3638_v10 }
0x188b   :  { %v3711_v19 = vmul.f32 %v9531_v0, %v11007_v33 }
0x188c   :  { %v9533_v1 = vpop.eup %9532  ;;  %9542 = vrsqrt.f32 %v3685_v57  ;;  %v3686_v22 = vadd.f32 1e-05, %v3670_v23  ;;  %8572 = vmatpush3.bf16.msra.mxu0 %v9255_v13 }
0x188d   :  { %v3712_v14 = vmul.f32 %v9533_v1, %v11018_v53  ;;  %v3731_v44 = vmul.f32 %v11134_v21, %v3711_v19  ;;  %8573 = vmatprep.subr.bf16.mxu0 %v9256_v39 }
0x188e   :  { %v9535_v61 = vpop.eup %9534  ;;  %9544 = vrsqrt.f32 %v3686_v22 }
0x188f   :  { %v3713_v31 = vmul.f32 %v9535_v61, %v11026_v59  ;;  %v3732_v38 = vmul.f32 %v11134_v21, %v3712_v14  ;;  %v11149_v28 = vadd.f32 %v11140_v8, %v3731_v44 }
0x1890   :  { %v9537_v9 = vpop.eup %9536  ;;  %8574 = vmatpush3.bf16.msra.mxu0 %v9256_v39 }
0x1891   :  { %v3733_v33 = vmul.f32 %v11134_v21, %v3713_v31  ;;  %v3714_v48 = vmul.f32 %v9537_v9, %v11033_v32  ;;  %v11152_v41 = vadd.f32 %v11140_v8, %v3732_v38  ;;  %8575 = vmatprep.subr.bf16.mxu0 %v9257_v35 }
0x1892   :  { %v9539_v53 = vpop.eup %9538  ;;  %4444 = vrot.lane.b32.xlu1 %v9253_v50, %s9708_s5 }
0x1893   :  { %v3734_v62 = vmul.f32 %v11134_v21, %v3714_v48  ;;  %v3771_v5 = vpack.c.bf16 %v11152_v41, %v11149_v28  ;;  %v3715_v59 = vmul.f32 %v9539_v53, %v11040_v20  ;;  %v11159_v43 = vadd.f32 %v11140_v8, %v3733_v33 }
0x1894   :  { %v9541_v17 = vpop.eup %9540  ;;  %8576 = vmatpush3.bf16.msra.mxu0 %v9257_v35 }
0x1895   :  { %v11162_v32 = vadd.f32 %v11140_v8, %v3734_v62  ;;  %8553 = vmatprep.mubr.msk.bf16.mxu1 %vm534_vm2, %v3771_v5  ;;  %v3716_v6 = vmul.f32 %v9541_v17, %v11046_v46  ;;  %v3735_v16 = vmul.f32 %v11134_v21, %v3715_v59  ;;  %8621 = vmatprep.subr.bf16.mxu0 %v9724_v63 }
0x1896   :  { %v9543_v34 = vpop.eup %9542 }
0x1897   :  { %v3772_v29 = vpack.c.bf16 %v11162_v32, %v11159_v43  ;;  %v3736_v60 = vmul.f32 %v11134_v21, %v3716_v6  ;;  %v3717_v20 = vmul.f32 %v9543_v34, %v11052_v3  ;;  %v11173_v18 = vadd.f32 %v11140_v8, %v3735_v16 }
0x1898   :  { %v9545_v25 = vpop.eup %9544 }
0x1899   :  { %8554 = vmatmul.mubr.msk.bf16.vlgmr.msra.gmra.mrb[88].mxu1 %vm534_vm2, %v3772_v29  ;;  %v11176_v40 = vadd.f32 %v11140_v8, %v3736_v60  ;;  %v3718_v46 = vmul.f32 %v9545_v25, %v11058_v12  ;;  %v3737_v27 = vmul.f32 %v11134_v21, %v3717_v20  ;;  %v11199_v12 = vld [vmem:[%s11195_s1] sm:$0xff]  }
0x189a   :  { %8594 = vmatpush3.bf16.msra.mxu1 %v11199_v12  ;;  %4442 = vrot.lane.b32.xlu0 %v11199_v12, %s9708_s5 }
0x189b   :  { %v3773_v2 = vpack.c.bf16 %v11176_v40, %v11173_v18  ;;  %v3738_v26 = vmul.f32 %v11134_v21, %v3718_v46  ;;  %v11185_v3 = vadd.f32 %v11140_v8, %v3737_v27  ;;  %8595 = vmatprep.subr.bf16.mxu1 %v9724_v63 }
0x189d   :  { %8557 = vmatprep.mubr.msk.bf16.mxu1 %vm534_vm2, %v3773_v2  ;;  %v11188_v30 = vadd.f32 %v11140_v8, %v3738_v26 }
0x189e   :  { %8596 = vmatpush3.bf16.msra.mxu1 %v9253_v50 }
0x189f   :  { %v3774_v7 = vpack.c.bf16 %v11188_v30, %v11185_v3  ;;  %8601 = vmatprep.subr.bf16.mxu1 %v9724_v63 }
0x18a1   :  { %8558 = vmatmul.mubr.msk.bf16.gmra.mrb[92].mxu1 %vm534_vm2, %v3774_v7 }
0x1900   :  { %v3641_v4 = vpop.xlane.xlu0 %3640 }
0x1901   :  { %v3671_v45 = vmul.f32 0.03125, %v3641_v4 }
0x1902   :  { %v3644_v49 = vpop.xlane.xlu1 %3643 }
0x1903   :  { %v3687_v10 = vadd.f32 1e-05, %v3671_v45  ;;  %v3672_v0 = vmul.f32 0.03125, %v3644_v49 }
0x1904   :  { %v3647_v57 = vpop.xlane.xlu0 %3646 }
0x1905   :  { %9546 = vrsqrt.f32 %v3687_v10  ;;  %v3688_v23 = vadd.f32 1e-05, %v3672_v0  ;;  %v3673_v19 = vmul.f32 0.03125, %v3647_v57 }
0x1906   :  { %v3650_v1 = vpop.xlane.xlu1 %3649 }
0x1907   :  { %9548 = vrsqrt.f32 %v3688_v23  ;;  %v3689_v22 = vadd.f32 1e-05, %v3673_v19  ;;  %v3674_v14 = vmul.f32 0.03125, %v3650_v1 }
0x1908   :  { %v3653_v44 = vpop.xlane.xlu0 %3652 }
0x1909   :  { %9550 = vrsqrt.f32 %v3689_v22  ;;  %v3690_v61 = vadd.f32 1e-05, %v3674_v14  ;;  %v3675_v31 = vmul.f32 0.03125, %v3653_v44 }
0x190a   :  { %v3656_v38 = vpop.xlane.xlu1 %3655 }
0x190b   :  { %9552 = vrsqrt.f32 %v3690_v61  ;;  %v3691_v9 = vadd.f32 1e-05, %v3675_v31  ;;  %v3676_v33 = vmul.f32 0.03125, %v3656_v38  ;;  %v501_v61 = vld [vmem:[%s11255_s20] sm:$0xff] }
0x190c   :  { %v3659_v48 = vpop.xlane.xlu0 %3658  ;;  %v4379_v31 = vpack.c.bf16 %v501_v61, %v501_v61 }
0x190d   :  { %9554 = vrsqrt.f32 %v3691_v9  ;;  %v3692_v53 = vadd.f32 1e-05, %v3676_v33  ;;  %v3677_v62 = vmul.f32 0.03125, %v3659_v48 }
0x190e   :  { %v3662_v5 = vpop.xlane.xlu1 %3661 }
0x190f   :  { %v9547_v59 = vpop.eup %9546  ;;  %9556 = vrsqrt.f32 %v3692_v53  ;;  %v3693_v17 = vadd.f32 1e-05, %v3677_v62  ;;  %v3678_v6 = vmul.f32 0.03125, %v3662_v5 }
0x1910   :  { %v3719_v16 = vmul.f32 %v9547_v59, %v11075_v54 }
0x1911   :  { %v9549_v34 = vpop.eup %9548  ;;  %9558 = vrsqrt.f32 %v3693_v17  ;;  %v3694_v29 = vadd.f32 1e-05, %v3678_v6 }
0x1912   :  { %v3720_v60 = vmul.f32 %v9549_v34, %v11078_v37  ;;  %v3739_v20 = vmul.f32 %v11134_v21, %v3719_v16 }
0x1913   :  { %v9551_v25 = vpop.eup %9550  ;;  %9560 = vrsqrt.f32 %v3694_v29 }
0x1914   :  { %v3740_v46 = vmul.f32 %v11134_v21, %v3720_v60  ;;  %v3721_v27 = vmul.f32 %v9551_v25, %v11083_v58  ;;  %v11219_v26 = vadd.f32 %v11140_v8, %v3739_v20 }
0x1915   :  { %v9553_v2 = vpop.eup %9552 }
0x1916   :  { %v11222_v7 = vadd.f32 %v11140_v8, %v3740_v46  ;;  %v3722_v54 = vmul.f32 %v9553_v2, %v11089_v24  ;;  %v3741_v50 = vmul.f32 %v11134_v21, %v3721_v27 }
0x1917   :  { %v9555_v37 = vpop.eup %9554 }
0x1918   :  { %v3775_v42 = vpack.c.bf16 %v11222_v7, %v11219_v26  ;;  %v3742_v13 = vmul.f32 %v11134_v21, %v3722_v54  ;;  %v3723_v39 = vmul.f32 %v9555_v37, %v11095_v47  ;;  %v11232_v35 = vadd.f32 %v11140_v8, %v3741_v50 }
0x1919   :  { %v9557_v58 = vpop.eup %9556 }
0x191a   :  { %8561 = vmatprep.mubr.msk.bf16.mxu1 %vm534_vm2, %v3775_v42  ;;  %v11235_v4 = vadd.f32 %v11140_v8, %v3742_v13  ;;  %v3724_v24 = vmul.f32 %v9557_v58, %v11101_v52  ;;  %v3743_v45 = vmul.f32 %v11134_v21, %v3723_v39 }
0x191b   :  { %v9559_v49 = vpop.eup %9558 }
0x191c   :  { %v3776_v10 = vpack.c.bf16 %v11235_v4, %v11232_v35  ;;  %v3744_v0 = vmul.f32 %v11134_v21, %v3724_v24  ;;  %v3725_v47 = vmul.f32 %v9559_v49, %v11107_v15  ;;  %v11245_v23 = vadd.f32 %v11140_v8, %v3743_v45  ;;  %v4443_v45 = vpop.permute.xlu0 %4442  ;;  %v4445_v49 = vpop.permute.xlu1 %4444 }
0x191d   :  { %v9561_v57 = vpop.eup %9560 }
0x191e   :  { %8562 = vmatmul.mubr.msk.bf16.gmra.mrb[96].mxu1 %vm534_vm2, %v3776_v10  ;;  %v11248_v19 = vadd.f32 %v11140_v8, %v3744_v0  ;;  %v3726_v52 = vmul.f32 %v9561_v57, %v11113_v51  ;;  %v3745_v1 = vmul.f32 %v11134_v21, %v3725_v47 }
0x1920   :  { %v3777_v15 = vpack.c.bf16 %v11248_v19, %v11245_v23  ;;  %v3746_v22 = vmul.f32 %v11134_v21, %v3726_v52  ;;  %v11262_v14 = vadd.f32 %v11140_v8, %v3745_v1  ;;  %v11279_v21 = vld [vmem:[%s7585_s24] ss:$0 sm:$0xff] }
0x1922   :  { %8565 = vmatprep.mubr.msk.bf16.mxu1 %vm534_vm2, %v3777_v15  ;;  %v11265_v51 = vadd.f32 %v11140_v8, %v3746_v22 }
0x1924   :  { %v3778_v44 = vpack.c.bf16 %v11265_v51, %v11262_v14 }
0x1926   :  { %8566 = vmatmul.mubr.msk.bf16.gmra.mrb[100].mxu1 %vm534_vm2, %v3778_v44 }
0x1927   :  { %8597 = vmatprep.mubr.msk.bf16.mxu1 %vm9727_vm6, %v9724_v63 }
0x192e   :  { %8598 = vmatmul.mubr.msk.bf16.vlgmr.msra.gmra.mrb[104].mxu1 %vm534_vm2, %v4379_v31 }
0x192f   :  { %8605 = vmatprep.mubr.msk.bf16.mxu1 %vm9727_vm6, %v9724_v63  ;;  %8602 = vmatpush3.bf16.msra.mxu1 %v4443_v45 }
0x1930   :  { %8603 = vmatprep.subr.bf16.mxu1 %v9724_v63 }
0x1933   :  { %8604 = vmatpush3.bf16.msra.mxu1 %v4445_v49 }
0x1934   :  { %8609 = vmatprep.subr.bf16.mxu1 %v9724_v63 }
0x196c   :  { %v8555_v8 = vpop.f32.mrb[88].mxu1 }
0x196d   :  { %v3865_v38 = vadd.f32 %v8555_v8, %v11279_v21  ;;  %v3856_v9 = vpop.f32.mrb[89].mxu1 }
0x196e   :  { %v3857_v33 = vadd.f32 %v11279_v21, %v3856_v9  ;;  %v8556_v48 = vpop.f32.mrb[90].mxu1 }
0x196f   :  { %v3868_v53 = vadd.f32 %v8556_v48, %v11279_v21  ;;  %v3859_v62 = vpop.f32.mrb[91].mxu1  ;;  %v3921_v59 = vmax.f32 %v3865_v38, 0.0 }
0x1970   :  { %v3860_v5 = vadd.f32 %v11279_v21, %v3859_v62  ;;  %v3919_v6 = vmax.f32 %v3857_v33, 0.0  ;;  %v9730_v62 = vmov 0  }
0x1971   :  { %v3922_v17 = vmax.f32 %v3868_v53, 0.0  ;;  %8606 = vmatmul.mubr.bf16.vlgmr.msra.gmra.mrb[108].mxu1 %v9730_v62 }
0x1972   :  { %v3920_v16 = vmax.f32 %v3860_v5, 0.0  ;;  %8611 = vmatprep.mubr.msk.bf16.mxu1 %vm9727_vm6, %v9724_v63 }
0x1973   :  { %v3944_v34 = vpack.c.bf16 %v3922_v17, %v3921_v59 }
0x1974   :  { %v3943_v29 = vpack.c.bf16 %v3920_v16, %v3919_v6  ;;  %v8559_v60 = vpop.f32.mrb[92].mxu1 }
0x1975   :  { %v3881_v20 = vadd.f32 %v8559_v60, %v11279_v21  ;;  %v3872_v25 = vpop.f32.mrb[93].mxu1 }
0x1976   :  { %v3873_v46 = vadd.f32 %v11279_v21, %v3872_v25  ;;  %v8560_v27 = vpop.f32.mrb[94].mxu1  ;;  %8577 = vmatprep.mubr.msk.bf16.mxu0 %vm371_vm1, %v3943_v29  ;;  %v11310_v25 = vld [vmem:[%s7590_s2] ss:$0 sm:$0xff] }
0x1977   :  { %v3884_v2 = vadd.f32 %v8560_v27, %v11279_v21  ;;  %v3875_v54 = vpop.f32.mrb[95].mxu1  ;;  %8578 = vmatmul.mubr.msk.bf16.vlgmr.msra.gmra.mrb[112].mxu0 %vm371_vm1, %v3944_v34  ;;  %v3925_v37 = vmax.f32 %v3881_v20, 0.0 }
0x1978   :  { %v3876_v50 = vadd.f32 %v11279_v21, %v3875_v54  ;;  %v3923_v13 = vmax.f32 %v3873_v46, 0.0 }
0x1979   :  { %v3926_v42 = vmax.f32 %v3884_v2, 0.0 }
0x197a   :  { %v3924_v39 = vmax.f32 %v3876_v50, 0.0 }
0x197b   :  { %v3946_v58 = vpack.c.bf16 %v3926_v42, %v3925_v37 }
0x197c   :  { %v3945_v24 = vpack.c.bf16 %v3924_v39, %v3923_v13 }
0x197e   :  { %8581 = vmatprep.mubr.msk.bf16.mxu0 %vm371_vm1, %v3945_v24 }
0x197f   :  { %8582 = vmatmul.mubr.msk.bf16.gmra.mrb[116].mxu0 %vm371_vm1, %v3946_v58 }
0x19f1   :  { %v8563_v10 = vpop.f32.mrb[96].mxu1 }
0x19f2   :  { %v3897_v0 = vadd.f32 %v8563_v10, %v11279_v21  ;;  %v3888_v47 = vpop.f32.mrb[97].mxu1 }
0x19f3   :  { %v3889_v57 = vadd.f32 %v11279_v21, %v3888_v47  ;;  %v8564_v52 = vpop.f32.mrb[98].mxu1 }
0x19f4   :  { %v3900_v1 = vadd.f32 %v8564_v52, %v11279_v21  ;;  %v3891_v15 = vpop.f32.mrb[99].mxu1  ;;  %v3929_v44 = vmax.f32 %v3897_v0, 0.0 }
0x19f5   :  { %v3892_v22 = vadd.f32 %v11279_v21, %v3891_v15  ;;  %v3927_v31 = vmax.f32 %v3889_v57, 0.0 }
0x19f6   :  { %v3930_v61 = vmax.f32 %v3900_v1, 0.0 }
0x19f7   :  { %v3928_v8 = vmax.f32 %v3892_v22, 0.0 }
0x19f8   :  { %v3948_v38 = vpack.c.bf16 %v3930_v61, %v3929_v44 }
0x19f9   :  { %v3947_v9 = vpack.c.bf16 %v3928_v8, %v3927_v31  ;;  %v8567_v33 = vpop.f32.mrb[100].mxu1 }
0x19fa   :  { %v3913_v48 = vadd.f32 %v8567_v33, %v11279_v21  ;;  %v3904_v53 = vpop.f32.mrb[101].mxu1 }
0x19fb   :  { %v3905_v5 = vadd.f32 %v11279_v21, %v3904_v53  ;;  %v8568_v59 = vpop.f32.mrb[102].mxu1  ;;  %8585 = vmatprep.mubr.msk.bf16.mxu0 %vm371_vm1, %v3947_v9 }
0x19fc   :  { %v3916_v17 = vadd.f32 %v8568_v59, %v11279_v21  ;;  %v3907_v6 = vpop.f32.mrb[103].mxu1  ;;  %8586 = vmatmul.mubr.msk.bf16.gmra.mrb[120].mxu0 %vm371_vm1, %v3948_v38  ;;  %v3933_v34 = vmax.f32 %v3913_v48, 0.0 }
0x19fd   :  { %v3908_v16 = vadd.f32 %v11279_v21, %v3907_v6  ;;  %v3931_v60 = vmax.f32 %v3905_v5, 0.0 }
0x19fe   :  { %v3934_v29 = vmax.f32 %v3916_v17, 0.0 }
0x19ff   :  { %v3932_v20 = vmax.f32 %v3908_v16, 0.0 }
0x1a00   :  { %v3950_v46 = vpack.c.bf16 %v3934_v29, %v3933_v34 }
0x1a01   :  { %v3949_v27 = vpack.c.bf16 %v3932_v20, %v3931_v60  ;;  %v4435_v2 = vpop.f32.mrb[104].mxu1 }
0x1a02   :  { %v4436_v54 = vadd.f32 %v11310_v25, %v4435_v2  ;;  %v8599_v50 = vpop.f32.mrb[105].mxu1 }
0x1a03   :  { %8589 = vmatprep.mubr.msk.bf16.mxu0 %vm371_vm1, %v3949_v27  ;;  %v4438_v37 = vpop.f32.mrb[106].mxu1 }
0x1a04   :  { %v4495_v42 = vpack.c.bf16 %v4436_v54, %v4436_v54  ;;  %8590 = vmatmul.mubr.msk.bf16.gmra.mrb[124].mxu0 %vm371_vm1, %v3950_v46  ;;  %v8600_v13 = vpop.f32.mrb[107].mxu1  ;;  %v4439_v21 = vadd.f32 %v11310_v25, %v4438_v37 }
0x1a05   :  { %8623 = vmatprep.mubr.msk.bf16.mxu0 %vm9727_vm6, %v9724_v63 }
0x1a06   :  { %4608 = vrot.lane.b32.xlu0 %v4495_v42, %s9709_s6  ;;  %4498 = vrot.lane.b32.xlu1 %v4495_v42, %s9707_s4  ;;  %v4955_v39 = vpack.c.bf16 %v4439_v21, %v4439_v21 }
0x1a0a   :  { %4720 = vrot.lane.b32.xlu0 %v4495_v42, %s9712_s9  ;;  %4606 = vrot.lane.b32.xlu1 %v4495_v42, %s9710_s7 }
0x1a0e   :  { %4831 = vrot.lane.b32.xlu0 %v4495_v42, %s9715_s12  ;;  %4718 = vrot.lane.b32.xlu1 %v4495_v42, %s9713_s10 }
0x1a12   :  { %4829 = vrot.lane.b32.xlu1 %v4495_v42, %s9716_s13  ;;  %4958 = vrot.lane.b32.xlu0 %v4955_v39, %s9707_s4 }
0x1a16   :  { %5067 = vrot.lane.b32.xlu1 %v4955_v39, %s9709_s6  ;;  %5065 = vrot.lane.b32.xlu0 %v4955_v39, %s9710_s7  ;;  %s9731_s6 = smov 12  }
0x1a17   :  { %s7587_s3 = sld [smem:[%s12502_s0 + %s9731_s6]]  }
0x1a1a   :  { %5179 = vrot.lane.b32.xlu1 %v4955_v39, %s9712_s9  ;;  %5177 = vrot.lane.b32.xlu0 %v4955_v39, %s9713_s10  ;;  %s7596_s9 = sld [smem:[%s12502_s0 + %s9737_s29]]  }
0x1a1e   :  { %5290 = vrot.lane.b32.xlu1 %v4955_v39, %s9715_s12  ;;  %5288 = vrot.lane.b32.xlu0 %v4955_v39, %s9716_s13  ;;  %s9738_s12 = smov 23  }
0x1a1f   :  { %s7598_s8 = sld [smem:[%s12502_s0 + %s9738_s12]]  }
0x1a44   :  { %v11388_v20 = vpop.f32.mrb[108].mxu1 }
0x1a45   :  { %v8607_v46 = vpop.f32.mrb[109].mxu1 }
0x1a46   :  { %v11392_v2 = vpop.f32.mrb[110].mxu1 }
0x1a47   :  { %v8608_v50 = vpop.f32.mrb[111].mxu1 }
0x1a4a   :  { %v11332_v58 = vpop.f32.mrb[112].mxu0 }
0x1a4b   :  { %v11334_v24 = vpop.f32.mrb[113].mxu0 }
0x1a4c   :  { %v11336_v45 = vpop.f32.mrb[114].mxu0 }
0x1a4d   :  { %v11338_v49 = vpop.f32.mrb[115].mxu0 }
0x1a52   :  { %v11340_v10 = vpop.f32.mrb[116].mxu0 }
0x1a53   :  { %v11342_v0 = vpop.f32.mrb[117].mxu0 }
0x1a54   :  { %v11344_v47 = vpop.f32.mrb[118].mxu0 }
0x1a55   :  { %v11346_v57 = vpop.f32.mrb[119].mxu0 }
0x1a78   :  { %v4609_v52 = vpop.permute.xlu0 %4608  ;;  %v4499_v1 = vpop.permute.xlu1 %4498 }
0x1a79   :  { %v4614_v15 = vsel %vm765_vm3, %v4609_v52, 0  ;;  %v4504_v22 = vsel %vm765_vm3, %v4499_v1, 0 }
0x1a7a   :  { %8610 = vmatpush3.bf16.xpose.msra.mxu1 %v4504_v22  ;;  %8622 = vmatpush3.bf16.xpose.msra.mxu0 %v4614_v15 }
0x1a7b   :  { %8633 = vmatprep.subr.bf16.mxu0 %v9724_v63  ;;  %8615 = vmatprep.subr.bf16.mxu1 %v9724_v63 }
0x1a7c   :  { %v4721_v44 = vpop.permute.xlu0 %4720  ;;  %v4607_v61 = vpop.permute.xlu1 %4606 }
0x1a7d   :  { %v4726_v31 = vsel %vm765_vm3, %v4721_v44, 0 }
0x1a80   :  { %v4832_v8 = vpop.permute.xlu0 %4831  ;;  %v4719_v38 = vpop.permute.xlu1 %4718 }
0x1a81   :  { %8612 = vmatmul.mubr.msk.bf16.vlgmr.msra.gmra.mrb[112].mxu1 %vm765_vm3, %v4495_v42  ;;  %8624 = vmatmul.mubr.msk.bf16.vlgmr.msra.gmra.mrb[128].mxu0 %vm765_vm3, %v4607_v61  ;;  %v4837_v9 = vsel %vm765_vm3, %v4832_v8, 0 }
0x1a82   :  { %8634 = vmatpush3.bf16.xpose.msra.mxu0 %v4726_v31  ;;  %8635 = vmatprep.mubr.msk.bf16.mxu0 %vm9727_vm6, %v9724_v63 }
0x1a83   :  { %8645 = vmatprep.subr.bf16.mxu0 %v9724_v63  ;;  %8617 = vmatprep.mubr.msk.bf16.mxu1 %vm9727_vm6, %v9724_v63 }
0x1a84   :  { %v4959_v33 = vpop.permute.xlu0 %4958  ;;  %v4830_v48 = vpop.permute.xlu1 %4829 }
0x1a85   :  { %v4964_v53 = vsel %vm765_vm3, %v4959_v33, 0 }
0x1a88   :  { %v5068_v62 = vpop.permute.xlu1 %5067  ;;  %v5066_v17 = vpop.permute.xlu0 %5065 }
0x1a89   :  { %8636 = vmatmul.mubr.msk.bf16.vlgmr.msra.gmra.mrb[132].mxu0 %vm765_vm3, %v4719_v38  ;;  %v5073_v5 = vsel %vm765_vm3, %v5068_v62, 0 }
0x1a8a   :  { %8646 = vmatpush3.bf16.xpose.msra.mxu0 %v4837_v9  ;;  %8647 = vmatprep.mubr.msk.bf16.mxu0 %vm9727_vm6, %v9724_v63 }
0x1a8b   :  { %8657 = vmatprep.subr.bf16.mxu0 %v9724_v63 }
0x1a8c   :  { %v5180_v59 = vpop.permute.xlu1 %5179  ;;  %v5178_v34 = vpop.permute.xlu0 %5177 }
0x1a8d   :  { %v5185_v6 = vsel %vm765_vm3, %v5180_v59, 0 }
0x1a90   :  { %v5291_v16 = vpop.permute.xlu1 %5290  ;;  %v5289_v60 = vpop.permute.xlu0 %5288 }
0x1a91   :  { %8648 = vmatmul.mubr.msk.bf16.vlgmr.msra.gmra.mrb[136].mxu0 %vm765_vm3, %v4830_v48  ;;  %v5296_v29 = vsel %vm765_vm3, %v5291_v16, 0 }
0x1a92   :  { %8658 = vmatpush3.bf16.xpose.msra.mxu0 %v4964_v53  ;;  %8659 = vmatprep.mubr.msk.bf16.mxu0 %vm9727_vm6, %v9724_v63 }
0x1a93   :  { %8669 = vmatprep.subr.bf16.mxu0 %v9724_v63 }
0x1a99   :  { %8660 = vmatmul.mubr.msk.bf16.vlgmr.msra.gmra.mrb[140].mxu0 %vm765_vm3, %v4955_v39 }
0x1a9a   :  { %8670 = vmatpush3.bf16.xpose.msra.mxu0 %v5073_v5  ;;  %8671 = vmatprep.mubr.msk.bf16.mxu0 %vm9727_vm6, %v9724_v63 }
0x1a9b   :  { %8681 = vmatprep.subr.bf16.mxu0 %v9724_v63 }
0x1aa1   :  { %8672 = vmatmul.mubr.msk.bf16.vlgmr.msra.gmra.mrb[144].mxu0 %vm765_vm3, %v5066_v17 }
0x1aa2   :  { %8682 = vmatpush3.bf16.xpose.msra.mxu0 %v5185_v6  ;;  %8683 = vmatprep.mubr.msk.bf16.mxu0 %vm9727_vm6, %v9724_v63 }
0x1aa3   :  { %8693 = vmatprep.subr.bf16.mxu0 %v9724_v63 }
0x1aa9   :  { %8684 = vmatmul.mubr.msk.bf16.vlgmr.msra.gmra.mrb[148].mxu0 %vm765_vm3, %v5178_v34 }
0x1aaa   :  { %8694 = vmatpush3.bf16.xpose.msra.mxu0 %v5296_v29  ;;  %8695 = vmatprep.mubr.msk.bf16.mxu0 %vm9727_vm6, %v9724_v63 }
0x1aab   :  { %8705 = vmatprep.subr.bf16.mxu0 %v9724_v63 }
0x1ab1   :  { %8696 = vmatmul.mubr.msk.bf16.vlgmr.msra.gmra.mrb[152].mxu0 %vm765_vm3, %v5289_v60 }
0x1ab2   :  { %8709 = vmatprep.mubr.msk.bf16.mxu0 %vm9727_vm6, %v9724_v63 }
0x1acf   :  { %v11390_v27 = vpop.f32.mrb[120].mxu0 }
0x1ad0   :  { %v11394_v54 = vpop.f32.mrb[121].mxu0 }
0x1ad1   :  { %v11396_v37 = vpop.f32.mrb[122].mxu0 }
0x1ad2   :  { %v11398_v42 = vpop.f32.mrb[123].mxu0 }
0x1ad7   :  { %v11400_v13 = vpop.f32.mrb[124].mxu0 }
0x1ad8   :  { %v11402_v21 = vpop.f32.mrb[125].mxu0 }
0x1ad9   :  { %v11404_v39 = vpop.f32.mrb[126].mxu0 }
0x1ada   :  { %v11406_v52 = vpop.f32.mrb[127].mxu0 }
0x1b54   :  { %v4540_v1 = vpop.f32.mrb[112].mxu1  ;;  %v4650_v15 = vpop.f32.mrb[128].mxu0 }
0x1b55   :  { %v11408_v22 = vmul.f32 0.35355338, %v4540_v1  ;;  %v11410_v44 = vmul.f32 0.35355338, %v4650_v15  ;;  %v8613_v61 = vpop.f32.mrb[113].mxu1  ;;  %v8625_v31 = vpop.f32.mrb[129].mxu0 }
0x1b56   :  { %v4543_v8 = vpop.f32.mrb[114].mxu1  ;;  %v4653_v38 = vpop.f32.mrb[130].mxu0 }
0x1b57   :  { %v8614_v9 = vpop.f32.mrb[115].mxu1  ;;  %v8626_v33 = vpop.f32.mrb[131].mxu0  ;;  %v4547_v48 = vsel %vm765_vm3, %v11408_v22, -inf  ;;  %v4657_v53 = vsel %vm765_vm3, %v11410_v44, -inf }
0x1b58   :  { %4548 = vmax.xlane.f32.xlu1 %v4547_v48  ;;  %4658 = vmax.xlane.f32.xlu0 %v4657_v53 }
0x1b5c   :  { %v4762_v62 = vpop.f32.mrb[132].mxu0 }
0x1b5d   :  { %v11416_v5 = vmul.f32 0.35355338, %v4762_v62  ;;  %v8637_v59 = vpop.f32.mrb[133].mxu0 }
0x1b5e   :  { %v4765_v17 = vpop.f32.mrb[134].mxu0 }
0x1b5f   :  { %v8638_v6 = vpop.f32.mrb[135].mxu0  ;;  %v4769_v16 = vsel %vm765_vm3, %v11416_v5, -inf }
0x1b60   :  { %4770 = vmax.xlane.f32.xlu0 %v4769_v16 }
0x1b64   :  { %v4873_v34 = vpop.f32.mrb[136].mxu0 }
0x1b65   :  { %v11420_v29 = vmul.f32 0.35355338, %v4873_v34  ;;  %v8649_v60 = vpop.f32.mrb[137].mxu0 }
0x1b66   :  { %v4876_v46 = vpop.f32.mrb[138].mxu0 }
0x1b67   :  { %v8650_v50 = vpop.f32.mrb[139].mxu0  ;;  %v4880_v1 = vsel %vm765_vm3, %v11420_v29, -inf }
0x1b68   :  { %4881 = vmax.xlane.f32.xlu1 %v4880_v1 }
0x1b6c   :  { %v5000_v15 = vpop.f32.mrb[140].mxu0 }
0x1b6d   :  { %v11424_v61 = vmul.f32 0.35355338, %v5000_v15  ;;  %v8661_v31 = vpop.f32.mrb[141].mxu0 }
0x1b6e   :  { %v5003_v8 = vpop.f32.mrb[142].mxu0 }
0x1b6f   :  { %v8662_v38 = vpop.f32.mrb[143].mxu0  ;;  %v5007_v9 = vsel %vm765_vm3, %v11424_v61, -inf }
0x1b70   :  { %5008 = vmax.xlane.f32.xlu0 %v5007_v9 }
0x1b74   :  { %v5109_v33 = vpop.f32.mrb[144].mxu0 }
0x1b75   :  { %v5115_v48 = vmul.f32 0.35355338, %v5109_v33  ;;  %v8673_v53 = vpop.f32.mrb[145].mxu0 }
0x1b76   :  { %v5112_v62 = vpop.f32.mrb[146].mxu0 }
0x1b77   :  { %v8674_v59 = vpop.f32.mrb[147].mxu0  ;;  %v5116_v17 = vsel %vm765_vm3, %v5115_v48, -inf }
0x1b78   :  { %5117 = vmax.xlane.f32.xlu1 %v5116_v17 }
0x1b7c   :  { %v5221_v6 = vpop.f32.mrb[148].mxu0 }
0x1b7d   :  { %v5227_v16 = vmul.f32 0.35355338, %v5221_v6  ;;  %v8685_v34 = vpop.f32.mrb[149].mxu0 }
0x1b7e   :  { %v5224_v60 = vpop.f32.mrb[150].mxu0 }
0x1b7f   :  { %v8686_v46 = vpop.f32.mrb[151].mxu0  ;;  %v5228_v50 = vsel %vm765_vm3, %v5227_v16, -inf }
0x1b80   :  { %5229 = vmax.xlane.f32.xlu0 %v5228_v50 }
0x1b84   :  { %v5332_v1 = vpop.f32.mrb[152].mxu0 }
0x1b85   :  { %v8697_v15 = vpop.f32.mrb[153].mxu0  ;;  %v5338_v11 = vmul.f32 0.35355338, %v5332_v1 }
0x1b86   :  { %v5335_v31 = vpop.f32.mrb[154].mxu0 }
0x1b87   :  { %v8698_v8 = vpop.f32.mrb[155].mxu0 }
0x1b96   :  { %4448 = vrot.lane.b32.xlu0 %v11310_v25, %s9708_s5 }
0x1be5   :  { %v4549_v38 = vpop.xlane.xlu1 %4548  ;;  %v4659_v9 = vpop.xlane.xlu0 %4658 }
0x1bed   :  { %v4771_v53 = vpop.xlane.xlu0 %4770 }
0x1bf5   :  { %v4882_v33 = vpop.xlane.xlu1 %4881 }
0x1bfd   :  { %v5009_v6 = vpop.xlane.xlu0 %5008 }
0x1c05   :  { %v5118_v62 = vpop.xlane.xlu1 %5117 }
0x1c06   :  { %v5119_v59 = vsub.f32 %v5115_v48, %v5118_v62  ;;  %v4550_v48 = vsub.f32 %v11408_v22, %v4549_v38  ;;  %v4660_v62 = vsub.f32 %v11410_v44, %v4659_v9 }
0x1c08   :  { %v5120_v17 = vmul.f32 1.442695, %v5119_v59  ;;  %v4661_v59 = vmul.f32 1.442695, %v4660_v62 }
0x1c0a   :  { %9562 = vpow2.f32 %v5120_v17  ;;  %v4772_v17 = vsub.f32 %v11416_v5, %v4771_v53  ;;  %v4883_v5 = vsub.f32 %v11420_v29, %v4882_v33  ;;  %v5010_v53 = vsub.f32 %v11424_v61, %v5009_v6 }
0x1c0c   :  { %v4884_v1 = vmul.f32 1.442695, %v4883_v5 }
0x1c0d   :  { %v5230_v34 = vpop.xlane.xlu0 %5229 }
0x1c0e   :  { %v5231_v62 = vsub.f32 %v5227_v16, %v5230_v34 }
0x1c11   :  { %v4449_v60 = vpop.permute.xlu0 %4448 }
0x1c12   :  { %v4489_v46 = vadd.f32 %v11388_v20, %v4449_v60  ;;  %v4551_v20 = vmul.f32 1.442695, %v4550_v48  ;;  %v5011_v48 = vmul.f32 1.442695, %v5010_v53  ;;  %v4492_v61 = vadd.f32 %v11392_v2, %v4449_v60 }
0x1c14   :  { %v11433_v50 = vpop.eup %9562  ;;  %v4496_v15 = vpack.c.bf16 %v4489_v46, %v4489_v46  ;;  %9564 = vpow2.f32 %v4551_v20  ;;  %v4773_v46 = vmul.f32 1.442695, %v4772_v17  ;;  %v5232_v20 = vmul.f32 1.442695, %v5231_v62 }
0x1c15   :  { %v5122_v31 = vsel %vm765_vm3, %v11433_v50, 0.0  ;;  %9566 = vpow2.f32 %v4661_v59  ;;  %v4956_v16 = vpack.c.bf16 %v4492_v61, %v4492_v61 }
0x1c16   :  { %4670 = vrot.lane.b32.xlu1 %v4496_v15, %s9710_s7  ;;  %5123 = vadd.xlane.f32.xlu0 %v5122_v31  ;;  %v4564_v8 = vsel %vm4562_vm7, %v4496_v15, 0  ;;  %9568 = vpow2.f32 %v4773_v46  ;;  %v5339_v31 = vsel %vm765_vm3, %v5338_v11, -inf }
0x1c17   :  { %8616 = vmatpush3.bf16.msra.mxu1 %v4564_v8  ;;  %9570 = vpow2.f32 %v4884_v1 }
0x1c18   :  { %8627 = vmatprep.subr.bf16.mxu1 %v9724_v63  ;;  %9572 = vpow2.f32 %v5011_v48 }
0x1c19   :  { %9574 = vpow2.f32 %v5232_v20 }
0x1c1e   :  { %v9565_v8 = vpop.eup %9564 }
0x1c1f   :  { %v4553_v36 = vsel %vm765_vm3, %v9565_v8, 0.0  ;;  %v9567_v22 = vpop.eup %9566 }
0x1c20   :  { %v4663_v44 = vsel %vm765_vm3, %v9567_v22, 0.0  ;;  %v9569_v38 = vpop.eup %9568 }
0x1c21   :  { %v4775_v9 = vsel %vm765_vm3, %v9569_v38, 0.0 }
0x1c2c   :  { %4892 = vrot.lane.b32.xlu0 %v4496_v15, %s9716_s13 }
0x1c3a   :  { %5340 = vmax.xlane.f32.xlu1 %v5339_v31 }
0x1c3e   :  { %4554 = vadd.xlane.f32.xlu1 %v4553_v36  ;;  %v9571_v36 = vpop.eup %9570 }
0x1c3f   :  { %v4886_v59 = vsel %vm765_vm3, %v9571_v36, 0.0  ;;  %v11452_v17 = vpop.eup %9572 }
0x1c40   :  { %v11456_v46 = vpop.eup %9574 }
0x1c41   :  { %v5234_v29 = vsel %vm765_vm3, %v11456_v46, 0.0 }
0x1c42   :  { %4664 = vadd.xlane.f32.xlu1 %v4663_v44 }
0x1c46   :  { %4776 = vadd.xlane.f32.xlu1 %v4775_v9 }
0x1c57   :  { %4781 = vrot.lane.b32.xlu1 %v4496_v15, %s9713_s10  ;;  %v5013_v15 = vsel %vm765_vm3, %v11452_v17, 0.0 }
0x1c7b   :  { %4887 = vadd.xlane.f32.xlu1 %v4886_v59 }
0x1c7f   :  { %5014 = vadd.xlane.f32.xlu1 %v5013_v15 }
0x1c83   :  { %5235 = vadd.xlane.f32.xlu1 %v5234_v29 }
0x1c88   :  { %v4671_v33 = vpop.permute.xlu1 %4670 }
0x1c94   :  { %5129 = vrot.lane.b32.xlu1 %v4956_v16, %s9710_s7 }
0x1c98   :  { %5240 = vrot.lane.b32.xlu1 %v4956_v16, %s9713_s10 }
0x1c9c   :  { %5351 = vrot.lane.b32.xlu1 %v4956_v16, %s9716_s13 }
0x1ca0   :  { %5415 = vrot.lane.b32.xlu1 %v11199_v12, %s9719_s16 }
0x1ca3   :  { %v5124_v29 = vpop.xlane.xlu0 %5123 }
0x1cc7   :  { %v5341_v6 = vpop.xlane.xlu1 %5340 }
0x1cc8   :  { %v5342_v34 = vsub.f32 %v5338_v11, %v5341_v6  ;;  %v4676_v11 = vsel %vm4562_vm7, %v4671_v33, 0  ;;  %v4893_v33 = vpop.permute.xlu0 %4892 }
0x1cca   :  { %v5343_v31 = vmul.f32 1.442695, %v5342_v34  ;;  %v4898_v34 = vsel %vm4562_vm7, %v4893_v33, 0 }
0x1ccb   :  { %v4555_v44 = vpop.xlane.xlu1 %4554 }
0x1ccc   :  { %9576 = vpow2.f32 %v5343_v31 }
0x1ccd   :  { %9578 = vrcp.f32 %v4555_v44 }
0x1ccf   :  { %v4665_v9 = vpop.xlane.xlu1 %4664 }
0x1cd0   :  { %9580 = vrcp.f32 %v4665_v9 }
0x1cd3   :  { %v4777_v60 = vpop.xlane.xlu1 %4776 }
0x1cd4   :  { %9582 = vrcp.f32 %v4777_v60 }
0x1cd6   :  { %v11466_v2 = vpop.eup %9576 }
0x1cd7   :  { %v9579_v5 = vpop.eup %9578  ;;  %v5345_v1 = vsel %vm765_vm3, %v11466_v2, 0.0  ;;  %v4782_v20 = vpop.permute.xlu1 %4781 }
0x1cd8   :  { %5346 = vadd.xlane.f32.xlu0 %v5345_v1  ;;  %v4557_v53 = vmul.f32 %v9579_v5, %v9565_v8  ;;  %v4787_v8 = vsel %vm4562_vm7, %v4782_v20, 0  ;;  %v5023_v1 = vsel %vm4562_vm7, %v4956_v16, 0 }
0x1cda   :  { %v4558_v12 = vpack.c.bf16 %v4557_v53, %v4557_v53  ;;  %v9581_v48 = vpop.eup %9580 }
0x1cdb   :  { %v4667_v62 = vmul.f32 %v9581_v48, %v9567_v22 }
0x1cdc   :  { %8618 = vmatmul.mubr.msk.bf16.vlgmr.msra.gmra.mrb[116].mxu1 %vm765_vm3, %v4558_v12 }
0x1cdd   :  { %8628 = vmatpush3.bf16.msra.mxu1 %v4676_v11  ;;  %8629 = vmatprep.mubr.msk.bf16.mxu1 %vm9727_vm6, %v9724_v63  ;;  %v4668_v59 = vpack.c.bf16 %v4667_v62, %v4667_v62 }
0x1cde   :  { %8639 = vmatprep.subr.bf16.mxu1 %v9724_v63  ;;  %v9583_v15 = vpop.eup %9582 }
0x1cdf   :  { %v4779_v61 = vmul.f32 %v9583_v15, %v9569_v38 }
0x1ce1   :  { %v4780_v6 = vpack.c.bf16 %v4779_v61, %v4779_v61 }
0x1ce4   :  { %8630 = vmatmul.mubr.msk.bf16.vlgmr.msra.gmra.mrb[120].mxu1 %vm765_vm3, %v4668_v59 }
0x1ce5   :  { %8640 = vmatpush3.bf16.msra.mxu1 %v4787_v8  ;;  %8641 = vmatprep.mubr.msk.bf16.mxu1 %vm9727_vm6, %v9724_v63 }
0x1ce6   :  { %8651 = vmatprep.subr.bf16.mxu1 %v9724_v63 }
0x1cec   :  { %8642 = vmatmul.mubr.msk.bf16.vlgmr.msra.gmra.mrb[124].mxu1 %vm765_vm3, %v4780_v6 }
0x1ced   :  { %8652 = vmatpush3.bf16.msra.mxu1 %v4898_v34  ;;  %8653 = vmatprep.mubr.msk.bf16.mxu1 %vm9727_vm6, %v9724_v63 }
0x1cee   :  { %8663 = vmatprep.subr.bf16.mxu1 %v9724_v63 }
0x1d08   :  { %v4888_v22 = vpop.xlane.xlu1 %4887 }
0x1d09   :  { %9584 = vrcp.f32 %v4888_v22 }
0x1d0c   :  { %v5015_v31 = vpop.xlane.xlu1 %5014 }
0x1d0d   :  { %9586 = vrcp.f32 %v5015_v31 }
0x1d0e   :  { %9588 = vrcp.f32 %v5124_v29 }
0x1d10   :  { %v5236_v5 = vpop.xlane.xlu1 %5235 }
0x1d11   :  { %9590 = vrcp.f32 %v5236_v5 }
0x1d13   :  { %v9585_v44 = vpop.eup %9584 }
0x1d14   :  { %v4890_v9 = vmul.f32 %v9585_v44, %v9571_v36  ;;  %v5130_v12 = vpop.permute.xlu1 %5129 }
0x1d15   :  { %v5135_v11 = vsel %vm4562_vm7, %v5130_v12, 0 }
0x1d16   :  { %v4891_v38 = vpack.c.bf16 %v4890_v9, %v4890_v9 }
0x1d17   :  { %v9587_v60 = vpop.eup %9586 }
0x1d18   :  { %8654 = vmatmul.mubr.msk.bf16.vlgmr.msra.gmra.mrb[128].mxu1 %vm765_vm3, %v4891_v38  ;;  %v5017_v53 = vmul.f32 %v9587_v60, %v11452_v17  ;;  %v9589_v36 = vpop.eup %9588  ;;  %v5241_v62 = vpop.permute.xlu1 %5240 }
0x1d19   :  { %8664 = vmatpush3.bf16.msra.mxu1 %v5023_v1  ;;  %8665 = vmatprep.mubr.msk.bf16.mxu1 %vm9727_vm6, %v9724_v63  ;;  %v5126_v16 = vmul.f32 %v9589_v36, %v11433_v50  ;;  %v5246_v17 = vsel %vm4562_vm7, %v5241_v62, 0 }
0x1d1a   :  { %8675 = vmatprep.subr.bf16.mxu1 %v9724_v63  ;;  %v5018_v48 = vpack.c.bf16 %v5017_v53, %v5017_v53 }
0x1d1b   :  { %v5127_v20 = vpack.c.bf16 %v5126_v16, %v5126_v16  ;;  %v9591_v59 = vpop.eup %9590 }
0x1d1c   :  { %v5238_v15 = vmul.f32 %v9591_v59, %v11456_v46  ;;  %v5352_v29 = vpop.permute.xlu1 %5351 }
0x1d1d   :  { %v5357_v61 = vsel %vm4562_vm7, %v5352_v29, 0 }
0x1d1e   :  { %v5239_v8 = vpack.c.bf16 %v5238_v15, %v5238_v15 }
0x1d20   :  { %8666 = vmatmul.mubr.msk.bf16.vlgmr.msra.gmra.mrb[132].mxu1 %vm765_vm3, %v5018_v48 }
0x1d21   :  { %8676 = vmatpush3.bf16.msra.mxu1 %v5135_v11  ;;  %8677 = vmatprep.mubr.msk.bf16.mxu1 %vm9727_vm6, %v9724_v63 }
0x1d22   :  { %8687 = vmatprep.subr.bf16.mxu1 %v9724_v63 }
0x1d28   :  { %8678 = vmatmul.mubr.msk.bf16.vlgmr.msra.gmra.mrb[136].mxu1 %vm765_vm3, %v5127_v20  ;;  %v5416_v20 = vpop.permute.xlu1 %5415 }
0x1d29   :  { %8688 = vmatpush3.bf16.msra.mxu1 %v5246_v17  ;;  %8689 = vmatprep.mubr.msk.bf16.mxu1 %vm9727_vm6, %v9724_v63 }
0x1d2a   :  { %8699 = vmatprep.subr.bf16.mxu1 %v9724_v63  ;;  %8706 = vmatpush3.bf16.msra.mxu0 %v5416_v20  ;;  %v9685_v20 = vld [vmem:[%s11195_s1 + $0x8] sm:$0xff]   ;;  %s9745_s1 = smov 31  }
0x1d2b   :  { %8707 = vmatprep.subr.bf16.mxu0 %v9724_v63  ;;  %s7606_s14 = sld [smem:[%s12502_s0 + %s9745_s1]]  }
0x1d30   :  { %8690 = vmatmul.mubr.msk.bf16.vlgmr.msra.gmra.mrb[140].mxu1 %vm765_vm3, %v5239_v8 }
0x1d31   :  { %8700 = vmatpush3.bf16.msra.mxu1 %v5357_v61  ;;  %8701 = vmatprep.mubr.msk.bf16.mxu1 %vm9727_vm6, %v9724_v63 }
0x1d32   :  { %8713 = vmatprep.subr.bf16.mxu1 %v9724_v63 }
0x1d65   :  { %v5347_v50 = vpop.xlane.xlu0 %5346 }
0x1d66   :  { %9592 = vrcp.f32 %v5347_v50 }
0x1d70   :  { %v9593_v33 = vpop.eup %9592 }
0x1d71   :  { %v5349_v6 = vmul.f32 %v9593_v33, %v11466_v2 }
0x1d73   :  { %v5350_v34 = vpack.c.bf16 %v5349_v6, %v5349_v6 }
0x1d75   :  { %8702 = vmatmul.mubr.msk.bf16.vlgmr.msra.gmra.mrb[144].mxu1 %vm765_vm3, %v5350_v34 }
0x1d76   :  { %8717 = vmatprep.mubr.msk.bf16.mxu1 %vm9727_vm6, %v9724_v63 }
0x1daf   :  { %v11512_v46 = vpop.f32.mrb[116].mxu1 }
0x1db0   :  { %v8619_v22 = vpop.f32.mrb[117].mxu1 }
0x1db1   :  { %v4603_v31 = vpop.f32.mrb[118].mxu1 }
0x1db2   :  { %v8620_v44 = vpop.f32.mrb[119].mxu1 }
0x1db7   :  { %v4712_v9 = vpop.f32.mrb[120].mxu1 }
0x1db8   :  { %v8631_v38 = vpop.f32.mrb[121].mxu1 }
0x1db9   :  { %v4715_v60 = vpop.f32.mrb[122].mxu1  ;;  %v11522_v38 = vld [vmem:[%s7587_s3] ss:$0 sm:$0xff]  ;;  %s7599_s3 = sld [smem:[%s12502_s0 + %s9720_s17]]  }
0x1dba   :  { %v8632_v5 = vpop.f32.mrb[123].mxu1  ;;  %v4049_v60 = vadd.f32 %v11332_v58, %v11522_v38 }
0x1dbf   :  { %v4823_v1 = vpop.f32.mrb[124].mxu1 }
0x1dc0   :  { %v8643_v53 = vpop.f32.mrb[125].mxu1 }
0x1dc1   :  { %v4826_v12 = vpop.f32.mrb[126].mxu1  ;;  %v4057_v53 = vadd.f32 %v11522_v38, %v11342_v0 }
0x1dc2   :  { %v8644_v48 = vpop.f32.mrb[127].mxu1 }
0x1dc3   :  { %v11541_v48 = vadd.f32 %v4057_v53, %v11173_v18 }
0x1dc5   :  { %v4131_v58 = vsel %vm534_vm2, %v11541_v48, 0.0 }
0x1deb   :  { %v4934_v2 = vpop.f32.mrb[128].mxu1 }
0x1dec   :  { %v8655_v36 = vpop.f32.mrb[129].mxu1 }
0x1ded   :  { %v4937_v11 = vpop.f32.mrb[130].mxu1 }
0x1dee   :  { %v8656_v16 = vpop.f32.mrb[131].mxu1 }
0x1df3   :  { %v11514_v62 = vpop.f32.mrb[132].mxu1 }
0x1df4   :  { %v8667_v59 = vpop.f32.mrb[133].mxu1 }
0x1df5   :  { %v5062_v17 = vpop.f32.mrb[134].mxu1 }
0x1df6   :  { %v8668_v15 = vpop.f32.mrb[135].mxu1  ;;  %v4052_v17 = vadd.f32 %v11336_v45, %v11522_v38 }
0x1df7   :  { %v4060_v15 = vadd.f32 %v11522_v38, %v11346_v57 }
0x1dfb   :  { %v5171_v29 = vpop.f32.mrb[136].mxu1 }
0x1dfc   :  { %v9211_v8 = vpack.i.bf16 %v5171_v29, %v4712_v9  ;;  %v8679_v61 = vpop.f32.mrb[137].mxu1  ;;  %v4044_v9 = vadd.f32 %v11522_v38, %v11338_v49  ;;  %v4065_v49 = vadd.f32 %v11340_v10, %v11522_v38 }
0x1dfd   :  { %v5174_v50 = vpop.f32.mrb[138].mxu1 }
0x1dfe   :  { %9212 = vrot.lane.b32.xlu0 %v9211_v8, %s9706_s30  ;;  %v8680_v33 = vpop.f32.mrb[139].mxu1  ;;  %v11529_v5 = vadd.f32 %v4044_v9, %v11152_v41  ;;  %v4068_v8 = vadd.f32 %v11344_v47, %v11522_v38 }
0x1e00   :  { %v4122_v12 = vsel %vm534_vm2, %v11529_v5, 0.0 }
0x1e03   :  { %v5282_v6 = vpop.f32.mrb[140].mxu1 }
0x1e04   :  { %v9216_v34 = vpack.i.bf16 %v5282_v6, %v4823_v1  ;;  %v8691_v22 = vpop.f32.mrb[141].mxu1  ;;  %v11532_v1 = vadd.f32 %v4049_v60, %v11159_v43  ;;  %v11546_v43 = vadd.f32 %v4065_v49, %v11185_v3  ;;  %v4041_v3 = vadd.f32 %v11522_v38, %v11334_v24 }
0x1e05   :  { %v5285_v31 = vpop.f32.mrb[142].mxu1 }
0x1e06   :  { %9217 = vrot.lane.b32.xlu1 %v9216_v34, %s9718_s15  ;;  %v8692_v44 = vpop.f32.mrb[143].mxu1  ;;  %v4125_v41 = vsel %vm534_vm2, %v11532_v1, 0.0  ;;  %v4137_v0 = vsel %vm534_vm2, %v11546_v43, 0.0  ;;  %v4103_v59 = vadd.f32 %v4041_v3, %v11149_v28  ;;  %v11573_v28 = vadd.f32 %v4068_v8, %v11188_v30 }
0x1e08   :  { %v4119_v29 = vsel %vm534_vm2, %v4103_v59, 0.0  ;;  %v4140_v45 = vsel %vm534_vm2, %v11573_v28, 0.0 }
0x1e1d   :  { %4123 = vadd.xlane.f32.xlu0 %v4122_v12 }
0x1e21   :  { %4126 = vadd.xlane.f32.xlu0 %v4125_v41 }
0x1e25   :  { %4132 = vadd.xlane.f32.xlu0 %v4131_v58 }
0x1e29   :  { %4138 = vadd.xlane.f32.xlu0 %v4137_v0 }
0x1e48   :  { %v5393_v36 = vpop.f32.mrb[144].mxu1 }
0x1e49   :  { %v9221_v10 = vpack.i.bf16 %v5393_v36, %v4934_v2  ;;  %v8703_v11 = vpop.f32.mrb[145].mxu1  ;;  %v4106_v2 = vadd.f32 %v4052_v17, %v11162_v32 }
0x1e4a   :  { %v5396_v18 = vpop.f32.mrb[146].mxu1 }
0x1e4b   :  { %9222 = vrot.lane.b32.xlu1 %v9221_v10, %s9720_s17  ;;  %v8704_v16 = vpop.f32.mrb[147].mxu1  ;;  %v4128_v24 = vsel %vm534_vm2, %v4106_v2, 0.0 }
0x1e4f   :  { %5417 = vrot.lane.b32.xlu1 %v9685_v20, %s9719_s16 }
0x1e53   :  { %5421 = vrot.lane.b32.xlu1 %v11310_v25, %s9719_s16  ;;  %v11569_v25 = vadd.f32 %v4060_v15, %v11176_v40 }
0x1e55   :  { %v4134_v32 = vsel %vm534_vm2, %v11569_v25, 0.0 }
0x1e70   :  { %v9213_v57 = vpop.permute.xlu0 %9212 }
0x1e71   :  { %v9215_v47 = vunpack.i.h.bf16 %v9213_v57  ;;  %v9214_v50 = vunpack.i.l.bf16 %v9213_v57 }
0x1e73   :  { %v5411_v34 = vsel %vm765_vm3, %v11514_v62, %v9215_v47  ;;  %v4952_v30 = vsel %vm765_vm3, %v11512_v46, %v9214_v50  ;;  %v11595_v46 = vld [vmem:[%s11592_s11] sm:$0xff]  }
0x1e74   :  { %8714 = vmatpush3.bf16.msra.mxu1 %v11595_v46 }
0x1e75   :  { %8715 = vmatprep.subr.bf16.mxu1 %v9724_v63 }
0x1e77   :  { %4120 = vadd.xlane.f32.xlu1 %v4119_v29 }
0x1e78   :  { %v9218_v61 = vpop.permute.xlu1 %9217 }
0x1e79   :  { %v9220_v40 = vunpack.i.h.bf16 %v9218_v61  ;;  %v9219_v33 = vunpack.i.l.bf16 %v9218_v61 }
0x1e7b   :  { %4129 = vadd.xlane.f32.xlu1 %v4128_v24  ;;  %v5412_v44 = vsel %vm2034_vm4, %v5411_v34, %v9220_v40  ;;  %v4953_v9 = vsel %vm2034_vm4, %v4952_v30, %v9219_v33 }
0x1e7f   :  { %4135 = vadd.xlane.f32.xlu1 %v4134_v32 }
0x1e83   :  { %4141 = vadd.xlane.f32.xlu1 %v4140_v45 }
0x1eaa   :  { %v4124_v41 = vpop.xlane.xlu0 %4123 }
0x1eab   :  { %v4168_v11 = vmul.f32 0.03125, %v4124_v41 }
0x1ead   :  { %v11602_v15 = vsub.f32 %v11529_v5, %v4168_v11  ;;  %v11656_v11 = vld [vmem:[%s11592_s11 + $0x8] sm:$0xff]  }
0x1eae   :  { %v4127_v0 = vpop.xlane.xlu0 %4126  ;;  %8716 = vmatpush3.bf16.msra.mxu1 %v11656_v11 }
0x1eaf   :  { %v4169_v18 = vmul.f32 0.03125, %v4127_v0 }
0x1eb1   :  { %v11607_v32 = vsub.f32 %v11532_v1, %v4169_v18  ;;  %v4073_v18 = vadd.f32 %v11522_v38, %v11394_v54  ;;  %v4089_v54 = vadd.f32 %v11522_v38, %v11402_v21 }
0x1eb2   :  { %v4133_v16 = vpop.xlane.xlu0 %4132 }
0x1eb3   :  { %v4171_v57 = vmul.f32 0.03125, %v4133_v16  ;;  %v4081_v16 = vadd.f32 %v11390_v27, %v11522_v38  ;;  %v11683_v27 = vadd.f32 %v4089_v54, %v11245_v23  ;;  %v11700_v23 = vld [vmem:[%s11697_s21] ss:$0 sm:$0xff] }
0x1eb4   :  { %v9686_v54 = vld [vmem:[%s11122_s26] sm:$0xf] }
0x1eb5   :  { %v11622_v30 = vsub.f32 %v11541_v48, %v4171_v57  ;;  %v4155_v21 = vsel %vm534_vm2, %v11683_v27, 0.0 }
0x1eb6   :  { %v4139_v5 = vpop.xlane.xlu0 %4138 }
0x1ebd   :  { %v9223_v6 = vpop.permute.xlu1 %9222 }
0x1ebe   :  { %v9225_v22 = vunpack.i.h.bf16 %v9223_v6  ;;  %v9224_v31 = vunpack.i.l.bf16 %v9223_v6  ;;  %v4200_v6 = vmul.f32 %v11602_v15, %v11602_v15 }
0x1ec0   :  { %v4954_v60 = vsel %vm2043_vm5, %v4953_v9, %v9224_v31  ;;  %v5413_v53 = vsel %vm2043_vm5, %v5412_v44, %v9225_v22  ;;  %v4173_v22 = vmul.f32 0.03125, %v4139_v5  ;;  %v4201_v44 = vmul.f32 %v11607_v32, %v11607_v32 }
0x1ec1   :  { %v5414_v12 = vpack.c.bf16 %v5413_v53, %v4954_v60  ;;  %v5418_v49 = vpop.permute.xlu1 %5417  ;;  %v4218_v60 = vsel %vm534_vm2, %v4200_v6, 0.0 }
0x1ec2   :  { %8708 = vmatpush3.bf16.msra.mxu0 %v5418_v49  ;;  %v11634_v48 = vsub.f32 %v11546_v43, %v4173_v22  ;;  %v4203_v49 = vmul.f32 %v11622_v30, %v11622_v30 }
0x1ec4   :  { %v4205_v43 = vmul.f32 %v11634_v48, %v11634_v48 }
0x1ec5   :  { %8710 = vmatmul.mubr.msk.bf16.vlgmr.msra.gmra.mrb[156].mxu0 %vm534_vm2, %v5414_v12  ;;  %v5422_v62 = vpop.permute.xlu1 %5421  ;;  %v4221_v12 = vsel %vm534_vm2, %v4201_v44, 0.0 }
0x1f04   :  { %v4121_v58 = vpop.xlane.xlu1 %4120 }
0x1f05   :  { %v4167_v10 = vmul.f32 0.03125, %v4121_v58  ;;  %v4227_v58 = vsel %vm534_vm2, %v4203_v49, 0.0 }
0x1f07   :  { %v11599_v20 = vsub.f32 %v4103_v59, %v4167_v10 }
0x1f08   :  { %v4130_v36 = vpop.xlane.xlu1 %4129 }
0x1f09   :  { %v4170_v29 = vmul.f32 0.03125, %v4130_v36  ;;  %v4199_v50 = vmul.f32 %v11599_v20, %v11599_v20 }
0x1f0b   :  { %v11615_v40 = vsub.f32 %v4106_v2, %v4170_v29  ;;  %v4215_v31 = vsel %vm534_vm2, %v4199_v50, 0.0  ;;  %v4084_v29 = vadd.f32 %v11396_v37, %v11522_v38 }
0x1f0c   :  { %v4136_v3 = vpop.xlane.xlu1 %4135 }
0x1f0d   :  { %v4172_v33 = vmul.f32 0.03125, %v4136_v3  ;;  %v4202_v53 = vmul.f32 %v11615_v40, %v11615_v40  ;;  %v11664_v3 = vadd.f32 %v4073_v18, %v11219_v26 }
0x1f0f   :  { %v11628_v2 = vsub.f32 %v11569_v25, %v4172_v33 }
0x1f10   :  { %v4142_v34 = vpop.xlane.xlu1 %4141 }
0x1f11   :  { %v4174_v9 = vmul.f32 0.03125, %v4142_v34  ;;  %v4204_v41 = vmul.f32 %v11628_v2, %v11628_v2 }
0x1f13   :  { %v11640_v25 = vsub.f32 %v11573_v28, %v4174_v9  ;;  %v4230_v0 = vsel %vm534_vm2, %v4204_v41, 0.0  ;;  %v4233_v28 = vsel %vm534_vm2, %v4205_v43, 0.0 }
0x1f15   :  { %v4206_v36 = vmul.f32 %v11640_v25, %v11640_v25 }
0x1f17   :  { %v4236_v10 = vsel %vm534_vm2, %v4206_v36, 0.0 }
0x1f98   :  { %v5461_v17 = vpop.f32.mrb[156].mxu0 }
0x1f99   :  { %v11604_v8 = vadd.f32 %v5461_v17, %v5422_v62  ;;  %v8711_v24 = vpop.f32.mrb[157].mxu0  ;;  %v11667_v17 = vadd.f32 %v4081_v16, %v11232_v35  ;;  %v4097_v35 = vadd.f32 %v11400_v13, %v11522_v38  ;;  %v4349_v16 = vsub.s32 3, %v11128_v55 }
0x1f9a   :  { %v5464_v45 = vpop.f32.mrb[158].mxu0  ;;  %v4143_v24 = vsel %vm534_vm2, %v11664_v3, 0.0 }
0x1f9b   :  { %v11609_v61 = vadd.f32 %v5464_v45, %v5422_v62  ;;  %v8712_v47 = vpop.f32.mrb[159].mxu0  ;;  %v5470_v59 = vsel %vm534_vm2, %v11604_v8, 0.0  ;;  %v4224_v62 = vsel %vm534_vm2, %v4202_v53, 0.0  ;;  %v11674_v45 = vadd.f32 %v4084_v29, %v11235_v4 }
0x1f9c   :  { %5471 = vadd.xlane.f32.xlu0 %v5470_v59  ;;  %v4149_v26 = vsel %vm534_vm2, %v11667_v17, 0.0  ;;  %v11688_v4 = vadd.f32 %v4097_v35, %v11262_v14 }
0x1f9d   :  { %v5473_v1 = vsel %vm534_vm2, %v11609_v61, 0.0  ;;  %v4152_v37 = vsel %vm534_vm2, %v11674_v45, 0.0 }
0x1f9e   :  { %5474 = vadd.xlane.f32.xlu1 %v5473_v1  ;;  %v4161_v57 = vsel %vm534_vm2, %v11688_v4, 0.0 }
0x1fa0   :  { %4216 = vadd.xlane.f32.xlu0 %v4215_v31 }
0x1fa2   :  { %4219 = vadd.xlane.f32.xlu1 %v4218_v60 }
0x1fa4   :  { %4222 = vadd.xlane.f32.xlu0 %v4221_v12 }
0x1fa6   :  { %4225 = vadd.xlane.f32.xlu1 %v4224_v62 }
0x1fa8   :  { %4228 = vadd.xlane.f32.xlu0 %v4227_v58 }
0x1faa   :  { %4231 = vadd.xlane.f32.xlu1 %v4230_v0  ;;  %v4329_v0 = vsub.s32 2, %v11128_v55 }
0x1fac   :  { %4234 = vadd.xlane.f32.xlu0 %v4233_v28 }
0x1fae   :  { %4237 = vadd.xlane.f32.xlu1 %v4236_v10 }
0x1fc2   :  { %5597 = vrot.lane.b32.xlu0 %v11595_v46, %s9707_s4 }
0x1fe1   :  { %4144 = vadd.xlane.f32.xlu0 %v4143_v24 }
0x1fe5   :  { %4150 = vadd.xlane.f32.xlu0 %v4149_v26  ;;  %v11721_v26 = vrot.slane %v9686_v54, %v4329_v0 }
0x1fe9   :  { %4153 = vadd.xlane.f32.xlu0 %v4152_v37 }
0x1fed   :  { %4156 = vadd.xlane.f32.xlu0 %v4155_v21 }
0x1ff1   :  { %4162 = vadd.xlane.f32.xlu0 %v4161_v57 }
0x2007   :  { %5603 = vrot.lane.b32.xlu0 %v11700_v23, %s9707_s4 }
0x2029   :  { %v5472_v14 = vpop.xlane.xlu0 %5471 }
0x202a   :  { %v5476_v13 = vmul.f32 0.03125, %v5472_v14 }
0x202b   :  { %v5475_v47 = vpop.xlane.xlu1 %5474 }
0x202c   :  { %v11705_v59 = vsub.f32 %v11604_v8, %v5476_v13  ;;  %v5477_v50 = vmul.f32 0.03125, %v5475_v47  ;;  %v11726_v13 = vrot.slane %v9686_v54, %v4349_v16 }
0x202d   :  { %v4217_v5 = vpop.xlane.xlu0 %4216 }
0x202e   :  { %v11708_v33 = vsub.f32 %v11609_v61, %v5477_v50  ;;  %v4263_v1 = vmul.f32 0.03125, %v4217_v5  ;;  %v5480_v6 = vmul.f32 %v11705_v59, %v11705_v59 }
0x202f   :  { %v4220_v34 = vpop.xlane.xlu1 %4219 }
0x2030   :  { %v4279_v22 = vadd.f32 1e-05, %v4263_v1  ;;  %v4264_v31 = vmul.f32 0.03125, %v4220_v34  ;;  %v5482_v44 = vsel %vm534_vm2, %v5480_v6, 0.0  ;;  %v5481_v9 = vmul.f32 %v11708_v33, %v11708_v33 }
0x2031   :  { %v4223_v60 = vpop.xlane.xlu0 %4222  ;;  %5483 = vadd.xlane.f32.xlu1 %v5482_v44 }
0x2032   :  { %9594 = vrsqrt.f32 %v4279_v22  ;;  %v4280_v8 = vadd.f32 1e-05, %v4264_v31  ;;  %v4265_v53 = vmul.f32 0.03125, %v4223_v60  ;;  %v5485_v62 = vsel %vm534_vm2, %v5481_v9, 0.0 }
0x2033   :  { %v4226_v12 = vpop.xlane.xlu1 %4225 }
0x2034   :  { %9596 = vrsqrt.f32 %v4280_v8  ;;  %v4281_v61 = vadd.f32 1e-05, %v4265_v53  ;;  %v4266_v49 = vmul.f32 0.03125, %v4226_v12 }
0x2035   :  { %v4229_v41 = vpop.xlane.xlu0 %4228  ;;  %5486 = vadd.xlane.f32.xlu1 %v5485_v62 }
0x2036   :  { %9598 = vrsqrt.f32 %v4281_v61  ;;  %v4282_v58 = vadd.f32 1e-05, %v4266_v49  ;;  %v4267_v43 = vmul.f32 0.03125, %v4229_v41  ;;  %v11743_v61 = vld [vmem:[%s9812_s25] sm:$0xff]  ;;  %v11748_v49 = vld [vmem:[%s9812_s25 + $0x8] sm:$0xff] }
0x2037   :  { %v4232_v36 = vpop.xlane.xlu1 %4231 }
0x2038   :  { %9600 = vrsqrt.f32 %v4282_v58  ;;  %v4283_v28 = vadd.f32 1e-05, %v4267_v43  ;;  %v4268_v10 = vmul.f32 0.03125, %v4232_v36 }
0x2039   :  { %v4235_v18 = vpop.xlane.xlu0 %4234 }
0x203a   :  { %9602 = vrsqrt.f32 %v4283_v28  ;;  %v4284_v29 = vadd.f32 1e-05, %v4268_v10  ;;  %v4269_v24 = vmul.f32 0.03125, %v4235_v18 }
0x203b   :  { %v4238_v35 = vpop.xlane.xlu1 %4237 }
0x203c   :  { %v9595_v37 = vpop.eup %9594  ;;  %9604 = vrsqrt.f32 %v4284_v29  ;;  %v4285_v21 = vadd.f32 1e-05, %v4269_v24  ;;  %v4270_v57 = vmul.f32 0.03125, %v4238_v35 }
0x203d   :  { %v4311_v14 = vmul.f32 %v9595_v37, %v11599_v20  ;;  %v5598_v47 = vpop.permute.xlu0 %5597 }
0x203e   :  { %v9597_v50 = vpop.eup %9596  ;;  %9606 = vrsqrt.f32 %v4285_v21  ;;  %v4286_v5 = vadd.f32 1e-05, %v4270_v57  ;;  %8721 = vmatprep.subr.bf16.mxu0 %v5598_v47 }
0x203f   :  { %v4312_v1 = vmul.f32 %v9597_v50, %v11602_v15  ;;  %v4331_v6 = vmul.f32 %v11721_v26, %v4311_v14  ;;  %8722 = vmatpush3.bf16.msra.mxu0 %v5598_v47  ;;  %v4076_v50 = vadd.f32 %v11522_v38, %v11398_v42 }
0x2040   :  { %v9599_v34 = vpop.eup %9598  ;;  %9608 = vrsqrt.f32 %v4286_v5 }
0x2041   :  { %v4313_v20 = vmul.f32 %v9599_v34, %v11607_v32  ;;  %v4332_v22 = vmul.f32 %v11721_v26, %v4312_v1  ;;  %v11733_v31 = vadd.f32 %v11726_v13, %v4331_v6  ;;  %v11791_v5 = vadd.f32 %v4076_v50, %v11222_v7  ;;  %v11844_v50 = vld [vmem:[%s9812_s25 + $0x20] sm:$0xff] }
0x2042   :  { %v9601_v44 = vpop.eup %9600  ;;  %v4092_v1 = vadd.f32 %v11522_v38, %v11406_v52  ;;  %v4100_v6 = vadd.f32 %v11404_v39, %v11522_v38 }
0x2043   :  { %v4333_v9 = vmul.f32 %v11721_v26, %v4313_v20  ;;  %v4314_v60 = vmul.f32 %v9601_v44, %v11615_v40  ;;  %v11738_v15 = vadd.f32 %v11726_v13, %v4332_v22  ;;  %v5573_v32 = vadd.f32 %v11743_v61, %v11733_v31 }
0x2044   :  { %v9603_v8 = vpop.eup %9602  ;;  %v11798_v34 = vadd.f32 %v4092_v1, %v11248_v19  ;;  %v4146_v20 = vsel %vm534_vm2, %v11791_v5, 0.0  ;;  %v11803_v22 = vadd.f32 %v4100_v6, %v11265_v51 }
0x2045   :  { %v4334_v53 = vmul.f32 %v11721_v26, %v4314_v60  ;;  %v4315_v12 = vmul.f32 %v9603_v8, %v11622_v30  ;;  %v5574_v62 = vadd.f32 %v11748_v49, %v11738_v15  ;;  %v5727_v40 = vpack.c.bf16 %v11738_v15, %v11733_v31 }
0x2046   :  { %v9605_v41 = vpop.eup %9604  ;;  %5599 = vrot.lane.b32.xlu1 %v11656_v11, %s9707_s4  ;;  %v11758_v43 = vadd.f32 %v11726_v13, %v4333_v9  ;;  %v4158_v7 = vsel %vm534_vm2, %v11798_v34, 0.0  ;;  %v4164_v19 = vsel %vm534_vm2, %v11803_v22, 0.0  ;;  %s9733_s4 = smov 22  }
0x2047   :  { %v4316_v58 = vmul.f32 %v9605_v41, %v11628_v2  ;;  %v5589_v30 = vpack.c.bf16 %v5574_v62, %v5573_v32  ;;  %v11761_v36 = vadd.f32 %v11726_v13, %v4334_v53  ;;  %v4335_v10 = vmul.f32 %v11721_v26, %v4315_v12  ;;  %s11826_s23 = sld [smem:[%s12502_s0 + %s9733_s4]]  }
0x2048   :  { %v9607_v28 = vpop.eup %9606 }
0x2049   :  { %v4317_v18 = vmul.f32 %v9607_v28, %v11634_v48  ;;  %8725 = vmatprep.mubr.msk.bf16.mxu0 %vm534_vm2, %v5589_v30  ;;  %v4336_v29 = vmul.f32 %v11721_v26, %v4316_v58  ;;  %v5728_v24 = vpack.c.bf16 %v11761_v36, %v11758_v43  ;;  %v11771_v35 = vadd.f32 %v11726_v13, %v4335_v10  ;;  %v11829_v10 = vld [vmem:[%s9812_s25 + $0x18] sm:$0xff] }
0x204a   :  { %v9609_v2 = vpop.eup %9608 }
0x204b   :  { %v4318_v54 = vmul.f32 %v9609_v2, %v11640_v25  ;;  %v11774_v37 = vadd.f32 %v11726_v13, %v4336_v29  ;;  %v4337_v21 = vmul.f32 %v11721_v26, %v4317_v18  ;;  %v5576_v18 = vadd.f32 %v11829_v10, %v11761_v36  ;;  %v11834_v2 = vld [vmem:[%s9812_s25 + $0x28] sm:$0xff] }
0x204c   :  { %v5577_v1 = vadd.f32 %v11844_v50, %v11771_v35 }
0x204d   :  { %v4338_v48 = vmul.f32 %v11721_v26, %v4318_v54  ;;  %v5729_v57 = vpack.c.bf16 %v11774_v37, %v11771_v35  ;;  %v11781_v14 = vadd.f32 %v11726_v13, %v4337_v21  ;;  %v5578_v54 = vadd.f32 %v11834_v2, %v11774_v37  ;;  %v11839_v21 = vld [vmem:[%s9812_s25 + $0x10] sm:$0xff]  ;;  %v4377_v6 = vld [vmem:[%s11826_s23] sm:$0xff] }
0x204f   :  { %v11784_v47 = vadd.f32 %v11726_v13, %v4338_v48  ;;  %v5575_v48 = vadd.f32 %v11839_v21, %v11758_v43 }
0x2051   :  { %v5730_v25 = vpack.c.bf16 %v11784_v47, %v11781_v14 }
0x206a   :  { %4147 = vadd.xlane.f32.xlu1 %v4146_v20  ;;  %v5590_v20 = vpack.c.bf16 %v5576_v18, %v5575_v48 }
0x206e   :  { %v4145_v42 = vpop.xlane.xlu0 %4144  ;;  %4159 = vadd.xlane.f32.xlu1 %v4158_v7  ;;  %v5591_v7 = vpack.c.bf16 %v5578_v54, %v5577_v1 }
0x206f   :  { %v4175_v44 = vmul.f32 0.03125, %v4145_v42  ;;  %v5499_v42 = vrot.slane %v4377_v6, %v3729_v56 }
0x2071   :  { %v11808_v52 = vsub.f32 %v11664_v3, %v4175_v44 }
0x2072   :  { %v4151_v39 = vpop.xlane.xlu0 %4150  ;;  %4165 = vadd.xlane.f32.xlu1 %v4164_v19  ;;  %v11855_v19 = vld [vmem:[%s9812_s25 + $0x38] sm:$0xff] }
0x2073   :  { %v4207_v38 = vmul.f32 %v11808_v52, %v11808_v52 }
0x2075   :  { %v4239_v51 = vsel %vm534_vm2, %v4207_v38, 0.0  ;;  %v5580_v38 = vadd.f32 %v11855_v19, %v11784_v47 }
0x2076   :  { %v4154_v9 = vpop.xlane.xlu0 %4153  ;;  %4240 = vadd.xlane.f32.xlu1 %v4239_v51 }
0x207a   :  { %v11815_v60 = vpop.xlane.xlu0 %4156 }
0x207e   :  { %v4163_v8 = vpop.xlane.xlu0 %4162 }
0x207f   :  { %v4181_v53 = vmul.f32 0.03125, %v4163_v8  ;;  %v11861_v8 = vld [vmem:[%s9812_s25 + $0x30] sm:$0xff]  ;;  %s9734_s25 = smov 18  }
0x2081   :  { %v11818_v3 = vsub.f32 %v11688_v4, %v4181_v53  ;;  %v5579_v53 = vadd.f32 %v11861_v8, %v11781_v14 }
0x2083   :  { %v4213_v12 = vmul.f32 %v11818_v3, %v11818_v3 }
0x2085   :  { %v4257_v32 = vsel %vm534_vm2, %v4213_v12, 0.0 }
0x2086   :  { %4258 = vadd.xlane.f32.xlu0 %v4257_v32  ;;  %v12620_v32 = vsub.s32 1, %v11128_v55 }
0x2088   :  { %v5505_v56 = vrot.slane %v4377_v6, %v12620_v32 }
0x20be   :  { %v5484_v62 = vpop.xlane.xlu1 %5483 }
0x20bf   :  { %v5488_v41 = vmul.f32 0.03125, %v5484_v62 }
0x20c1   :  { %v5490_v58 = vadd.f32 1e-05, %v5488_v41  ;;  %v5592_v41 = vpack.c.bf16 %v5580_v38, %v5579_v53 }
0x20c2   :  { %v5487_v4 = vpop.xlane.xlu1 %5486 }
0x20c3   :  { %9610 = vrsqrt.f32 %v5490_v58  ;;  %v5489_v30 = vmul.f32 0.03125, %v5487_v4 }
0x20c5   :  { %v5491_v28 = vadd.f32 1e-05, %v5489_v30 }
0x20c6   :  { %v5600_v29 = vpop.permute.xlu1 %5599 }
0x20c7   :  { %9612 = vrsqrt.f32 %v5491_v28  ;;  %8723 = vmatprep.subr.bf16.mxu0 %v5600_v29 }
0x20c8   :  { %8724 = vmatpush3.bf16.msra.mxu0 %v5600_v29 }
0x20c9   :  { %8761 = vmatprep.subr.bf16.mxu0 %v9724_v63 }
0x20cb   :  { %8726 = vmatmul.mubr.msk.bf16.vlgmr.msra.gmra.mrb[160].mxu0 %vm534_vm2, %v5590_v20  ;;  %v4178_v20 = vmul.f32 0.03125, %v4154_v9 }
0x20cc   :  { %8729 = vmatprep.mubr.msk.bf16.mxu0 %vm534_vm2, %v5591_v7 }
0x20cd   :  { %v9611_v44 = vpop.eup %9610  ;;  %v11886_v38 = vsub.f32 %v11674_v45, %v4178_v20 }
0x20ce   :  { %v5494_v51 = vmul.f32 %v9611_v44, %v11705_v59  ;;  %v9695_v59 = vld [vmem:[%s11255_s20] sm:$0xff]  ;;  %s9736_s20 = smov 19  }
0x20cf   :  { %s7594_s28 = sld [smem:[%s12502_s0 + %s9736_s20]]  }
0x20d0   :  { %v5500_v12 = vmul.f32 %v5499_v42, %v5494_v51  ;;  %v4179_v51 = vmul.f32 0.03125, %v11815_v60 }
0x20d1   :  { %v9613_v62 = vpop.eup %9612 }
0x20d2   :  { %v5495_v58 = vmul.f32 %v9613_v62, %v11708_v33  ;;  %v11869_v30 = vadd.f32 %v5505_v56, %v5500_v12  ;;  %v4177_v33 = vmul.f32 0.03125, %v4151_v39 }
0x20d3   :  { %8730 = vmatmul.mubr.msk.bf16.gmra.mrb[164].mxu0 %vm534_vm2, %v5592_v41 }
0x20d4   :  { %v5501_v4 = vmul.f32 %v5499_v42, %v5495_v58  ;;  %v5508_v18 = vadd.f32 %v9695_v59, %v11869_v30  ;;  %v11882_v6 = vsub.f32 %v11667_v17, %v4177_v33 }
0x20d6   :  { %v11871_v28 = vadd.f32 %v5505_v56, %v5501_v4  ;;  %v4209_v15 = vmul.f32 %v11882_v6, %v11882_v6 }
0x20d8   :  { %v5509_v29 = vadd.f32 %v9695_v59, %v11871_v28  ;;  %v4245_v39 = vsel %vm534_vm2, %v4209_v15, 0.0 }
0x20da   :  { %v5510_v54 = vpack.c.bf16 %v5509_v29, %v5508_v18 }
0x20dc   :  { %8718 = vmatmul.mubr.msk.bf16.vlgmr.msra.gmra.mrb[148].mxu1 %vm534_vm2, %v5510_v54 }
0x20dd   :  { %8745 = vmatprep.mubr.msk.bf16.mxu1 %vm534_vm2, %v5727_v40  ;;  %v11893_v40 = vsub.f32 %v11683_v27, %v4179_v51 }
0x20df   :  { %v4211_v12 = vmul.f32 %v11893_v40, %v11893_v40 }
0x20e1   :  { %v4251_v32 = vsel %vm534_vm2, %v4211_v12, 0.0 }
0x20f7   :  { %v4148_v48 = vpop.xlane.xlu1 %4147 }
0x20f8   :  { %v4176_v1 = vmul.f32 0.03125, %v4148_v48 }
0x20fa   :  { %v4192_v7 = vsub.f32 %v11791_v5, %v4176_v1  ;;  %v4210_v5 = vmul.f32 %v11886_v38, %v11886_v38 }
0x20fb   :  { %v4160_v44 = vpop.xlane.xlu1 %4159 }
0x20fc   :  { %v4208_v42 = vmul.f32 %v4192_v7, %v4192_v7  ;;  %v4180_v17 = vmul.f32 0.03125, %v4160_v44  ;;  %v4248_v53 = vsel %vm534_vm2, %v4210_v5, 0.0 }
0x20fe   :  { %v4242_v31 = vsel %vm534_vm2, %v4208_v42, 0.0  ;;  %v11899_v45 = vsub.f32 %v11798_v34, %v4180_v17 }
0x20ff   :  { %4243 = vadd.xlane.f32.xlu1 %v4242_v31  ;;  %v4166_v9 = vpop.xlane.xlu1 %4165 }
0x2100   :  { %v4182_v60 = vmul.f32 0.03125, %v4166_v9  ;;  %v4212_v56 = vmul.f32 %v11899_v45, %v11899_v45 }
0x2102   :  { %v11905_v27 = vsub.f32 %v11803_v22, %v4182_v60  ;;  %v4254_v62 = vsel %vm534_vm2, %v4212_v56, 0.0  ;;  %v11914_v22 = vpop.permute.xlu0 %5603 }
0x2103   :  { %4246 = vadd.xlane.f32.xlu1 %v4245_v39  ;;  %v4241_v58 = vpop.xlane.xlu1 %4240 }
0x2104   :  { %v4214_v34 = vmul.f32 %v11905_v27, %v11905_v27  ;;  %v4271_v4 = vmul.f32 0.03125, %v4241_v58 }
0x2106   :  { %v4260_v41 = vsel %vm534_vm2, %v4214_v34, 0.0  ;;  %v4287_v59 = vadd.f32 1e-05, %v4271_v4 }
0x2107   :  { %4249 = vadd.xlane.f32.xlu1 %v4248_v53 }
0x2108   :  { %9614 = vrsqrt.f32 %v4287_v59 }
0x210b   :  { %4252 = vadd.xlane.f32.xlu1 %v4251_v32 }
0x210f   :  { %4255 = vadd.xlane.f32.xlu1 %v4254_v62 }
0x2112   :  { %v9615_v1 = vpop.eup %9614 }
0x2113   :  { %4261 = vadd.xlane.f32.xlu1 %v4260_v41  ;;  %v4259_v33 = vpop.xlane.xlu0 %4258  ;;  %v4319_v51 = vmul.f32 %v9615_v1, %v11808_v52 }
0x2114   :  { %v4277_v42 = vmul.f32 0.03125, %v4259_v33 }
0x2115   :  { %v4339_v9 = vmul.f32 %v11721_v26, %v4319_v51 }
0x2116   :  { %v4293_v17 = vadd.f32 1e-05, %v4277_v42 }
0x2117   :  { %v11919_v62 = vadd.f32 %v11726_v13, %v4339_v9 }
0x218c   :  { %v4244_v18 = vpop.xlane.xlu1 %4243 }
0x218d   :  { %v4272_v29 = vmul.f32 0.03125, %v4244_v18 }
0x218f   :  { %v4288_v54 = vadd.f32 1e-05, %v4272_v29 }
0x2190   :  { %v4247_v48 = vpop.xlane.xlu1 %4246 }
0x2191   :  { %9616 = vrsqrt.f32 %v4288_v54  ;;  %v4273_v20 = vmul.f32 0.03125, %v4247_v48 }
0x2193   :  { %v4289_v44 = vadd.f32 1e-05, %v4273_v20 }
0x2194   :  { %v4250_v31 = vpop.xlane.xlu1 %4249 }
0x2195   :  { %9618 = vrsqrt.f32 %v4289_v44  ;;  %v4274_v15 = vmul.f32 0.03125, %v4250_v31 }
0x2197   :  { %v4290_v39 = vadd.f32 1e-05, %v4274_v15 }
0x2198   :  { %v4253_v5 = vpop.xlane.xlu1 %4252 }
0x2199   :  { %9620 = vrsqrt.f32 %v4290_v39  ;;  %v4275_v60 = vmul.f32 0.03125, %v4253_v5 }
0x219a   :  { %9622 = vrsqrt.f32 %v4293_v17 }
0x219b   :  { %v9617_v53 = vpop.eup %9616  ;;  %v4291_v12 = vadd.f32 1e-05, %v4275_v60 }
0x219c   :  { %v4320_v32 = vmul.f32 %v9617_v53, %v4192_v7  ;;  %v4256_v56 = vpop.xlane.xlu1 %4255  ;;  %v5581_v7 = vadd.f32 %v11743_v61, %v11919_v62 }
0x219d   :  { %9624 = vrsqrt.f32 %v4291_v12  ;;  %v4276_v52 = vmul.f32 0.03125, %v4256_v56 }
0x219e   :  { %v8727_v34 = vpop.f32.mrb[160].mxu0  ;;  %v4340_v41 = vmul.f32 %v11721_v26, %v4320_v32 }
0x219f   :  { %v9619_v58 = vpop.eup %9618  ;;  %v4292_v4 = vadd.f32 1e-05, %v4276_v52  ;;  %v5664_v59 = vpop.f32.mrb[161].mxu0  ;;  %v5673_v48 = vadd.f32 %v8727_v34, %v11914_v22 }
0x21a0   :  { %v4321_v18 = vmul.f32 %v9619_v58, %v11882_v6  ;;  %v4262_v29 = vpop.xlane.xlu1 %4261  ;;  %v8728_v54 = vpop.f32.mrb[162].mxu0  ;;  %v11924_v33 = vadd.f32 %v11726_v13, %v4340_v41  ;;  %v5665_v44 = vadd.f32 %v5664_v59, %v11914_v22 }
0x21a1   :  { %9626 = vrsqrt.f32 %v4292_v4  ;;  %v4278_v1 = vmul.f32 0.03125, %v4262_v29  ;;  %v5676_v20 = vadd.f32 %v8728_v54, %v11914_v22  ;;  %v5667_v42 = vpop.f32.mrb[163].mxu0 }
0x21a2   :  { %v5668_v51 = vadd.f32 %v5667_v42, %v11914_v22  ;;  %v5582_v6 = vadd.f32 %v11748_v49, %v11924_v33  ;;  %v4341_v31 = vmul.f32 %v11721_v26, %v4321_v18 }
0x21a3   :  { %v9621_v15 = vpop.eup %9620  ;;  %v4294_v17 = vadd.f32 1e-05, %v4278_v1  ;;  %v11935_v39 = vpack.c.bf16 %v5676_v20, %v5673_v48 }
0x21a4   :  { %v4322_v61 = vmul.f32 %v9621_v15, %v11886_v38  ;;  %v11938_v5 = vpack.c.bf16 %v5668_v51, %v5665_v44  ;;  %v5593_v9 = vpack.c.bf16 %v5582_v6, %v5581_v7  ;;  %v9623_v60 = vpop.eup %9622  ;;  %v11941_v53 = vadd.f32 %v11726_v13, %v4341_v31 }
0x21a5   :  { %9628 = vrsqrt.f32 %v4294_v17  ;;  %v4325_v52 = vmul.f32 %v9623_v60, %v11818_v3 }
0x21a6   :  { %v8731_v12 = vpop.f32.mrb[164].mxu0  ;;  %8733 = vmatprep.mubr.msk.bf16.mxu0 %vm534_vm2, %v5593_v9  ;;  %5992 = vrot.lane.b32.xlu1 %v11938_v5, %s9710_s7  ;;  %v5878_v49 = vsel %vm765_vm3, %v11938_v5, 0  ;;  %v4342_v32 = vmul.f32 %v11721_v26, %v4322_v61  ;;  %v5583_v54 = vadd.f32 %v11839_v21, %v11941_v53 }
0x21a7   :  { %v9625_v38 = vpop.eup %9624  ;;  %v5680_v56 = vpop.f32.mrb[165].mxu0  ;;  %8762 = vmatpush3.bf16.xpose.msra.mxu0 %v5878_v49  ;;  %v5689_v4 = vadd.f32 %v8731_v12, %v11914_v22  ;;  %v4345_v51 = vmul.f32 %v11721_v26, %v4325_v52 }
0x21a8   :  { %v4323_v34 = vmul.f32 %v9625_v38, %v11893_v40  ;;  %v8732_v41 = vpop.f32.mrb[166].mxu0  ;;  %v11952_v58 = vadd.f32 %v11726_v13, %v4342_v32  ;;  %8763 = vmatprep.subr.bf16.mxu0 %v9724_v63  ;;  %v5681_v59 = vadd.f32 %v5680_v56, %v11914_v22 }
0x21a9   :  { %v5692_v18 = vadd.f32 %v8732_v41, %v11914_v22  ;;  %v5683_v29 = vpop.f32.mrb[167].mxu0  ;;  %v4365_v49 = vadd.f32 %v11726_v13, %v4345_v51 }
0x21aa   :  { %v5684_v3 = vadd.f32 %v5683_v29, %v11914_v22  ;;  %5994 = vrot.lane.b32.xlu1 %v11935_v39, %s9710_s7  ;;  %v5584_v40 = vadd.f32 %v11829_v10, %v11952_v58  ;;  %v4343_v7 = vmul.f32 %v11721_v26, %v4323_v34  ;;  %v5732_v48 = vpack.c.bf16 %v11952_v58, %v11941_v53 }
0x21ab   :  { %v9627_v1 = vpop.eup %9626  ;;  %v11968_v20 = vpack.c.bf16 %v5692_v18, %v5689_v4  ;;  %v5881_v10 = vsel %vm765_vm3, %v11935_v39, 0  ;;  %v5587_v18 = vadd.f32 %v11861_v8, %v4365_v49 }
0x21ac   :  { %v4324_v42 = vmul.f32 %v9627_v1, %v11899_v45  ;;  %v11971_v44 = vpack.c.bf16 %v5684_v3, %v5681_v59  ;;  %v5594_v21 = vpack.c.bf16 %v5584_v40, %v5583_v54  ;;  %v11983_v45 = vadd.f32 %v11726_v13, %v4343_v7 }
0x21ad   :  { %5998 = vrot.lane.b32.xlu0 %v11968_v20, %s9710_s7 }
0x21ae   :  { %8734 = vmatmul.mubr.msk.bf16.gmra.mrb[168].mxu0 %vm534_vm2, %v5594_v21  ;;  %5996 = vrot.lane.b32.xlu1 %v11971_v44, %s9710_s7  ;;  %v4344_v6 = vmul.f32 %v11721_v26, %v4324_v42  ;;  %v5585_v56 = vadd.f32 %v11844_v50, %v11983_v45  ;;  %v5884_v59 = vsel %vm765_vm3, %v11971_v44, 0  ;;  %v5731_v42 = vpack.c.bf16 %v11924_v33, %v11919_v62 }
0x21af   :  { %v9629_v31 = vpop.eup %9628  ;;  %v5566_v15 = vpop.f32.mrb[148].mxu1  ;;  %8764 = vmatpush3.bf16.xpose.msra.mxu0 %v5881_v10 }
0x21b0   :  { %v4326_v17 = vmul.f32 %v9629_v31, %v11905_v27  ;;  %v5567_v61 = vadd.f32 %v11700_v23, %v5566_v15  ;;  %v8719_v9 = vpop.f32.mrb[149].mxu1  ;;  %v4364_v60 = vadd.f32 %v11726_v13, %v4344_v6  ;;  %8765 = vmatprep.subr.bf16.mxu0 %v9724_v63 }
0x21b1   :  { %v11989_v12 = vpop.f32.mrb[150].mxu1 }
0x21b2   :  { %v11992_v32 = vpack.c.bf16 %v5567_v61, %v5567_v61  ;;  %v8720_v38 = vpop.f32.mrb[151].mxu1  ;;  %v5586_v52 = vadd.f32 %v11834_v2, %v4364_v60  ;;  %v4346_v27 = vmul.f32 %v11721_v26, %v4326_v17  ;;  %v5733_v34 = vpack.c.bf16 %v4364_v60, %v11983_v45 }
0x21b4   :  { %5986 = vrot.lane.b32.xlu1 %v11992_v32, %s9710_s7  ;;  %v5595_v41 = vpack.c.bf16 %v5586_v52, %v5585_v56  ;;  %v4366_v4 = vadd.f32 %v11726_v13, %v4346_v27  ;;  %v5887_v13 = vsel %vm765_vm3, %v11968_v20, 0 }
0x21b6   :  { %8737 = vmatprep.mubr.msk.bf16.mxu0 %vm534_vm2, %v5595_v41  ;;  %v5588_v50 = vadd.f32 %v11855_v19, %v4366_v4  ;;  %v5734_v43 = vpack.c.bf16 %v4366_v4, %v4365_v49 }
0x21b7   :  { %8766 = vmatpush3.bf16.xpose.msra.mxu0 %v5884_v59 }
0x21b8   :  { %5735 = vrot.lane.b32.xlu1 %v11595_v46, %s9708_s5  ;;  %v5596_v26 = vpack.c.bf16 %v5588_v50, %v5587_v18  ;;  %8767 = vmatprep.subr.bf16.mxu0 %v9724_v63 }
0x21ba   :  { %8738 = vmatmul.mubr.msk.bf16.gmra.mrb[172].mxu0 %vm534_vm2, %v5596_v26 }
0x21bb   :  { %8769 = vmatprep.mubr.msk.bf16.mxu0 %vm9727_vm6, %v9724_v63 }
0x21bc   :  { %5737 = vrot.lane.b32.xlu1 %v11656_v11, %s9708_s5 }
0x21bf   :  { %8768 = vmatpush3.bf16.xpose.msra.mxu0 %v5887_v13 }
0x21c0   :  { %8785 = vmatprep.subr.bf16.mxu0 %v9724_v63 }
0x21c6   :  { %8770 = vmatmul.mubr.msk.bf16.vlgmr.msra.gmra.mrb[176].mxu0 %vm765_vm3, %v11992_v32 }
0x21c7   :  { %8793 = vmatprep.mubr.msk.bf16.mxu0 %vm9727_vm6, %v9724_v63 }
0x2218   :  { %v5993_v46 = vpop.permute.xlu1 %5992 }
0x2219   :  { %v6004_v2 = vsel %vm765_vm3, %v5993_v46, 0 }
0x221a   :  { %8786 = vmatpush3.bf16.xpose.msra.mxu0 %v6004_v2 }
0x221b   :  { %8787 = vmatprep.subr.bf16.mxu0 %v9724_v63 }
0x221c   :  { %v5995_v19 = vpop.permute.xlu1 %5994 }
0x221d   :  { %v6007_v11 = vsel %vm765_vm3, %v5995_v19, 0 }
0x221f   :  { %v5999_v40 = vpop.permute.xlu0 %5998 }
0x2220   :  { %v5997_v8 = vpop.permute.xlu1 %5996  ;;  %v6013_v1 = vsel %vm765_vm3, %v5999_v40, 0 }
0x2221   :  { %v6010_v54 = vsel %vm765_vm3, %v5997_v8, 0 }
0x2222   :  { %8788 = vmatpush3.bf16.xpose.msra.mxu0 %v6007_v11 }
0x2223   :  { %8789 = vmatprep.subr.bf16.mxu0 %v9724_v63 }
0x2226   :  { %v5987_v29 = vpop.permute.xlu1 %5986 }
0x222a   :  { %v5736_v3 = vpop.permute.xlu1 %5735  ;;  %8790 = vmatpush3.bf16.xpose.msra.mxu0 %v6010_v54 }
0x222b   :  { %8741 = vmatprep.subr.bf16.mxu1 %v5736_v3  ;;  %8791 = vmatprep.subr.bf16.mxu0 %v9724_v63 }
0x222c   :  { %8742 = vmatpush3.bf16.msra.mxu1 %v5736_v3 }
0x222e   :  { %v5738_v7 = vpop.permute.xlu1 %5737 }
0x222f   :  { %8743 = vmatprep.subr.bf16.mxu1 %v5738_v7 }
0x2230   :  { %8744 = vmatpush3.bf16.msra.mxu1 %v5738_v7 }
0x2231   :  { %8773 = vmatprep.subr.bf16.mxu1 %v9724_v63 }
0x2232   :  { %8792 = vmatpush3.bf16.xpose.msra.mxu0 %v6013_v1 }
0x2233   :  { %8746 = vmatmul.mubr.msk.bf16.vlgmr.msra.gmra.mrb[152].mxu1 %vm534_vm2, %v5728_v24  ;;  %8821 = vmatprep.subr.bf16.mxu0 %v9724_v63 }
0x2234   :  { %8749 = vmatprep.mubr.msk.bf16.mxu1 %vm534_vm2, %v5729_v57 }
0x2239   :  { %8794 = vmatmul.mubr.msk.bf16.vlgmr.msra.gmra.mrb[180].mxu0 %vm765_vm3, %v5987_v29 }
0x223a   :  { %8829 = vmatprep.mubr.msk.bf16.mxu0 %vm9727_vm6, %v9724_v63 }
0x223b   :  { %8750 = vmatmul.mubr.msk.bf16.gmra.mrb[156].mxu1 %vm534_vm2, %v5730_v25 }
0x223c   :  { %8753 = vmatprep.mubr.msk.bf16.mxu1 %vm534_vm2, %v5731_v42 }
0x2243   :  { %8754 = vmatmul.mubr.msk.bf16.gmra.mrb[160].mxu1 %vm534_vm2, %v5732_v48 }
0x2244   :  { %8757 = vmatprep.mubr.msk.bf16.mxu1 %vm534_vm2, %v5733_v34 }
0x224b   :  { %8758 = vmatmul.mubr.msk.bf16.gmra.mrb[164].mxu1 %vm534_vm2, %v5734_v43 }
0x224c   :  { %8781 = vmatprep.mubr.msk.bf16.mxu1 %vm9727_vm6, %v9724_v63 }
0x2281   :  { %v8735_v36 = vpop.f32.mrb[168].mxu0 }
0x2282   :  { %v5696_v24 = vpop.f32.mrb[169].mxu0  ;;  %v5705_v37 = vadd.f32 %v8735_v36, %v11914_v22 }
0x2283   :  { %v8736_v35 = vpop.f32.mrb[170].mxu0  ;;  %v5697_v47 = vadd.f32 %v5696_v24, %v11914_v22 }
0x2284   :  { %v5708_v57 = vadd.f32 %v8736_v35, %v11914_v22  ;;  %v5699_v14 = vpop.f32.mrb[171].mxu0 }
0x2285   :  { %v5700_v25 = vadd.f32 %v5699_v14, %v11914_v22 }
0x2286   :  { %v12061_v62 = vpack.c.bf16 %v5708_v57, %v5705_v37 }
0x2287   :  { %v12063_v33 = vpack.c.bf16 %v5700_v25, %v5697_v47 }
0x228d   :  { %v8739_v53 = vpop.f32.mrb[172].mxu0 }
0x228e   :  { %v5712_v58 = vpop.f32.mrb[173].mxu0  ;;  %v5721_v21 = vadd.f32 %v8739_v53, %v11914_v22 }
0x228f   :  { %v8740_v48 = vpop.f32.mrb[174].mxu0  ;;  %v5713_v6 = vadd.f32 %v5712_v58, %v11914_v22 }
0x2290   :  { %v5724_v51 = vadd.f32 %v8740_v48, %v11914_v22  ;;  %v5715_v10 = vpop.f32.mrb[175].mxu0 }
0x2291   :  { %v5716_v45 = vadd.f32 %v5715_v10, %v11914_v22 }
0x2292   :  { %v12069_v31 = vpack.c.bf16 %v5724_v51, %v5721_v21 }
0x2293   :  { %v12071_v15 = vpack.c.bf16 %v5716_v45, %v5713_v6 }
0x2299   :  { %v5923_v17 = vpop.f32.mrb[176].mxu0 }
0x229a   :  { %v5929_v61 = vmul.f32 0.35355338, %v5923_v17  ;;  %v8771_v9 = vpop.f32.mrb[177].mxu0 }
0x229b   :  { %v5926_v60 = vpop.f32.mrb[178].mxu0 }
0x229c   :  { %v8772_v49 = vpop.f32.mrb[179].mxu0  ;;  %v5930_v38 = vsel %vm371_vm1, %v5929_v61, -inf }
0x229d   :  { %5931 = vmax.xlane.f32.xlu1 %v5930_v38 }
0x22ae   :  { %5741 = vrot.lane.b32.xlu1 %v11700_v23, %s9708_s5 }
0x2306   :  { %v8747_v56 = vpop.f32.mrb[152].mxu1 }
0x2307   :  { %v5802_v52 = vpop.f32.mrb[153].mxu1 }
0x2308   :  { %v8748_v27 = vpop.f32.mrb[154].mxu1 }
0x2309   :  { %v5805_v34 = vpop.f32.mrb[155].mxu1 }
0x230c   :  { %v6049_v22 = vpop.f32.mrb[180].mxu0 }
0x230d   :  { %v12076_v41 = vmul.f32 0.35355338, %v6049_v22  ;;  %v8795_v4 = vpop.f32.mrb[181].mxu0 }
0x230e   :  { %v8751_v59 = vpop.f32.mrb[156].mxu1  ;;  %v6052_v18 = vpop.f32.mrb[182].mxu0 }
0x230f   :  { %v5818_v50 = vpop.f32.mrb[157].mxu1  ;;  %v8796_v26 = vpop.f32.mrb[183].mxu0  ;;  %v6056_v13 = vsel %vm371_vm1, %v12076_v41, -inf }
0x2310   :  { %v8752_v46 = vpop.f32.mrb[158].mxu1  ;;  %6057 = vmax.xlane.f32.xlu0 %v6056_v13 }
0x2311   :  { %v5821_v2 = vpop.f32.mrb[159].mxu1 }
0x2316   :  { %v8755_v19 = vpop.f32.mrb[160].mxu1 }
0x2317   :  { %v5834_v23 = vpop.f32.mrb[161].mxu1 }
0x2318   :  { %v8756_v11 = vpop.f32.mrb[162].mxu1 }
0x2319   :  { %v5837_v8 = vpop.f32.mrb[163].mxu1 }
0x231e   :  { %v8759_v29 = vpop.f32.mrb[164].mxu1 }
0x231f   :  { %v5850_v54 = vpop.f32.mrb[165].mxu1 }
0x2320   :  { %v8760_v3 = vpop.f32.mrb[166].mxu1 }
0x2321   :  { %v5853_v40 = vpop.f32.mrb[167].mxu1 }
0x232a   :  { %v5932_v7 = vpop.xlane.xlu1 %5931 }
0x232b   :  { %v5933_v1 = vsub.f32 %v5929_v61, %v5932_v7 }
0x232d   :  { %v5934_v42 = vmul.f32 1.442695, %v5933_v1 }
0x232e   :  { %v5742_v43 = vpop.permute.xlu1 %5741 }
0x232f   :  { %9630 = vpow2.f32 %v5934_v42  ;;  %v5811_v36 = vadd.f32 %v8747_v56, %v5742_v43  ;;  %v5814_v24 = vadd.f32 %v8748_v27, %v5742_v43  ;;  %v5803_v35 = vadd.f32 %v5802_v52, %v5742_v43 }
0x2330   :  { %v5806_v37 = vadd.f32 %v5805_v34, %v5742_v43  ;;  %v5819_v57 = vadd.f32 %v5818_v50, %v5742_v43  ;;  %v5822_v14 = vadd.f32 %v5821_v2, %v5742_v43  ;;  %v5827_v47 = vadd.f32 %v8751_v59, %v5742_v43 }
0x2331   :  { %v12080_v25 = vpack.c.bf16 %v5814_v24, %v5811_v36  ;;  %v5830_v53 = vadd.f32 %v8752_v46, %v5742_v43  ;;  %v5835_v58 = vadd.f32 %v5834_v23, %v5742_v43  ;;  %v5838_v48 = vadd.f32 %v5837_v8, %v5742_v43 }
0x2332   :  { %v12082_v21 = vpack.c.bf16 %v5806_v37, %v5803_v35  ;;  %v12084_v51 = vpack.c.bf16 %v5822_v14, %v5819_v57  ;;  %v5843_v10 = vadd.f32 %v8755_v19, %v5742_v43  ;;  %v5846_v6 = vadd.f32 %v8756_v11, %v5742_v43 }
0x2333   :  { %6074 = vrot.lane.b32.xlu1 %v12080_v25, %s9710_s7  ;;  %v12088_v45 = vpack.c.bf16 %v5830_v53, %v5827_v47  ;;  %v12090_v17 = vpack.c.bf16 %v5838_v48, %v5835_v58  ;;  %v5851_v61 = vadd.f32 %v5850_v54, %v5742_v43  ;;  %v5854_v9 = vadd.f32 %v5853_v40, %v5742_v43 }
0x2334   :  { %8774 = vmatpush3.bf16.msra.mxu1 %v12082_v21  ;;  %v12093_v60 = vpack.c.bf16 %v5846_v6, %v5843_v10  ;;  %v5859_v49 = vadd.f32 %v8759_v29, %v5742_v43  ;;  %v5862_v38 = vadd.f32 %v8760_v3, %v5742_v43 }
0x2335   :  { %8775 = vmatprep.subr.bf16.mxu1 %v9724_v63  ;;  %v12096_v56 = vpack.c.bf16 %v5854_v9, %v5851_v61 }
0x2336   :  { %v12098_v52 = vpack.c.bf16 %v5862_v38, %v5859_v49 }
0x2337   :  { %6076 = vrot.lane.b32.xlu1 %v12084_v51, %s9710_s7 }
0x2338   :  { %8776 = vmatpush3.bf16.msra.mxu1 %v12080_v25 }
0x2339   :  { %v9631_v27 = vpop.eup %9630  ;;  %8777 = vmatprep.subr.bf16.mxu1 %v9724_v63 }
0x233a   :  { %v5936_v34 = vsel %vm371_vm1, %v9631_v27, 0.0 }
0x233b   :  { %6078 = vrot.lane.b32.xlu1 %v12088_v45, %s9710_s7  ;;  %5937 = vadd.xlane.f32.xlu0 %v5936_v34 }
0x233c   :  { %8778 = vmatpush3.bf16.msra.mxu1 %v12084_v51 }
0x233d   :  { %8779 = vmatprep.subr.bf16.mxu1 %v9724_v63 }
0x233f   :  { %6129 = vrot.lane.b32.xlu1 %v11938_v5, %s9713_s10 }
0x2340   :  { %8780 = vmatpush3.bf16.msra.mxu1 %v12088_v45 }
0x2341   :  { %8797 = vmatprep.subr.bf16.mxu1 %v9724_v63 }
0x2343   :  { %6131 = vrot.lane.b32.xlu1 %v11935_v39, %s9713_s10 }
0x2347   :  { %6135 = vrot.lane.b32.xlu1 %v11968_v20, %s9713_s10 }
0x239d   :  { %v6058_v22 = vpop.xlane.xlu0 %6057 }
0x239e   :  { %v6059_v4 = vsub.f32 %v12076_v41, %v6058_v22 }
0x23a0   :  { %v6060_v59 = vmul.f32 1.442695, %v6059_v4 }
0x23a2   :  { %9632 = vpow2.f32 %v6060_v59 }
0x23a5   :  { %v6075_v19 = vpop.permute.xlu1 %6074 }
0x23a9   :  { %v6077_v8 = vpop.permute.xlu1 %6076 }
0x23ac   :  { %v9633_v18 = vpop.eup %9632 }
0x23ad   :  { %v6062_v50 = vsel %vm371_vm1, %v9633_v18, 0.0  ;;  %v6079_v40 = vpop.permute.xlu1 %6078 }
0x23ae   :  { %6063 = vadd.xlane.f32.xlu0 %v6062_v50 }
0x23b1   :  { %v6130_v42 = vpop.permute.xlu1 %6129 }
0x23b2   :  { %v6141_v43 = vsel %vm765_vm3, %v6130_v42, 0 }
0x23b5   :  { %v6132_v36 = vpop.permute.xlu1 %6131 }
0x23b6   :  { %v6144_v24 = vsel %vm765_vm3, %v6132_v36, 0 }
0x23b9   :  { %v6136_v37 = vpop.permute.xlu1 %6135 }
0x23ba   :  { %v6150_v57 = vsel %vm765_vm3, %v6136_v37, 0 }
0x23c4   :  { %6072 = vrot.lane.b32.xlu0 %v12082_v21, %s9710_s7 }
0x23c8   :  { %6133 = vrot.lane.b32.xlu0 %v11971_v44, %s9713_s10  ;;  %v5938_v26 = vpop.xlane.xlu0 %5937 }
0x23c9   :  { %9634 = vrcp.f32 %v5938_v26 }
0x23cc   :  { %6127 = vrot.lane.b32.xlu0 %v11992_v32, %s9713_s10 }
0x23d0   :  { %6205 = vrot.lane.b32.xlu0 %v12082_v21, %s9713_s10 }
0x23d3   :  { %v9635_v41 = vpop.eup %9634 }
0x23d4   :  { %v5940_v13 = vmul.f32 %v9635_v41, %v9631_v27 }
0x23d6   :  { %v5941_v46 = vpack.c.bf16 %v5940_v13, %v5940_v13 }
0x23d8   :  { %8782 = vmatmul.mubr.msk.bf16.vlgmr.msra.gmra.mrb[168].mxu1 %vm371_vm1, %v5941_v46 }
0x23d9   :  { %8805 = vmatprep.mubr.msk.bf16.mxu1 %vm9727_vm6, %v9724_v63 }
0x243b   :  { %v6064_v2 = vpop.xlane.xlu0 %6063 }
0x243c   :  { %9636 = vrcp.f32 %v6064_v2 }
0x243f   :  { %v6073_v23 = vpop.permute.xlu0 %6072 }
0x2440   :  { %8798 = vmatpush3.bf16.msra.mxu1 %v6073_v23 }
0x2441   :  { %8799 = vmatprep.subr.bf16.mxu1 %v9724_v63 }
0x2443   :  { %v6134_v11 = vpop.permute.xlu0 %6133 }
0x2444   :  { %8800 = vmatpush3.bf16.msra.mxu1 %v6075_v19  ;;  %v6147_v35 = vsel %vm765_vm3, %v6134_v11, 0 }
0x2445   :  { %8801 = vmatprep.subr.bf16.mxu1 %v9724_v63 }
0x2446   :  { %v9637_v29 = vpop.eup %9636 }
0x2447   :  { %v6128_v54 = vpop.permute.xlu0 %6127  ;;  %v6066_v3 = vmul.f32 %v9637_v29, %v9633_v18 }
0x2448   :  { %8802 = vmatpush3.bf16.msra.mxu1 %v6077_v8 }
0x2449   :  { %8803 = vmatprep.subr.bf16.mxu1 %v9724_v63  ;;  %v6067_v1 = vpack.c.bf16 %v6066_v3, %v6066_v3 }
0x244b   :  { %v6206_v7 = vpop.permute.xlu0 %6205 }
0x244c   :  { %8804 = vmatpush3.bf16.msra.mxu1 %v6079_v40  ;;  %8822 = vmatpush3.bf16.msra.mxu0 %v6206_v7 }
0x244d   :  { %8809 = vmatprep.subr.bf16.mxu1 %v9724_v63  ;;  %8823 = vmatprep.subr.bf16.mxu0 %v9724_v63 }
0x244f   :  { %8806 = vmatmul.mubr.msk.bf16.vlgmr.msra.gmra.mrb[172].mxu1 %vm371_vm1, %v6067_v1 }
0x2450   :  { %8817 = vmatprep.mubr.msk.bf16.mxu1 %vm9727_vm6, %v9724_v63 }
0x2455   :  { %8810 = vmatpush3.bf16.xpose.msra.mxu1 %v6141_v43 }
0x2456   :  { %8811 = vmatprep.subr.bf16.mxu1 %v9724_v63 }
0x245d   :  { %8812 = vmatpush3.bf16.xpose.msra.mxu1 %v6144_v24 }
0x245e   :  { %8813 = vmatprep.subr.bf16.mxu1 %v9724_v63 }
0x2465   :  { %8814 = vmatpush3.bf16.xpose.msra.mxu1 %v6147_v35 }
0x2466   :  { %8815 = vmatprep.subr.bf16.mxu1 %v9724_v63 }
0x246d   :  { %8816 = vmatpush3.bf16.xpose.msra.mxu1 %v6150_v57 }
0x246e   :  { %8845 = vmatprep.subr.bf16.mxu1 %v9724_v63 }
0x2474   :  { %8818 = vmatmul.mubr.msk.bf16.vlgmr.msra.gmra.mrb[176].mxu1 %vm765_vm3, %v6128_v54 }
0x2475   :  { %8853 = vmatprep.mubr.msk.bf16.mxu1 %vm9727_vm6, %v9724_v63 }
0x24ab   :  { %v12149_v14 = vpop.f32.mrb[168].mxu1 }
0x24ac   :  { %v8783_v47 = vpop.f32.mrb[169].mxu1 }
0x24ad   :  { %v5982_v53 = vpop.f32.mrb[170].mxu1 }
0x24ae   :  { %v8784_v58 = vpop.f32.mrb[171].mxu1 }
0x2522   :  { %v12151_v48 = vpop.f32.mrb[172].mxu1 }
0x2523   :  { %v8807_v10 = vpop.f32.mrb[173].mxu1 }
0x2524   :  { %v6124_v6 = vpop.f32.mrb[174].mxu1 }
0x2525   :  { %v8808_v61 = vpop.f32.mrb[175].mxu1 }
0x2547   :  { %v6186_v9 = vpop.f32.mrb[176].mxu1 }
0x2548   :  { %v6192_v49 = vmul.f32 0.35355338, %v6186_v9  ;;  %v8819_v38 = vpop.f32.mrb[177].mxu1 }
0x2549   :  { %v6189_v27 = vpop.f32.mrb[178].mxu1 }
0x254a   :  { %v8820_v34 = vpop.f32.mrb[179].mxu1  ;;  %v6193_v22 = vsel %vm371_vm1, %v6192_v49, -inf }
0x254b   :  { %6194 = vmax.xlane.f32.xlu1 %v6193_v22  ;;  %v6421_v34 = vsel %vm765_vm3, %v12063_v33, 0  ;;  %v6427_v22 = vsel %vm765_vm3, %v12071_v15, 0 }
0x255c   :  { %6207 = vrot.lane.b32.xlu1 %v12080_v25, %s9713_s10 }
0x2560   :  { %6209 = vrot.lane.b32.xlu1 %v12084_v51, %s9713_s10 }
0x2564   :  { %6262 = vrot.lane.b32.xlu1 %v11938_v5, %s9716_s13 }
0x2568   :  { %6266 = vrot.lane.b32.xlu1 %v11971_v44, %s9716_s13 }
0x256c   :  { %6260 = vrot.lane.b32.xlu1 %v11992_v32, %s9716_s13 }
0x2570   :  { %6340 = vrot.lane.b32.xlu1 %v12080_v25, %s9716_s13 }
0x25d8   :  { %v6195_v4 = vpop.xlane.xlu1 %6194 }
0x25d9   :  { %v6196_v59 = vsub.f32 %v6192_v49, %v6195_v4  ;;  %v6430_v4 = vsel %vm765_vm3, %v12069_v31, 0 }
0x25db   :  { %v6197_v18 = vmul.f32 1.442695, %v6196_v59  ;;  %v12227_v59 = vld [vmem:[%s11697_s21] ss:$0 sm:$0xff]  ;;  %s9740_s21 = smov 27  }
0x25dc   :  { %v6208_v50 = vpop.permute.xlu1 %6207  ;;  %s7602_s22 = sld [smem:[%s12502_s0 + %s9740_s21]]  }
0x25dd   :  { %9638 = vpow2.f32 %v6197_v18  ;;  %8824 = vmatpush3.bf16.msra.mxu0 %v6208_v50  ;;  %v5570_v18 = vadd.f32 %v12227_v59, %v11989_v12 }
0x25de   :  { %8825 = vmatprep.subr.bf16.mxu0 %v9724_v63 }
0x25df   :  { %v12232_v50 = vpack.c.bf16 %v5570_v18, %v5570_v18 }
0x25e0   :  { %v6210_v26 = vpop.permute.xlu1 %6209 }
0x25e1   :  { %8826 = vmatpush3.bf16.msra.mxu0 %v6210_v26 }
0x25e2   :  { %8827 = vmatprep.subr.bf16.mxu0 %v9724_v63 }
0x25e4   :  { %v6263_v46 = vpop.permute.xlu1 %6262 }
0x25e5   :  { %v6274_v19 = vsel %vm765_vm3, %v6263_v46, 0 }
0x25e7   :  { %v9639_v5 = vpop.eup %9638 }
0x25e8   :  { %v6199_v44 = vsel %vm371_vm1, %v9639_v5, 0.0  ;;  %v6267_v23 = vpop.permute.xlu1 %6266 }
0x25e9   :  { %6200 = vadd.xlane.f32.xlu0 %v6199_v44  ;;  %v6280_v11 = vsel %vm765_vm3, %v6267_v23, 0 }
0x25ec   :  { %v6261_v54 = vpop.permute.xlu1 %6260 }
0x25f0   :  { %v6341_v10 = vpop.permute.xlu1 %6340 }
0x25ff   :  { %6211 = vrot.lane.b32.xlu0 %v12088_v45, %s9713_s10 }
0x2603   :  { %6264 = vrot.lane.b32.xlu0 %v11935_v39, %s9716_s13 }
0x2607   :  { %6268 = vrot.lane.b32.xlu0 %v11968_v20, %s9716_s13 }
0x2676   :  { %v6201_v32 = vpop.xlane.xlu0 %6200 }
0x2677   :  { %9640 = vrcp.f32 %v6201_v32 }
0x267a   :  { %v6212_v25 = vpop.permute.xlu0 %6211 }
0x267b   :  { %8828 = vmatpush3.bf16.msra.mxu0 %v6212_v25 }
0x267c   :  { %8833 = vmatprep.subr.bf16.mxu0 %v9724_v63 }
0x267e   :  { %v6265_v39 = vpop.permute.xlu0 %6264 }
0x267f   :  { %v6277_v20 = vsel %vm765_vm3, %v6265_v39, 0 }
0x2681   :  { %v9641_v41 = vpop.eup %9640 }
0x2682   :  { %v6203_v13 = vmul.f32 %v9641_v41, %v9639_v5  ;;  %v6269_v8 = vpop.permute.xlu0 %6268 }
0x2683   :  { %v6283_v29 = vsel %vm765_vm3, %v6269_v8, 0 }
0x2684   :  { %v6204_v2 = vpack.c.bf16 %v6203_v13, %v6203_v13 }
0x2686   :  { %8830 = vmatmul.mubr.msk.bf16.vlgmr.msra.gmra.mrb[184].mxu0 %vm371_vm1, %v6204_v2 }
0x2687   :  { %8834 = vmatpush3.bf16.xpose.msra.mxu0 %v6274_v19  ;;  %8841 = vmatprep.mubr.msk.bf16.mxu0 %vm9727_vm6, %v9724_v63 }
0x2688   :  { %8835 = vmatprep.subr.bf16.mxu0 %v9724_v63 }
0x268f   :  { %8836 = vmatpush3.bf16.xpose.msra.mxu0 %v6277_v20 }
0x2690   :  { %8837 = vmatprep.subr.bf16.mxu0 %v9724_v63 }
0x2697   :  { %8838 = vmatpush3.bf16.xpose.msra.mxu0 %v6280_v11 }
0x2698   :  { %8839 = vmatprep.subr.bf16.mxu0 %v9724_v63 }
0x269f   :  { %8840 = vmatpush3.bf16.xpose.msra.mxu0 %v6283_v29 }
0x26a0   :  { %8869 = vmatprep.subr.bf16.mxu0 %v9724_v63 }
0x26a6   :  { %8842 = vmatmul.mubr.msk.bf16.vlgmr.msra.gmra.mrb[188].mxu0 %vm765_vm3, %v6261_v54 }
0x26a7   :  { %8870 = vmatpush3.bf16.msra.mxu0 %v12090_v17  ;;  %8877 = vmatprep.mubr.msk.bf16.mxu0 %vm9727_vm6, %v9724_v63 }
0x26a8   :  { %8871 = vmatprep.subr.bf16.mxu0 %v9724_v63 }
0x26ab   :  { %8872 = vmatpush3.bf16.msra.mxu0 %v12093_v60 }
0x26ac   :  { %8873 = vmatprep.subr.bf16.mxu0 %v9724_v63 }
0x26af   :  { %8874 = vmatpush3.bf16.msra.mxu0 %v12096_v56 }
0x26b0   :  { %8875 = vmatprep.subr.bf16.mxu0 %v9724_v63 }
0x26b3   :  { %8876 = vmatpush3.bf16.msra.mxu0 %v12098_v52 }
0x26b4   :  { %8881 = vmatprep.subr.bf16.mxu0 %v9724_v63 }
0x2759   :  { %v12198_v3 = vpop.f32.mrb[184].mxu0 }
0x275a   :  { %v8831_v40 = vpop.f32.mrb[185].mxu0 }
0x275b   :  { %v6257_v7 = vpop.f32.mrb[186].mxu0 }
0x275c   :  { %v8832_v1 = vpop.f32.mrb[187].mxu0 }
0x2779   :  { %v6319_v42 = vpop.f32.mrb[188].mxu0 }
0x277a   :  { %v6325_v43 = vmul.f32 0.35355338, %v6319_v42  ;;  %v8843_v36 = vpop.f32.mrb[189].mxu0 }
0x277b   :  { %v6322_v24 = vpop.f32.mrb[190].mxu0 }
0x277c   :  { %v8844_v35 = vpop.f32.mrb[191].mxu0  ;;  %v6326_v37 = vsel %vm371_vm1, %v6325_v43, -inf }
0x277d   :  { %6327 = vmax.xlane.f32.xlu0 %v6326_v37 }
0x2793   :  { %6338 = vrot.lane.b32.xlu0 %v12082_v21, %s9716_s13 }
0x2797   :  { %6342 = vrot.lane.b32.xlu0 %v12084_v51, %s9716_s13 }
0x280a   :  { %v6328_v57 = vpop.xlane.xlu0 %6327 }
0x280b   :  { %v6329_v47 = vsub.f32 %v6325_v43, %v6328_v57 }
0x280d   :  { %v6330_v53 = vmul.f32 1.442695, %v6329_v47 }
0x280e   :  { %v6339_v58 = vpop.permute.xlu0 %6338 }
0x280f   :  { %9642 = vpow2.f32 %v6330_v53  ;;  %8846 = vmatpush3.bf16.msra.mxu1 %v6339_v58 }
0x2810   :  { %8847 = vmatprep.subr.bf16.mxu1 %v9724_v63 }
0x2812   :  { %v6343_v6 = vpop.permute.xlu0 %6342 }
0x2813   :  { %8848 = vmatpush3.bf16.msra.mxu1 %v6341_v10 }
0x2814   :  { %8849 = vmatprep.subr.bf16.mxu1 %v9724_v63 }
0x2817   :  { %8850 = vmatpush3.bf16.msra.mxu1 %v6343_v6 }
0x2818   :  { %8851 = vmatprep.subr.bf16.mxu1 %v9724_v63 }
0x2819   :  { %v9643_v21 = vpop.eup %9642 }
0x281a   :  { %v6332_v61 = vsel %vm371_vm1, %v9643_v21, 0.0 }
0x281b   :  { %6333 = vadd.xlane.f32.xlu1 %v6332_v61 }
0x282c   :  { %6344 = vrot.lane.b32.xlu1 %v12088_v45, %s9716_s13  ;;  %v6424_v45 = vsel %vm765_vm3, %v12061_v62, 0 }
0x28a8   :  { %v6334_v51 = vpop.xlane.xlu1 %6333 }
0x28a9   :  { %9644 = vrcp.f32 %v6334_v51 }
0x28ac   :  { %v6345_v9 = vpop.permute.xlu1 %6344 }
0x28ad   :  { %8852 = vmatpush3.bf16.msra.mxu1 %v6345_v9 }
0x28ae   :  { %8857 = vmatprep.subr.bf16.mxu1 %v9724_v63 }
0x28b3   :  { %v9645_v49 = vpop.eup %9644 }
0x28b4   :  { %v6336_v38 = vmul.f32 %v9645_v49, %v9643_v21 }
0x28b6   :  { %v6337_v27 = vpack.c.bf16 %v6336_v38, %v6336_v38 }
0x28b8   :  { %8854 = vmatmul.mubr.msk.bf16.vlgmr.msra.gmra.mrb[180].mxu1 %vm371_vm1, %v6337_v27 }
0x28b9   :  { %8858 = vmatpush3.bf16.xpose.msra.mxu1 %v6421_v34  ;;  %8865 = vmatprep.mubr.msk.bf16.mxu1 %vm9727_vm6, %v9724_v63 }
0x28ba   :  { %8859 = vmatprep.subr.bf16.mxu1 %v9724_v63 }
0x28c1   :  { %8860 = vmatpush3.bf16.xpose.msra.mxu1 %v6424_v45 }
0x28c2   :  { %8861 = vmatprep.subr.bf16.mxu1 %v9724_v63 }
0x28c9   :  { %8862 = vmatpush3.bf16.xpose.msra.mxu1 %v6427_v22 }
0x28ca   :  { %8863 = vmatprep.subr.bf16.mxu1 %v9724_v63 }
0x28d1   :  { %8864 = vmatpush3.bf16.xpose.msra.mxu1 %v6430_v4 }
0x28d2   :  { %8893 = vmatprep.subr.bf16.mxu1 %v9724_v63 }
0x28d8   :  { %8866 = vmatmul.mubr.msk.bf16.vlgmr.msra.gmra.mrb[184].mxu1 %vm765_vm3, %v12232_v50 }
0x28d9   :  { %8901 = vmatprep.mubr.msk.bf16.mxu1 %vm9727_vm6, %v9724_v63 }
0x298b   :  { %v12238_v26 = vpop.f32.mrb[180].mxu1 }
0x298c   :  { %v8855_v5 = vpop.f32.mrb[181].mxu1 }
0x298d   :  { %v6390_v44 = vpop.f32.mrb[182].mxu1 }
0x298e   :  { %v8856_v32 = vpop.f32.mrb[183].mxu1 }
0x29ab   :  { %v6466_v25 = vpop.f32.mrb[184].mxu1 }
0x29ac   :  { %v6472_v41 = vmul.f32 0.35355338, %v6466_v25  ;;  %v8867_v13 = vpop.f32.mrb[185].mxu1 }
0x29ad   :  { %v6469_v46 = vpop.f32.mrb[186].mxu1 }
0x29ae   :  { %v8868_v12 = vpop.f32.mrb[187].mxu1  ;;  %v6473_v2 = vsel %vm371_vm1, %v6472_v41, -inf }
0x29af   :  { %6474 = vmax.xlane.f32.xlu0 %v6473_v2 }
0x29c5   :  { %6535 = vrot.lane.b32.xlu0 %v12063_v33, %s9710_s7 }
0x29c9   :  { %6539 = vrot.lane.b32.xlu0 %v12071_v15, %s9710_s7 }
0x29cd   :  { %6529 = vrot.lane.b32.xlu0 %v12232_v50, %s9710_s7 }
0x29d1   :  { %6615 = vrot.lane.b32.xlu0 %v12090_v17, %s9710_s7 }
0x2a3c   :  { %v6475_v19 = vpop.xlane.xlu0 %6474 }
0x2a3d   :  { %v6476_v39 = vsub.f32 %v6472_v41, %v6475_v19 }
0x2a3f   :  { %v6477_v20 = vmul.f32 1.442695, %v6476_v39 }
0x2a40   :  { %v6536_v23 = vpop.permute.xlu0 %6535 }
0x2a41   :  { %9646 = vpow2.f32 %v6477_v20  ;;  %v6547_v36 = vsel %vm765_vm3, %v6536_v23, 0 }
0x2a44   :  { %v6540_v11 = vpop.permute.xlu0 %6539 }
0x2a45   :  { %v6553_v37 = vsel %vm765_vm3, %v6540_v11, 0 }
0x2a48   :  { %v6530_v8 = vpop.permute.xlu0 %6529 }
0x2a4b   :  { %v9647_v29 = vpop.eup %9646 }
0x2a4c   :  { %v6616_v54 = vpop.permute.xlu0 %6615  ;;  %v6479_v40 = vsel %vm371_vm1, %v9647_v29, 0.0 }
0x2a4d   :  { %6480 = vadd.xlane.f32.xlu1 %v6479_v40  ;;  %8894 = vmatpush3.bf16.msra.mxu1 %v6616_v54 }
0x2a4e   :  { %8895 = vmatprep.subr.bf16.mxu1 %v9724_v63 }
0x2a5e   :  { %6537 = vrot.lane.b32.xlu1 %v12061_v62, %s9710_s7 }
0x2a62   :  { %6541 = vrot.lane.b32.xlu1 %v12069_v31, %s9710_s7 }
0x2ada   :  { %v6481_v7 = vpop.xlane.xlu1 %6480 }
0x2adb   :  { %9648 = vrcp.f32 %v6481_v7 }
0x2ade   :  { %v6538_v24 = vpop.permute.xlu1 %6537 }
0x2adf   :  { %v6550_v35 = vsel %vm765_vm3, %v6538_v24, 0 }
0x2ae2   :  { %v6542_v57 = vpop.permute.xlu1 %6541 }
0x2ae3   :  { %v6556_v47 = vsel %vm765_vm3, %v6542_v57, 0 }
0x2ae5   :  { %v9649_v1 = vpop.eup %9648 }
0x2ae6   :  { %v6483_v42 = vmul.f32 %v9649_v1, %v9647_v29 }
0x2ae8   :  { %v6484_v43 = vpack.c.bf16 %v6483_v42, %v6483_v42 }
0x2aea   :  { %8878 = vmatmul.mubr.msk.bf16.vlgmr.msra.gmra.mrb[192].mxu0 %vm371_vm1, %v6484_v43 }
0x2aeb   :  { %8882 = vmatpush3.bf16.xpose.msra.mxu0 %v6547_v36  ;;  %8889 = vmatprep.mubr.msk.bf16.mxu0 %vm9727_vm6, %v9724_v63 }
0x2aec   :  { %8883 = vmatprep.subr.bf16.mxu0 %v9724_v63 }
0x2af3   :  { %8884 = vmatpush3.bf16.xpose.msra.mxu0 %v6550_v35 }
0x2af4   :  { %8885 = vmatprep.subr.bf16.mxu0 %v9724_v63 }
0x2afb   :  { %8886 = vmatpush3.bf16.xpose.msra.mxu0 %v6553_v37 }
0x2afc   :  { %8887 = vmatprep.subr.bf16.mxu0 %v9724_v63 }
0x2b03   :  { %8888 = vmatpush3.bf16.xpose.msra.mxu0 %v6556_v47 }
0x2b04   :  { %8917 = vmatprep.subr.bf16.mxu0 %v9724_v63 }
0x2b0a   :  { %8890 = vmatmul.mubr.msk.bf16.vlgmr.msra.gmra.mrb[196].mxu0 %vm765_vm3, %v6530_v8 }
0x2b0b   :  { %8925 = vmatprep.mubr.msk.bf16.mxu0 %vm9727_vm6, %v9724_v63 }
0x2bbd   :  { %v12269_v53 = vpop.f32.mrb[192].mxu0 }
0x2bbe   :  { %v8879_v58 = vpop.f32.mrb[193].mxu0 }
0x2bbf   :  { %v6525_v10 = vpop.f32.mrb[194].mxu0 }
0x2bc0   :  { %v8880_v6 = vpop.f32.mrb[195].mxu0 }
0x2bdd   :  { %v6592_v21 = vpop.f32.mrb[196].mxu0 }
0x2bde   :  { %v6598_v61 = vmul.f32 0.35355338, %v6592_v21  ;;  %v8891_v51 = vpop.f32.mrb[197].mxu0 }
0x2bdf   :  { %v6595_v9 = vpop.f32.mrb[198].mxu0 }
0x2be0   :  { %v8892_v49 = vpop.f32.mrb[199].mxu0  ;;  %v6599_v38 = vsel %vm371_vm1, %v6598_v61, -inf }
0x2be1   :  { %6600 = vmax.xlane.f32.xlu1 %v6599_v38 }
0x2bf2   :  { %6617 = vrot.lane.b32.xlu1 %v12093_v60, %s9710_s7 }
0x2bf6   :  { %6619 = vrot.lane.b32.xlu1 %v12096_v56, %s9710_s7 }
0x2bfa   :  { %6672 = vrot.lane.b32.xlu1 %v12063_v33, %s9713_s10 }
0x2bfe   :  { %6676 = vrot.lane.b32.xlu1 %v12071_v15, %s9713_s10 }
0x2c02   :  { %6670 = vrot.lane.b32.xlu1 %v12232_v50, %s9713_s10 }
0x2c06   :  { %6750 = vrot.lane.b32.xlu1 %v12093_v60, %s9713_s10 }
0x2c0a   :  { %6754 = vrot.lane.b32.xlu1 %v12098_v52, %s9713_s10 }
0x2c6e   :  { %v6601_v27 = vpop.xlane.xlu1 %6600 }
0x2c6f   :  { %v6602_v34 = vsub.f32 %v6598_v61, %v6601_v27 }
0x2c71   :  { %v6603_v45 = vmul.f32 1.442695, %v6602_v34 }
0x2c72   :  { %v6618_v22 = vpop.permute.xlu1 %6617 }
0x2c73   :  { %9650 = vpow2.f32 %v6603_v45  ;;  %8896 = vmatpush3.bf16.msra.mxu1 %v6618_v22 }
0x2c74   :  { %8897 = vmatprep.subr.bf16.mxu1 %v9724_v63 }
0x2c76   :  { %v6620_v4 = vpop.permute.xlu1 %6619 }
0x2c77   :  { %8898 = vmatpush3.bf16.msra.mxu1 %v6620_v4 }
0x2c78   :  { %8899 = vmatprep.subr.bf16.mxu1 %v9724_v63 }
0x2c7a   :  { %v6673_v13 = vpop.permute.xlu1 %6672 }
0x2c7b   :  { %v6684_v12 = vsel %vm765_vm3, %v6673_v13, 0 }
0x2c7d   :  { %v9651_v18 = vpop.eup %9650 }
0x2c7e   :  { %v6605_v5 = vsel %vm371_vm1, %v9651_v18, 0.0  ;;  %v6677_v39 = vpop.permute.xlu1 %6676 }
0x2c7f   :  { %6606 = vadd.xlane.f32.xlu0 %v6605_v5  ;;  %v6690_v20 = vsel %vm765_vm3, %v6677_v39, 0 }
0x2c82   :  { %v6671_v8 = vpop.permute.xlu1 %6670 }
0x2c86   :  { %v6751_v6 = vpop.permute.xlu1 %6750 }
0x2c95   :  { %6621 = vrot.lane.b32.xlu0 %v12098_v52, %s9710_s7  ;;  %s7593_s7 = sld [smem:[%s12502_s0 + %s9734_s25]]  }
0x2c99   :  { %6674 = vrot.lane.b32.xlu0 %v12061_v62, %s9713_s10 }
0x2c9d   :  { %6678 = vrot.lane.b32.xlu0 %v12069_v31, %s9713_s10 }
0x2d0c   :  { %v6607_v44 = vpop.xlane.xlu0 %6606 }
0x2d0d   :  { %9652 = vrcp.f32 %v6607_v44 }
0x2d10   :  { %v6622_v32 = vpop.permute.xlu0 %6621 }
0x2d11   :  { %8900 = vmatpush3.bf16.msra.mxu1 %v6622_v32 }
0x2d12   :  { %8905 = vmatprep.subr.bf16.mxu1 %v9724_v63 }
0x2d14   :  { %v6675_v2 = vpop.permute.xlu0 %6674 }
0x2d15   :  { %v6687_v19 = vsel %vm765_vm3, %v6675_v2, 0 }
0x2d17   :  { %v9653_v25 = vpop.eup %9652 }
0x2d18   :  { %v6609_v41 = vmul.f32 %v9653_v25, %v9651_v18  ;;  %v6679_v23 = vpop.permute.xlu0 %6678 }
0x2d19   :  { %v6693_v11 = vsel %vm765_vm3, %v6679_v23, 0 }
0x2d1a   :  { %v6610_v46 = vpack.c.bf16 %v6609_v41, %v6609_v41 }
0x2d1c   :  { %8902 = vmatmul.mubr.msk.bf16.vlgmr.msra.gmra.mrb[188].mxu1 %vm371_vm1, %v6610_v46 }
0x2d1d   :  { %8906 = vmatpush3.bf16.xpose.msra.mxu1 %v6684_v12  ;;  %8913 = vmatprep.mubr.msk.bf16.mxu1 %vm9727_vm6, %v9724_v63 }
0x2d1e   :  { %8907 = vmatprep.subr.bf16.mxu1 %v9724_v63 }
0x2d25   :  { %8908 = vmatpush3.bf16.xpose.msra.mxu1 %v6687_v19 }
0x2d26   :  { %8909 = vmatprep.subr.bf16.mxu1 %v9724_v63 }
0x2d2d   :  { %8910 = vmatpush3.bf16.xpose.msra.mxu1 %v6690_v20  ;;  %v9697_v20 = vld [vmem:[%s11592_s11] sm:$0xff]  }
0x2d2e   :  { %8911 = vmatprep.subr.bf16.mxu1 %v9724_v63 }
0x2d35   :  { %8912 = vmatpush3.bf16.xpose.msra.mxu1 %v6693_v11 }
0x2d36   :  { %8941 = vmatprep.subr.bf16.mxu1 %v9724_v63 }
0x2d3c   :  { %8914 = vmatmul.mubr.msk.bf16.vlgmr.msra.gmra.mrb[192].mxu1 %vm765_vm3, %v6671_v8 }
0x2d3d   :  { %8949 = vmatprep.mubr.msk.bf16.mxu1 %vm9727_vm6, %v9724_v63 }
0x2def   :  { %v12310_v29 = vpop.f32.mrb[188].mxu1 }
0x2df0   :  { %v9226_v54 = vpack.i.bf16 %v12310_v29, %v12151_v48  ;;  %v8903_v40 = vpop.f32.mrb[189].mxu1 }
0x2df1   :  { %v6667_v7 = vpop.f32.mrb[190].mxu1 }
0x2df2   :  { %v8904_v1 = vpop.f32.mrb[191].mxu1 }
0x2e0f   :  { %v6729_v42 = vpop.f32.mrb[192].mxu1 }
0x2e10   :  { %v6735_v43 = vmul.f32 0.35355338, %v6729_v42  ;;  %v8915_v36 = vpop.f32.mrb[193].mxu1 }
0x2e11   :  { %v6732_v24 = vpop.f32.mrb[194].mxu1 }
0x2e12   :  { %v8916_v35 = vpop.f32.mrb[195].mxu1  ;;  %v6736_v37 = vsel %vm371_vm1, %v6735_v43, -inf }
0x2e13   :  { %6737 = vmax.xlane.f32.xlu0 %v6736_v37 }
0x2e29   :  { %6748 = vrot.lane.b32.xlu0 %v12090_v17, %s9713_s10 }
0x2e2d   :  { %6752 = vrot.lane.b32.xlu0 %v12096_v56, %s9713_s10  ;;  %s9735_s10 = smov 20  }
0x2e31   :  { %6805 = vrot.lane.b32.xlu0 %v12063_v33, %s9716_s13 }
0x2e35   :  { %6809 = vrot.lane.b32.xlu0 %v12071_v15, %s9716_s13 }
0x2e39   :  { %6803 = vrot.lane.b32.xlu0 %v12232_v50, %s9716_s13  ;;  %v6755_v50 = vpop.permute.xlu1 %6754 }
0x2e3d   :  { %6881 = vrot.lane.b32.xlu0 %v12090_v17, %s9716_s13 }
0x2ea0   :  { %v6738_v57 = vpop.xlane.xlu0 %6737 }
0x2ea1   :  { %v6739_v47 = vsub.f32 %v6735_v43, %v6738_v57 }
0x2ea3   :  { %v6740_v58 = vmul.f32 1.442695, %v6739_v47 }
0x2ea4   :  { %v6749_v10 = vpop.permute.xlu0 %6748 }
0x2ea5   :  { %9654 = vpow2.f32 %v6740_v58  ;;  %8918 = vmatpush3.bf16.msra.mxu0 %v6749_v10 }
0x2ea6   :  { %8919 = vmatprep.subr.bf16.mxu0 %v9724_v63 }
0x2ea8   :  { %v6753_v21 = vpop.permute.xlu0 %6752 }
0x2ea9   :  { %8920 = vmatpush3.bf16.msra.mxu0 %v6751_v6 }
0x2eaa   :  { %8921 = vmatprep.subr.bf16.mxu0 %v9724_v63 }
0x2eac   :  { %v6806_v33 = vpop.permute.xlu0 %6805 }
0x2ead   :  { %8922 = vmatpush3.bf16.msra.mxu0 %v6753_v21  ;;  %v6817_v45 = vsel %vm765_vm3, %v6806_v33, 0 }
0x2eae   :  { %8923 = vmatprep.subr.bf16.mxu0 %v9724_v63 }
0x2eaf   :  { %v9655_v15 = vpop.eup %9654 }
0x2eb0   :  { %v6810_v17 = vpop.permute.xlu0 %6809  ;;  %v6742_v61 = vsel %vm371_vm1, %v9655_v15, 0.0 }
0x2eb1   :  { %6743 = vadd.xlane.f32.xlu1 %v6742_v61  ;;  %8924 = vmatpush3.bf16.msra.mxu0 %v6755_v50 }
0x2eb2   :  { %8929 = vmatprep.subr.bf16.mxu0 %v9724_v63 }
0x2eb4   :  { %v6804_v51 = vpop.permute.xlu0 %6803 }
0x2eb8   :  { %v6882_v9 = vpop.permute.xlu0 %6881 }
0x2eb9   :  { %8942 = vmatpush3.bf16.msra.mxu1 %v6882_v9 }
0x2eba   :  { %8943 = vmatprep.subr.bf16.mxu1 %v9724_v63 }
0x2ec2   :  { %6807 = vrot.lane.b32.xlu1 %v12061_v62, %s9716_s13 }
0x2ec6   :  { %6811 = vrot.lane.b32.xlu1 %v12069_v31, %s9716_s13  ;;  %v6823_v31 = vsel %vm765_vm3, %v6810_v17, 0 }
0x2f3e   :  { %v6744_v49 = vpop.xlane.xlu1 %6743 }
0x2f3f   :  { %9656 = vrcp.f32 %v6744_v49 }
0x2f42   :  { %v6808_v22 = vpop.permute.xlu1 %6807 }
0x2f43   :  { %v6820_v62 = vsel %vm765_vm3, %v6808_v22, 0 }
0x2f46   :  { %v6812_v4 = vpop.permute.xlu1 %6811 }
0x2f47   :  { %v6826_v18 = vsel %vm765_vm3, %v6812_v4, 0 }
0x2f49   :  { %v9657_v38 = vpop.eup %9656 }
0x2f4a   :  { %v6746_v27 = vmul.f32 %v9657_v38, %v9655_v15 }
0x2f4c   :  { %v6747_v34 = vpack.c.bf16 %v6746_v27, %v6746_v27 }
0x2f4e   :  { %8926 = vmatmul.mubr.msk.bf16.vlgmr.msra.gmra.mrb[200].mxu0 %vm371_vm1, %v6747_v34 }
0x2f4f   :  { %8930 = vmatpush3.bf16.xpose.msra.mxu0 %v6817_v45  ;;  %8937 = vmatprep.mubr.msk.bf16.mxu0 %vm9727_vm6, %v9724_v63 }
0x2f50   :  { %8931 = vmatprep.subr.bf16.mxu0 %v9724_v63 }
0x2f57   :  { %8932 = vmatpush3.bf16.xpose.msra.mxu0 %v6820_v62 }
0x2f58   :  { %8933 = vmatprep.subr.bf16.mxu0 %v9724_v63 }
0x2f5f   :  { %8934 = vmatpush3.bf16.xpose.msra.mxu0 %v6823_v31 }
0x2f60   :  { %8935 = vmatprep.subr.bf16.mxu0 %v9724_v63 }
0x2f67   :  { %8936 = vmatpush3.bf16.xpose.msra.mxu0 %v6826_v18 }
0x2f68   :  { %8969 = vmatprep.subr.bf16.mxu0 %v9724_v63 }
0x2f6e   :  { %8938 = vmatmul.mubr.msk.bf16.vlgmr.msra.gmra.mrb[204].mxu0 %vm765_vm3, %v6804_v51 }
0x2f6f   :  { %8977 = vmatprep.mubr.msk.bf16.mxu0 %vm9727_vm6, %v9724_v63 }
0x3021   :  { %v6797_v5 = vpop.f32.mrb[200].mxu0 }
0x3022   :  { %v9231_v44 = vpack.i.bf16 %v6797_v5, %v12198_v3  ;;  %v8927_v32 = vpop.f32.mrb[201].mxu0  ;;  %v9698_v3 = vld [vmem:[%s11592_s11 + $0x8] sm:$0xff]   ;;  %s9739_s11 = smov 25  }
0x3023   :  { %v6800_v25 = vpop.f32.mrb[202].mxu0  ;;  %s7600_s19 = sld [smem:[%s12502_s0 + %s9739_s11]]  }
0x3024   :  { %v8928_v41 = vpop.f32.mrb[203].mxu0 }
0x3041   :  { %v6862_v13 = vpop.f32.mrb[204].mxu0 }
0x3042   :  { %v6868_v46 = vmul.f32 0.35355338, %v6862_v13  ;;  %v8939_v12 = vpop.f32.mrb[205].mxu0 }
0x3043   :  { %v6865_v2 = vpop.f32.mrb[206].mxu0 }
0x3044   :  { %v8940_v19 = vpop.f32.mrb[207].mxu0  ;;  %v6869_v39 = vsel %vm371_vm1, %v6868_v46, -inf }
0x3045   :  { %6870 = vmax.xlane.f32.xlu1 %v6869_v39  ;;  %v9261_v39 = vld [vmem:[%s7593_s7 + $0x8] sm:$0xff]  }
0x3056   :  { %6883 = vrot.lane.b32.xlu1 %v12093_v60, %s9716_s13 }
0x305a   :  { %6885 = vrot.lane.b32.xlu1 %v12096_v56, %s9716_s13 }
0x305e   :  { %6952 = vrot.lane.b32.xlu1 %v9697_v20, %s9719_s16 }
0x3062   :  { %9232 = vrot.lane.b32.xlu1 %v9231_v44, %s9718_s15 }
0x3066   :  { %6954 = vrot.lane.b32.xlu1 %v9698_v3, %s9719_s16 }
0x30d2   :  { %v6871_v23 = vpop.xlane.xlu1 %6870 }
0x30d3   :  { %v6872_v11 = vsub.f32 %v6868_v46, %v6871_v23 }
0x30d5   :  { %v6873_v8 = vmul.f32 1.442695, %v6872_v11 }
0x30d6   :  { %v6884_v40 = vpop.permute.xlu1 %6883 }
0x30d7   :  { %9658 = vpow2.f32 %v6873_v8  ;;  %8944 = vmatpush3.bf16.msra.mxu1 %v6884_v40 }
0x30d8   :  { %8945 = vmatprep.subr.bf16.mxu1 %v9724_v63 }
0x30da   :  { %v6886_v60 = vpop.permute.xlu1 %6885 }
0x30db   :  { %8946 = vmatpush3.bf16.msra.mxu1 %v6886_v60 }
0x30dc   :  { %8947 = vmatprep.subr.bf16.mxu1 %v9724_v63 }
0x30de   :  { %v6953_v35 = vpop.permute.xlu1 %6952 }
0x30e1   :  { %v9659_v56 = vpop.eup %9658 }
0x30e2   :  { %v6875_v7 = vsel %vm371_vm1, %v9659_v56, 0.0 }
0x30e3   :  { %6876 = vadd.xlane.f32.xlu0 %v6875_v7  ;;  %v12413_v7 = vld [vmem:[%s11826_s23] sm:$0xff]  ;;  %s9741_s23 = smov 26  }
0x30e4   :  { %s7601_s5 = sld [smem:[%s12502_s0 + %s9741_s23]]  }
0x30f9   :  { %6887 = vrot.lane.b32.xlu0 %v12098_v52, %s9716_s13  ;;  %v9233_v52 = vpop.permute.xlu1 %9232 }
0x30fa   :  { %v9235_v15 = vunpack.i.h.bf16 %v9233_v52  ;;  %v9234_v50 = vunpack.i.l.bf16 %v9233_v52  ;;  %v7042_v52 = vrot.slane %v12413_v7, %v4349_v16  ;;  %v7801_v16 = vld [vmem:[%s7594_s28] ss:$0 sm:$0xff]  ;;  %s9744_s28 = smov 30  }
0x30fb   :  { %s7605_s6 = sld [smem:[%s12502_s0 + %s9744_s28]]  }
0x30fd   :  { %9227 = vrot.lane.b32.xlu0 %v9226_v54, %s9706_s30  ;;  %v6955_v48 = vpop.permute.xlu1 %6954 }
0x3170   :  { %v6877_v1 = vpop.xlane.xlu0 %6876 }
0x3171   :  { %9660 = vrcp.f32 %v6877_v1  ;;  %v7036_v1 = vrot.slane %v12413_v7, %v4329_v0 }
0x3174   :  { %v6888_v42 = vpop.permute.xlu0 %6887 }
0x3175   :  { %8948 = vmatpush3.bf16.msra.mxu1 %v6888_v42 }
0x3176   :  { %8953 = vmatprep.subr.bf16.mxu1 %v9724_v63 }
0x3178   :  { %v9228_v58 = vpop.permute.xlu0 %9227 }
0x3179   :  { %v9230_v10 = vunpack.i.h.bf16 %v9228_v58  ;;  %v9229_v6 = vunpack.i.l.bf16 %v9228_v58 }
0x317b   :  { %v9661_v43 = vpop.eup %9660  ;;  %v6948_v21 = vsel %vm765_vm3, %v12269_v53, %v9230_v10  ;;  %v6405_v33 = vsel %vm765_vm3, %v12149_v14, %v9229_v6 }
0x317c   :  { %v6879_v36 = vmul.f32 %v9661_v43, %v9659_v56  ;;  %v6406_v51 = vsel %vm2034_vm4, %v6405_v33, %v9234_v50  ;;  %v6949_v9 = vsel %vm2034_vm4, %v6948_v21, %v9235_v15 }
0x317e   :  { %v6880_v24 = vpack.c.bf16 %v6879_v36, %v6879_v36 }
0x3180   :  { %8950 = vmatmul.mubr.msk.bf16.vlgmr.msra.gmra.mrb[196].mxu1 %vm371_vm1, %v6880_v24 }
0x3181   :  { %8954 = vmatpush3.bf16.msra.mxu1 %v6953_v35  ;;  %8957 = vmatprep.mubr.msk.bf16.mxu1 %vm9727_vm6, %v9724_v63 }
0x3182   :  { %8955 = vmatprep.subr.bf16.mxu1 %v9724_v63 }
0x3185   :  { %8956 = vmatpush3.bf16.msra.mxu1 %v6955_v48 }
0x3186   :  { %8961 = vmatprep.subr.bf16.mxu1 %v9724_v63 }
0x3253   :  { %v6930_v29 = vpop.f32.mrb[196].mxu1 }
0x3254   :  { %v9236_v54 = vpack.i.bf16 %v6930_v29, %v12238_v26  ;;  %v8951_v37 = vpop.f32.mrb[197].mxu1 }
0x3255   :  { %v6933_v57 = vpop.f32.mrb[198].mxu1 }
0x3256   :  { %9237 = vrot.lane.b32.xlu0 %v9236_v54, %s9720_s17  ;;  %v8952_v47 = vpop.f32.mrb[199].mxu1 }
0x325a   :  { %6958 = vrot.lane.b32.xlu0 %v12227_v59, %s9719_s16  ;;  %s12406_s16 = sld [smem:[%s12502_s0 + %s9735_s10]]  }
0x3260   :  { %v9262_v20 = vld [vmem:[%s12406_s16] sm:$0xff]   ;;  %v9263_v3 = vld [vmem:[%s12406_s16 + $0x8] sm:$0xff]   ;;  %v9264_v0 = vld [vmem:[%s12406_s16 + $0x10] sm:$0xff]  }
0x3261   :  { %8970 = vmatpush3.bf16.msra.mxu0 %v9262_v20  ;;  %v9265_v57 = vld [vmem:[%s12406_s16 + $0x18] sm:$0xff]   ;;  %s9743_s16 = smov 28  }
0x3262   :  { %8971 = vmatprep.subr.bf16.mxu0 %v9724_v63  ;;  %s7603_s27 = sld [smem:[%s12502_s0 + %s9743_s16]]  }
0x3265   :  { %8972 = vmatpush3.bf16.msra.mxu0 %v9263_v3 }
0x3266   :  { %8973 = vmatprep.subr.bf16.mxu0 %v9724_v63 }
0x3269   :  { %8974 = vmatpush3.bf16.msra.mxu0 %v9264_v0 }
0x326a   :  { %8975 = vmatprep.subr.bf16.mxu0 %v9724_v63 }
0x326d   :  { %8976 = vmatpush3.bf16.msra.mxu0 %v9265_v57 }
0x326e   :  { %8997 = vmatprep.subr.bf16.mxu0 %v9724_v63 }
0x32c8   :  { %v9238_v26 = vpop.permute.xlu0 %9237 }
0x32c9   :  { %v9240_v17 = vunpack.i.h.bf16 %v9238_v26  ;;  %v9239_v61 = vunpack.i.l.bf16 %v9238_v26 }
0x32cb   :  { %v6407_v59 = vsel %vm2043_vm5, %v6406_v51, %v9239_v61  ;;  %v6950_v49 = vsel %vm2043_vm5, %v6949_v9, %v9240_v17  ;;  %v7805_v17 = vld [vmem:[%s7596_s9] ss:$0 sm:$0xff] }
0x32cc   :  { %v6951_v38 = vpack.c.bf16 %v6950_v49, %v6407_v59  ;;  %v6959_v14 = vpop.permute.xlu0 %6958 }
0x32ce   :  { %8958 = vmatmul.mubr.msk.bf16.vlgmr.msra.gmra.mrb[200].mxu1 %vm534_vm2, %v6951_v38 }
0x32cf   :  { %8965 = vmatprep.mubr.msk.bf16.mxu1 %vm9727_vm6, %v9724_v63 }
0x33a1   :  { %v6998_v53 = vpop.f32.mrb[200].mxu1 }
0x33a2   :  { %v6999_v27 = vadd.f32 %v6998_v53, %v6959_v14  ;;  %v8959_v34 = vpop.f32.mrb[201].mxu1 }
0x33a3   :  { %v7001_v45 = vpop.f32.mrb[202].mxu1 }
0x33a4   :  { %v7005_v22 = vadd.f32 %v6999_v27, %v11869_v30  ;;  %v7002_v62 = vadd.f32 %v7001_v45, %v6959_v14  ;;  %v8960_v31 = vpop.f32.mrb[203].mxu1 }
0x33a6   :  { %v7006_v4 = vadd.f32 %v7002_v62, %v11871_v28  ;;  %v7007_v18 = vsel %vm534_vm2, %v7005_v22, 0.0  ;;  %v9260_v28 = vld [vmem:[%s7593_s7] sm:$0xff]   ;;  %s9742_s7 = smov 29  }
0x33a7   :  { %7008 = vadd.xlane.f32.xlu1 %v7007_v18  ;;  %8962 = vmatpush3.bf16.msra.mxu1 %v9260_v28  ;;  %v7235_v28 = vsub.s32 5, %v11128_v55  ;;  %s7604_s15 = sld [smem:[%s12502_s0 + %s9742_s7]]  }
0x33a8   :  { %v7010_v5 = vsel %vm534_vm2, %v7006_v4, 0.0  ;;  %8963 = vmatprep.subr.bf16.mxu1 %v9724_v63 }
0x33a9   :  { %7011 = vadd.xlane.f32.xlu0 %v7010_v5 }
0x33ab   :  { %8964 = vmatpush3.bf16.msra.mxu1 %v9261_v39 }
0x33ac   :  { %8981 = vmatprep.subr.bf16.mxu1 %v9724_v63 }
0x3434   :  { %v7009_v44 = vpop.xlane.xlu1 %7008 }
0x3435   :  { %v7013_v32 = vmul.f32 0.03125, %v7009_v44 }
0x3436   :  { %v7012_v25 = vpop.xlane.xlu0 %7011 }
0x3437   :  { %v7015_v41 = vsub.f32 %v7005_v22, %v7013_v32  ;;  %v7014_v13 = vmul.f32 0.03125, %v7012_v25 }
0x3439   :  { %v7016_v46 = vsub.f32 %v7006_v4, %v7014_v13  ;;  %v7017_v12 = vmul.f32 %v7015_v41, %v7015_v41 }
0x343b   :  { %v7019_v2 = vsel %vm534_vm2, %v7017_v12, 0.0  ;;  %v7018_v30 = vmul.f32 %v7016_v46, %v7016_v46 }
0x343c   :  { %7020 = vadd.xlane.f32.xlu0 %v7019_v2 }
0x343d   :  { %v7022_v19 = vsel %vm534_vm2, %v7018_v30, 0.0 }
0x343e   :  { %7023 = vadd.xlane.f32.xlu1 %v7022_v19  ;;  %v7229_v19 = vsub.s32 4, %v11128_v55 }
0x3440   :  { %v7230_v39 = vrot.slane %v12413_v7, %v7229_v19  ;;  %v9272_v19 = vld [vmem:[%s7604_s15] sm:$0xff]  }
0x34c9   :  { %v7021_v23 = vpop.xlane.xlu0 %7020 }
0x34ca   :  { %v7025_v11 = vmul.f32 0.03125, %v7021_v23  ;;  %v7236_v23 = vrot.slane %v12413_v7, %v7235_v28  ;;  %v9273_v28 = vld [vmem:[%s7604_s15 + $0x8] sm:$0xff]  }
0x34cb   :  { %v7024_v8 = vpop.xlane.xlu1 %7023 }
0x34cc   :  { %v7027_v40 = vadd.f32 1e-05, %v7025_v11  ;;  %v7026_v60 = vmul.f32 0.03125, %v7024_v8 }
0x34ce   :  { %9662 = vrsqrt.f32 %v7027_v40  ;;  %v7028_v56 = vadd.f32 1e-05, %v7026_v60 }
0x34d0   :  { %9664 = vrsqrt.f32 %v7028_v56 }
0x34d8   :  { %v9663_v42 = vpop.eup %9662 }
0x34d9   :  { %v7031_v43 = vmul.f32 %v9663_v42, %v7015_v41 }
0x34da   :  { %v9665_v36 = vpop.eup %9664 }
0x34db   :  { %v7037_v24 = vmul.f32 %v7036_v1, %v7031_v43  ;;  %v7032_v35 = vmul.f32 %v9665_v36, %v7016_v46 }
0x34dd   :  { %v7038_v48 = vmul.f32 %v7036_v1, %v7032_v35  ;;  %v7043_v29 = vadd.f32 %v7042_v52, %v7037_v24 }
0x34df   :  { %v7044_v54 = vadd.f32 %v7042_v52, %v7038_v48 }
0x34e1   :  { %v7049_v37 = vpack.c.bf16 %v7044_v54, %v7043_v29 }
0x34e3   :  { %8966 = vmatmul.mubr.msk.bf16.vlgmr.msra.gmra.mrb[204].mxu1 %vm534_vm2, %v7049_v37 }
0x34e4   :  { %8985 = vmatprep.mubr.msk.bf16.mxu1 %vm9727_vm6, %v9724_v63 }
0x35b6   :  { %v7106_v47 = vpop.f32.mrb[204].mxu1 }
0x35b7   :  { %v7107_v58 = vadd.f32 %v7801_v16, %v7106_v47  ;;  %v8967_v10 = vpop.f32.mrb[205].mxu1  ;;  %v9267_v47 = vld [vmem:[%s7598_s8 + $0x8] sm:$0xff]  }
0x35b8   :  { %v7109_v6 = vpop.f32.mrb[206].mxu1 }
0x35b9   :  { %v7110_v21 = vadd.f32 %v7801_v16, %v7109_v6  ;;  %v8968_v33 = vpop.f32.mrb[207].mxu1  ;;  %v7113_v15 = vmax.f32 %v7107_v58, 0.0  ;;  %v9266_v16 = vld [vmem:[%s7598_s8] sm:$0xff]  }
0x35ba   :  { %8982 = vmatpush3.bf16.msra.mxu1 %v9266_v16  ;;  %v12621_v16 = vlaneseq }
0x35bb   :  { %v7114_v50 = vmax.f32 %v7110_v21, 0.0  ;;  %8983 = vmatprep.subr.bf16.mxu1 %v9724_v63 }
0x35bd   :  { %v7123_v26 = vpack.c.bf16 %v7114_v50, %v7113_v15  ;;  %v7267_v50 = vsub.s32 6, %v11128_v55 }
0x35be   :  { %8984 = vmatpush3.bf16.msra.mxu1 %v9267_v47  ;;  %v7562_v47 = vand.u32 127, %v12621_v16 }
0x35bf   :  { %8978 = vmatmul.mubr.msk.bf16.vlgmr.msra.gmra.mrb[208].mxu0 %vm371_vm1, %v7123_v26  ;;  %8989 = vmatprep.subr.bf16.mxu1 %v9724_v63  ;;  %v7268_v26 = vrot.slane %v12413_v7, %v7267_v50 }
0x35c0   :  { %9001 = vmatprep.mubr.msk.bf16.mxu0 %vm9727_vm6, %v9724_v63  ;;  %vm7563_vm8 = vcmp.ge.s32.totalorder %v7562_v47, 92  ;;  %vm7564_vm9 = vcmp.lt.s32.totalorder %v7562_v47, 96 }
0x35c1   :  { %vm7565_vm10 = vmand %vm7563_vm8, %vm7564_vm9 }
0x3692   :  { %v7192_v61 = vpop.f32.mrb[208].mxu0 }
0x3693   :  { %v7193_v51 = vadd.f32 %v7805_v17, %v7192_v61  ;;  %v8979_v9 = vpop.f32.mrb[209].mxu0 }
0x3694   :  { %v7195_v59 = vpop.f32.mrb[210].mxu0 }
0x3695   :  { %v7199_v49 = vadd.f32 %v7193_v51, %v7043_v29  ;;  %v7196_v38 = vadd.f32 %v7805_v17, %v7195_v59  ;;  %v8980_v14 = vpop.f32.mrb[211].mxu0  ;;  %v7273_v17 = vsub.s32 7, %v11128_v55  ;;  %v9270_v55 = vld [vmem:[%s7602_s22] sm:$0xff]  }
0x3696   :  { %8998 = vmatpush3.bf16.msra.mxu0 %v9270_v55 }
0x3697   :  { %v7200_v53 = vadd.f32 %v7196_v38, %v7044_v54  ;;  %v7201_v27 = vsel %vm534_vm2, %v7199_v49, 0.0  ;;  %v7274_v38 = vrot.slane %v12413_v7, %v7273_v17  ;;  %8999 = vmatprep.subr.bf16.mxu0 %v9724_v63  ;;  %v9271_v7 = vld [vmem:[%s7602_s22 + $0x8] sm:$0xff]  }
0x3698   :  { %7202 = vadd.xlane.f32.xlu0 %v7201_v27 }
0x3699   :  { %v7204_v34 = vsel %vm534_vm2, %v7200_v53, 0.0 }
0x369a   :  { %7205 = vadd.xlane.f32.xlu1 %v7204_v34  ;;  %v9268_v34 = vld [vmem:[%s7600_s19] sm:$0xff]   ;;  %9000 = vmatpush3.bf16.msra.mxu0 %v9271_v7 }
0x3725   :  { %v7203_v45 = vpop.xlane.xlu0 %7202 }
0x3726   :  { %v7207_v22 = vmul.f32 0.03125, %v7203_v45 }
0x3727   :  { %v7206_v62 = vpop.xlane.xlu1 %7205 }
0x3728   :  { %v7209_v31 = vsub.f32 %v7199_v49, %v7207_v22  ;;  %v7208_v4 = vmul.f32 0.03125, %v7206_v62  ;;  %v9269_v22 = vld [vmem:[%s7600_s19 + $0x8] sm:$0xff]  }
0x372a   :  { %v7210_v18 = vsub.f32 %v7200_v53, %v7208_v4  ;;  %v7211_v5 = vmul.f32 %v7209_v31, %v7209_v31 }
0x372c   :  { %v7213_v44 = vsel %vm534_vm2, %v7211_v5, 0.0  ;;  %v7212_v32 = vmul.f32 %v7210_v18, %v7210_v18  ;;  %v7815_v5 = vld [vmem:[%s7601_s5] ss:$0 sm:$0xff] }
0x372d   :  { %7214 = vadd.xlane.f32.xlu0 %v7213_v44 }
0x372e   :  { %v7216_v25 = vsel %vm534_vm2, %v7212_v32, 0.0 }
0x372f   :  { %7217 = vadd.xlane.f32.xlu1 %v7216_v25 }
0x37ba   :  { %v7215_v41 = vpop.xlane.xlu0 %7214 }
0x37bb   :  { %v7219_v13 = vmul.f32 0.03125, %v7215_v41 }
0x37bc   :  { %v7218_v46 = vpop.xlane.xlu1 %7217 }
0x37bd   :  { %v7221_v12 = vadd.f32 1e-05, %v7219_v13  ;;  %v7220_v2 = vmul.f32 0.03125, %v7218_v46 }
0x37bf   :  { %9666 = vrsqrt.f32 %v7221_v12  ;;  %v7222_v30 = vadd.f32 1e-05, %v7220_v2 }
0x37c1   :  { %9668 = vrsqrt.f32 %v7222_v30 }
0x37c9   :  { %v9667_v20 = vpop.eup %9666 }
0x37ca   :  { %v7225_v3 = vmul.f32 %v9667_v20, %v7209_v31 }
0x37cb   :  { %v9669_v11 = vpop.eup %9668 }
0x37cc   :  { %v7231_v8 = vmul.f32 %v7230_v39, %v7225_v3  ;;  %v7226_v40 = vmul.f32 %v9669_v11, %v7210_v18 }
0x37ce   :  { %v7237_v60 = vadd.f32 %v7236_v23, %v7231_v8  ;;  %v7232_v56 = vmul.f32 %v7230_v39, %v7226_v40  ;;  %v7819_v39 = vld [vmem:[%s7603_s27] ss:$0 sm:$0xff] }
0x37d0   :  { %v7239_v1 = vsel %vm534_vm2, %v7237_v60, 0.0  ;;  %v7238_v42 = vadd.f32 %v7236_v23, %v7232_v56 }
0x37d1   :  { %7240 = vadd.xlane.f32.xlu0 %v7239_v1 }
0x37d2   :  { %v7242_v43 = vsel %vm534_vm2, %v7238_v42, 0.0 }
0x37d3   :  { %7243 = vadd.xlane.f32.xlu1 %v7242_v43 }
0x385e   :  { %v7241_v36 = vpop.xlane.xlu0 %7240 }
0x385f   :  { %v7245_v24 = vmul.f32 0.03125, %v7241_v36 }
0x3860   :  { %v7244_v35 = vpop.xlane.xlu1 %7243 }
0x3861   :  { %v7247_v52 = vsub.f32 %v7237_v60, %v7245_v24  ;;  %v7246_v48 = vmul.f32 0.03125, %v7244_v35 }
0x3863   :  { %v7248_v29 = vsub.f32 %v7238_v42, %v7246_v48  ;;  %v7249_v54 = vmul.f32 %v7247_v52, %v7247_v52 }
0x3865   :  { %v7251_v37 = vsel %vm534_vm2, %v7249_v54, 0.0  ;;  %v7250_v0 = vmul.f32 %v7248_v29, %v7248_v29 }
0x3866   :  { %7252 = vadd.xlane.f32.xlu0 %v7251_v37 }
0x3867   :  { %v7254_v57 = vsel %vm534_vm2, %v7250_v0, 0.0 }
0x3868   :  { %7255 = vadd.xlane.f32.xlu1 %v7254_v57 }
0x38f3   :  { %v7253_v58 = vpop.xlane.xlu0 %7252 }
0x38f4   :  { %v7257_v10 = vmul.f32 0.03125, %v7253_v58  ;;  %v7811_v58 = vld [vmem:[%s7599_s3] ss:$0 sm:$0xff] }
0x38f5   :  { %v7256_v6 = vpop.xlane.xlu1 %7255 }
0x38f6   :  { %v7259_v21 = vadd.f32 1e-05, %v7257_v10  ;;  %v7258_v33 = vmul.f32 0.03125, %v7256_v6 }
0x38f8   :  { %9670 = vrsqrt.f32 %v7259_v21  ;;  %v7260_v15 = vadd.f32 1e-05, %v7258_v33 }
0x38fa   :  { %9672 = vrsqrt.f32 %v7260_v15 }
0x3902   :  { %v9671_v61 = vpop.eup %9670 }
0x3903   :  { %v7263_v51 = vmul.f32 %v9671_v61, %v7247_v52 }
0x3904   :  { %v9673_v9 = vpop.eup %9672 }
0x3905   :  { %v7269_v59 = vmul.f32 %v7268_v26, %v7263_v51  ;;  %v7264_v49 = vmul.f32 %v9673_v9, %v7248_v29 }
0x3907   :  { %v7270_v14 = vmul.f32 %v7268_v26, %v7264_v49  ;;  %v7275_v53 = vadd.f32 %v7274_v38, %v7269_v59 }
0x3909   :  { %v7276_v27 = vadd.f32 %v7274_v38, %v7270_v14 }
0x390b   :  { %v7281_v45 = vpack.c.bf16 %v7276_v27, %v7275_v53 }
0x390d   :  { %8986 = vmatmul.mubr.msk.bf16.vlgmr.msra.gmra.mrb[208].mxu1 %vm534_vm2, %v7281_v45 }
0x390e   :  { %8990 = vmatpush3.bf16.msra.mxu1 %v9268_v34  ;;  %8993 = vmatprep.mubr.msk.bf16.mxu1 %vm9727_vm6, %v9724_v63 }
0x390f   :  { %8991 = vmatprep.subr.bf16.mxu1 %v9724_v63 }
0x3912   :  { %8992 = vmatpush3.bf16.msra.mxu1 %v9269_v22 }
0x3913   :  { %9005 = vmatprep.subr.bf16.mxu1 %v9724_v63 }
0x3915   :  { %8994 = vmatmul.mubr.msk.bf16.vlgmr.msra.gmra.mrb[212].mxu1 %vm534_vm2, %v7281_v45 }
0x3916   :  { %9009 = vmatprep.mubr.msk.bf16.mxu1 %vm9727_vm6, %v9724_v63  ;;  %9006 = vmatpush3.bf16.msra.mxu1 %v9272_v19 }
0x3917   :  { %9007 = vmatprep.subr.bf16.mxu1 %v9724_v63  ;;  %v7823_v63 = vld [vmem:[%s7605_s6] ss:$0 sm:$0xff] }
0x391a   :  { %9008 = vmatpush3.bf16.msra.mxu1 %v9273_v28 }
0x39e0   :  { %v12476_v62 = vpop.f32.mrb[208].mxu1 }
0x39e1   :  { %v8987_v31 = vpop.f32.mrb[209].mxu1  ;;  %v7339_v6 = vadd.f32 %v7811_v58, %v12476_v62 }
0x39e2   :  { %v12478_v4 = vpop.f32.mrb[210].mxu1 }
0x39e3   :  { %v8988_v18 = vpop.f32.mrb[211].mxu1  ;;  %v7342_v15 = vadd.f32 %v7811_v58, %v12478_v4 }
0x39e8   :  { %v7402_v44 = vpop.f32.mrb[212].mxu1 }
0x39e9   :  { %v7403_v32 = vadd.f32 %v7815_v5, %v7402_v44  ;;  %v8995_v25 = vpop.f32.mrb[213].mxu1 }
0x39ea   :  { %v7405_v41 = vpop.f32.mrb[214].mxu1 }
0x39eb   :  { %v7406_v13 = vadd.f32 %v7815_v5, %v7405_v41  ;;  %v8996_v46 = vpop.f32.mrb[215].mxu1  ;;  %v7409_v12 = vmax.f32 %v7403_v32, 0.0 }
0x39ed   :  { %v7410_v2 = vmax.f32 %v7406_v13, 0.0 }
0x39ef   :  { %v7415_v30 = vpack.c.bf16 %v7410_v2, %v7409_v12 }
0x39f1   :  { %9002 = vmatmul.mubr.msk.bf16.vlgmr.msra.gmra.mrb[212].mxu0 %vm534_vm2, %v7415_v30 }
0x3ac4   :  { %v7472_v20 = vpop.f32.mrb[212].mxu0 }
0x3ac5   :  { %v7473_v3 = vadd.f32 %v7819_v39, %v7472_v20  ;;  %v9003_v23 = vpop.f32.mrb[213].mxu0 }
0x3ac6   :  { %v7475_v11 = vpop.f32.mrb[214].mxu0 }
0x3ac7   :  { %v7476_v8 = vadd.f32 %v7819_v39, %v7475_v11  ;;  %v9004_v40 = vpop.f32.mrb[215].mxu0  ;;  %v7479_v60 = vmax.f32 %v7473_v3, 0.0 }
0x3ac9   :  { %v7480_v56 = vmax.f32 %v7476_v8, 0.0 }
0x3acb   :  { %v7485_v1 = vpack.c.bf16 %v7480_v56, %v7479_v60 }
0x3acd   :  { %9010 = vmatmul.mubr.msk.bf16.vlgmr.msra.gmra.mrb[216].mxu1 %vm534_vm2, %v7485_v1 }
0x3ba0   :  { %v7542_v42 = vpop.f32.mrb[216].mxu1 }
0x3ba1   :  { %v7543_v43 = vadd.f32 %v7823_v63, %v7542_v42  ;;  %v9011_v36 = vpop.f32.mrb[217].mxu1 }
0x3ba2   :  { %v7545_v24 = vpop.f32.mrb[218].mxu1 }
0x3ba3   :  { %v7827_v35 = vmul.f32 -1.442695, %v7543_v43  ;;  %v7546_v52 = vadd.f32 %v7823_v63, %v7545_v24  ;;  %v9012_v48 = vpop.f32.mrb[219].mxu1 }
0x3ba5   :  { %9674 = vpow2.f32 %v7827_v35  ;;  %v7828_v29 = vmul.f32 -1.442695, %v7546_v52 }
0x3ba7   :  { %9676 = vpow2.f32 %v7828_v29 }
0x3baf   :  { %v9675_v54 = vpop.eup %9674 }
0x3bb0   :  { %v7555_v37 = vadd.f32 1.0, %v9675_v54 }
0x3bb1   :  { %v9677_v0 = vpop.eup %9676 }
0x3bb2   :  { %9678 = vrcp.f32 %v7555_v37  ;;  %v7556_v57 = vadd.f32 1.0, %v9677_v0 }
0x3bb4   :  { %9680 = vrcp.f32 %v7556_v57 }
0x3bbc   :  { %v9679_v10 = vpop.eup %9678 }
0x3bbd   :  { %v7566_v21 = vsel %vm7565_vm10, %v9679_v10, 0.0 }
0x3bbe   :  { %v9681_v33 = vpop.eup %9680  ;;  %v7568_v50 = vadd.f32 %v7566_v21, %v7339_v6 }
0x3bbf   :  { %v7567_v26 = vsel %vm7565_vm10, %v9681_v33, 0.0 }
0x3bc0   :  { %7570 = vst [vmem:[%s7606_s14] sm:$0xff] %v7568_v50  ;;  %v7569_v17 = vadd.f32 %v7567_v26, %v7342_v15 }
0x3bc2   :  { %7571 = vst [vmem:[%s7606_s14 + $0x8] sm:$0xff] %v7569_v17 }

</bundles_post_ra>
